<compile_context>
chip_gen: v5e
topology: v5e:2x2
jax: 0.10.0
libtpu: 0.0.40
codegen_flags: <defaults>
</compile_context>

<pallas_src>
import functools

import jax
import jax.numpy as jnp
import numpy as np
from jax import lax
from jax.experimental import pallas as pl
from jax.experimental.pallas import tpu as pltpu

MARGIN = 0.6
_PAD_LABEL = 0x3FFFFFFF  # sentinel for padded pixels: excluded from every group


# ----------------------------------------------------------------------------
# Pallas kernel: one grid step per class.
# ----------------------------------------------------------------------------
def _tree_triplet_kernel(lo_ref, hi_ref, labels_ref, feats_ref, out_ref,
                         acc_ref, mcs_a_ref, mcs_p_ref, mcs_n_ref,
                         *, max_triplet, t_pad, pad_label, use_while):
    cls = pl.program_id(0)
    lo = lo_ref[cls]                                  # scalar int32 (SMEM)
    hi = hi_ref[cls]
    nrows = labels_ref.shape[0]                       # R (static)

    lbl = labels_ref[...]                             # (R, 128) int32
    m_a = lbl == cls
    m_p = (lbl >= lo) & (lbl < hi) & jnp.logical_not(m_a)
    # ignore=255 pixels land in the negative group (matches PyTorch); only the
    # padding sentinel is excluded.
    m_n = ((lbl < lo) | (lbl >= hi)) & (lbl != pad_label)

    cnt_a = jnp.sum(m_a.astype(jnp.int32))
    cnt_p = jnp.sum(m_p.astype(jnp.int32))
    cnt_n = jnp.sum(m_n.astype(jnp.int32))
    min_size = jnp.minimum(jnp.minimum(cnt_a, cnt_p),
                           jnp.minimum(cnt_n, max_triplet))

    # Each class owns its own (1, 8, 128) output block; default = no contribution.
    out_ref[0] = jnp.zeros((8, 128), jnp.float32)

    @pl.when(min_size > 0)
    def _heavy():
        acc_ref[...] = jnp.zeros(acc_ref.shape, jnp.float32)

        # Inclusive-prefix-sum matrix generated in-kernel: tri[j, i] = 1 iff j <= i.
        i0 = lax.broadcasted_iota(jnp.int32, (128, 128), 0)
        i1 = lax.broadcasted_iota(jnp.int32, (128, 128), 1)
        tri = (i0 <= i1).astype(jnp.float32)

        # Hoisted block-wide cumsums (one matmul per group, reusing the masks).
        # Masked within-chunk rank: 0 for non-members, 1..count for members.
        def masked_csum(mask):
            mf = mask.astype(jnp.float32)
            cs = jnp.dot(mf, tri, preferred_element_type=jnp.float32)  # (R,128)
            return (cs * mf).astype(jnp.int32)

        mcs_a_ref[...] = masked_csum(m_a)
        mcs_p_ref[...] = masked_csum(m_p)
        mcs_n_ref[...] = masked_csum(m_n)

        kkp1 = lax.broadcasted_iota(jnp.int32, (t_pad, 128), 0) + 1   # (t_pad,128)

        def process_chunk(r, ba, bp, bn):
            row_a = mcs_a_ref[pl.ds(r, 1), :]                  # (1,128)
            row_p = mcs_p_ref[pl.ds(r, 1), :]
            row_n = mcs_n_ref[pl.ds(r, 1), :]
            tot_a = jnp.max(row_a)
            tot_p = jnp.max(row_p)
            tot_n = jnp.max(row_n)
            active = (ba < min_size) | (bp < min_size) | (bn < min_size)

            @pl.when(active)
            def _():
                fr = feats_ref[r]                              # (C, 128) lane-dense
                # negatives: rarely skippable -> ungated
                sel_n = ((row_n == kkp1 - bn) & (row_n > 0)).astype(jnp.float32)
                acc_ref[2] = acc_ref[2] + jnp.dot(
                    fr, sel_n.T, preferred_element_type=jnp.float32)

                @pl.when(tot_a > 0)
                def _():
                    sel_a = ((row_a == kkp1 - ba) & (row_a > 0)).astype(jnp.float32)
                    acc_ref[0] = acc_ref[0] + jnp.dot(
                        fr, sel_a.T, preferred_element_type=jnp.float32)

                @pl.when(tot_p > 0)
                def _():
                    sel_p = ((row_p == kkp1 - bp) & (row_p > 0)).astype(jnp.float32)
                    acc_ref[1] = acc_ref[1] + jnp.dot(
                        fr, sel_p.T, preferred_element_type=jnp.float32)

            return tot_a, tot_p, tot_n

        zero = jnp.int32(0)
        if use_while:
            # Early exit once every group has produced min_size members.
            def wcond(carry):
                r, ba, bp, bn = carry
                return (r < nrows) & ((ba < min_size) | (bp < min_size)
                                      | (bn < min_size))

            def wbody(carry):
                r, ba, bp, bn = carry
                ta, tp, tn = process_chunk(r, ba, bp, bn)
                return (r + 1, ba + ta, bp + tp, bn + tn)

            lax.while_loop(wcond, wbody, (zero, zero, zero, zero))
        else:
            # Fallback: full loop, heavy work gated by `active` inside the body.
            def fbody(r, carry):
                ba, bp, bn = carry
                ta, tp, tn = process_chunk(r, ba, bp, bn)
                return (ba + ta, bp + tp, bn + tn)

            lax.fori_loop(0, nrows, fbody, (zero, zero, zero))

        f_a = acc_ref[0]                                       # (C, t_pad)
        f_p = acc_ref[1]
        f_n = acc_ref[2]
        d_pos = jnp.sum(f_a * f_p, axis=0, keepdims=True)      # (1, t_pad)
        d_neg = jnp.sum(f_a * f_n, axis=0, keepdims=True)
        # distance[:,0]-distance[:,1]+margin == (1-d_pos)-(1-d_neg)+margin
        tl = jnp.maximum(d_neg - d_pos + MARGIN, 0.0)

        kvec = lax.broadcasted_iota(jnp.int32, (1, t_pad), 1)
        loss_sum = jnp.sum(jnp.where(kvec < min_size, tl, 0.0))
        loss_mean = loss_sum / min_size.astype(jnp.float32)

        sub = lax.broadcasted_iota(jnp.int32, (8, 128), 0)
        lane = lax.broadcasted_iota(jnp.int32, (8, 128), 1)
        out_ref[0] = jnp.where((sub == 0) & (lane == 0), loss_mean,
                               jnp.where((sub == 0) & (lane == 1), 1.0, 0.0))


# ----------------------------------------------------------------------------
# Glue
# ----------------------------------------------------------------------------
def _nearest_resize_labels(labels, out_h, out_w):
    """PyTorch F.interpolate(mode='nearest') for integer label maps."""
    _, in_h, in_w = labels.shape
    rows = jnp.clip(jnp.floor(jnp.arange(out_h) * (in_h / out_h)).astype(jnp.int32),
                    0, in_h - 1)
    cols = jnp.clip(jnp.floor(jnp.arange(out_w) * (in_w / out_w)).astype(jnp.int32),
                    0, in_w - 1)
    return labels[:, rows[:, None], cols[None, :]]


def tree_triplet_loss(feats, labels, hiera_map, hiera_index, max_triplet=200):
    """Returns (triplet_loss: f32 scalar, class_count: f32[1])."""
    n, c, h, w = feats.shape
    num_classes = len(hiera_map)

    labels_r = _nearest_resize_labels(labels.astype(jnp.int32), h, w)
    labels_flat = labels_r.reshape(-1).astype(jnp.int32)                 # (Npix,)
    feats_flat = jnp.transpose(feats, (0, 2, 3, 1)).reshape(-1, c)
    feats_flat = feats_flat.astype(jnp.float32)                          # (Npix, C)

    npix = n * h * w
    npix_pad = ((npix + 1023) // 1024) * 1024        # chunk rows multiple of 8
    pad = npix_pad - npix
    if pad:
        labels_flat = jnp.concatenate(
            [labels_flat, jnp.full((pad,), _PAD_LABEL, jnp.int32)])
        feats_flat = jnp.concatenate(
            [feats_flat, jnp.zeros((pad, c), jnp.float32)], axis=0)
    rows = npix_pad // 128
    labels2d = labels_flat.reshape(rows, 128)                            # (R, 128)
    # Lane-dense feature layout: (chunk, channel, pixel-in-chunk).
    feats3d = jnp.transpose(feats_flat.reshape(rows, 128, c), (0, 2, 1))  # (R, C, 128)

    lo = jnp.array([hiera_index[hiera_map[i]][0] for i in range(num_classes)],
                   dtype=jnp.int32)
    hi = jnp.array([hiera_index[hiera_map[i]][-1] for i in range(num_classes)],
                   dtype=jnp.int32)

    t_pad = ((max_triplet + 127) // 128) * 128       # lane-aligned triplet axis

    # VMEM budget: actual footprint (dense feats, single-buffered invariants).
    c_pad = ((c + 7) // 8) * 8
    est = (rows * c_pad * 128 * 4          # feats
           + rows * 128 * 4                # labels
           + 3 * rows * 128 * 4            # masked-rank scratch
           + 3 * rows * 128 * 4            # mask temporaries
           + 3 * c_pad * t_pad * 4         # gathered-feature accumulator
           + 128 * 128 * 4                 # prefix matrix
           + 4 * t_pad * 128 * 4           # one-hot temporaries
           + 4 * 8 * 128 * 4)              # output blocks
    try:
        phys_vmem = int(pltpu.get_tpu_info().vmem_capacity_bytes)
    except Exception:                                   # pragma: no cover
        phys_vmem = 128 * 1024 * 1024
    cap = min(phys_vmem * 3 // 4, 110 * 1024 * 1024)    # ~48MiB on v7x, ~96MiB v5e/v6e
    vmem_limit = int(min(cap, max(32 * 1024 * 1024, int(est * 1.5) + (4 << 20))))

    def build_call(use_while, single_buffer):
        kernel = functools.partial(_tree_triplet_kernel, max_triplet=max_triplet,
                                   t_pad=t_pad, pad_label=_PAD_LABEL,
                                   use_while=use_while)

        def big_spec(shape, imap):
            if single_buffer:
                # grid-invariant blocks: no need for double buffering
                return pl.BlockSpec(shape, imap, pipeline_mode=pl.Buffered(1))
            return pl.BlockSpec(shape, imap)

        grid_spec = pltpu.PrefetchScalarGridSpec(
            num_scalar_prefetch=0,
            grid=(num_classes,),
            in_specs=[
                pl.BlockSpec(memory_space=pltpu.MemorySpace.SMEM),       # lo
                pl.BlockSpec(memory_space=pltpu.MemorySpace.SMEM),       # hi
                big_spec((rows, 128), lambda i: (0, 0)),                 # labels
                big_spec((rows, c, 128), lambda i: (0, 0, 0)),           # feats
            ],
            out_specs=pl.BlockSpec((1, 8, 128), lambda i: (i, 0, 0)),
            scratch_shapes=[
                pltpu.VMEM((3, c, t_pad), jnp.float32),   # anchor/pos/neg gather acc
                pltpu.VMEM((rows, 128), jnp.int32),       # masked ranks: anchor
                pltpu.VMEM((rows, 128), jnp.int32),       # masked ranks: positive
                pltpu.VMEM((rows, 128), jnp.int32),       # masked ranks: negative
            ],
        )
        return pl.pallas_call(
            kernel,
            out_shape=jax.ShapeDtypeStruct((num_classes, 8, 128), jnp.float32),
            grid_spec=grid_spec,
            compiler_params=pltpu.CompilerParams(
                dimension_semantics=("parallel",),
                vmem_limit_bytes=vmem_limit),
        )

    out = None
    last_err = None
    # Preferred config first; conservative fallbacks if the toolchain rejects
    # Buffered(1) or a data-dependent while loop.
    for cfg in ((True, True), (True, False), (False, False)):
        try:
            out = build_call(*cfg)(lo, hi, labels2d, feats3d)
            break
        except Exception as e:                          # pragma: no cover
            last_err = e
    if out is None:
        raise last_err

    per_class_loss = out[:, 0, 0]
    per_class_cnt = out[:, 0, 1]
    count = jnp.sum(per_class_cnt)
    # PyTorch returns (None, [0]) when no class contributes; we return 0.0.
    loss = jnp.where(count > 0, jnp.sum(per_class_loss) / jnp.maximum(count, 1.0), 0.0)
    return loss, count.reshape(1)


# ----------------------------------------------------------------------------
# Pure numpy reference (mirrors the PyTorch forward)
# ----------------------------------------------------------------------------
def _reference(feats, labels, hiera_map, hiera_index, max_triplet=200):
    n, c, h, w = feats.shape
    lab = np.asarray(_nearest_resize_labels(labels.astype(jnp.int32), h, w)).reshape(-1)
    f = np.transpose(np.asarray(feats), (0, 2, 3, 1)).reshape(-1, c).astype(np.float32)
    total, cc = 0.0, 0
    for ii in np.unique(lab):
        if ii == 255:
            continue
        lo = hiera_index[hiera_map[ii]][0]
        hi = hiera_index[hiera_map[ii]][-1]
        a = lab == ii
        p = (lab >= lo) & (lab < hi) & ~a
        ng = (lab < lo) | (lab >= hi)
        m = int(min(a.sum(), p.sum(), ng.sum(), max_triplet))
        if m == 0:
            continue
        fa, fp, fn = f[a][:m], f[p][:m], f[ng][:m]
        dpos = (fa * fp).sum(1)
        dneg = (fa * fn).sum(1)
        tl = np.maximum(dneg - dpos + MARGIN, 0.0)
        total += float(tl.mean())
        cc += 1
    if cc == 0:
        return 0.0, 0.0
    return total / cc, float(cc)


# ----------------------------------------------------------------------------
if __name__ == "__main__":
    num_classes = 19
    hiera_map = [0, 0, 1, 1, 1, 2, 2, 2, 3, 3, 4, 5, 5, 6, 6, 6, 6, 6, 6]
    hiera_index = [[0, 2], [2, 5], [5, 8], [8, 10], [10, 11], [11, 13], [13, 19]]

    key = jax.random.PRNGKey(0)
    k1, k2, k3 = jax.random.split(key, 3)

    N, C, H, W = 2, 32, 16, 16
    LH, LW = 32, 32  # labels at a different resolution to exercise nearest resize

    labels = jax.random.randint(k1, (N, LH, LW), 0, num_classes, dtype=jnp.int32)
    ignore_mask = jax.random.uniform(k2, (N, LH, LW)) < 0.05
    labels = jnp.where(ignore_mask, 255, labels)

    feats = jax.random.normal(k3, (N, C, H, W), dtype=jnp.float32)
    feats = feats / jnp.linalg.norm(feats, axis=1, keepdims=True)  # unit embeddings

    loss, count = tree_triplet_loss(feats, labels, hiera_map, hiera_index)
    loss = jax.block_until_ready(loss)
    count = jax.block_until_ready(count)

    ref_loss, ref_count = _reference(feats, labels, hiera_map, hiera_index)
    assert abs(float(count[0]) - ref_count) < 1e-6, (float(count[0]), ref_count)
    assert abs(float(loss) - ref_loss) < 2e-4, (float(loss), ref_loss)

    print("KERNEL_OK")
</pallas_src>

<mosaic_0001>
module attributes {stable_mosaic.version = 11 : i64} {
  func.func @_tree_triplet_kernel(%arg0: i32, %arg1: memref<19xi32, #tpu.memory_space<smem>>, %arg2: memref<19xi32, #tpu.memory_space<smem>>, %arg3: memref<8x128xi32, #tpu.memory_space<vmem>>, %arg4: memref<8x32x128xf32, #tpu.memory_space<vmem>>, %arg5: memref<1x8x128xf32, #tpu.memory_space<vmem>>, %arg6: memref<3x32x256xf32, #tpu.memory_space<vmem>>, %arg7: memref<8x128xi32, #tpu.memory_space<vmem>>, %arg8: memref<8x128xi32, #tpu.memory_space<vmem>>, %arg9: memref<8x128xi32, #tpu.memory_space<vmem>>) attributes {dimension_semantics = [#tpu.dimension_semantics<parallel>], iteration_bounds = array<i64: 19>, scalar_prefetch = 0 : i64, scratch_operands = 4 : i64, tpu.core_type = #tpu.core_type<tc>, window_params = [{transform_indices = @transform_0, window_bounds = array<i64: 19>}, {transform_indices = @transform_1, window_bounds = array<i64: 19>}, {pipeline_mode = #tpu.pipeline_mode<synchronous>, transform_indices = @transform_2, window_bounds = array<i64: 8, 128>}, {pipeline_mode = #tpu.pipeline_mode<synchronous>, transform_indices = @transform_3, window_bounds = array<i64: 8, 32, 128>}, {transform_indices = @transform_4, window_bounds = array<i64: 1, 8, 128>}]} {
    %0 = arith.index_cast %arg0 : i32 to index
    %1 = memref.load %arg1[%0] : memref<19xi32, #tpu.memory_space<smem>>
    %2 = arith.index_cast %arg0 : i32 to index
    %3 = memref.load %arg2[%2] : memref<19xi32, #tpu.memory_space<smem>>
    %c0 = arith.constant 0 : index
    %c0_0 = arith.constant 0 : index
    %4 = vector.load %arg3[%c0, %c0_0] : memref<8x128xi32, #tpu.memory_space<vmem>>, vector<8x128xi32>
    %5 = vector.broadcast %arg0 : i32 to vector<8x128xi32>
    %6 = arith.cmpi eq, %4, %5 : vector<8x128xi32>
    %7 = vector.broadcast %1 : i32 to vector<8x128xi32>
    %8 = arith.cmpi sge, %4, %7 : vector<8x128xi32>
    %9 = vector.broadcast %3 : i32 to vector<8x128xi32>
    %10 = arith.cmpi slt, %4, %9 : vector<8x128xi32>
    %11 = arith.andi %8, %10 : vector<8x128xi1>
    %cst = arith.constant dense<true> : vector<8x128xi1>
    %12 = arith.xori %6, %cst : vector<8x128xi1>
    %13 = arith.andi %11, %12 : vector<8x128xi1>
    %14 = vector.broadcast %1 : i32 to vector<8x128xi32>
    %15 = arith.cmpi slt, %4, %14 : vector<8x128xi32>
    %16 = vector.broadcast %3 : i32 to vector<8x128xi32>
    %17 = arith.cmpi sge, %4, %16 : vector<8x128xi32>
    %18 = arith.ori %15, %17 : vector<8x128xi1>
    %c1073741823_i32 = arith.constant 1073741823 : i32
    %19 = vector.broadcast %c1073741823_i32 : i32 to vector<8x128xi32>
    %20 = arith.cmpi ne, %4, %19 : vector<8x128xi32>
    %21 = arith.andi %18, %20 : vector<8x128xi1>
    %22 = arith.extui %6 : vector<8x128xi1> to vector<8x128xi32>
    %23 = vector.shape_cast %22 : vector<8x128xi32> to vector<1x8x128xi32>
    %cst_1 = arith.constant dense<0> : vector<1xi32>
    %24 = vector.multi_reduction <add>, %23, %cst_1 [1, 2] : vector<1x8x128xi32> to vector<1xi32>
    %25 = vector.shape_cast %24 : vector<1xi32> to vector<1x1x1xi32>
    %26 = vector.extract %25[0, 0, 0] : i32 from vector<1x1x1xi32>
    %27 = arith.extui %13 : vector<8x128xi1> to vector<8x128xi32>
    %28 = vector.shape_cast %27 : vector<8x128xi32> to vector<1x8x128xi32>
    %cst_2 = arith.constant dense<0> : vector<1xi32>
    %29 = vector.multi_reduction <add>, %28, %cst_2 [1, 2] : vector<1x8x128xi32> to vector<1xi32>
    %30 = vector.shape_cast %29 : vector<1xi32> to vector<1x1x1xi32>
    %31 = vector.extract %30[0, 0, 0] : i32 from vector<1x1x1xi32>
    %32 = arith.extui %21 : vector<8x128xi1> to vector<8x128xi32>
    %33 = vector.shape_cast %32 : vector<8x128xi32> to vector<1x8x128xi32>
    %cst_3 = arith.constant dense<0> : vector<1xi32>
    %34 = vector.multi_reduction <add>, %33, %cst_3 [1, 2] : vector<1x8x128xi32> to vector<1xi32>
    %35 = vector.shape_cast %34 : vector<1xi32> to vector<1x1x1xi32>
    %36 = vector.extract %35[0, 0, 0] : i32 from vector<1x1x1xi32>
    %37 = arith.minsi %26, %31 : i32
    %c200_i32 = arith.constant 200 : i32
    %38 = arith.minsi %36, %c200_i32 : i32
    %39 = arith.minsi %37, %38 : i32
    %cst_4 = arith.constant 0.000000e+00 : f32
    %40 = vector.broadcast %cst_4 : f32 to vector<8x128xf32>
    %c0_5 = arith.constant 0 : index
    %c0_6 = arith.constant 0 : index
    %c0_7 = arith.constant 0 : index
    %41 = vector.load %arg5[%c0_5, %c0_6, %c0_7] : memref<1x8x128xf32, #tpu.memory_space<vmem>>, vector<1x8x128xf32>
    %42 = vector.shape_cast %41 : vector<1x8x128xf32> to vector<8x128xf32>
    %43 = vector.shape_cast %40 : vector<8x128xf32> to vector<1x8x128xf32>
    tpu.vector_store %arg5[%c0_5, %c0_6, %c0_7], %43 {strides = array<i32>} : memref<1x8x128xf32, #tpu.memory_space<vmem>>, vector<1x8x128xf32>,
    %c0_i32 = arith.constant 0 : i32
    %44 = arith.cmpi sgt, %39, %c0_i32 : i32
    %45 = arith.extui %44 : i1 to i32
    %c0_i32_8 = arith.constant 0 : i32
    %46 = arith.cmpi ne, %45, %c0_i32_8 : i32
    scf.if %46 {
      %cst_9 = arith.constant 0.000000e+00 : f32
      %47 = vector.broadcast %cst_9 : f32 to vector<3x32x256xf32>
      %c0_10 = arith.constant 0 : index
      %c0_11 = arith.constant 0 : index
      %c0_12 = arith.constant 0 : index
      %48 = vector.load %arg6[%c0_10, %c0_11, %c0_12] : memref<3x32x256xf32, #tpu.memory_space<vmem>>, vector<3x32x256xf32>
      tpu.vector_store %arg6[%c0_10, %c0_11, %c0_12], %47 {strides = array<i32>} : memref<3x32x256xf32, #tpu.memory_space<vmem>>, vector<3x32x256xf32>,
      %49 = tpu.iota {dimensions = array<i32: 0>} : vector<128x128xi32>
      %50 = tpu.iota {dimensions = array<i32: 1>} : vector<128x128xi32>
      %51 = arith.cmpi sle, %49, %50 : vector<128x128xi32>
      %52 = arith.extui %51 : vector<128x128xi1> to vector<128x128xi32>
      %53 = arith.sitofp %52 : vector<128x128xi32> to vector<128x128xf32>
      %54 = arith.extui %6 : vector<8x128xi1> to vector<8x128xi32>
      %55 = arith.sitofp %54 : vector<8x128xi32> to vector<8x128xf32>
      %cst_13 = arith.constant dense<0.000000e+00> : vector<8x128xf32>
      %56 = tpu.matmul %55, %53, %cst_13 {dimension_numbers = #tpu.dot_dimension_numbers<[1], [0], [0], [1], [0, 0, 1, 1], [], []>} : vector<8x128xf32>, vector<128x128xf32>, vector<8x128xf32> -> vector<8x128xf32>
      %57 = arith.mulf %56, %55 : vector<8x128xf32>
      %58 = arith.fptosi %57 : vector<8x128xf32> to vector<8x128xi32>
      %c0_14 = arith.constant 0 : index
      %c0_15 = arith.constant 0 : index
      %59 = vector.load %arg7[%c0_14, %c0_15] : memref<8x128xi32, #tpu.memory_space<vmem>>, vector<8x128xi32>
      tpu.vector_store %arg7[%c0_14, %c0_15], %58 {strides = array<i32>} : memref<8x128xi32, #tpu.memory_space<vmem>>, vector<8x128xi32>,
      %60 = arith.extui %13 : vector<8x128xi1> to vector<8x128xi32>
      %61 = arith.sitofp %60 : vector<8x128xi32> to vector<8x128xf32>
      %cst_16 = arith.constant dense<0.000000e+00> : vector<8x128xf32>
      %62 = tpu.matmul %61, %53, %cst_16 {dimension_numbers = #tpu.dot_dimension_numbers<[1], [0], [0], [1], [0, 0, 1, 1], [], []>} : vector<8x128xf32>, vector<128x128xf32>, vector<8x128xf32> -> vector<8x128xf32>
      %63 = arith.mulf %62, %61 : vector<8x128xf32>
      %64 = arith.fptosi %63 : vector<8x128xf32> to vector<8x128xi32>
      %c0_17 = arith.constant 0 : index
      %c0_18 = arith.constant 0 : index
      %65 = vector.load %arg8[%c0_17, %c0_18] : memref<8x128xi32, #tpu.memory_space<vmem>>, vector<8x128xi32>
      tpu.vector_store %arg8[%c0_17, %c0_18], %64 {strides = array<i32>} : memref<8x128xi32, #tpu.memory_space<vmem>>, vector<8x128xi32>,
      %66 = arith.extui %21 : vector<8x128xi1> to vector<8x128xi32>
      %67 = arith.sitofp %66 : vector<8x128xi32> to vector<8x128xf32>
      %cst_19 = arith.constant dense<0.000000e+00> : vector<8x128xf32>
      %68 = tpu.matmul %67, %53, %cst_19 {dimension_numbers = #tpu.dot_dimension_numbers<[1], [0], [0], [1], [0, 0, 1, 1], [], []>} : vector<8x128xf32>, vector<128x128xf32>, vector<8x128xf32> -> vector<8x128xf32>
      %69 = arith.mulf %68, %67 : vector<8x128xf32>
      %70 = arith.fptosi %69 : vector<8x128xf32> to vector<8x128xi32>
      %c0_20 = arith.constant 0 : index
      %c0_21 = arith.constant 0 : index
      %71 = vector.load %arg9[%c0_20, %c0_21] : memref<8x128xi32, #tpu.memory_space<vmem>>, vector<8x128xi32>
      tpu.vector_store %arg9[%c0_20, %c0_21], %70 {strides = array<i32>} : memref<8x128xi32, #tpu.memory_space<vmem>>, vector<8x128xi32>,
      %72 = tpu.iota {dimensions = array<i32: 0>} : vector<256x128xi32>
      %c1_i32 = arith.constant 1 : i32
      %73 = vector.broadcast %c1_i32 : i32 to vector<256x128xi32>
      %74 = arith.addi %72, %73 : vector<256x128xi32>
      %c0_i32_22 = arith.constant 0 : i32
      %c0_i32_23 = arith.constant 0 : i32
      %c0_i32_24 = arith.constant 0 : i32
      %c0_i32_25 = arith.constant 0 : i32
      %75:4 = scf.while (%arg10 = %c0_i32_22, %arg11 = %c0_i32_23, %arg12 = %c0_i32_24, %arg13 = %c0_i32_25) : (i32, i32, i32, i32) -> (i32, i32, i32, i32) {
        %c8_i32 = arith.constant 8 : i32
        %124 = arith.cmpi slt, %arg10, %c8_i32 : i32
        %125 = arith.cmpi slt, %arg11, %39 : i32
        %126 = arith.cmpi slt, %arg12, %39 : i32
        %127 = arith.ori %125, %126 : i1
        %128 = arith.cmpi slt, %arg13, %39 : i32
        %129 = arith.ori %127, %128 : i1
        %130 = arith.andi %124, %129 : i1
        scf.condition(%130) %arg10, %arg11, %arg12, %arg13 : i32, i32, i32, i32
      } do {
      ^bb0(%arg10: i32, %arg11: i32, %arg12: i32, %arg13: i32):
        %124 = arith.index_cast %arg10 : i32 to index
        %c0_48 = arith.constant 0 : index
        %125 = vector.load %arg7[%124, %c0_48] : memref<8x128xi32, #tpu.memory_space<vmem>>, vector<1x128xi32>
        %126 = arith.index_cast %arg10 : i32 to index
        %c0_49 = arith.constant 0 : index
        %127 = vector.load %arg8[%126, %c0_49] : memref<8x128xi32, #tpu.memory_space<vmem>>, vector<1x128xi32>
        %128 = arith.index_cast %arg10 : i32 to index
        %c0_50 = arith.constant 0 : index
        %129 = vector.load %arg9[%128, %c0_50] : memref<8x128xi32, #tpu.memory_space<vmem>>, vector<1x128xi32>
        %130 = vector.shape_cast %125 : vector<1x128xi32> to vector<1x1x128xi32>
        %cst_51 = arith.constant dense<-2147483648> : vector<1xi32>
        %131 = vector.multi_reduction <maxsi>, %130, %cst_51 [1, 2] : vector<1x1x128xi32> to vector<1xi32>
        %132 = vector.shape_cast %131 : vector<1xi32> to vector<1x1x1xi32>
        %133 = vector.extract %132[0, 0, 0] : i32 from vector<1x1x1xi32>
        %134 = vector.shape_cast %127 : vector<1x128xi32> to vector<1x1x128xi32>
        %cst_52 = arith.constant dense<-2147483648> : vector<1xi32>
        %135 = vector.multi_reduction <maxsi>, %134, %cst_52 [1, 2] : vector<1x1x128xi32> to vector<1xi32>
        %136 = vector.shape_cast %135 : vector<1xi32> to vector<1x1x1xi32>
        %137 = vector.extract %136[0, 0, 0] : i32 from vector<1x1x1xi32>
        %138 = vector.shape_cast %129 : vector<1x128xi32> to vector<1x1x128xi32>
        %cst_53 = arith.constant dense<-2147483648> : vector<1xi32>
        %139 = vector.multi_reduction <maxsi>, %138, %cst_53 [1, 2] : vector<1x1x128xi32> to vector<1xi32>
        %140 = vector.shape_cast %139 : vector<1xi32> to vector<1x1x1xi32>
        %141 = vector.extract %140[0, 0, 0] : i32 from vector<1x1x1xi32>
        %142 = arith.cmpi slt, %arg11, %39 : i32
        %143 = arith.cmpi slt, %arg12, %39 : i32
        %144 = arith.ori %142, %143 : i1
        %145 = arith.cmpi slt, %arg13, %39 : i32
        %146 = arith.ori %144, %145 : i1
        %147 = arith.extui %146 : i1 to i32
        %c0_i32_54 = arith.constant 0 : i32
        %148 = arith.cmpi ne, %147, %c0_i32_54 : i32
        scf.if %148 {
          %153 = arith.index_cast %arg10 : i32 to index
          %c0_56 = arith.constant 0 : index
          %c0_57 = arith.constant 0 : index
          %154 = vector.load %arg4[%153, %c0_56, %c0_57] : memref<8x32x128xf32, #tpu.memory_space<vmem>>, vector<1x32x128xf32>
          %155 = vector.shape_cast %154 : vector<1x32x128xf32> to vector<32x128xf32>
          %156 = vector.broadcast %arg13 : i32 to vector<256x128xi32>
          %157 = arith.subi %74, %156 : vector<256x128xi32>
          %158 = vector.broadcast %129 : vector<1x128xi32> to vector<256x128xi32>
          %159 = arith.cmpi eq, %158, %157 : vector<256x128xi32>
          %c0_i32_58 = arith.constant 0 : i32
          %160 = vector.broadcast %c0_i32_58 : i32 to vector<1x128xi32>
          %161 = arith.cmpi sgt, %129, %160 : vector<1x128xi32>
          %162 = vector.broadcast %161 : vector<1x128xi1> to vector<256x128xi1>
          %163 = arith.andi %159, %162 : vector<256x128xi1>
          %164 = arith.extui %163 : vector<256x128xi1> to vector<256x128xi32>
          %165 = arith.sitofp %164 : vector<256x128xi32> to vector<256x128xf32>
          %c2_59 = arith.constant 2 : index
          %c0_60 = arith.constant 0 : index
          %c0_61 = arith.constant 0 : index
          %166 = vector.load %arg6[%c2_59, %c0_60, %c0_61] : memref<3x32x256xf32, #tpu.memory_space<vmem>>, vector<1x32x256xf32>
          %167 = vector.shape_cast %166 : vector<1x32x256xf32> to vector<32x256xf32>
          %168 = tpu.transpose %165, [1, 0] : vector<256x128xf32> -> vector<128x256xf32>
          %cst_62 = arith.constant dense<0.000000e+00> : vector<32x256xf32>
          %169 = tpu.matmul %155, %168, %cst_62 {dimension_numbers = #tpu.dot_dimension_numbers<[1], [0], [0], [1], [0, 0, 1, 1], [], []>} : vector<32x128xf32>, vector<128x256xf32>, vector<32x256xf32> -> vector<32x256xf32>
          %170 = arith.addf %167, %169 : vector<32x256xf32>
          %c2_63 = arith.constant 2 : index
          %c0_64 = arith.constant 0 : index
          %c0_65 = arith.constant 0 : index
          %171 = vector.load %arg6[%c2_63, %c0_64, %c0_65] : memref<3x32x256xf32, #tpu.memory_space<vmem>>, vector<1x32x256xf32>
          %172 = vector.shape_cast %171 : vector<1x32x256xf32> to vector<32x256xf32>
          %173 = vector.shape_cast %170 : vector<32x256xf32> to vector<1x32x256xf32>
          tpu.vector_store %arg6[%c2_63, %c0_64, %c0_65], %173 {strides = array<i32>} : memref<3x32x256xf32, #tpu.memory_space<vmem>>, vector<1x32x256xf32>,
          %c0_i32_66 = arith.constant 0 : i32
          %174 = arith.cmpi sgt, %133, %c0_i32_66 : i32
          %175 = arith.extui %174 : i1 to i32
          %c0_i32_67 = arith.constant 0 : i32
          %176 = arith.cmpi ne, %175, %c0_i32_67 : i32
          scf.if %176 {
            %180 = vector.broadcast %arg11 : i32 to vector<256x128xi32>
            %181 = arith.subi %74, %180 : vector<256x128xi32>
            %182 = vector.broadcast %125 : vector<1x128xi32> to vector<256x128xi32>
            %183 = arith.cmpi eq, %182, %181 : vector<256x128xi32>
            %c0_i32_70 = arith.constant 0 : i32
            %184 = vector.broadcast %c0_i32_70 : i32 to vector<1x128xi32>
            %185 = arith.cmpi sgt, %125, %184 : vector<1x128xi32>
            %186 = vector.broadcast %185 : vector<1x128xi1> to vector<256x128xi1>
            %187 = arith.andi %183, %186 : vector<256x128xi1>
            %188 = arith.extui %187 : vector<256x128xi1> to vector<256x128xi32>
            %189 = arith.sitofp %188 : vector<256x128xi32> to vector<256x128xf32>
            %c0_71 = arith.constant 0 : index
            %c0_72 = arith.constant 0 : index
            %c0_73 = arith.constant 0 : index
            %190 = vector.load %arg6[%c0_71, %c0_72, %c0_73] : memref<3x32x256xf32, #tpu.memory_space<vmem>>, vector<1x32x256xf32>
            %191 = vector.shape_cast %190 : vector<1x32x256xf32> to vector<32x256xf32>
            %192 = tpu.transpose %189, [1, 0] : vector<256x128xf32> -> vector<128x256xf32>
            %cst_74 = arith.constant dense<0.000000e+00> : vector<32x256xf32>
            %193 = tpu.matmul %155, %192, %cst_74 {dimension_numbers = #tpu.dot_dimension_numbers<[1], [0], [0], [1], [0, 0, 1, 1], [], []>} : vector<32x128xf32>, vector<128x256xf32>, vector<32x256xf32> -> vector<32x256xf32>
            %194 = arith.addf %191, %193 : vector<32x256xf32>
            %c0_75 = arith.constant 0 : index
            %c0_76 = arith.constant 0 : index
            %c0_77 = arith.constant 0 : index
            %195 = vector.load %arg6[%c0_75, %c0_76, %c0_77] : memref<3x32x256xf32, #tpu.memory_space<vmem>>, vector<1x32x256xf32>
            %196 = vector.shape_cast %195 : vector<1x32x256xf32> to vector<32x256xf32>
            %197 = vector.shape_cast %194 : vector<32x256xf32> to vector<1x32x256xf32>
            tpu.vector_store %arg6[%c0_75, %c0_76, %c0_77], %197 {strides = array<i32>} : memref<3x32x256xf32, #tpu.memory_space<vmem>>, vector<1x32x256xf32>,
          } else {
          }
          %c0_i32_68 = arith.constant 0 : i32
          %177 = arith.cmpi sgt, %137, %c0_i32_68 : i32
          %178 = arith.extui %177 : i1 to i32
          %c0_i32_69 = arith.constant 0 : i32
          %179 = arith.cmpi ne, %178, %c0_i32_69 : i32
          scf.if %179 {
            %180 = vector.broadcast %arg12 : i32 to vector<256x128xi32>
            %181 = arith.subi %74, %180 : vector<256x128xi32>
            %182 = vector.broadcast %127 : vector<1x128xi32> to vector<256x128xi32>
            %183 = arith.cmpi eq, %182, %181 : vector<256x128xi32>
            %c0_i32_70 = arith.constant 0 : i32
            %184 = vector.broadcast %c0_i32_70 : i32 to vector<1x128xi32>
            %185 = arith.cmpi sgt, %127, %184 : vector<1x128xi32>
            %186 = vector.broadcast %185 : vector<1x128xi1> to vector<256x128xi1>
            %187 = arith.andi %183, %186 : vector<256x128xi1>
            %188 = arith.extui %187 : vector<256x128xi1> to vector<256x128xi32>
            %189 = arith.sitofp %188 : vector<256x128xi32> to vector<256x128xf32>
            %c1_71 = arith.constant 1 : index
            %c0_72 = arith.constant 0 : index
            %c0_73 = arith.constant 0 : index
            %190 = vector.load %arg6[%c1_71, %c0_72, %c0_73] : memref<3x32x256xf32, #tpu.memory_space<vmem>>, vector<1x32x256xf32>
            %191 = vector.shape_cast %190 : vector<1x32x256xf32> to vector<32x256xf32>
            %192 = tpu.transpose %189, [1, 0] : vector<256x128xf32> -> vector<128x256xf32>
            %cst_74 = arith.constant dense<0.000000e+00> : vector<32x256xf32>
            %193 = tpu.matmul %155, %192, %cst_74 {dimension_numbers = #tpu.dot_dimension_numbers<[1], [0], [0], [1], [0, 0, 1, 1], [], []>} : vector<32x128xf32>, vector<128x256xf32>, vector<32x256xf32> -> vector<32x256xf32>
            %194 = arith.addf %191, %193 : vector<32x256xf32>
            %c1_75 = arith.constant 1 : index
            %c0_76 = arith.constant 0 : index
            %c0_77 = arith.constant 0 : index
            %195 = vector.load %arg6[%c1_75, %c0_76, %c0_77] : memref<3x32x256xf32, #tpu.memory_space<vmem>>, vector<1x32x256xf32>
            %196 = vector.shape_cast %195 : vector<1x32x256xf32> to vector<32x256xf32>
            %197 = vector.shape_cast %194 : vector<32x256xf32> to vector<1x32x256xf32>
            tpu.vector_store %arg6[%c1_75, %c0_76, %c0_77], %197 {strides = array<i32>} : memref<3x32x256xf32, #tpu.memory_space<vmem>>, vector<1x32x256xf32>,
          } else {
          }
        } else {
        }
        %c1_i32_55 = arith.constant 1 : i32
        %149 = arith.addi %arg10, %c1_i32_55 : i32
        %150 = arith.addi %arg11, %133 : i32
        %151 = arith.addi %arg12, %137 : i32
        %152 = arith.addi %arg13, %141 : i32
        scf.yield %149, %150, %151, %152 : i32, i32, i32, i32
      }
      %c0_26 = arith.constant 0 : index
      %c0_27 = arith.constant 0 : index
      %c0_28 = arith.constant 0 : index
      %76 = vector.load %arg6[%c0_26, %c0_27, %c0_28] : memref<3x32x256xf32, #tpu.memory_space<vmem>>, vector<1x32x256xf32>
      %77 = vector.shape_cast %76 : vector<1x32x256xf32> to vector<32x256xf32>
      %c1 = arith.constant 1 : index
      %c0_29 = arith.constant 0 : index
      %c0_30 = arith.constant 0 : index
      %78 = vector.load %arg6[%c1, %c0_29, %c0_30] : memref<3x32x256xf32, #tpu.memory_space<vmem>>, vector<1x32x256xf32>
      %79 = vector.shape_cast %78 : vector<1x32x256xf32> to vector<32x256xf32>
      %c2 = arith.constant 2 : index
      %c0_31 = arith.constant 0 : index
      %c0_32 = arith.constant 0 : index
      %80 = vector.load %arg6[%c2, %c0_31, %c0_32] : memref<3x32x256xf32, #tpu.memory_space<vmem>>, vector<1x32x256xf32>
      %81 = vector.shape_cast %80 : vector<1x32x256xf32> to vector<32x256xf32>
      %82 = arith.mulf %77, %79 : vector<32x256xf32>
      %cst_33 = arith.constant dense<0.000000e+00> : vector<256xf32>
      %83 = vector.multi_reduction <add>, %82, %cst_33 [0] : vector<32x256xf32> to vector<256xf32>
      %84 = vector.shape_cast %83 : vector<256xf32> to vector<1x256xf32>
      %85 = arith.mulf %77, %81 : vector<32x256xf32>
      %cst_34 = arith.constant dense<0.000000e+00> : vector<256xf32>
      %86 = vector.multi_reduction <add>, %85, %cst_34 [0] : vector<32x256xf32> to vector<256xf32>
      %87 = vector.shape_cast %86 : vector<256xf32> to vector<1x256xf32>
      %88 = arith.subf %87, %84 : vector<1x256xf32>
      %cst_35 = arith.constant 6.000000e-01 : f32
      %89 = vector.broadcast %cst_35 : f32 to vector<1x256xf32>
      %90 = arith.addf %88, %89 : vector<1x256xf32>
      %cst_36 = arith.constant 0.000000e+00 : f32
      %91 = vector.broadcast %cst_36 : f32 to vector<1x256xf32>
      %92 = arith.maximumf %90, %91 : vector<1x256xf32>
      %93 = tpu.iota {dimensions = array<i32: 1>} : vector<1x256xi32>
      %94 = vector.broadcast %39 : i32 to vector<1x256xi32>
      %95 = arith.cmpi slt, %93, %94 : vector<1x256xi32>
      %cst_37 = arith.constant 0.000000e+00 : f32
      %96 = vector.broadcast %cst_37 : f32 to vector<1x256xf32>
      %97 = arith.select %95, %92, %96 : vector<1x256xi1>, vector<1x256xf32>
      %98 = vector.shape_cast %97 : vector<1x256xf32> to vector<1x1x256xf32>
      %cst_38 = arith.constant dense<0.000000e+00> : vector<1xf32>
      %99 = vector.multi_reduction <add>, %98, %cst_38 [1, 2] : vector<1x1x256xf32> to vector<1xf32>
      %100 = vector.shape_cast %99 : vector<1xf32> to vector<1x1x1xf32>
      %101 = vector.extract %100[0, 0, 0] : f32 from vector<1x1x1xf32>
      %102 = arith.sitofp %39 : i32 to f32
      %103 = arith.divf %101, %102 : f32
      %104 = tpu.iota {dimensions = array<i32: 0>} : vector<8x128xi32>
      %105 = tpu.iota {dimensions = array<i32: 1>} : vector<8x128xi32>
      %c0_i32_39 = arith.constant 0 : i32
      %106 = vector.broadcast %c0_i32_39 : i32 to vector<8x128xi32>
      %107 = arith.cmpi eq, %104, %106 : vector<8x128xi32>
      %c0_i32_40 = arith.constant 0 : i32
      %108 = vector.broadcast %c0_i32_40 : i32 to vector<8x128xi32>
      %109 = arith.cmpi eq, %105, %108 : vector<8x128xi32>
      %110 = arith.andi %107, %109 : vector<8x128xi1>
      %c0_i32_41 = arith.constant 0 : i32
      %111 = vector.broadcast %c0_i32_41 : i32 to vector<8x128xi32>
      %112 = arith.cmpi eq, %104, %111 : vector<8x128xi32>
      %c1_i32_42 = arith.constant 1 : i32
      %113 = vector.broadcast %c1_i32_42 : i32 to vector<8x128xi32>
      %114 = arith.cmpi eq, %105, %113 : vector<8x128xi32>
      %115 = arith.andi %112, %114 : vector<8x128xi1>
      %cst_43 = arith.constant 1.000000e+00 : f32
      %cst_44 = arith.constant 0.000000e+00 : f32
      %116 = vector.broadcast %cst_43 : f32 to vector<8x128xf32>
      %117 = vector.broadcast %cst_44 : f32 to vector<8x128xf32>
      %118 = arith.select %115, %116, %117 : vector<8x128xi1>, vector<8x128xf32>
      %119 = vector.broadcast %103 : f32 to vector<8x128xf32>
      %120 = arith.select %110, %119, %118 : vector<8x128xi1>, vector<8x128xf32>
      %c0_45 = arith.constant 0 : index
      %c0_46 = arith.constant 0 : index
      %c0_47 = arith.constant 0 : index
      %121 = vector.load %arg5[%c0_45, %c0_46, %c0_47] : memref<1x8x128xf32, #tpu.memory_space<vmem>>, vector<1x8x128xf32>
      %122 = vector.shape_cast %121 : vector<1x8x128xf32> to vector<8x128xf32>
      %123 = vector.shape_cast %120 : vector<8x128xf32> to vector<1x8x128xf32>
      tpu.vector_store %arg5[%c0_45, %c0_46, %c0_47], %123 {strides = array<i32>} : memref<1x8x128xf32, #tpu.memory_space<vmem>>, vector<1x8x128xf32>,
    } else {
    }
    return
  }
  func.func @transform_0(%arg0: i32) -> i32 {
    %c0_i32 = arith.constant 0 : i32
    %c0_i32_0 = arith.constant 0 : i32
    return %c0_i32 : i32
  }
  func.func @transform_1(%arg0: i32) -> i32 {
    %c0_i32 = arith.constant 0 : i32
    %c0_i32_0 = arith.constant 0 : i32
    return %c0_i32 : i32
  }
  func.func @transform_2(%arg0: i32) -> (i32, i32) {
    %c0_i32 = arith.constant 0 : i32
    %c0_i32_0 = arith.constant 0 : i32
    %c0_i32_1 = arith.constant 0 : i32
    return %c0_i32, %c0_i32_0 : i32, i32
  }
  func.func @transform_3(%arg0: i32) -> (i32, i32, i32) {
    %c0_i32 = arith.constant 0 : i32
    %c0_i32_0 = arith.constant 0 : i32
    %c0_i32_1 = arith.constant 0 : i32
    %c0_i32_2 = arith.constant 0 : i32
    return %c0_i32, %c0_i32_0, %c0_i32_1 : i32, i32, i32
  }
  func.func @transform_4(%arg0: i32) -> (i32, i32, i32) {
    %c0_i32 = arith.constant 0 : i32
    %c0_i32_0 = arith.constant 0 : i32
    %c0_i32_1 = arith.constant 0 : i32
    return %arg0, %c0_i32, %c0_i32_0 : i32, i32, i32
  }
}

module attributes {stable_mosaic.version = 11 : i64} {
  func.func @_tree_triplet_kernel(%arg0: i32, %arg1: memref<19xi32, #tpu.memory_space<smem>>, %arg2: memref<19xi32, #tpu.memory_space<smem>>, %arg3: memref<8x128xi32, #tpu.memory_space<vmem>>, %arg4: memref<8x32x128xf32, #tpu.memory_space<vmem>>, %arg5: memref<1x8x128xf32, #tpu.memory_space<vmem>>, %arg6: memref<3x32x256xf32, #tpu.memory_space<vmem>>, %arg7: memref<8x128xi32, #tpu.memory_space<vmem>>, %arg8: memref<8x128xi32, #tpu.memory_space<vmem>>, %arg9: memref<8x128xi32, #tpu.memory_space<vmem>>) attributes {dimension_semantics = [#tpu.dimension_semantics<parallel>], iteration_bounds = array<i64: 19>, scalar_prefetch = 0 : i64, scratch_operands = 4 : i64, tpu.core_type = #tpu.core_type<tc>, window_params = [{transform_indices = @transform_0, window_bounds = array<i64: 19>}, {transform_indices = @transform_1, window_bounds = array<i64: 19>}, {pipeline_mode = #tpu.pipeline_mode<synchronous>, transform_indices = @transform_2, window_bounds = array<i64: 8, 128>}, {pipeline_mode = #tpu.pipeline_mode<synchronous>, transform_indices = @transform_3, window_bounds = array<i64: 8, 32, 128>}, {transform_indices = @transform_4, window_bounds = array<i64: 1, 8, 128>}]} {
    %0 = arith.index_cast %arg0 : i32 to index
    %1 = memref.load %arg1[%0] : memref<19xi32, #tpu.memory_space<smem>>
    %2 = arith.index_cast %arg0 : i32 to index
    %3 = memref.load %arg2[%2] : memref<19xi32, #tpu.memory_space<smem>>
    %c0 = arith.constant 0 : index
    %c0_0 = arith.constant 0 : index
    %4 = vector.load %arg3[%c0, %c0_0] : memref<8x128xi32, #tpu.memory_space<vmem>>, vector<8x128xi32>
    %5 = vector.broadcast %arg0 : i32 to vector<8x128xi32>
    %6 = arith.cmpi eq, %4, %5 : vector<8x128xi32>
    %7 = vector.broadcast %1 : i32 to vector<8x128xi32>
    %8 = arith.cmpi sge, %4, %7 : vector<8x128xi32>
    %9 = vector.broadcast %3 : i32 to vector<8x128xi32>
    %10 = arith.cmpi slt, %4, %9 : vector<8x128xi32>
    %11 = arith.andi %8, %10 : vector<8x128xi1>
    %cst = arith.constant dense<true> : vector<8x128xi1>
    %12 = arith.xori %6, %cst : vector<8x128xi1>
    %13 = arith.andi %11, %12 : vector<8x128xi1>
    %14 = vector.broadcast %1 : i32 to vector<8x128xi32>
    %15 = arith.cmpi slt, %4, %14 : vector<8x128xi32>
    %16 = vector.broadcast %3 : i32 to vector<8x128xi32>
    %17 = arith.cmpi sge, %4, %16 : vector<8x128xi32>
    %18 = arith.ori %15, %17 : vector<8x128xi1>
    %c1073741823_i32 = arith.constant 1073741823 : i32
    %19 = vector.broadcast %c1073741823_i32 : i32 to vector<8x128xi32>
    %20 = arith.cmpi ne, %4, %19 : vector<8x128xi32>
    %21 = arith.andi %18, %20 : vector<8x128xi1>
    %22 = arith.extui %6 : vector<8x128xi1> to vector<8x128xi32>
    %23 = vector.shape_cast %22 : vector<8x128xi32> to vector<1x8x128xi32>
    %cst_1 = arith.constant dense<0> : vector<1xi32>
    %24 = vector.multi_reduction <add>, %23, %cst_1 [1, 2] : vector<1x8x128xi32> to vector<1xi32>
    %25 = vector.shape_cast %24 : vector<1xi32> to vector<1x1x1xi32>
    %26 = vector.extract %25[0, 0, 0] : i32 from vector<1x1x1xi32>
    %27 = arith.extui %13 : vector<8x128xi1> to vector<8x128xi32>
    %28 = vector.shape_cast %27 : vector<8x128xi32> to vector<1x8x128xi32>
    %cst_2 = arith.constant dense<0> : vector<1xi32>
    %29 = vector.multi_reduction <add>, %28, %cst_2 [1, 2] : vector<1x8x128xi32> to vector<1xi32>
    %30 = vector.shape_cast %29 : vector<1xi32> to vector<1x1x1xi32>
    %31 = vector.extract %30[0, 0, 0] : i32 from vector<1x1x1xi32>
    %32 = arith.extui %21 : vector<8x128xi1> to vector<8x128xi32>
    %33 = vector.shape_cast %32 : vector<8x128xi32> to vector<1x8x128xi32>
    %cst_3 = arith.constant dense<0> : vector<1xi32>
    %34 = vector.multi_reduction <add>, %33, %cst_3 [1, 2] : vector<1x8x128xi32> to vector<1xi32>
    %35 = vector.shape_cast %34 : vector<1xi32> to vector<1x1x1xi32>
    %36 = vector.extract %35[0, 0, 0] : i32 from vector<1x1x1xi32>
    %37 = arith.minsi %26, %31 : i32
    %c200_i32 = arith.constant 200 : i32
    %38 = arith.minsi %36, %c200_i32 : i32
    %39 = arith.minsi %37, %38 : i32
    %cst_4 = arith.constant 0.000000e+00 : f32
    %40 = vector.broadcast %cst_4 : f32 to vector<8x128xf32>
    %c0_5 = arith.constant 0 : index
    %c0_6 = arith.constant 0 : index
    %c0_7 = arith.constant 0 : index
    %41 = vector.load %arg5[%c0_5, %c0_6, %c0_7] : memref<1x8x128xf32, #tpu.memory_space<vmem>>, vector<1x8x128xf32>
    %42 = vector.shape_cast %41 : vector<1x8x128xf32> to vector<8x128xf32>
    %43 = vector.shape_cast %40 : vector<8x128xf32> to vector<1x8x128xf32>
    tpu.vector_store %arg5[%c0_5, %c0_6, %c0_7], %43 {strides = array<i32>} : memref<1x8x128xf32, #tpu.memory_space<vmem>>, vector<1x8x128xf32>,
    %c0_i32 = arith.constant 0 : i32
    %44 = arith.cmpi sgt, %39, %c0_i32 : i32
    %45 = arith.extui %44 : i1 to i32
    %c0_i32_8 = arith.constant 0 : i32
    %46 = arith.cmpi ne, %45, %c0_i32_8 : i32
    scf.if %46 {
      %cst_9 = arith.constant 0.000000e+00 : f32
      %47 = vector.broadcast %cst_9 : f32 to vector<3x32x256xf32>
      %c0_10 = arith.constant 0 : index
      %c0_11 = arith.constant 0 : index
      %c0_12 = arith.constant 0 : index
      %48 = vector.load %arg6[%c0_10, %c0_11, %c0_12] : memref<3x32x256xf32, #tpu.memory_space<vmem>>, vector<3x32x256xf32>
      tpu.vector_store %arg6[%c0_10, %c0_11, %c0_12], %47 {strides = array<i32>} : memref<3x32x256xf32, #tpu.memory_space<vmem>>, vector<3x32x256xf32>,
      %49 = tpu.iota {dimensions = array<i32: 0>} : vector<128x128xi32>
      %50 = tpu.iota {dimensions = array<i32: 1>} : vector<128x128xi32>
      %51 = arith.cmpi sle, %49, %50 : vector<128x128xi32>
      %52 = arith.extui %51 : vector<128x128xi1> to vector<128x128xi32>
      %53 = arith.sitofp %52 : vector<128x128xi32> to vector<128x128xf32>
      %54 = arith.extui %6 : vector<8x128xi1> to vector<8x128xi32>
      %55 = arith.sitofp %54 : vector<8x128xi32> to vector<8x128xf32>
      %cst_13 = arith.constant dense<0.000000e+00> : vector<8x128xf32>
      %56 = tpu.matmul %55, %53, %cst_13 {dimension_numbers = #tpu.dot_dimension_numbers<[1], [0], [0], [1], [0, 0, 1, 1], [], []>} : vector<8x128xf32>, vector<128x128xf32>, vector<8x128xf32> -> vector<8x128xf32>
      %57 = arith.mulf %56, %55 : vector<8x128xf32>
      %58 = arith.fptosi %57 : vector<8x128xf32> to vector<8x128xi32>
      %c0_14 = arith.constant 0 : index
      %c0_15 = arith.constant 0 : index
      %59 = vector.load %arg7[%c0_14, %c0_15] : memref<8x128xi32, #tpu.memory_space<vmem>>, vector<8x128xi32>
      tpu.vector_store %arg7[%c0_14, %c0_15], %58 {strides = array<i32>} : memref<8x128xi32, #tpu.memory_space<vmem>>, vector<8x128xi32>,
      %60 = arith.extui %13 : vector<8x128xi1> to vector<8x128xi32>
      %61 = arith.sitofp %60 : vector<8x128xi32> to vector<8x128xf32>
      %cst_16 = arith.constant dense<0.000000e+00> : vector<8x128xf32>
      %62 = tpu.matmul %61, %53, %cst_16 {dimension_numbers = #tpu.dot_dimension_numbers<[1], [0], [0], [1], [0, 0, 1, 1], [], []>} : vector<8x128xf32>, vector<128x128xf32>, vector<8x128xf32> -> vector<8x128xf32>
      %63 = arith.mulf %62, %61 : vector<8x128xf32>
      %64 = arith.fptosi %63 : vector<8x128xf32> to vector<8x128xi32>
      %c0_17 = arith.constant 0 : index
      %c0_18 = arith.constant 0 : index
      %65 = vector.load %arg8[%c0_17, %c0_18] : memref<8x128xi32, #tpu.memory_space<vmem>>, vector<8x128xi32>
      tpu.vector_store %arg8[%c0_17, %c0_18], %64 {strides = array<i32>} : memref<8x128xi32, #tpu.memory_space<vmem>>, vector<8x128xi32>,
      %66 = arith.extui %21 : vector<8x128xi1> to vector<8x128xi32>
      %67 = arith.sitofp %66 : vector<8x128xi32> to vector<8x128xf32>
      %cst_19 = arith.constant dense<0.000000e+00> : vector<8x128xf32>
      %68 = tpu.matmul %67, %53, %cst_19 {dimension_numbers = #tpu.dot_dimension_numbers<[1], [0], [0], [1], [0, 0, 1, 1], [], []>} : vector<8x128xf32>, vector<128x128xf32>, vector<8x128xf32> -> vector<8x128xf32>
      %69 = arith.mulf %68, %67 : vector<8x128xf32>
      %70 = arith.fptosi %69 : vector<8x128xf32> to vector<8x128xi32>
      %c0_20 = arith.constant 0 : index
      %c0_21 = arith.constant 0 : index
      %71 = vector.load %arg9[%c0_20, %c0_21] : memref<8x128xi32, #tpu.memory_space<vmem>>, vector<8x128xi32>
      tpu.vector_store %arg9[%c0_20, %c0_21], %70 {strides = array<i32>} : memref<8x128xi32, #tpu.memory_space<vmem>>, vector<8x128xi32>,
      %72 = tpu.iota {dimensions = array<i32: 0>} : vector<256x128xi32>
      %c1_i32 = arith.constant 1 : i32
      %73 = vector.broadcast %c1_i32 : i32 to vector<256x128xi32>
      %74 = arith.addi %72, %73 : vector<256x128xi32>
      %c0_i32_22 = arith.constant 0 : i32
      %c0_i32_23 = arith.constant 0 : i32
      %c0_i32_24 = arith.constant 0 : i32
      %c0_i32_25 = arith.constant 0 : i32
      %75:4 = scf.while (%arg10 = %c0_i32_22, %arg11 = %c0_i32_23, %arg12 = %c0_i32_24, %arg13 = %c0_i32_25) : (i32, i32, i32, i32) -> (i32, i32, i32, i32) {
        %c8_i32 = arith.constant 8 : i32
        %124 = arith.cmpi slt, %arg10, %c8_i32 : i32
        %125 = arith.cmpi slt, %arg11, %39 : i32
        %126 = arith.cmpi slt, %arg12, %39 : i32
        %127 = arith.ori %125, %126 : i1
        %128 = arith.cmpi slt, %arg13, %39 : i32
        %129 = arith.ori %127, %128 : i1
        %130 = arith.andi %124, %129 : i1
        scf.condition(%130) %arg10, %arg11, %arg12, %arg13 : i32, i32, i32, i32
      } do {
      ^bb0(%arg10: i32, %arg11: i32, %arg12: i32, %arg13: i32):
        %124 = arith.index_cast %arg10 : i32 to index
        %c0_48 = arith.constant 0 : index
        %125 = vector.load %arg7[%124, %c0_48] : memref<8x128xi32, #tpu.memory_space<vmem>>, vector<1x128xi32>
        %126 = arith.index_cast %arg10 : i32 to index
        %c0_49 = arith.constant 0 : index
        %127 = vector.load %arg8[%126, %c0_49] : memref<8x128xi32, #tpu.memory_space<vmem>>, vector<1x128xi32>
        %128 = arith.index_cast %arg10 : i32 to index
        %c0_50 = arith.constant 0 : index
        %129 = vector.load %arg9[%128, %c0_50] : memref<8x128xi32, #tpu.memory_space<vmem>>, vector<1x128xi32>
        %130 = vector.shape_cast %125 : vector<1x128xi32> to vector<1x1x128xi32>
        %cst_51 = arith.constant dense<-2147483648> : vector<1xi32>
        %131 = vector.multi_reduction <maxsi>, %130, %cst_51 [1, 2] : vector<1x1x128xi32> to vector<1xi32>
        %132 = vector.shape_cast %131 : vector<1xi32> to vector<1x1x1xi32>
        %133 = vector.extract %132[0, 0, 0] : i32 from vector<1x1x1xi32>
        %134 = vector.shape_cast %127 : vector<1x128xi32> to vector<1x1x128xi32>
        %cst_52 = arith.constant dense<-2147483648> : vector<1xi32>
        %135 = vector.multi_reduction <maxsi>, %134, %cst_52 [1, 2] : vector<1x1x128xi32> to vector<1xi32>
        %136 = vector.shape_cast %135 : vector<1xi32> to vector<1x1x1xi32>
        %137 = vector.extract %136[0, 0, 0] : i32 from vector<1x1x1xi32>
        %138 = vector.shape_cast %129 : vector<1x128xi32> to vector<1x1x128xi32>
        %cst_53 = arith.constant dense<-2147483648> : vector<1xi32>
        %139 = vector.multi_reduction <maxsi>, %138, %cst_53 [1, 2] : vector<1x1x128xi32> to vector<1xi32>
        %140 = vector.shape_cast %139 : vector<1xi32> to vector<1x1x1xi32>
        %141 = vector.extract %140[0, 0, 0] : i32 from vector<1x1x1xi32>
        %142 = arith.cmpi slt, %arg11, %39 : i32
        %143 = arith.cmpi slt, %arg12, %39 : i32
        %144 = arith.ori %142, %143 : i1
        %145 = arith.cmpi slt, %arg13, %39 : i32
        %146 = arith.ori %144, %145 : i1
        %147 = arith.extui %146 : i1 to i32
        %c0_i32_54 = arith.constant 0 : i32
        %148 = arith.cmpi ne, %147, %c0_i32_54 : i32
        scf.if %148 {
          %153 = arith.index_cast %arg10 : i32 to index
          %c0_56 = arith.constant 0 : index
          %c0_57 = arith.constant 0 : index
          %154 = vector.load %arg4[%153, %c0_56, %c0_57] : memref<8x32x128xf32, #tpu.memory_space<vmem>>, vector<1x32x128xf32>
          %155 = vector.shape_cast %154 : vector<1x32x128xf32> to vector<32x128xf32>
          %156 = vector.broadcast %arg13 : i32 to vector<256x128xi32>
          %157 = arith.subi %74, %156 : vector<256x128xi32>
          %158 = vector.broadcast %129 : vector<1x128xi32> to vector<256x128xi32>
          %159 = arith.cmpi eq, %158, %157 : vector<256x128xi32>
          %c0_i32_58 = arith.constant 0 : i32
          %160 = vector.broadcast %c0_i32_58 : i32 to vector<1x128xi32>
          %161 = arith.cmpi sgt, %129, %160 : vector<1x128xi32>
          %162 = vector.broadcast %161 : vector<1x128xi1> to vector<256x128xi1>
          %163 = arith.andi %159, %162 : vector<256x128xi1>
          %164 = arith.extui %163 : vector<256x128xi1> to vector<256x128xi32>
          %165 = arith.sitofp %164 : vector<256x128xi32> to vector<256x128xf32>
          %c2_59 = arith.constant 2 : index
          %c0_60 = arith.constant 0 : index
          %c0_61 = arith.constant 0 : index
          %166 = vector.load %arg6[%c2_59, %c0_60, %c0_61] : memref<3x32x256xf32, #tpu.memory_space<vmem>>, vector<1x32x256xf32>
          %167 = vector.shape_cast %166 : vector<1x32x256xf32> to vector<32x256xf32>
          %168 = tpu.transpose %165, [1, 0] : vector<256x128xf32> -> vector<128x256xf32>
          %cst_62 = arith.constant dense<0.000000e+00> : vector<32x256xf32>
          %169 = tpu.matmul %155, %168, %cst_62 {dimension_numbers = #tpu.dot_dimension_numbers<[1], [0], [0], [1], [0, 0, 1, 1], [], []>} : vector<32x128xf32>, vector<128x256xf32>, vector<32x256xf32> -> vector<32x256xf32>
          %170 = arith.addf %167, %169 : vector<32x256xf32>
          %c2_63 = arith.constant 2 : index
          %c0_64 = arith.constant 0 : index
          %c0_65 = arith.constant 0 : index
          %171 = vector.load %arg6[%c2_63, %c0_64, %c0_65] : memref<3x32x256xf32, #tpu.memory_space<vmem>>, vector<1x32x256xf32>
          %172 = vector.shape_cast %171 : vector<1x32x256xf32> to vector<32x256xf32>
          %173 = vector.shape_cast %170 : vector<32x256xf32> to vector<1x32x256xf32>
          tpu.vector_store %arg6[%c2_63, %c0_64, %c0_65], %173 {strides = array<i32>} : memref<3x32x256xf32, #tpu.memory_space<vmem>>, vector<1x32x256xf32>,
          %c0_i32_66 = arith.constant 0 : i32
          %174 = arith.cmpi sgt, %133, %c0_i32_66 : i32
          %175 = arith.extui %174 : i1 to i32
          %c0_i32_67 = arith.constant 0 : i32
          %176 = arith.cmpi ne, %175, %c0_i32_67 : i32
          scf.if %176 {
            %180 = vector.broadcast %arg11 : i32 to vector<256x128xi32>
            %181 = arith.subi %74, %180 : vector<256x128xi32>
            %182 = vector.broadcast %125 : vector<1x128xi32> to vector<256x128xi32>
            %183 = arith.cmpi eq, %182, %181 : vector<256x128xi32>
            %c0_i32_70 = arith.constant 0 : i32
            %184 = vector.broadcast %c0_i32_70 : i32 to vector<1x128xi32>
            %185 = arith.cmpi sgt, %125, %184 : vector<1x128xi32>
            %186 = vector.broadcast %185 : vector<1x128xi1> to vector<256x128xi1>
            %187 = arith.andi %183, %186 : vector<256x128xi1>
            %188 = arith.extui %187 : vector<256x128xi1> to vector<256x128xi32>
            %189 = arith.sitofp %188 : vector<256x128xi32> to vector<256x128xf32>
            %c0_71 = arith.constant 0 : index
            %c0_72 = arith.constant 0 : index
            %c0_73 = arith.constant 0 : index
            %190 = vector.load %arg6[%c0_71, %c0_72, %c0_73] : memref<3x32x256xf32, #tpu.memory_space<vmem>>, vector<1x32x256xf32>
            %191 = vector.shape_cast %190 : vector<1x32x256xf32> to vector<32x256xf32>
            %192 = tpu.transpose %189, [1, 0] : vector<256x128xf32> -> vector<128x256xf32>
            %cst_74 = arith.constant dense<0.000000e+00> : vector<32x256xf32>
            %193 = tpu.matmul %155, %192, %cst_74 {dimension_numbers = #tpu.dot_dimension_numbers<[1], [0], [0], [1], [0, 0, 1, 1], [], []>} : vector<32x128xf32>, vector<128x256xf32>, vector<32x256xf32> -> vector<32x256xf32>
            %194 = arith.addf %191, %193 : vector<32x256xf32>
            %c0_75 = arith.constant 0 : index
            %c0_76 = arith.constant 0 : index
            %c0_77 = arith.constant 0 : index
            %195 = vector.load %arg6[%c0_75, %c0_76, %c0_77] : memref<3x32x256xf32, #tpu.memory_space<vmem>>, vector<1x32x256xf32>
            %196 = vector.shape_cast %195 : vector<1x32x256xf32> to vector<32x256xf32>
            %197 = vector.shape_cast %194 : vector<32x256xf32> to vector<1x32x256xf32>
            tpu.vector_store %arg6[%c0_75, %c0_76, %c0_77], %197 {strides = array<i32>} : memref<3x32x256xf32, #tpu.memory_space<vmem>>, vector<1x32x256xf32>,
          } else {
          }
          %c0_i32_68 = arith.constant 0 : i32
          %177 = arith.cmpi sgt, %137, %c0_i32_68 : i32
          %178 = arith.extui %177 : i1 to i32
          %c0_i32_69 = arith.constant 0 : i32
          %179 = arith.cmpi ne, %178, %c0_i32_69 : i32
          scf.if %179 {
            %180 = vector.broadcast %arg12 : i32 to vector<256x128xi32>
            %181 = arith.subi %74, %180 : vector<256x128xi32>
            %182 = vector.broadcast %127 : vector<1x128xi32> to vector<256x128xi32>
            %183 = arith.cmpi eq, %182, %181 : vector<256x128xi32>
            %c0_i32_70 = arith.constant 0 : i32
            %184 = vector.broadcast %c0_i32_70 : i32 to vector<1x128xi32>
            %185 = arith.cmpi sgt, %127, %184 : vector<1x128xi32>
            %186 = vector.broadcast %185 : vector<1x128xi1> to vector<256x128xi1>
            %187 = arith.andi %183, %186 : vector<256x128xi1>
            %188 = arith.extui %187 : vector<256x128xi1> to vector<256x128xi32>
            %189 = arith.sitofp %188 : vector<256x128xi32> to vector<256x128xf32>
            %c1_71 = arith.constant 1 : index
            %c0_72 = arith.constant 0 : index
            %c0_73 = arith.constant 0 : index
            %190 = vector.load %arg6[%c1_71, %c0_72, %c0_73] : memref<3x32x256xf32, #tpu.memory_space<vmem>>, vector<1x32x256xf32>
            %191 = vector.shape_cast %190 : vector<1x32x256xf32> to vector<32x256xf32>
            %192 = tpu.transpose %189, [1, 0] : vector<256x128xf32> -> vector<128x256xf32>
            %cst_74 = arith.constant dense<0.000000e+00> : vector<32x256xf32>
            %193 = tpu.matmul %155, %192, %cst_74 {dimension_numbers = #tpu.dot_dimension_numbers<[1], [0], [0], [1], [0, 0, 1, 1], [], []>} : vector<32x128xf32>, vector<128x256xf32>, vector<32x256xf32> -> vector<32x256xf32>
            %194 = arith.addf %191, %193 : vector<32x256xf32>
            %c1_75 = arith.constant 1 : index
            %c0_76 = arith.constant 0 : index
            %c0_77 = arith.constant 0 : index
            %195 = vector.load %arg6[%c1_75, %c0_76, %c0_77] : memref<3x32x256xf32, #tpu.memory_space<vmem>>, vector<1x32x256xf32>
            %196 = vector.shape_cast %195 : vector<1x32x256xf32> to vector<32x256xf32>
            %197 = vector.shape_cast %194 : vector<32x256xf32> to vector<1x32x256xf32>
            tpu.vector_store %arg6[%c1_75, %c0_76, %c0_77], %197 {strides = array<i32>} : memref<3x32x256xf32, #tpu.memory_space<vmem>>, vector<1x32x256xf32>,
          } else {
          }
        } else {
        }
        %c1_i32_55 = arith.constant 1 : i32
        %149 = arith.addi %arg10, %c1_i32_55 : i32
        %150 = arith.addi %arg11, %133 : i32
        %151 = arith.addi %arg12, %137 : i32
        %152 = arith.addi %arg13, %141 : i32
        scf.yield %149, %150, %151, %152 : i32, i32, i32, i32
      }
      %c0_26 = arith.constant 0 : index
      %c0_27 = arith.constant 0 : index
      %c0_28 = arith.constant 0 : index
      %76 = vector.load %arg6[%c0_26, %c0_27, %c0_28] : memref<3x32x256xf32, #tpu.memory_space<vmem>>, vector<1x32x256xf32>
      %77 = vector.shape_cast %76 : vector<1x32x256xf32> to vector<32x256xf32>
      %c1 = arith.constant 1 : index
      %c0_29 = arith.constant 0 : index
      %c0_30 = arith.constant 0 : index
      %78 = vector.load %arg6[%c1, %c0_29, %c0_30] : memref<3x32x256xf32, #tpu.memory_space<vmem>>, vector<1x32x256xf32>
      %79 = vector.shape_cast %78 : vector<1x32x256xf32> to vector<32x256xf32>
      %c2 = arith.constant 2 : index
      %c0_31 = arith.constant 0 : index
      %c0_32 = arith.constant 0 : index
      %80 = vector.load %arg6[%c2, %c0_31, %c0_32] : memref<3x32x256xf32, #tpu.memory_space<vmem>>, vector<1x32x256xf32>
      %81 = vector.shape_cast %80 : vector<1x32x256xf32> to vector<32x256xf32>
      %82 = arith.mulf %77, %79 : vector<32x256xf32>
      %cst_33 = arith.constant dense<0.000000e+00> : vector<256xf32>
      %83 = vector.multi_reduction <add>, %82, %cst_33 [0] : vector<32x256xf32> to vector<256xf32>
      %84 = vector.shape_cast %83 : vector<256xf32> to vector<1x256xf32>
      %85 = arith.mulf %77, %81 : vector<32x256xf32>
      %cst_34 = arith.constant dense<0.000000e+00> : vector<256xf32>
      %86 = vector.multi_reduction <add>, %85, %cst_34 [0] : vector<32x256xf32> to vector<256xf32>
      %87 = vector.shape_cast %86 : vector<256xf32> to vector<1x256xf32>
      %88 = arith.subf %87, %84 : vector<1x256xf32>
      %cst_35 = arith.constant 6.000000e-01 : f32
      %89 = vector.broadcast %cst_35 : f32 to vector<1x256xf32>
      %90 = arith.addf %88, %89 : vector<1x256xf32>
      %cst_36 = arith.constant 0.000000e+00 : f32
      %91 = vector.broadcast %cst_36 : f32 to vector<1x256xf32>
      %92 = arith.maximumf %90, %91 : vector<1x256xf32>
      %93 = tpu.iota {dimensions = array<i32: 1>} : vector<1x256xi32>
      %94 = vector.broadcast %39 : i32 to vector<1x256xi32>
      %95 = arith.cmpi slt, %93, %94 : vector<1x256xi32>
      %cst_37 = arith.constant 0.000000e+00 : f32
      %96 = vector.broadcast %cst_37 : f32 to vector<1x256xf32>
      %97 = arith.select %95, %92, %96 : vector<1x256xi1>, vector<1x256xf32>
      %98 = vector.shape_cast %97 : vector<1x256xf32> to vector<1x1x256xf32>
      %cst_38 = arith.constant dense<0.000000e+00> : vector<1xf32>
      %99 = vector.multi_reduction <add>, %98, %cst_38 [1, 2] : vector<1x1x256xf32> to vector<1xf32>
      %100 = vector.shape_cast %99 : vector<1xf32> to vector<1x1x1xf32>
      %101 = vector.extract %100[0, 0, 0] : f32 from vector<1x1x1xf32>
      %102 = arith.sitofp %39 : i32 to f32
      %103 = arith.divf %101, %102 : f32
      %104 = tpu.iota {dimensions = array<i32: 0>} : vector<8x128xi32>
      %105 = tpu.iota {dimensions = array<i32: 1>} : vector<8x128xi32>
      %c0_i32_39 = arith.constant 0 : i32
      %106 = vector.broadcast %c0_i32_39 : i32 to vector<8x128xi32>
      %107 = arith.cmpi eq, %104, %106 : vector<8x128xi32>
      %c0_i32_40 = arith.constant 0 : i32
      %108 = vector.broadcast %c0_i32_40 : i32 to vector<8x128xi32>
      %109 = arith.cmpi eq, %105, %108 : vector<8x128xi32>
      %110 = arith.andi %107, %109 : vector<8x128xi1>
      %c0_i32_41 = arith.constant 0 : i32
      %111 = vector.broadcast %c0_i32_41 : i32 to vector<8x128xi32>
      %112 = arith.cmpi eq, %104, %111 : vector<8x128xi32>
      %c1_i32_42 = arith.constant 1 : i32
      %113 = vector.broadcast %c1_i32_42 : i32 to vector<8x128xi32>
      %114 = arith.cmpi eq, %105, %113 : vector<8x128xi32>
      %115 = arith.andi %112, %114 : vector<8x128xi1>
      %cst_43 = arith.constant 1.000000e+00 : f32
      %cst_44 = arith.constant 0.000000e+00 : f32
      %116 = vector.broadcast %cst_43 : f32 to vector<8x128xf32>
      %117 = vector.broadcast %cst_44 : f32 to vector<8x128xf32>
      %118 = arith.select %115, %116, %117 : vector<8x128xi1>, vector<8x128xf32>
      %119 = vector.broadcast %103 : f32 to vector<8x128xf32>
      %120 = arith.select %110, %119, %118 : vector<8x128xi1>, vector<8x128xf32>
      %c0_45 = arith.constant 0 : index
      %c0_46 = arith.constant 0 : index
      %c0_47 = arith.constant 0 : index
      %121 = vector.load %arg5[%c0_45, %c0_46, %c0_47] : memref<1x8x128xf32, #tpu.memory_space<vmem>>, vector<1x8x128xf32>
      %122 = vector.shape_cast %121 : vector<1x8x128xf32> to vector<8x128xf32>
      %123 = vector.shape_cast %120 : vector<8x128xf32> to vector<1x8x128xf32>
      tpu.vector_store %arg5[%c0_45, %c0_46, %c0_47], %123 {strides = array<i32>} : memref<1x8x128xf32, #tpu.memory_space<vmem>>, vector<1x8x128xf32>,
    } else {
    }
    return
  }
  func.func @transform_0(%arg0: i32) -> i32 {
    %c0_i32 = arith.constant 0 : i32
    %c0_i32_0 = arith.constant 0 : i32
    return %c0_i32 : i32
  }
  func.func @transform_1(%arg0: i32) -> i32 {
    %c0_i32 = arith.constant 0 : i32
    %c0_i32_0 = arith.constant 0 : i32
    return %c0_i32 : i32
  }
  func.func @transform_2(%arg0: i32) -> (i32, i32) {
    %c0_i32 = arith.constant 0 : i32
    %c0_i32_0 = arith.constant 0 : i32
    %c0_i32_1 = arith.constant 0 : i32
    return %c0_i32, %c0_i32_0 : i32, i32
  }
  func.func @transform_3(%arg0: i32) -> (i32, i32, i32) {
    %c0_i32 = arith.constant 0 : i32
    %c0_i32_0 = arith.constant 0 : i32
    %c0_i32_1 = arith.constant 0 : i32
    %c0_i32_2 = arith.constant 0 : i32
    return %c0_i32, %c0_i32_0, %c0_i32_1 : i32, i32, i32
  }
  func.func @transform_4(%arg0: i32) -> (i32, i32, i32) {
    %c0_i32 = arith.constant 0 : i32
    %c0_i32_0 = arith.constant 0 : i32
    %c0_i32_1 = arith.constant 0 : i32
    return %arg0, %c0_i32, %c0_i32_0 : i32, i32, i32
  }
}

module attributes {stable_mosaic.version = 11 : i64} {
  func.func @_tree_triplet_kernel(%arg0: i32, %arg1: memref<19xi32, #tpu.memory_space<smem>>, %arg2: memref<19xi32, #tpu.memory_space<smem>>, %arg3: memref<8x128xi32, #tpu.memory_space<vmem>>, %arg4: memref<8x32x128xf32, #tpu.memory_space<vmem>>, %arg5: memref<1x8x128xf32, #tpu.memory_space<vmem>>, %arg6: memref<3x32x256xf32, #tpu.memory_space<vmem>>, %arg7: memref<8x128xi32, #tpu.memory_space<vmem>>, %arg8: memref<8x128xi32, #tpu.memory_space<vmem>>, %arg9: memref<8x128xi32, #tpu.memory_space<vmem>>) attributes {dimension_semantics = [#tpu.dimension_semantics<parallel>], iteration_bounds = array<i64: 19>, scalar_prefetch = 0 : i64, scratch_operands = 4 : i64, tpu.core_type = #tpu.core_type<tc>, window_params = [{transform_indices = @transform_0, window_bounds = array<i64: 19>}, {transform_indices = @transform_1, window_bounds = array<i64: 19>}, {pipeline_mode = #tpu.pipeline_mode<synchronous>, transform_indices = @transform_2, window_bounds = array<i64: 8, 128>}, {pipeline_mode = #tpu.pipeline_mode<synchronous>, transform_indices = @transform_3, window_bounds = array<i64: 8, 32, 128>}, {transform_indices = @transform_4, window_bounds = array<i64: 1, 8, 128>}]} {
    %0 = arith.index_cast %arg0 : i32 to index
    %1 = memref.load %arg1[%0] : memref<19xi32, #tpu.memory_space<smem>>
    %2 = arith.index_cast %arg0 : i32 to index
    %3 = memref.load %arg2[%2] : memref<19xi32, #tpu.memory_space<smem>>
    %c0 = arith.constant 0 : index
    %c0_0 = arith.constant 0 : index
    %4 = vector.load %arg3[%c0, %c0_0] : memref<8x128xi32, #tpu.memory_space<vmem>>, vector<8x128xi32>
    %5 = vector.broadcast %arg0 : i32 to vector<8x128xi32>
    %6 = arith.cmpi eq, %4, %5 : vector<8x128xi32>
    %7 = vector.broadcast %1 : i32 to vector<8x128xi32>
    %8 = arith.cmpi sge, %4, %7 : vector<8x128xi32>
    %9 = vector.broadcast %3 : i32 to vector<8x128xi32>
    %10 = arith.cmpi slt, %4, %9 : vector<8x128xi32>
    %11 = arith.andi %8, %10 : vector<8x128xi1>
    %cst = arith.constant dense<true> : vector<8x128xi1>
    %12 = arith.xori %6, %cst : vector<8x128xi1>
    %13 = arith.andi %11, %12 : vector<8x128xi1>
    %14 = vector.broadcast %1 : i32 to vector<8x128xi32>
    %15 = arith.cmpi slt, %4, %14 : vector<8x128xi32>
    %16 = vector.broadcast %3 : i32 to vector<8x128xi32>
    %17 = arith.cmpi sge, %4, %16 : vector<8x128xi32>
    %18 = arith.ori %15, %17 : vector<8x128xi1>
    %c1073741823_i32 = arith.constant 1073741823 : i32
    %19 = vector.broadcast %c1073741823_i32 : i32 to vector<8x128xi32>
    %20 = arith.cmpi ne, %4, %19 : vector<8x128xi32>
    %21 = arith.andi %18, %20 : vector<8x128xi1>
    %22 = arith.extui %6 : vector<8x128xi1> to vector<8x128xi32>
    %23 = vector.shape_cast %22 : vector<8x128xi32> to vector<1x8x128xi32>
    %cst_1 = arith.constant dense<0> : vector<1xi32>
    %24 = vector.multi_reduction <add>, %23, %cst_1 [1, 2] : vector<1x8x128xi32> to vector<1xi32>
    %25 = vector.shape_cast %24 : vector<1xi32> to vector<1x1x1xi32>
    %26 = vector.extract %25[0, 0, 0] : i32 from vector<1x1x1xi32>
    %27 = arith.extui %13 : vector<8x128xi1> to vector<8x128xi32>
    %28 = vector.shape_cast %27 : vector<8x128xi32> to vector<1x8x128xi32>
    %cst_2 = arith.constant dense<0> : vector<1xi32>
    %29 = vector.multi_reduction <add>, %28, %cst_2 [1, 2] : vector<1x8x128xi32> to vector<1xi32>
    %30 = vector.shape_cast %29 : vector<1xi32> to vector<1x1x1xi32>
    %31 = vector.extract %30[0, 0, 0] : i32 from vector<1x1x1xi32>
    %32 = arith.extui %21 : vector<8x128xi1> to vector<8x128xi32>
    %33 = vector.shape_cast %32 : vector<8x128xi32> to vector<1x8x128xi32>
    %cst_3 = arith.constant dense<0> : vector<1xi32>
    %34 = vector.multi_reduction <add>, %33, %cst_3 [1, 2] : vector<1x8x128xi32> to vector<1xi32>
    %35 = vector.shape_cast %34 : vector<1xi32> to vector<1x1x1xi32>
    %36 = vector.extract %35[0, 0, 0] : i32 from vector<1x1x1xi32>
    %37 = arith.minsi %26, %31 : i32
    %c200_i32 = arith.constant 200 : i32
    %38 = arith.minsi %36, %c200_i32 : i32
    %39 = arith.minsi %37, %38 : i32
    %cst_4 = arith.constant 0.000000e+00 : f32
    %40 = vector.broadcast %cst_4 : f32 to vector<8x128xf32>
    %c0_5 = arith.constant 0 : index
    %c0_6 = arith.constant 0 : index
    %c0_7 = arith.constant 0 : index
    %41 = vector.load %arg5[%c0_5, %c0_6, %c0_7] : memref<1x8x128xf32, #tpu.memory_space<vmem>>, vector<1x8x128xf32>
    %42 = vector.shape_cast %41 : vector<1x8x128xf32> to vector<8x128xf32>
    %43 = vector.shape_cast %40 : vector<8x128xf32> to vector<1x8x128xf32>
    tpu.vector_store %arg5[%c0_5, %c0_6, %c0_7], %43 {strides = array<i32>} : memref<1x8x128xf32, #tpu.memory_space<vmem>>, vector<1x8x128xf32>,
    %c0_i32 = arith.constant 0 : i32
    %44 = arith.cmpi sgt, %39, %c0_i32 : i32
    %45 = arith.extui %44 : i1 to i32
    %c0_i32_8 = arith.constant 0 : i32
    %46 = arith.cmpi ne, %45, %c0_i32_8 : i32
    scf.if %46 {
      %cst_9 = arith.constant 0.000000e+00 : f32
      %47 = vector.broadcast %cst_9 : f32 to vector<3x32x256xf32>
      %c0_10 = arith.constant 0 : index
      %c0_11 = arith.constant 0 : index
      %c0_12 = arith.constant 0 : index
      %48 = vector.load %arg6[%c0_10, %c0_11, %c0_12] : memref<3x32x256xf32, #tpu.memory_space<vmem>>, vector<3x32x256xf32>
      tpu.vector_store %arg6[%c0_10, %c0_11, %c0_12], %47 {strides = array<i32>} : memref<3x32x256xf32, #tpu.memory_space<vmem>>, vector<3x32x256xf32>,
      %49 = tpu.iota {dimensions = array<i32: 0>} : vector<128x128xi32>
      %50 = tpu.iota {dimensions = array<i32: 1>} : vector<128x128xi32>
      %51 = arith.cmpi sle, %49, %50 : vector<128x128xi32>
      %52 = arith.extui %51 : vector<128x128xi1> to vector<128x128xi32>
      %53 = arith.sitofp %52 : vector<128x128xi32> to vector<128x128xf32>
      %54 = arith.extui %6 : vector<8x128xi1> to vector<8x128xi32>
      %55 = arith.sitofp %54 : vector<8x128xi32> to vector<8x128xf32>
      %cst_13 = arith.constant dense<0.000000e+00> : vector<8x128xf32>
      %56 = tpu.matmul %55, %53, %cst_13 {dimension_numbers = #tpu.dot_dimension_numbers<[1], [0], [0], [1], [0, 0, 1, 1], [], []>} : vector<8x128xf32>, vector<128x128xf32>, vector<8x128xf32> -> vector<8x128xf32>
      %57 = arith.mulf %56, %55 : vector<8x128xf32>
      %58 = arith.fptosi %57 : vector<8x128xf32> to vector<8x128xi32>
      %c0_14 = arith.constant 0 : index
      %c0_15 = arith.constant 0 : index
      %59 = vector.load %arg7[%c0_14, %c0_15] : memref<8x128xi32, #tpu.memory_space<vmem>>, vector<8x128xi32>
      tpu.vector_store %arg7[%c0_14, %c0_15], %58 {strides = array<i32>} : memref<8x128xi32, #tpu.memory_space<vmem>>, vector<8x128xi32>,
      %60 = arith.extui %13 : vector<8x128xi1> to vector<8x128xi32>
      %61 = arith.sitofp %60 : vector<8x128xi32> to vector<8x128xf32>
      %cst_16 = arith.constant dense<0.000000e+00> : vector<8x128xf32>
      %62 = tpu.matmul %61, %53, %cst_16 {dimension_numbers = #tpu.dot_dimension_numbers<[1], [0], [0], [1], [0, 0, 1, 1], [], []>} : vector<8x128xf32>, vector<128x128xf32>, vector<8x128xf32> -> vector<8x128xf32>
      %63 = arith.mulf %62, %61 : vector<8x128xf32>
      %64 = arith.fptosi %63 : vector<8x128xf32> to vector<8x128xi32>
      %c0_17 = arith.constant 0 : index
      %c0_18 = arith.constant 0 : index
      %65 = vector.load %arg8[%c0_17, %c0_18] : memref<8x128xi32, #tpu.memory_space<vmem>>, vector<8x128xi32>
      tpu.vector_store %arg8[%c0_17, %c0_18], %64 {strides = array<i32>} : memref<8x128xi32, #tpu.memory_space<vmem>>, vector<8x128xi32>,
      %66 = arith.extui %21 : vector<8x128xi1> to vector<8x128xi32>
      %67 = arith.sitofp %66 : vector<8x128xi32> to vector<8x128xf32>
      %cst_19 = arith.constant dense<0.000000e+00> : vector<8x128xf32>
      %68 = tpu.matmul %67, %53, %cst_19 {dimension_numbers = #tpu.dot_dimension_numbers<[1], [0], [0], [1], [0, 0, 1, 1], [], []>} : vector<8x128xf32>, vector<128x128xf32>, vector<8x128xf32> -> vector<8x128xf32>
      %69 = arith.mulf %68, %67 : vector<8x128xf32>
      %70 = arith.fptosi %69 : vector<8x128xf32> to vector<8x128xi32>
      %c0_20 = arith.constant 0 : index
      %c0_21 = arith.constant 0 : index
      %71 = vector.load %arg9[%c0_20, %c0_21] : memref<8x128xi32, #tpu.memory_space<vmem>>, vector<8x128xi32>
      tpu.vector_store %arg9[%c0_20, %c0_21], %70 {strides = array<i32>} : memref<8x128xi32, #tpu.memory_space<vmem>>, vector<8x128xi32>,
      %72 = tpu.iota {dimensions = array<i32: 0>} : vector<256x128xi32>
      %c1_i32 = arith.constant 1 : i32
      %73 = vector.broadcast %c1_i32 : i32 to vector<256x128xi32>
      %74 = arith.addi %72, %73 : vector<256x128xi32>
      %c0_i32_22 = arith.constant 0 : i32
      %c0_i32_23 = arith.constant 0 : i32
      %c0_i32_24 = arith.constant 0 : i32
      %c0_i32_25 = arith.constant 0 : i32
      %c8_i32 = arith.constant 8 : i32
      %75 = arith.addi %c0_i32_25, %c8_i32 : i32
      %c1_i32_26 = arith.constant 1 : i32
      %76:3 = scf.for %arg10 = %c0_i32_25 to %75 step %c1_i32_26 iter_args(%arg11 = %c0_i32_22, %arg12 = %c0_i32_23, %arg13 = %c0_i32_24) -> (i32, i32, i32)  : i32 {
        %125 = arith.index_cast %arg10 : i32 to index
        %c0_50 = arith.constant 0 : index
        %126 = vector.load %arg7[%125, %c0_50] : memref<8x128xi32, #tpu.memory_space<vmem>>, vector<1x128xi32>
        %127 = arith.index_cast %arg10 : i32 to index
        %c0_51 = arith.constant 0 : index
        %128 = vector.load %arg8[%127, %c0_51] : memref<8x128xi32, #tpu.memory_space<vmem>>, vector<1x128xi32>
        %129 = arith.index_cast %arg10 : i32 to index
        %c0_52 = arith.constant 0 : index
        %130 = vector.load %arg9[%129, %c0_52] : memref<8x128xi32, #tpu.memory_space<vmem>>, vector<1x128xi32>
        %131 = vector.shape_cast %126 : vector<1x128xi32> to vector<1x1x128xi32>
        %cst_53 = arith.constant dense<-2147483648> : vector<1xi32>
        %132 = vector.multi_reduction <maxsi>, %131, %cst_53 [1, 2] : vector<1x1x128xi32> to vector<1xi32>
        %133 = vector.shape_cast %132 : vector<1xi32> to vector<1x1x1xi32>
        %134 = vector.extract %133[0, 0, 0] : i32 from vector<1x1x1xi32>
        %135 = vector.shape_cast %128 : vector<1x128xi32> to vector<1x1x128xi32>
        %cst_54 = arith.constant dense<-2147483648> : vector<1xi32>
        %136 = vector.multi_reduction <maxsi>, %135, %cst_54 [1, 2] : vector<1x1x128xi32> to vector<1xi32>
        %137 = vector.shape_cast %136 : vector<1xi32> to vector<1x1x1xi32>
        %138 = vector.extract %137[0, 0, 0] : i32 from vector<1x1x1xi32>
        %139 = vector.shape_cast %130 : vector<1x128xi32> to vector<1x1x128xi32>
        %cst_55 = arith.constant dense<-2147483648> : vector<1xi32>
        %140 = vector.multi_reduction <maxsi>, %139, %cst_55 [1, 2] : vector<1x1x128xi32> to vector<1xi32>
        %141 = vector.shape_cast %140 : vector<1xi32> to vector<1x1x1xi32>
        %142 = vector.extract %141[0, 0, 0] : i32 from vector<1x1x1xi32>
        %143 = arith.cmpi slt, %arg11, %39 : i32
        %144 = arith.cmpi slt, %arg12, %39 : i32
        %145 = arith.ori %143, %144 : i1
        %146 = arith.cmpi slt, %arg13, %39 : i32
        %147 = arith.ori %145, %146 : i1
        %148 = arith.extui %147 : i1 to i32
        %c0_i32_56 = arith.constant 0 : i32
        %149 = arith.cmpi ne, %148, %c0_i32_56 : i32
        scf.if %149 {
          %153 = arith.index_cast %arg10 : i32 to index
          %c0_57 = arith.constant 0 : index
          %c0_58 = arith.constant 0 : index
          %154 = vector.load %arg4[%153, %c0_57, %c0_58] : memref<8x32x128xf32, #tpu.memory_space<vmem>>, vector<1x32x128xf32>
          %155 = vector.shape_cast %154 : vector<1x32x128xf32> to vector<32x128xf32>
          %156 = vector.broadcast %arg13 : i32 to vector<256x128xi32>
          %157 = arith.subi %74, %156 : vector<256x128xi32>
          %158 = vector.broadcast %130 : vector<1x128xi32> to vector<256x128xi32>
          %159 = arith.cmpi eq, %158, %157 : vector<256x128xi32>
          %c0_i32_59 = arith.constant 0 : i32
          %160 = vector.broadcast %c0_i32_59 : i32 to vector<1x128xi32>
          %161 = arith.cmpi sgt, %130, %160 : vector<1x128xi32>
          %162 = vector.broadcast %161 : vector<1x128xi1> to vector<256x128xi1>
          %163 = arith.andi %159, %162 : vector<256x128xi1>
          %164 = arith.extui %163 : vector<256x128xi1> to vector<256x128xi32>
          %165 = arith.sitofp %164 : vector<256x128xi32> to vector<256x128xf32>
          %c2_60 = arith.constant 2 : index
          %c0_61 = arith.constant 0 : index
          %c0_62 = arith.constant 0 : index
          %166 = vector.load %arg6[%c2_60, %c0_61, %c0_62] : memref<3x32x256xf32, #tpu.memory_space<vmem>>, vector<1x32x256xf32>
          %167 = vector.shape_cast %166 : vector<1x32x256xf32> to vector<32x256xf32>
          %168 = tpu.transpose %165, [1, 0] : vector<256x128xf32> -> vector<128x256xf32>
          %cst_63 = arith.constant dense<0.000000e+00> : vector<32x256xf32>
          %169 = tpu.matmul %155, %168, %cst_63 {dimension_numbers = #tpu.dot_dimension_numbers<[1], [0], [0], [1], [0, 0, 1, 1], [], []>} : vector<32x128xf32>, vector<128x256xf32>, vector<32x256xf32> -> vector<32x256xf32>
          %170 = arith.addf %167, %169 : vector<32x256xf32>
          %c2_64 = arith.constant 2 : index
          %c0_65 = arith.constant 0 : index
          %c0_66 = arith.constant 0 : index
          %171 = vector.load %arg6[%c2_64, %c0_65, %c0_66] : memref<3x32x256xf32, #tpu.memory_space<vmem>>, vector<1x32x256xf32>
          %172 = vector.shape_cast %171 : vector<1x32x256xf32> to vector<32x256xf32>
          %173 = vector.shape_cast %170 : vector<32x256xf32> to vector<1x32x256xf32>
          tpu.vector_store %arg6[%c2_64, %c0_65, %c0_66], %173 {strides = array<i32>} : memref<3x32x256xf32, #tpu.memory_space<vmem>>, vector<1x32x256xf32>,
          %c0_i32_67 = arith.constant 0 : i32
          %174 = arith.cmpi sgt, %134, %c0_i32_67 : i32
          %175 = arith.extui %174 : i1 to i32
          %c0_i32_68 = arith.constant 0 : i32
          %176 = arith.cmpi ne, %175, %c0_i32_68 : i32
          scf.if %176 {
            %180 = vector.broadcast %arg11 : i32 to vector<256x128xi32>
            %181 = arith.subi %74, %180 : vector<256x128xi32>
            %182 = vector.broadcast %126 : vector<1x128xi32> to vector<256x128xi32>
            %183 = arith.cmpi eq, %182, %181 : vector<256x128xi32>
            %c0_i32_71 = arith.constant 0 : i32
            %184 = vector.broadcast %c0_i32_71 : i32 to vector<1x128xi32>
            %185 = arith.cmpi sgt, %126, %184 : vector<1x128xi32>
            %186 = vector.broadcast %185 : vector<1x128xi1> to vector<256x128xi1>
            %187 = arith.andi %183, %186 : vector<256x128xi1>
            %188 = arith.extui %187 : vector<256x128xi1> to vector<256x128xi32>
            %189 = arith.sitofp %188 : vector<256x128xi32> to vector<256x128xf32>
            %c0_72 = arith.constant 0 : index
            %c0_73 = arith.constant 0 : index
            %c0_74 = arith.constant 0 : index
            %190 = vector.load %arg6[%c0_72, %c0_73, %c0_74] : memref<3x32x256xf32, #tpu.memory_space<vmem>>, vector<1x32x256xf32>
            %191 = vector.shape_cast %190 : vector<1x32x256xf32> to vector<32x256xf32>
            %192 = tpu.transpose %189, [1, 0] : vector<256x128xf32> -> vector<128x256xf32>
            %cst_75 = arith.constant dense<0.000000e+00> : vector<32x256xf32>
            %193 = tpu.matmul %155, %192, %cst_75 {dimension_numbers = #tpu.dot_dimension_numbers<[1], [0], [0], [1], [0, 0, 1, 1], [], []>} : vector<32x128xf32>, vector<128x256xf32>, vector<32x256xf32> -> vector<32x256xf32>
            %194 = arith.addf %191, %193 : vector<32x256xf32>
            %c0_76 = arith.constant 0 : index
            %c0_77 = arith.constant 0 : index
            %c0_78 = arith.constant 0 : index
            %195 = vector.load %arg6[%c0_76, %c0_77, %c0_78] : memref<3x32x256xf32, #tpu.memory_space<vmem>>, vector<1x32x256xf32>
            %196 = vector.shape_cast %195 : vector<1x32x256xf32> to vector<32x256xf32>
            %197 = vector.shape_cast %194 : vector<32x256xf32> to vector<1x32x256xf32>
            tpu.vector_store %arg6[%c0_76, %c0_77, %c0_78], %197 {strides = array<i32>} : memref<3x32x256xf32, #tpu.memory_space<vmem>>, vector<1x32x256xf32>,
          } else {
          }
          %c0_i32_69 = arith.constant 0 : i32
          %177 = arith.cmpi sgt, %138, %c0_i32_69 : i32
          %178 = arith.extui %177 : i1 to i32
          %c0_i32_70 = arith.constant 0 : i32
          %179 = arith.cmpi ne, %178, %c0_i32_70 : i32
          scf.if %179 {
            %180 = vector.broadcast %arg12 : i32 to vector<256x128xi32>
            %181 = arith.subi %74, %180 : vector<256x128xi32>
            %182 = vector.broadcast %128 : vector<1x128xi32> to vector<256x128xi32>
            %183 = arith.cmpi eq, %182, %181 : vector<256x128xi32>
            %c0_i32_71 = arith.constant 0 : i32
            %184 = vector.broadcast %c0_i32_71 : i32 to vector<1x128xi32>
            %185 = arith.cmpi sgt, %128, %184 : vector<1x128xi32>
            %186 = vector.broadcast %185 : vector<1x128xi1> to vector<256x128xi1>
            %187 = arith.andi %183, %186 : vector<256x128xi1>
            %188 = arith.extui %187 : vector<256x128xi1> to vector<256x128xi32>
            %189 = arith.sitofp %188 : vector<256x128xi32> to vector<256x128xf32>
            %c1_72 = arith.constant 1 : index
            %c0_73 = arith.constant 0 : index
            %c0_74 = arith.constant 0 : index
            %190 = vector.load %arg6[%c1_72, %c0_73, %c0_74] : memref<3x32x256xf32, #tpu.memory_space<vmem>>, vector<1x32x256xf32>
            %191 = vector.shape_cast %190 : vector<1x32x256xf32> to vector<32x256xf32>
            %192 = tpu.transpose %189, [1, 0] : vector<256x128xf32> -> vector<128x256xf32>
            %cst_75 = arith.constant dense<0.000000e+00> : vector<32x256xf32>
            %193 = tpu.matmul %155, %192, %cst_75 {dimension_numbers = #tpu.dot_dimension_numbers<[1], [0], [0], [1], [0, 0, 1, 1], [], []>} : vector<32x128xf32>, vector<128x256xf32>, vector<32x256xf32> -> vector<32x256xf32>
            %194 = arith.addf %191, %193 : vector<32x256xf32>
            %c1_76 = arith.constant 1 : index
            %c0_77 = arith.constant 0 : index
            %c0_78 = arith.constant 0 : index
            %195 = vector.load %arg6[%c1_76, %c0_77, %c0_78] : memref<3x32x256xf32, #tpu.memory_space<vmem>>, vector<1x32x256xf32>
            %196 = vector.shape_cast %195 : vector<1x32x256xf32> to vector<32x256xf32>
            %197 = vector.shape_cast %194 : vector<32x256xf32> to vector<1x32x256xf32>
            tpu.vector_store %arg6[%c1_76, %c0_77, %c0_78], %197 {strides = array<i32>} : memref<3x32x256xf32, #tpu.memory_space<vmem>>, vector<1x32x256xf32>,
          } else {
          }
        } else {
        }
        %150 = arith.addi %arg11, %134 : i32
        %151 = arith.addi %arg12, %138 : i32
        %152 = arith.addi %arg13, %142 : i32
        scf.yield %150, %151, %152 : i32, i32, i32
      }
      %c8_i32_27 = arith.constant 8 : i32
      %c0_28 = arith.constant 0 : index
      %c0_29 = arith.constant 0 : index
      %c0_30 = arith.constant 0 : index
      %77 = vector.load %arg6[%c0_28, %c0_29, %c0_30] : memref<3x32x256xf32, #tpu.memory_space<vmem>>, vector<1x32x256xf32>
      %78 = vector.shape_cast %77 : vector<1x32x256xf32> to vector<32x256xf32>
      %c1 = arith.constant 1 : index
      %c0_31 = arith.constant 0 : index
      %c0_32 = arith.constant 0 : index
      %79 = vector.load %arg6[%c1, %c0_31, %c0_32] : memref<3x32x256xf32, #tpu.memory_space<vmem>>, vector<1x32x256xf32>
      %80 = vector.shape_cast %79 : vector<1x32x256xf32> to vector<32x256xf32>
      %c2 = arith.constant 2 : index
      %c0_33 = arith.constant 0 : index
      %c0_34 = arith.constant 0 : index
      %81 = vector.load %arg6[%c2, %c0_33, %c0_34] : memref<3x32x256xf32, #tpu.memory_space<vmem>>, vector<1x32x256xf32>
      %82 = vector.shape_cast %81 : vector<1x32x256xf32> to vector<32x256xf32>
      %83 = arith.mulf %78, %80 : vector<32x256xf32>
      %cst_35 = arith.constant dense<0.000000e+00> : vector<256xf32>
      %84 = vector.multi_reduction <add>, %83, %cst_35 [0] : vector<32x256xf32> to vector<256xf32>
      %85 = vector.shape_cast %84 : vector<256xf32> to vector<1x256xf32>
      %86 = arith.mulf %78, %82 : vector<32x256xf32>
      %cst_36 = arith.constant dense<0.000000e+00> : vector<256xf32>
      %87 = vector.multi_reduction <add>, %86, %cst_36 [0] : vector<32x256xf32> to vector<256xf32>
      %88 = vector.shape_cast %87 : vector<256xf32> to vector<1x256xf32>
      %89 = arith.subf %88, %85 : vector<1x256xf32>
      %cst_37 = arith.constant 6.000000e-01 : f32
      %90 = vector.broadcast %cst_37 : f32 to vector<1x256xf32>
      %91 = arith.addf %89, %90 : vector<1x256xf32>
      %cst_38 = arith.constant 0.000000e+00 : f32
      %92 = vector.broadcast %cst_38 : f32 to vector<1x256xf32>
      %93 = arith.maximumf %91, %92 : vector<1x256xf32>
      %94 = tpu.iota {dimensions = array<i32: 1>} : vector<1x256xi32>
      %95 = vector.broadcast %39 : i32 to vector<1x256xi32>
      %96 = arith.cmpi slt, %94, %95 : vector<1x256xi32>
      %cst_39 = arith.constant 0.000000e+00 : f32
      %97 = vector.broadcast %cst_39 : f32 to vector<1x256xf32>
      %98 = arith.select %96, %93, %97 : vector<1x256xi1>, vector<1x256xf32>
      %99 = vector.shape_cast %98 : vector<1x256xf32> to vector<1x1x256xf32>
      %cst_40 = arith.constant dense<0.000000e+00> : vector<1xf32>
      %100 = vector.multi_reduction <add>, %99, %cst_40 [1, 2] : vector<1x1x256xf32> to vector<1xf32>
      %101 = vector.shape_cast %100 : vector<1xf32> to vector<1x1x1xf32>
      %102 = vector.extract %101[0, 0, 0] : f32 from vector<1x1x1xf32>
      %103 = arith.sitofp %39 : i32 to f32
      %104 = arith.divf %102, %103 : f32
      %105 = tpu.iota {dimensions = array<i32: 0>} : vector<8x128xi32>
      %106 = tpu.iota {dimensions = array<i32: 1>} : vector<8x128xi32>
      %c0_i32_41 = arith.constant 0 : i32
      %107 = vector.broadcast %c0_i32_41 : i32 to vector<8x128xi32>
      %108 = arith.cmpi eq, %105, %107 : vector<8x128xi32>
      %c0_i32_42 = arith.constant 0 : i32
      %109 = vector.broadcast %c0_i32_42 : i32 to vector<8x128xi32>
      %110 = arith.cmpi eq, %106, %109 : vector<8x128xi32>
      %111 = arith.andi %108, %110 : vector<8x128xi1>
      %c0_i32_43 = arith.constant 0 : i32
      %112 = vector.broadcast %c0_i32_43 : i32 to vector<8x128xi32>
      %113 = arith.cmpi eq, %105, %112 : vector<8x128xi32>
      %c1_i32_44 = arith.constant 1 : i32
      %114 = vector.broadcast %c1_i32_44 : i32 to vector<8x128xi32>
      %115 = arith.cmpi eq, %106, %114 : vector<8x128xi32>
      %116 = arith.andi %113, %115 : vector<8x128xi1>
      %cst_45 = arith.constant 1.000000e+00 : f32
      %cst_46 = arith.constant 0.000000e+00 : f32
      %117 = vector.broadcast %cst_45 : f32 to vector<8x128xf32>
      %118 = vector.broadcast %cst_46 : f32 to vector<8x128xf32>
      %119 = arith.select %116, %117, %118 : vector<8x128xi1>, vector<8x128xf32>
      %120 = vector.broadcast %104 : f32 to vector<8x128xf32>
      %121 = arith.select %111, %120, %119 : vector<8x128xi1>, vector<8x128xf32>
      %c0_47 = arith.constant 0 : index
      %c0_48 = arith.constant 0 : index
      %c0_49 = arith.constant 0 : index
      %122 = vector.load %arg5[%c0_47, %c0_48, %c0_49] : memref<1x8x128xf32, #tpu.memory_space<vmem>>, vector<1x8x128xf32>
      %123 = vector.shape_cast %122 : vector<1x8x128xf32> to vector<8x128xf32>
      %124 = vector.shape_cast %121 : vector<8x128xf32> to vector<1x8x128xf32>
      tpu.vector_store %arg5[%c0_47, %c0_48, %c0_49], %124 {strides = array<i32>} : memref<1x8x128xf32, #tpu.memory_space<vmem>>, vector<1x8x128xf32>,
    } else {
    }
    return
  }
  func.func @transform_0(%arg0: i32) -> i32 {
    %c0_i32 = arith.constant 0 : i32
    %c0_i32_0 = arith.constant 0 : i32
    return %c0_i32 : i32
  }
  func.func @transform_1(%arg0: i32) -> i32 {
    %c0_i32 = arith.constant 0 : i32
    %c0_i32_0 = arith.constant 0 : i32
    return %c0_i32 : i32
  }
  func.func @transform_2(%arg0: i32) -> (i32, i32) {
    %c0_i32 = arith.constant 0 : i32
    %c0_i32_0 = arith.constant 0 : i32
    %c0_i32_1 = arith.constant 0 : i32
    return %c0_i32, %c0_i32_0 : i32, i32
  }
  func.func @transform_3(%arg0: i32) -> (i32, i32, i32) {
    %c0_i32 = arith.constant 0 : i32
    %c0_i32_0 = arith.constant 0 : i32
    %c0_i32_1 = arith.constant 0 : i32
    %c0_i32_2 = arith.constant 0 : i32
    return %c0_i32, %c0_i32_0, %c0_i32_1 : i32, i32, i32
  }
  func.func @transform_4(%arg0: i32) -> (i32, i32, i32) {
    %c0_i32 = arith.constant 0 : i32
    %c0_i32_0 = arith.constant 0 : i32
    %c0_i32_1 = arith.constant 0 : i32
    return %arg0, %c0_i32, %c0_i32_0 : i32, i32, i32
  }
}

</mosaic_0001>

<bundles_post_ra>
// kernel: tpu_custom_call.1
= control target key start
LH: loop header
LB: loop body
LE: loop exit
PB: predicated region body
PF: predicated region fallthrough
CT: control target
= control target key end

     0   :  { %9 = vsyncpa [#allocation9], 0  ;;  %s4149_s0 = inlined_call_operand.hbm [shape: s32[19], index: 0, kind: input, shape index: {}]   ;;  %s4150_s1 = inlined_call_operand.hbm [shape: s32[19], index: 1, kind: input, shape index: {}]   ;;  %s4151_s2 = inlined_call_operand.hbm [shape: s32[8,128], index: 2, kind: input, shape index: {}]   ;;  %s4152_s3 = inlined_call_operand.hbm [shape: f32[8,32,128], index: 3, kind: input, shape index: {}]   ;;  %s4153_s4 = inlined_call_operand.hbm [shape: f32[19,8,128], index: 4, kind: output, shape index: {}]  }
   0x1   :  { %10 = vsyncpa [#allocation11], 0 }
   0x2   :  { %11 = vsyncpa [#allocation7], 0 }
   0x3   :  { %12 = vsyncpa [#allocation14], 0 }
   0x4   :  { %13 = vsyncpa [#allocation8], 0 }
   0x5   :  { %15 = vsyncpa [#allocation8 + $0x1], 0  ;;  %s2449_s15 = smov 0   ;;  %s2451_s16 = smov 0  }
   0x6   :  { %s2453_s17 = smov 0   ;;  %s2455_s18 = smov 0  }
   0x7 LB: > { %s2470_s19 = sadd.s32 4294967295, %s2389_s18   ;;  %s1665_s20 = sadd.s32 4294967294, %s2389_s18   ;;  %s2389_s18 = sphi %s2455_s18, %s4332_s18   ;;  %s2385_s17 = sphi %s2453_s17, %s4331_s17   ;;  %s2381_s16 = sphi %s2451_s16, %s4330_s16   ;;  %s2377_s15 = sphi %s2449_s15, %s4329_s15  }
   0x8   : > { %s2474_s21 = sadd.s32 1, %s2389_s18   ;;  %s112_s22 = sadd.s32 1, %s2385_s17 }
   0x9   : > { %s109_s23 = ssub.s32 %s2389_s18, %s2474_s21  ;;  %p122_p0 = scmp.ne.s32.totalorder %s2385_s17, %s2381_s16 }
   0xa   : > { %p110_p1 = scmp.eq.s32.totalorder %s109_s23, 0  ;;  %p123_p2 = scmp.eq.s32.totalorder %s2470_s19, 18 }
   0xb   : > { %p128_p3 = scmp.ne.s32.totalorder %s2381_s16, %s2377_s15  ;;  %p129_p4 = scmp.eq.s32.totalorder %s1665_s20, 18 }
   0xc   : > { %s2485_s24 = scalar_select %p110_p1, %s2385_s17, %s112_s22  }
   0xd   : > { %p2487_p5 = por %p123_p2, %p122_p0  ;;  %p2491_p6 = por %p129_p4, %p128_p3 }
   0xe   : > { %p1666_p7 = scmp.ge.s32.totalorder %s2389_s18, 1  ;;  %p136_p8 = scmp.lt.s32.totalorder %s2389_s18, 20 }
   0xf   : > { %p2113_p9 = scmp.eq.s32.totalorder %s2470_s19, 0  ;;  %s148_s30 = sshll.u32 %s4149_s0, 4  ;;  %s149_s30 = int_to_ptr.hbm [resolvable:$true] %s148_s30 }
  0x10   : > { %p2498_p10 = pnand %p1666_p7, %p136_p8  ;;  %s158_s7 = sshll.u32 %s4150_s1, 4  ;;  %s159_s7 = int_to_ptr.hbm [resolvable:$true] %s158_s7 }
  0x11   : > { %s168_s11 = sshll.u32 %s4151_s2, 4  ;;  %s2407_s12 = smov [#allocation12]   ;;  %s169_s11 = int_to_ptr.hbm [resolvable:$true] %s168_s11 }
  0x12   : > { %p2096_p11 = pneg %p2498_p10  ;;  %s170_s13 = sshll.u32 %s2407_s12, 4  ;;  %s171_s13 = int_to_ptr.vmem [resolvable:$true] %s170_s13 }
  0x13   : > { %s2408_s14 = smov [#allocation6]   ;;  %s2409_s20 = smov [#allocation10]  }
  0x14   : > { %p2512_p12 = pnand %p2113_p9, %p2096_p11  ;;  %s179_s28 = sshll.u32 %s4152_s3, 4  ;;  %s180_s28 = int_to_ptr.hbm [resolvable:$true] %s179_s28 }
  0x15   : > { %s2410_s29 = smov [#allocation13]   ;;  %s2411_s6 = smov 128  }
  0x16   : > { %2099 = dma.hbm_to_smem (!%p2512_p12), %s149_s30, 16, %s2408_s14, [#allocation9]  }
  0x17   : > { %2102 = dma.hbm_to_smem (!%p2512_p12), %s159_s7, 16, %s2409_s20, [#allocation11]  }
  0x18   : > { %2105 = dma.hbm_to_vmem [thread:$0]  (!%p2512_p12), %s169_s11, 128, %s171_s13, [#allocation7]  }
  0x19   : > { %s181_s5 = sshll.u32 %s2410_s29, 4  ;;  %s2412_s9 = smov 8   ;;  %s182_s5 = int_to_ptr.vmem [resolvable:$true] %s181_s5 }
  0x1a   : > { %2108 = dma.hbm_to_vmem [thread:$0]  (!%p2512_p12), %s180_s28, 4096, %s182_s5, [#allocation14], %s2411_s6, %s2411_s6, %s2412_s9  }
  0x1b   : > { %197 = sbr.rel (%p2498_p10) target bundleno = 1600 (0x640), region = 36 }
  0x20   : > { %2356 = dma.done.wait (%p2113_p9), [#allocation9], 16  }
  0x21   : > { %2358 = vsyncadd (%p2113_p9), [#allocation9], 4294967280 }
  0x22   : > { %2360 = dma.done.wait (%p2113_p9), [#allocation11], 16  }
  0x23   : > { %2362 = vsyncadd (%p2113_p9), [#allocation11], 4294967280 }
  0x24   : > { %2364 = dma.done.wait (%p2113_p9), [#allocation7], 128  }
  0x25   : > { %2366 = vsyncadd (%p2113_p9), [#allocation7], 4294967168 }
  0x26   : > { %2368 = dma.done.wait (%p2113_p9), [#allocation14], 4096  }
  0x27   : > { %2370 = vsyncadd (%p2113_p9), [#allocation14], 4294963200 }
  0x28   : > { %219 = sfence }
  0x29   : > { %v237_v0 = vld [vmem:[#allocation12] sm:$0xff]  ;;  %v238_v1 = vstv %s2470_s19  ;;  %s235_s27 = sld [smem:[#allocation6 + %s2470_s19]]  ;;  %v2413_v3 = vmov 0   ;;  %vm2414_vm3 = vmmov 1   ;;  %s232_s7 = sand.u32 1, %s2381_s16   ;;  %v2415_v59 = vmov 0.0  }
  0x2a   : > { %vm2550_vm0 = vcmp.eq.s32.totalorder %v237_v0, %v238_v1  ;;  %s236_s30 = sld [smem:[#allocation10 + %s2470_s19]]  ;;  %vm250_vm2 = vcmp.ne.s32.totalorder %v237_v0, 1073741823  ;;  %s1676_s8 = sshll.u32 %s232_s7, 3 }
  0x2b   : > { %v252_v4 = vsel %vm2550_vm0, 1, %v2413_v3  ;;  %vm245_vm4 = vmxor %vm2550_vm0, %vm2414_vm3  ;;  %s2574_s10 = scalar_lea.vmem [#allocation15], %s1676_s8 }
  0x2c   : > { %v254_v5 = vshrl.u32 %v252_v4, 16  ;;  %v253_v19 = vand.u32 65535, %v252_v4  ;;  %318 = vst [vmem:[%s2574_s10] sm:$0xff] %v2415_v59 }
  0x2e   : > { %v256_v6 = vcvt.s32.f32 %v254_v5  ;;  %v255_v21 = vcvt.s32.f32 %v253_v19 }
  0x2f   : > { %v240_v7 = vstv %s235_s27 }
  0x30   : > { %259 = vadd.xlane.f32.xlu0 %v256_v6  ;;  %v242_v8 = vstv %s236_s30  ;;  %vm247_vm1 = vcmp.lt.s32.totalorder %v237_v0, %v240_v7  ;;  %vm241_vm6 = vcmp.ge.s32.totalorder %v237_v0, %v240_v7 }
  0x31   : > { %vm248_vm5 = vcmp.ge.s32.totalorder %v237_v0, %v242_v8  ;;  %vm243_vm7 = vcmp.lt.s32.totalorder %v237_v0, %v242_v8 }
  0x32   : > { %vm249_vm8 = vmor %vm247_vm1, %vm248_vm5 }
  0x33   : > { %vm2559_vm9 = vmand %vm249_vm8, %vm250_vm2 }
  0x34   : > { %v292_v10 = vsel %vm2559_vm9, 1, %v2413_v3  ;;  %vm244_vm10 = vmand %vm241_vm6, %vm243_vm7 }
  0x35   : > { %v294_v11 = vshrl.u32 %v292_v10, 16  ;;  %vm2565_vm11 = vmand %vm244_vm10, %vm245_vm4  ;;  %v293_v20 = vand.u32 65535, %v292_v10 }
  0x36   : > { %v272_v13 = vsel %vm2565_vm11, 1, %v2413_v3 }
  0x37   : > { %v296_v14 = vcvt.s32.f32 %v294_v11  ;;  %v274_v15 = vshrl.u32 %v272_v13, 16  ;;  %v273_v16 = vand.u32 65535, %v272_v13  ;;  %v295_v22 = vcvt.s32.f32 %v293_v20 }
  0x39   : > { %299 = vadd.xlane.f32.xlu1 %v296_v14  ;;  %v276_v17 = vcvt.s32.f32 %v274_v15  ;;  %v275_v18 = vcvt.s32.f32 %v273_v16 }
  0x3b   : > { %279 = vadd.xlane.f32.xlu0 %v276_v17  ;;  %277 = vadd.xlane.f32.xlu2 %v275_v18 }
  0x41   : > { %257 = vadd.xlane.f32.xlu1 %v255_v21 }
  0x43   : > { %297 = vadd.xlane.f32.xlu2 %v295_v22 }
  0xa3   : > { %v260_v23 = vpop.xlane.xlu0 %259 }
  0xa4   : > { %v262_v28 = vcvt.f32.s32 %v260_v23 }
  0xa6   : > { %v263_v34 = vshll.u32 %v262_v28, 16 }
  0xac   : > { %v300_v24 = vpop.xlane.xlu1 %299 }
  0xad   : > { %v302_v31 = vcvt.f32.s32 %v300_v24 }
  0xae   : > { %v280_v25 = vpop.xlane.xlu0 %279  ;;  %v278_v26 = vpop.xlane.xlu2 %277 }
  0xaf   : > { %v282_v27 = vcvt.f32.s32 %v280_v25  ;;  %v281_v30 = vcvt.f32.s32 %v278_v26  ;;  %v303_v38 = vshll.u32 %v302_v31, 16 }
  0xb1   : > { %v283_v29 = vshll.u32 %v282_v27, 16 }
  0xb3   : > { %v284_v32 = vadd.s32 %v283_v29, %v281_v30 }
  0xb4   : > { %v258_v33 = vpop.xlane.xlu1 %257 }
  0xb5   : > { %v285_v35 = vrot.slane %v284_v32, 4  ;;  %v261_v36 = vcvt.f32.s32 %v258_v33 }
  0xb6   : > { %v298_v37 = vpop.xlane.xlu2 %297 }
  0xb7   : > { %v286_v39 = vadd.s32 %v285_v35, %v284_v32  ;;  %v264_v40 = vadd.s32 %v263_v34, %v261_v36  ;;  %v301_v41 = vcvt.f32.s32 %v298_v37 }
  0xb9   : > { %v265_v42 = vrot.slane %v264_v40, 4  ;;  %v304_v43 = vadd.s32 %v303_v38, %v301_v41  ;;  %v287_v44 = vrot.slane %v286_v39, 2 }
  0xbb   : > { %v266_v45 = vadd.s32 %v265_v42, %v264_v40  ;;  %v305_v46 = vrot.slane %v304_v43, 4  ;;  %v288_v47 = vadd.s32 %v287_v44, %v286_v39 }
  0xbd   : > { %v306_v48 = vadd.s32 %v305_v46, %v304_v43  ;;  %v267_v49 = vrot.slane %v266_v45, 2  ;;  %v289_v52 = vrot.slane %v288_v47, 1 }
  0xbf   : > { %v268_v50 = vadd.s32 %v267_v49, %v266_v45  ;;  %v307_v51 = vrot.slane %v306_v48, 2  ;;  %v290_v57 = vadd.s32 %v289_v52, %v288_v47 }
  0xc1   : > { %v269_v53 = vrot.slane %v268_v50, 1  ;;  %v308_v54 = vadd.s32 %v307_v51, %v306_v48 }
  0xc3   : > { %v270_v55 = vadd.s32 %v269_v53, %v268_v50  ;;  %v309_v56 = vrot.slane %v308_v54, 1 }
  0xc5   : > { %2047 = vpush %v270_v55  ;;  %v310_v58 = vadd.s32 %v309_v56, %v308_v54 }
  0xc6   : > { %2049 = vpush %v290_v57 }
  0xc7   : > { %2051 = vpush %v310_v58 }
  0xf6   : > { %s2048_s11 = spop %2047 }
  0xf7   : > { %s2050_s12 = spop %2049 }
  0xf8   : > { %p312_p13 = scmp.lt.s32.totalorder %s2048_s11, %s2050_s12  ;;  %s2052_s13 = spop %2051 }
  0xf9   : > { %p314_p0 = scmp.lt.s32.totalorder %s2052_s13, 200 }
  0xfa   : > { %s4334_s11 = smov (!%p312_p13, %s2048_s11), %s2050_s12 }
  0xfb   : > { %s4336_s13 = smov (!%p314_p0, %s2052_s13), 200 }
  0xfc   : > { %p316_p1 = scmp.lt.s32.totalorder %s4334_s11, %s4336_s13 }
  0xfe   : > { %s4338_s11 = smov (!%p316_p1, %s4334_s11), %s4336_s13 }
  0xff   : > { %p1677_p2 = scmp.le.s32.totalorder %s4338_s11, 0 }
 0x100   : > { %p1748_p3 = scmp.gt.s32.totalorder (!%p1677_p2), %s4338_s11, 0 }
 0x101   : > { %322 = sbr.rel (%p1677_p2) target bundleno = 1585 (0x631), region = 56 }
 0x102   : > { %p1601_p4 = por (!%p1677_p2), %p1748_p3, %p1748_p3 }
 0x104   : > { %p1603_p7 = por (!%p1677_p2), %p1748_p3, %p1601_p4 }
 0x106   : > { %v347_v60 = vlaneseq  ;;  %v2416_v13 = vmov 1.0   ;;  %s2824_s14 = smov (%p1603_p7), 0   ;;  %s2826_s20 = smov (%p1603_p7), 0  }
 0x107   : > { %s2828_s22 = smov (%p1603_p7), 0   ;;  %s2830_s23 = smov (%p1603_p7), 0  }
 0x108   : > { %v2580_v61 = vshrl.u32 %v347_v60, 7  ;;  %v2582_v62 = vand.u32 127, %v347_v60 }
 0x10a   : > { %v363_v63 = vadd.s32 120, %v2580_v61  ;;  %v486_v0 = vadd.s32 128, %v2580_v61  ;;  %v487_v1 = vadd.s32 136, %v2580_v61  ;;  %v488_v3 = vadd.s32 144, %v2580_v61 }
 0x10b   : > { %v489_v4 = vadd.s32 152, %v2580_v61  ;;  %v490_v5 = vadd.s32 160, %v2580_v61  ;;  %v491_v6 = vadd.s32 168, %v2580_v61  ;;  %v492_v7 = vadd.s32 176, %v2580_v61 }
 0x10c   : > { %vm381_vm12 = vcmp.le.s32.totalorder %v363_v63, %v2582_v62  ;;  %v493_v8 = vadd.s32 184, %v2580_v61  ;;  %v494_v10 = vadd.s32 192, %v2580_v61  ;;  %v495_v11 = vadd.s32 200, %v2580_v61 }
 0x10d   : > { %1731 = vmatpush.msk.msra.mxu2 %vm381_vm12, %v2416_v13  ;;  %v496_v14 = vadd.s32 208, %v2580_v61  ;;  %v497_v15 = vadd.s32 216, %v2580_v61  ;;  %v498_v16 = vadd.s32 224, %v2580_v61  ;;  %v499_v17 = vadd.s32 232, %v2580_v61  ;;  %1695 = vmatpush.msk.msra.mxu0 %vm381_vm12, %v2416_v13 }
 0x10e   : > { %v500_v18 = vadd.s32 240, %v2580_v61  ;;  %v501_v19 = vadd.s32 248, %v2580_v61  ;;  %v2605_v20 = vadd.s32 1, %v2580_v61  ;;  %v2607_v21 = vadd.s32 1, %v363_v63  ;;  %1713 = vmatpush.msk.msra.mxu1 %vm381_vm12, %v2416_v13 }
 0x10f   : > { %v2610_v22 = vadd.s32 1, %v486_v0  ;;  %v2612_v23 = vadd.s32 1, %v487_v1  ;;  %v2614_v24 = vadd.s32 1, %v488_v3  ;;  %v2616_v25 = vadd.s32 1, %v489_v4 }
 0x110   : > { %v2618_v26 = vadd.s32 1, %v490_v5  ;;  %v2620_v27 = vadd.s32 1, %v491_v6  ;;  %v2622_v28 = vadd.s32 1, %v492_v7  ;;  %v2624_v29 = vadd.s32 1, %v493_v8 }
 0x111   : > { %v2626_v30 = vadd.s32 1, %v494_v10  ;;  %v2628_v31 = vadd.s32 1, %v495_v11  ;;  %v2630_v32 = vadd.s32 1, %v496_v14  ;;  %v2632_v33 = vadd.s32 1, %v497_v15 }
 0x112   : > { %v2634_v34 = vadd.s32 1, %v498_v16  ;;  %v2636_v35 = vadd.s32 1, %v499_v17  ;;  %v2638_v36 = vadd.s32 1, %v500_v18  ;;  %v2640_v37 = vadd.s32 1, %v501_v19 }
 0x113   : > { %v362_v38 = vadd.s32 112, %v2580_v61  ;;  %v361_v39 = vadd.s32 104, %v2580_v61  ;;  %v360_v40 = vadd.s32 96, %v2580_v61  ;;  %v359_v41 = vadd.s32 88, %v2580_v61 }
 0x114   : > { %v358_v42 = vadd.s32 80, %v2580_v61  ;;  %v357_v43 = vadd.s32 72, %v2580_v61  ;;  %v356_v48 = vadd.s32 64, %v2580_v61  ;;  %v355_v49 = vadd.s32 56, %v2580_v61 }
 0x115   : > { %vm380_vm13 = vcmp.le.s32.totalorder %v362_v38, %v2582_v62  ;;  %v2649_v44 = vadd.s32 1, %v362_v38  ;;  %vm379_vm14 = vcmp.le.s32.totalorder %v361_v39, %v2582_v62  ;;  %v2652_v45 = vadd.s32 1, %v361_v39 }
 0x116   : > { %1732 = vmatpush.msk.msra.mxu2 %vm380_vm13, %v2416_v13  ;;  %v2655_v46 = vadd.s32 1, %v360_v40  ;;  %1696 = vmatpush.msk.msra.mxu0 %vm380_vm13, %v2416_v13  ;;  %v2658_v47 = vadd.s32 1, %v359_v41  ;;  %vm378_vm15 = vcmp.le.s32.totalorder %v360_v40, %v2582_v62  ;;  %v2664_v50 = vadd.s32 1, %v358_v42 }
 0x117   : > { %1714 = vmatpush.msk.msra.mxu1 %vm380_vm13, %v2416_v13  ;;  %v2666_v51 = vadd.s32 1, %v357_v43  ;;  %v2674_v52 = vadd.s32 1, %v356_v48  ;;  %v2676_v53 = vadd.s32 1, %v355_v49  ;;  %vm377_vm1 = vcmp.le.s32.totalorder %v359_v41, %v2582_v62 }
 0x118   : > { %1733 = vmatpush.msk.msra.mxu2 %vm379_vm14, %v2416_v13  ;;  %1697 = vmatpush.msk.msra.mxu0 %vm379_vm14, %v2416_v13  ;;  %v354_v54 = vadd.s32 48, %v2580_v61  ;;  %v353_v55 = vadd.s32 40, %v2580_v61  ;;  %vm376_vm2 = vcmp.le.s32.totalorder %v358_v42, %v2582_v62  ;;  %v352_v56 = vadd.s32 32, %v2580_v61 }
 0x119   : > { %1715 = vmatpush.msk.msra.mxu1 %vm379_vm14, %v2416_v13  ;;  %v2693_v57 = vadd.s32 24, %v2580_v61  ;;  %v2703_v60 = vadd.s32 16, %v2580_v61  ;;  %v2706_v63 = vadd.s32 8, %v2580_v61  ;;  %v2417_v0 = vmov 0.0  }
 0x11a   : > { %1734 = vmatpush.msk.msra.mxu2 %vm378_vm15, %v2416_v13  ;;  %1698 = vmatpush.msk.msra.mxu0 %vm378_vm15, %v2416_v13  ;;  %v2698_v58 = vadd.s32 1, %v354_v54  ;;  %v2700_v59 = vadd.s32 1, %v353_v55  ;;  %323 = vst [vmem:[#allocation2 + $0xb0] sm:$0xff] %v2417_v0  ;;  %v2715_v1 = vadd.s32 1, %v352_v56  ;;  %vm375_vm3 = vcmp.le.s32.totalorder %v357_v43, %v2582_v62 }
 0x11b   : > { %1716 = vmatpush.msk.msra.mxu1 %vm378_vm15, %v2416_v13  ;;  %v2718_v3 = vadd.s32 1, %v2693_v57  ;;  %324 = vst [vmem:[#allocation2] sm:$0xff] %v2417_v0  ;;  %v2726_v4 = vadd.s32 1, %v2703_v60  ;;  %v2729_v5 = vadd.s32 1, %v2706_v63  ;;  %vm374_vm4 = vcmp.le.s32.totalorder %v356_v48, %v2582_v62 }
 0x11c   : > { %1735 = vmatpush.msk.msra.mxu2 %vm377_vm1, %v2416_v13  ;;  %1699 = vmatpush.msk.msra.mxu0 %vm377_vm1, %v2416_v13  ;;  %325 = vst [vmem:[#allocation2 + $0x10] sm:$0xff] %v2417_v0  ;;  %vm373_vm5 = vcmp.le.s32.totalorder %v355_v49, %v2582_v62  ;;  %vm372_vm6 = vcmp.le.s32.totalorder %v354_v54, %v2582_v62  ;;  %v1694_v6 = vsel %vm2550_vm0, 1.0, %v2417_v0  ;;  %v1712_v7 = vsel %vm2565_vm11, 1.0, %v2417_v0 }
 0x11d   : > { %1717 = vmatpush.msk.msra.mxu1 %vm377_vm1, %v2416_v13  ;;  %326 = vst [vmem:[#allocation2 + $0x48] sm:$0xff] %v2417_v0  ;;  %vm371_vm7 = vcmp.le.s32.totalorder %v353_v55, %v2582_v62  ;;  %vm370_vm8 = vcmp.le.s32.totalorder %v352_v56, %v2582_v62  ;;  %vm369_vm10 = vcmp.le.s32.totalorder %v2693_v57, %v2582_v62  ;;  %v1730_v15 = vsel %vm2559_vm9, 1.0, %v2417_v0 }
 0x11e   : > { %1736 = vmatpush.msk.msra.mxu2 %vm376_vm2, %v2416_v13  ;;  %1700 = vmatpush.msk.msra.mxu0 %vm376_vm2, %v2416_v13  ;;  %327 = vst [vmem:[#allocation2 + $0x60] sm:$0xff] %v2417_v0  ;;  %vm368_vm12 = vcmp.le.s32.totalorder %v2703_v60, %v2582_v62  ;;  %vm367_vm13 = vcmp.le.s32.totalorder %v2706_v63, %v2582_v62 }
 0x11f   : > { %1718 = vmatpush.msk.msra.mxu1 %vm376_vm2, %v2416_v13  ;;  %328 = vst [vmem:[#allocation2 + $0x28] sm:$0xff] %v2417_v0  ;;  %vm366_vm14 = vcmp.le.s32.totalorder %v2580_v61, %v2582_v62 }
 0x120   : > { %1737 = vmatpush.msk.msra.mxu2 %vm375_vm3, %v2416_v13  ;;  %1701 = vmatpush.msk.msra.mxu0 %vm375_vm3, %v2416_v13  ;;  %329 = vst [vmem:[#allocation2 + $0x40] sm:$0xff] %v2417_v0 }
 0x121   : > { %1719 = vmatpush.msk.msra.mxu1 %vm375_vm3, %v2416_v13  ;;  %330 = vst [vmem:[#allocation2 + $0x78] sm:$0xff] %v2417_v0 }
 0x122   : > { %1738 = vmatpush.msk.msra.mxu2 %vm374_vm4, %v2416_v13  ;;  %1702 = vmatpush.msk.msra.mxu0 %vm374_vm4, %v2416_v13  ;;  %331 = vst [vmem:[#allocation2 + $0x88] sm:$0xff] %v2417_v0 }
 0x123   : > { %1720 = vmatpush.msk.msra.mxu1 %vm374_vm4, %v2416_v13  ;;  %332 = vst [vmem:[#allocation2 + $0x90] sm:$0xff] %v2417_v0 }
 0x124   : > { %1739 = vmatpush.msk.msra.mxu2 %vm373_vm5, %v2416_v13  ;;  %1703 = vmatpush.msk.msra.mxu0 %vm373_vm5, %v2416_v13  ;;  %333 = vst [vmem:[#allocation2 + $0x18] sm:$0xff] %v2417_v0 }
 0x125   : > { %1721 = vmatpush.msk.msra.mxu1 %vm373_vm5, %v2416_v13  ;;  %334 = vst [vmem:[#allocation2 + $0x98] sm:$0xff] %v2417_v0 }
 0x126   : > { %1740 = vmatpush.msk.msra.mxu2 %vm372_vm6, %v2416_v13  ;;  %1704 = vmatpush.msk.msra.mxu0 %vm372_vm6, %v2416_v13  ;;  %335 = vst [vmem:[#allocation2 + $0x38] sm:$0xff] %v2417_v0 }
 0x127   : > { %1722 = vmatpush.msk.msra.mxu1 %vm372_vm6, %v2416_v13  ;;  %336 = vst [vmem:[#allocation2 + $0x50] sm:$0xff] %v2417_v0 }
 0x128   : > { %1741 = vmatpush.msk.msra.mxu2 %vm371_vm7, %v2416_v13  ;;  %1705 = vmatpush.msk.msra.mxu0 %vm371_vm7, %v2416_v13  ;;  %337 = vst [vmem:[#allocation2 + $0x70] sm:$0xff] %v2417_v0 }
 0x129   : > { %1723 = vmatpush.msk.msra.mxu1 %vm371_vm7, %v2416_v13  ;;  %338 = vst [vmem:[#allocation2 + $0xa0] sm:$0xff] %v2417_v0 }
 0x12a   : > { %1742 = vmatpush.msk.msra.mxu2 %vm370_vm8, %v2416_v13  ;;  %1706 = vmatpush.msk.msra.mxu0 %vm370_vm8, %v2416_v13  ;;  %339 = vst [vmem:[#allocation2 + $0xa8] sm:$0xff] %v2417_v0 }
 0x12b   : > { %1724 = vmatpush.msk.msra.mxu1 %vm370_vm8, %v2416_v13  ;;  %340 = vst [vmem:[#allocation2 + $0x68] sm:$0xff] %v2417_v0 }
 0x12c   : > { %1743 = vmatpush.msk.msra.mxu2 %vm369_vm10, %v2416_v13  ;;  %1707 = vmatpush.msk.msra.mxu0 %vm369_vm10, %v2416_v13  ;;  %341 = vst [vmem:[#allocation2 + $0x30] sm:$0xff] %v2417_v0 }
 0x12d   : > { %1725 = vmatpush.msk.msra.mxu1 %vm369_vm10, %v2416_v13  ;;  %342 = vst [vmem:[#allocation2 + $0x58] sm:$0xff] %v2417_v0 }
 0x12e   : > { %1744 = vmatpush.msk.msra.mxu2 %vm368_vm12, %v2416_v13  ;;  %1708 = vmatpush.msk.msra.mxu0 %vm368_vm12, %v2416_v13  ;;  %343 = vst [vmem:[#allocation2 + $0x80] sm:$0xff] %v2417_v0 }
 0x12f   : > { %1726 = vmatpush.msk.msra.mxu1 %vm368_vm12, %v2416_v13  ;;  %344 = vst [vmem:[#allocation2 + $0xb8] sm:$0xff] %v2417_v0 }
 0x130   : > { %1745 = vmatpush.msk.msra.mxu2 %vm367_vm13, %v2416_v13  ;;  %1709 = vmatpush.msk.msra.mxu0 %vm367_vm13, %v2416_v13  ;;  %345 = vst [vmem:[#allocation2 + $0x20] sm:$0xff] %v2417_v0 }
 0x131   : > { %1727 = vmatpush.msk.msra.mxu1 %vm367_vm13, %v2416_v13  ;;  %346 = vst [vmem:[#allocation2 + $0x8] sm:$0xff] %v2417_v0 }
 0x132   : > { %1746 = vmatpush.msk.msra.mxu2 %vm366_vm14, %v2416_v13  ;;  %1710 = vmatpush.msk.msra.mxu0 %vm366_vm14, %v2416_v13 }
 0x133   : > { %1747 = vmatmul.msk.f32.vlgmr.msra.gmra.mxu2 %vm2559_vm9, %v2416_v13  ;;  %1728 = vmatpush.msk.msra.mxu1 %vm366_vm14, %v2416_v13 }
 0x134   : > { %1711 = vmatmul.msk.f32.vlgmr.msra.gmra.mxu0 %vm2550_vm0, %v2416_v13  ;;  %1729 = vmatmul.msk.f32.vlgmr.msra.gmra.mxu1 %vm2565_vm11, %v2416_v13 }
 0x1b1   : > { %v432_v8 = vpop.f32.mrf.mxu0  ;;  %v456_v10 = vpop.f32.mrf.mxu1 }
 0x1b2   : > { %v435_v11 = vmul.f32 %v1694_v6, %v432_v8  ;;  %v459_v14 = vmul.f32 %v1712_v7, %v456_v10 }
 0x1b4   : > { %vm2053_vm15 = vcmp.lt.s32.totalorder %v435_v11, 0  ;;  %v2054_v16 = vceil.f32 %v435_v11  ;;  %v2055_v17 = vfloor.f32 %v435_v11  ;;  %vm2058_vm1 = vcmp.lt.s32.totalorder %v459_v14, 0 }
 0x1b5   : > { %v2059_v13 = vceil.f32 %v459_v14  ;;  %v2060_v18 = vfloor.f32 %v459_v14 }
 0x1b6   : > { %v2056_v2 = vsel %vm2053_vm15, %v2054_v16, %v2055_v17  ;;  %v480_v19 = vpop.f32.mrf.mxu2 }
 0x1b7   : > { %v2057_v38 = vcvt.f32.s32 %v2056_v2  ;;  %v2061_v39 = vsel %vm2058_vm1, %v2059_v13, %v2060_v18  ;;  %v483_v12 = vmul.f32 %v1730_v15, %v480_v19 }
 0x1b8   : > { %v2062_v40 = vcvt.f32.s32 %v2061_v39 }
 0x1b9   : > { %437 = vst [vmem:[#allocation3] sm:$0xff] %v2057_v38  ;;  %vm2063_vm0 = vcmp.lt.s32.totalorder %v483_v12, 0  ;;  %v2064_v41 = vceil.f32 %v483_v12  ;;  %v2065_v42 = vfloor.f32 %v483_v12 }
 0x1ba   : > { %461 = vst [vmem:[#allocation4] sm:$0xff] %v2062_v40  ;;  %1605 = sbr.rel (!%p1603_p7) target bundleno = 1364 (0x554), region = 111 }
 0x1bb   : > { %v2066_v43 = vsel %vm2063_vm0, %v2064_v41, %v2065_v42 }
 0x1bc   : > { %v2067_v9 = vcvt.f32.s32 %v2066_v43 }
 0x1be   : > { %485 = vst [vmem:[#allocation5] sm:$0xff] %v2067_v9 }
 0x1bf LB: >> { %vm555_vm9 = vcmask 1040384   ;;  %s549_s28 = scalar_lea.vmem [#allocation3], %s2405_s23  ;;  %s551_s29 = scalar_lea.vmem [#allocation4], %s2405_s23  ;;  %s2405_s23 = sphi %s2830_s23, %s1399_s23   ;;  %s2401_s22 = sphi %s2828_s22, %s1400_s22   ;;  %s2397_s20 = sphi %s2826_s20, %s1401_s20   ;;  %s2393_s14 = sphi %s2824_s14, %s1402_s14  }
 0x1c0   : >> { %v2845_v48 = vld [vmem:[%s549_s28] sm:$0x1]  ;;  %s553_s5 = scalar_lea.vmem [#allocation5], %s2405_s23  ;;  %p631_p8 = scmp.lt.s32.totalorder %s2401_s22, %s4338_s11 }
 0x1c1   : >> { %v2848_v49 = vld [vmem:[%s551_s29] sm:$0x1]  ;;  %v556_v54 = vsel %vm555_vm9, %v2845_v48, 2147483648  ;;  %p632_p9 = scmp.lt.s32.totalorder %s2397_s20, %s4338_s11  ;;  %p634_p11 = scmp.lt.s32.totalorder %s2393_s14, %s4338_s11 }
 0x1c2   : >> { %v558_v56 = vshra.s32 %v556_v54, 16  ;;  %v581_v60 = vsel %vm555_vm9, %v2848_v49, 2147483648  ;;  %v557_v11 = vand.u32 65535, %v556_v54 }
 0x1c3   : >> { %v583_v8 = vshra.s32 %v581_v60, 16  ;;  %v582_v17 = vand.u32 65535, %v581_v60  ;;  %p633_p10 = por %p632_p9, %p631_p8 }
 0x1c4   : >> { %v560_v6 = vcvt.s32.f32 %v558_v56  ;;  %v559_v14 = vcvt.s32.f32 %v557_v11 }
 0x1c5   : >> { %v2852_v55 = vld [vmem:[%s553_s5] sm:$0x1]  ;;  %v585_v10 = vcvt.s32.f32 %v583_v8  ;;  %v584_v13 = vcvt.s32.f32 %v582_v17  ;;  %p2862_p12 = por %p634_p11, %p633_p10 }
 0x1c6   : >> { %v606_v57 = vsel %vm555_vm9, %v2852_v55, 2147483648  ;;  %561 = vmax.xlane.f32.xlu0 %v560_v6  ;;  %vm711_vm15 = vcmp.gt.s32.totalorder (%p2862_p12), %v2852_v55, 0  ;;  %s1752_s8 = sshll.u32 (%p2862_p12), %s2405_s23, 5 }
 0x1c7   : >> { %v608_v63 = vshra.s32 %v606_v57, 16  ;;  %v607_v2 = vand.u32 65535, %v606_v57  ;;  %s640_s12 = scalar_lea.vmem (%p2862_p12), [#allocation13], %s1752_s8 }
 0x1c9   : >> { %v610_v7 = vcvt.s32.f32 %v608_v63  ;;  %v609_v39 = vcvt.s32.f32 %v607_v2 }
 0x1cb   : >> { %611 = vmax.xlane.f32.xlu1 %v610_v7 }
 0x1ce   : >> { %586 = vmax.xlane.f32.xlu0 %v585_v10 }
 0x239   : >> { %v562_v15 = vpop.xlane.xlu0 %561 }
 0x23a   : >> { %vm563_vm11 = vcmp.eq.f32.partialorder %v560_v6, %v562_v15  ;;  %v568_v40 = vcvt.f32.s32 %v562_v15 }
 0x23b   : >> { %v564_v16 = vsel %vm563_vm11, %v559_v14, -inf }
 0x23c   : >> { %565 = vmax.xlane.f32.xlu1 %v564_v16  ;;  %v569_v42 = vshll.u32 %v568_v40, 16 }
 0x23e   : >> { %v612_v38 = vpop.xlane.xlu1 %611 }
 0x23f   : >> { %vm613_vm3 = vcmp.eq.f32.partialorder %v610_v7, %v612_v38  ;;  %v618_v11 = vcvt.f32.s32 %v612_v38 }
 0x240   : >> { %v614_v12 = vsel %vm613_vm3, %v609_v39, -inf }
 0x241   : >> { %v587_v18 = vpop.xlane.xlu0 %586  ;;  %v619_v2 = vshll.u32 %v618_v11, 16 }
 0x242   : >> { %vm588_vm2 = vcmp.eq.f32.partialorder %v585_v10, %v587_v18  ;;  %v593_v54 = vcvt.f32.s32 %v587_v18 }
 0x243   : >> { %v589_v19 = vsel %vm588_vm2, %v584_v13, -inf }
 0x244   : >> { %590 = vmax.xlane.f32.xlu2 %v589_v19  ;;  %v594_v63 = vshll.u32 %v593_v54, 16 }
 0x24c   : >> { %615 = vmax.xlane.f32.xlu2 %v614_v12 }
 0x2af   : >> { %v566_v41 = vpop.xlane.xlu1 %565 }
 0x2b0   : >> { %v567_v43 = vcvt.f32.s32 %v566_v41 }
 0x2b2   : >> { %v570_v9 = vadd.s32 %v569_v42, %v567_v43 }
 0x2b4   : >> { %v571_v56 = vrot.slane %v570_v9, 4 }
 0x2b6   : >> { %vm572_vm4 = vcmp.gt.s32.totalorder %v570_v9, %v571_v56 }
 0x2b7   : >> { %v591_v57 = vpop.xlane.xlu2 %590  ;;  %v573_v60 = vsel %vm572_vm4, %v570_v9, %v571_v56 }
 0x2b8   : >> { %v592_v6 = vcvt.f32.s32 %v591_v57  ;;  %v574_v7 = vrot.slane %v573_v60, 2  ;;  %v2875_v57 = vstv (%p2862_p12), %s2393_s14 }
 0x2b9   : >> { %v660_v11 = vsub.s32 (%p2862_p12), %v2649_v44, %v2875_v57 }
 0x2ba   : >> { %v595_v8 = vadd.s32 %v594_v63, %v592_v6  ;;  %vm575_vm5 = vcmp.gt.s32.totalorder %v573_v60, %v574_v7  ;;  %v661_v63 = vsub.s32 (%p2862_p12), %v2607_v21, %v2875_v57  ;;  %v2418_v6 = vmov (%p2862_p12), 0  }
 0x2bb   : >> { %v576_v10 = vsel %vm575_vm5, %v573_v60, %v574_v7  ;;  %v2878_v60 = vperm.slane (%p2862_p12), %v2852_v55, 0  ;;  %v712_v7 = vsel (%p2862_p12), %vm711_vm15, 1, %v2418_v6  ;;  %v655_v6 = vsub.s32 (%p2862_p12), %v2666_v51, %v2875_v57  ;;  %v3280_v55 = vld [vmem:[%s640_s12 + $0x18] sm:$0xff] (%p2862_p12) }
 0x2bc   : >> { %v596_v14 = vrot.slane %v595_v8, 4  ;;  %v577_v16 = vrot.slane %v576_v10, 1 }
 0x2bd   : >> { %vm694_vm1 = vcmp.eq.s32.totalorder (%p2862_p12), %v2878_v60, %v661_v63  ;;  %vm2896_vm11 = vcmp.eq.s32.totalorder (%p2862_p12), %v2878_v60, %v660_v11  ;;  %v654_v11 = vsub.s32 (%p2862_p12), %v2674_v52, %v2875_v57  ;;  %v666_v63 = vsub.s32 (%p2862_p12), %v2618_v26, %v2875_v57 }
 0x2be   : >> { %vm597_vm6 = vcmp.gt.s32.totalorder %v595_v8, %v596_v14  ;;  %vm578_vm7 = vcmp.gt.s32.totalorder %v576_v10, %v577_v16 }
 0x2bf   : >> { %v616_v15 = vpop.xlane.xlu2 %615  ;;  %v579_v17 = vsel %vm578_vm7, %v576_v10, %v577_v16  ;;  %v598_v13 = vsel %vm597_vm6, %v595_v8, %v596_v14  ;;  %v677_v8 = vsub.s32 (%p2862_p12), %v2640_v37, %v2875_v57  ;;  %v713_v10 = vperm.slane (%p2862_p12), %v712_v7, 0 }
 0x2c0   : >> { %v617_v18 = vcvt.f32.s32 %v616_v15  ;;  %2068 = vpush %v579_v17  ;;  %v599_v19 = vrot.slane %v598_v13, 2  ;;  %v676_v14 = vsub.s32 (%p2862_p12), %v2638_v36, %v2875_v57  ;;  %v659_v15 = vsub.s32 (%p2862_p12), %v2652_v45, %v2875_v57 }
 0x2c1   : >> { %vm710_vm0 = vcmp.eq.s32.totalorder (%p2862_p12), %v2878_v60, %v677_v8  ;;  %vm2891_vm9 = vcmp.eq.s32.totalorder (%p2862_p12), %v713_v10, 1  ;;  %v671_v8 = vsub.s32 (%p2862_p12), %v2628_v31, %v2875_v57  ;;  %v670_v16 = vsub.s32 (%p2862_p12), %v2626_v30, %v2875_v57 }
 0x2c2   : >> { %v620_v39 = vadd.s32 %v619_v2, %v617_v18  ;;  %vm600_vm8 = vcmp.gt.s32.totalorder %v598_v13, %v599_v19  ;;  %vm730_vm2 = vmand (%p2862_p12), %vm694_vm1, %vm2891_vm9  ;;  %vm2905_vm3 = vcmp.eq.s32.totalorder (%p2862_p12), %v2878_v60, %v676_v14  ;;  %v2419_v2 = vmov (%p2862_p12), 1.0  }
 0x2c3   : >> { %v601_v12 = vsel %vm600_vm8, %v598_v13, %v599_v19  ;;  %v675_v13 = vsub.s32 (%p2862_p12), %v2636_v35, %v2875_v57  ;;  %1951 = vmatpush.xpose.msk.msra.mxu2 (%p2862_p12), %vm730_vm2, %v2419_v2  ;;  %vm746_vm4 = vmand (%p2862_p12), %vm710_vm0, %vm2891_vm9  ;;  %1785 = vmatpush.xpose.msk.msra.mxu0 (%p2862_p12), %vm730_vm2, %v2419_v2  ;;  %vm2926_vm7 = vcmp.eq.s32.totalorder (%p2862_p12), %v2878_v60, %v659_v15 }
 0x2c4   : >> { %v621_v40 = vrot.slane %v620_v39, 4  ;;  %v602_v41 = vrot.slane %v601_v12, 1  ;;  %1967 = vmatpush.xpose.msk.msra.mxu3 (%p2862_p12), %vm746_vm4, %v2419_v2  ;;  %vm729_vm5 = vmand (%p2862_p12), %vm2896_vm11, %vm2891_vm9  ;;  %1801 = vmatpush.xpose.msk.msra.mxu1 (%p2862_p12), %vm746_vm4, %v2419_v2  ;;  %v658_v19 = vsub.s32 (%p2862_p12), %v2655_v46, %v2875_v57  ;;  %v653_v17 = vsub.s32 (%p2862_p12), %v2676_v53, %v2875_v57 }
 0x2c5   : >> { %vm745_vm6 = vmand (%p2862_p12), %vm2905_vm3, %vm2891_vm9  ;;  %vm2933_vm8 = vcmp.eq.s32.totalorder (%p2862_p12), %v2878_v60, %v675_v13  ;;  %v669_v18 = vsub.s32 (%p2862_p12), %v2624_v29, %v2875_v57  ;;  %v649_v7 = vsub.s32 (%p2862_p12), %v2718_v3, %v2875_v57  ;;  %v665_v10 = vsub.s32 (%p2862_p12), %v2616_v25, %v2875_v57 }
 0x2c6   : >> { %vm622_vm10 = vcmp.gt.s32.totalorder %v620_v39, %v621_v40  ;;  %vm603_vm12 = vcmp.gt.s32.totalorder %v601_v12, %v602_v41  ;;  %v648_v14 = vsub.s32 (%p2862_p12), %v2726_v4, %v2875_v57  ;;  %v664_v15 = vsub.s32 (%p2862_p12), %v2614_v24, %v2875_v57 }
 0x2c7   : >> { %v604_v42 = vsel %vm603_vm12, %v601_v12, %v602_v41  ;;  %v623_v38 = vsel %vm622_vm10, %v620_v39, %v621_v40  ;;  %v674_v12 = vsub.s32 (%p2862_p12), %v2634_v34, %v2875_v57  ;;  %1952 = vmatpush.xpose.msk.msra.mxu2 (%p2862_p12), %vm729_vm5, %v2419_v2  ;;  %1786 = vmatpush.xpose.msk.msra.mxu0 (%p2862_p12), %vm729_vm5, %v2419_v2  ;;  %vm728_vm10 = vmand (%p2862_p12), %vm2926_vm7, %vm2891_vm9 }
 0x2c8   : >> { %2070 = vpush %v604_v42  ;;  %v624_v43 = vrot.slane %v623_v38, 2  ;;  %1968 = vmatpush.xpose.msk.msra.mxu3 (%p2862_p12), %vm745_vm6, %v2419_v2  ;;  %1802 = vmatpush.xpose.msk.msra.mxu1 (%p2862_p12), %vm745_vm6, %v2419_v2  ;;  %vm744_vm12 = vmand (%p2862_p12), %vm2933_vm8, %vm2891_vm9  ;;  %v657_v41 = vsub.s32 (%p2862_p12), %v2658_v47, %v2875_v57  ;;  %vm3030_vm8 = vcmp.eq.s32.totalorder (%p2862_p12), %v2878_v60, %v655_v6 }
 0x2c9   : >> { %v652_v39 = vsub.s32 (%p2862_p12), %v2698_v58, %v2875_v57  ;;  %v668_v40 = vsub.s32 (%p2862_p12), %v2622_v28, %v2875_v57  ;;  %v651_v42 = vsub.s32 (%p2862_p12), %v2700_v59, %v2875_v57  ;;  %v647_v13 = vsub.s32 (%p2862_p12), %v2729_v5, %v2875_v57 }
 0x2ca   : >> { %vm625_vm13 = vcmp.gt.s32.totalorder %v623_v38, %v624_v43  ;;  %vm2978_vm0 = vcmp.eq.s32.totalorder (%p2862_p12), %v2878_v60, %v657_v41  ;;  %v3282_v41 = vld [vmem:[%s640_s12 + $0x8] sm:$0xff] (%p2862_p12) }
 0x2cb   : >> { %v626_v9 = vsel %vm625_vm13, %v623_v38, %v624_v43  ;;  %vm2952_vm13 = vcmp.eq.s32.totalorder (%p2862_p12), %v2878_v60, %v658_v19  ;;  %v673_v38 = vsub.s32 (%p2862_p12), %v2632_v33, %v2875_v57  ;;  %1953 = vmatpush.xpose.msk.msra.mxu2 (%p2862_p12), %vm728_vm10, %v2419_v2  ;;  %1787 = vmatpush.xpose.msk.msra.mxu0 (%p2862_p12), %vm728_vm10, %v2419_v2  ;;  %vm726_vm2 = vmand (%p2862_p12), %vm2978_vm0, %vm2891_vm9 }
 0x2cc   : >> { %v627_v54 = vrot.slane %v626_v9, 1  ;;  %1969 = vmatpush.xpose.msk.msra.mxu3 (%p2862_p12), %vm744_vm12, %v2419_v2  ;;  %vm727_vm15 = vmand (%p2862_p12), %vm2952_vm13, %vm2891_vm9  ;;  %1803 = vmatpush.xpose.msk.msra.mxu1 (%p2862_p12), %vm744_vm12, %v2419_v2  ;;  %vm3037_vm10 = vcmp.eq.s32.totalorder (%p2862_p12), %v2878_v60, %v671_v8  ;;  %v667_v43 = vsub.s32 (%p2862_p12), %v2620_v27, %v2875_v57  ;;  %v663_v19 = vsub.s32 (%p2862_p12), %v2612_v23, %v2875_v57 }
 0x2cd   : >> { %vm2985_vm11 = vcmp.eq.s32.totalorder (%p2862_p12), %v2878_v60, %v673_v38  ;;  %vm724_vm12 = vmand (%p2862_p12), %vm3030_vm8, %vm2891_vm9 }
 0x2ce   : >> { %vm628_vm14 = vcmp.gt.s32.totalorder %v626_v9, %v627_v54  ;;  %vm742_vm3 = vmand (%p2862_p12), %vm2985_vm11, %vm2891_vm9  ;;  %vm3082_vm11 = vcmp.eq.s32.totalorder (%p2862_p12), %v2878_v60, %v653_v17 }
 0x2cf   : >> { %v629_v56 = vsel %vm628_vm14, %v626_v9, %v627_v54  ;;  %vm2959_vm14 = vcmp.eq.s32.totalorder (%p2862_p12), %v2878_v60, %v674_v12  ;;  %v656_v9 = vsub.s32 (%p2862_p12), %v2664_v50, %v2875_v57  ;;  %1954 = vmatpush.xpose.msk.msra.mxu2 (%p2862_p12), %vm727_vm15, %v2419_v2  ;;  %1788 = vmatpush.xpose.msk.msra.mxu0 (%p2862_p12), %vm727_vm15, %v2419_v2  ;;  %vm740_vm13 = vmand (%p2862_p12), %vm3037_vm10, %vm2891_vm9 }
 0x2d0   : >> { %2072 = vpush %v629_v56  ;;  %vm743_vm1 = vmand (%p2862_p12), %vm2959_vm14, %vm2891_vm9  ;;  %v672_v56 = vsub.s32 (%p2862_p12), %v2630_v32, %v2875_v57  ;;  %vm3056_vm14 = vcmp.eq.s32.totalorder (%p2862_p12), %v2878_v60, %v654_v11  ;;  %vm3063_vm15 = vcmp.eq.s32.totalorder (%p2862_p12), %v2878_v60, %v670_v16  ;;  %vm3134_vm10 = vcmp.eq.s32.totalorder (%p2862_p12), %v2878_v60, %v651_v42  ;;  %v813_v42 = vld [vmem:[#allocation2 + $0x68] sm:$0xff] (%p2862_p12)  ;;  %v815_v11 = vld [vmem:[#allocation2 + $0x58] sm:$0xff] (%p2862_p12) }
 0x2d1   : >> { %1970 = vmatpush.xpose.msk.msra.mxu3 (%p2862_p12), %vm743_vm1, %v2419_v2  ;;  %1804 = vmatpush.xpose.msk.msra.mxu1 (%p2862_p12), %vm743_vm1, %v2419_v2  ;;  %vm3004_vm4 = vcmp.eq.s32.totalorder (%p2862_p12), %v2878_v60, %v656_v9  ;;  %vm723_vm1 = vmand (%p2862_p12), %vm3056_vm14, %vm2891_vm9  ;;  %v650_v54 = vsub.s32 (%p2862_p12), %v2715_v1, %v2875_v57 }
 0x2d2   : >> { %vm3011_vm5 = vcmp.eq.s32.totalorder (%p2862_p12), %v2878_v60, %v672_v56  ;;  %vm725_vm6 = vmand (%p2862_p12), %vm3004_vm4, %vm2891_vm9  ;;  %v816_v56 = vld [vmem:[#allocation2 + $0x80] sm:$0xff] (%p2862_p12) }
 0x2d3   : >> { %1955 = vmatpush.xpose.msk.msra.mxu2 (%p2862_p12), %vm726_vm2, %v2419_v2  ;;  %1789 = vmatpush.xpose.msk.msra.mxu0 (%p2862_p12), %vm726_vm2, %v2419_v2  ;;  %vm741_vm7 = vmand (%p2862_p12), %vm3011_vm5, %vm2891_vm9  ;;  %vm3089_vm2 = vcmp.eq.s32.totalorder (%p2862_p12), %v2878_v60, %v669_v18  ;;  %vm3108_vm5 = vcmp.eq.s32.totalorder (%p2862_p12), %v2878_v60, %v652_v39  ;;  %v646_v39 = vsub.s32 (%p2862_p12), %v2605_v20, %v2875_v57  ;;  %v818_v18 = vld [vmem:[#allocation2 + $0x20] sm:$0xff] (%p2862_p12) }
 0x2d4   : >> { %vm739_vm0 = vmand (%p2862_p12), %vm3063_vm15, %vm2891_vm9  ;;  %vm3160_vm15 = vcmp.eq.s32.totalorder (%p2862_p12), %v2878_v60, %v650_v54 }
 0x2d5   : >> { %1971 = vmatpush.xpose.msk.msra.mxu3 (%p2862_p12), %vm742_vm3, %v2419_v2  ;;  %1805 = vmatpush.xpose.msk.msra.mxu1 (%p2862_p12), %vm742_vm3, %v2419_v2  ;;  %vm722_vm3 = vmand (%p2862_p12), %vm3082_vm11, %vm2891_vm9 }
 0x2d6   : >> { %vm738_vm4 = vmand (%p2862_p12), %vm3089_vm2, %vm2891_vm9  ;;  %vm3186_vm2 = vcmp.eq.s32.totalorder (%p2862_p12), %v2878_v60, %v649_v7  ;;  %v814_v7 = vld [vmem:[#allocation2 + $0x30] sm:$0xff] (%p2862_p12) }
 0x2d7   : >> { %1956 = vmatpush.xpose.msk.msra.mxu2 (%p2862_p12), %vm725_vm6, %v2419_v2  ;;  %1790 = vmatpush.xpose.msk.msra.mxu0 (%p2862_p12), %vm725_vm6, %v2419_v2  ;;  %vm3115_vm6 = vcmp.eq.s32.totalorder (%p2862_p12), %v2878_v60, %v668_v40  ;;  %v662_v40 = vsub.s32 (%p2862_p12), %v2610_v22, %v2875_v57  ;;  %v3269_v57 = vld [vmem:[%s640_s12 + $0x10] sm:$0xff] (%p2862_p12) }
 0x2d8   : >> { %vm737_vm8 = vmand (%p2862_p12), %vm3115_vm6, %vm2891_vm9  ;;  %vm3212_vm6 = vcmp.eq.s32.totalorder (%p2862_p12), %v2878_v60, %v648_v14 }
 0x2d9   : >> { %1972 = vmatpush.xpose.msk.msra.mxu3 (%p2862_p12), %vm741_vm7, %v2419_v2  ;;  %1806 = vmatpush.xpose.msk.msra.mxu1 (%p2862_p12), %vm741_vm7, %v2419_v2  ;;  %vm721_vm7 = vmand (%p2862_p12), %vm3108_vm5, %vm2891_vm9 }
 0x2db   : >> { %1957 = vmatpush.xpose.msk.msra.mxu2 (%p2862_p12), %vm724_vm12, %v2419_v2  ;;  %1791 = vmatpush.xpose.msk.msra.mxu0 (%p2862_p12), %vm724_vm12, %v2419_v2  ;;  %vm3141_vm12 = vcmp.eq.s32.totalorder (%p2862_p12), %v2878_v60, %v667_v43 }
 0x2dc   : >> { %vm736_vm14 = vmand (%p2862_p12), %vm3141_vm12, %vm2891_vm9  ;;  %vm680_vm12 = vcmp.eq.s32.totalorder (%p2862_p12), %v2878_v60, %v647_v13 }
 0x2dd   : >> { %1973 = vmatpush.xpose.msk.msra.mxu3 (%p2862_p12), %vm740_vm13, %v2419_v2  ;;  %1807 = vmatpush.xpose.msk.msra.mxu1 (%p2862_p12), %vm740_vm13, %v2419_v2  ;;  %vm720_vm13 = vmand (%p2862_p12), %vm3134_vm10, %vm2891_vm9 }
 0x2df   : >> { %1958 = vmatpush.xpose.msk.msra.mxu2 (%p2862_p12), %vm723_vm1, %v2419_v2  ;;  %1792 = vmatpush.xpose.msk.msra.mxu0 (%p2862_p12), %vm723_vm1, %v2419_v2  ;;  %vm3167_vm1 = vcmp.eq.s32.totalorder (%p2862_p12), %v2878_v60, %v666_v63  ;;  %v817_v63 = vld [vmem:[#allocation2 + $0xb8] sm:$0xff] (%p2862_p12) }
 0x2e0   : >> { %vm735_vm11 = vmand (%p2862_p12), %vm3167_vm1, %vm2891_vm9  ;;  %vm679_vm1 = vcmp.eq.s32.totalorder (%p2862_p12), %v2878_v60, %v646_v39 }
 0x2e1   : >> { %1974 = vmatpush.xpose.msk.msra.mxu3 (%p2862_p12), %vm739_vm0, %v2419_v2  ;;  %1808 = vmatpush.xpose.msk.msra.mxu1 (%p2862_p12), %vm739_vm0, %v2419_v2  ;;  %vm719_vm0 = vmand (%p2862_p12), %vm3160_vm15, %vm2891_vm9 }
 0x2e3   : >> { %1959 = vmatpush.xpose.msk.msra.mxu2 (%p2862_p12), %vm722_vm3, %v2419_v2  ;;  %1793 = vmatpush.xpose.msk.msra.mxu0 (%p2862_p12), %vm722_vm3, %v2419_v2  ;;  %vm3193_vm3 = vcmp.eq.s32.totalorder (%p2862_p12), %v2878_v60, %v665_v10 }
 0x2e4   : >> { %vm734_vm5 = vmand (%p2862_p12), %vm3193_vm3, %vm2891_vm9 }
 0x2e5   : >> { %1975 = vmatpush.xpose.msk.msra.mxu3 (%p2862_p12), %vm738_vm4, %v2419_v2  ;;  %1809 = vmatpush.xpose.msk.msra.mxu1 (%p2862_p12), %vm738_vm4, %v2419_v2  ;;  %vm718_vm4 = vmand (%p2862_p12), %vm3186_vm2, %vm2891_vm9 }
 0x2e7   : >> { %1960 = vmatpush.xpose.msk.msra.mxu2 (%p2862_p12), %vm721_vm7, %v2419_v2  ;;  %1794 = vmatpush.xpose.msk.msra.mxu0 (%p2862_p12), %vm721_vm7, %v2419_v2  ;;  %vm3219_vm7 = vcmp.eq.s32.totalorder (%p2862_p12), %v2878_v60, %v664_v15 }
 0x2e8   : >> { %vm733_vm10 = vmand (%p2862_p12), %vm3219_vm7, %vm2891_vm9 }
 0x2e9   : >> { %1976 = vmatpush.xpose.msk.msra.mxu3 (%p2862_p12), %vm737_vm8, %v2419_v2  ;;  %1810 = vmatpush.xpose.msk.msra.mxu1 (%p2862_p12), %vm737_vm8, %v2419_v2  ;;  %vm717_vm8 = vmand (%p2862_p12), %vm3212_vm6, %vm2891_vm9 }
 0x2eb   : >> { %1961 = vmatpush.xpose.msk.msra.mxu2 (%p2862_p12), %vm720_vm13, %v2419_v2  ;;  %1795 = vmatpush.xpose.msk.msra.mxu0 (%p2862_p12), %vm720_vm13, %v2419_v2  ;;  %vm3241_vm13 = vcmp.eq.s32.totalorder (%p2862_p12), %v2878_v60, %v663_v19  ;;  %v819_v19 = vld [vmem:[#allocation2 + $0x8] sm:$0xff] (%p2862_p12) }
 0x2ec   : >> { %vm732_vm15 = vmand (%p2862_p12), %vm3241_vm13, %vm2891_vm9 }
 0x2ed   : >> { %1977 = vmatpush.xpose.msk.msra.mxu3 (%p2862_p12), %vm736_vm14, %v2419_v2  ;;  %1811 = vmatpush.xpose.msk.msra.mxu1 (%p2862_p12), %vm736_vm14, %v2419_v2  ;;  %vm716_vm14 = vmand (%p2862_p12), %vm680_vm12, %vm2891_vm9 }
 0x2ef   : >> { %1962 = vmatpush.xpose.msk.msra.mxu2 (%p2862_p12), %vm719_vm0, %v2419_v2  ;;  %1796 = vmatpush.xpose.msk.msra.mxu0 (%p2862_p12), %vm719_vm0, %v2419_v2  ;;  %vm695_vm0 = vcmp.eq.s32.totalorder (%p2862_p12), %v2878_v60, %v662_v40  ;;  %v3272_v60 = vld [vmem:[%s640_s12] sm:$0xff] (%p2862_p12) }
 0x2f0   : >> { %vm731_vm2 = vmand (%p2862_p12), %vm695_vm0, %vm2891_vm9 }
 0x2f1   : >> { %s2866_s9 = spop %2068  ;;  %1978 = vmatpush.xpose.msk.msra.mxu3 (%p2862_p12), %vm735_vm11, %v2419_v2  ;;  %1812 = vmatpush.xpose.msk.msra.mxu1 (%p2862_p12), %vm735_vm11, %v2419_v2  ;;  %vm715_vm11 = vmand (%p2862_p12), %vm679_vm1, %vm2891_vm9 }
 0x2f2   : >> { %p1817_p13 = scmp.le.s32.totalorder (%p2862_p12), %s2866_s9, 0 }
 0x2f3   : >> { %1963 = vmatpush.xpose.msk.msra.mxu2 (%p2862_p12), %vm718_vm4, %v2419_v2  ;;  %1797 = vmatpush.xpose.msk.msra.mxu0 (%p2862_p12), %vm718_vm4, %v2419_v2 }
 0x2f5   : >> { %1979 = vmatpush.xpose.msk.msra.mxu3 (%p2862_p12), %vm734_vm5, %v2419_v2  ;;  %1813 = vmatpush.xpose.msk.msra.mxu1 (%p2862_p12), %vm734_vm5, %v2419_v2 }
 0x2f7   : >> { %1964 = vmatpush.xpose.msk.msra.mxu2 (%p2862_p12), %vm717_vm8, %v2419_v2  ;;  %1798 = vmatpush.xpose.msk.msra.mxu0 (%p2862_p12), %vm717_vm8, %v2419_v2 }
 0x2f9   : >> { %s2868_s27 = spop %2070  ;;  %1980 = vmatpush.xpose.msk.msra.mxu3 (%p2862_p12), %vm733_vm10, %v2419_v2  ;;  %1814 = vmatpush.xpose.msk.msra.mxu1 (%p2862_p12), %vm733_vm10, %v2419_v2 }
 0x2fb   : >> { %1965 = vmatpush.xpose.msk.msra.mxu2 (%p2862_p12), %vm716_vm14, %v2419_v2  ;;  %1799 = vmatpush.xpose.msk.msra.mxu0 (%p2862_p12), %vm716_vm14, %v2419_v2 }
 0x2fd   : >> { %638 = sbr.rel (!%p2862_p12) target bundleno = 1348 (0x544), region = 67  ;;  %1981 = vmatpush.xpose.msk.msra.mxu3 (%p2862_p12), %vm732_vm15, %v2419_v2  ;;  %1815 = vmatpush.xpose.msk.msra.mxu1 (%p2862_p12), %vm732_vm15, %v2419_v2 }
 0x2ff   : >> { %1966 = vmatpush.xpose.msk.msra.mxu2 (%p2862_p12), %vm715_vm11, %v2419_v2  ;;  %1800 = vmatpush.xpose.msk.msra.mxu0 (%p2862_p12), %vm715_vm11, %v2419_v2 }
 0x301   : >> { %s2870_s30 = spop %2072  ;;  %1982 = vmatpush.xpose.msk.msra.mxu3 (%p2862_p12), %vm731_vm2, %v2419_v2  ;;  %1816 = vmatpush.xpose.msk.msra.mxu1 (%p2862_p12), %vm731_vm2, %v2419_v2  ;;  %v812_v2 = vld [vmem:[#allocation2 + $0xa8] sm:$0xff] (%p2862_p12) }
 0x302   : >> { %842 = vmatmul.f32.vlgmr.msra.gmra.mxu2 %v3269_v57  ;;  %836 = vmatmul.f32.vlgmr.msra.gmra.mxu0 %v3272_v60 }
 0x304   : >> { %871 = vmatmul.f32.vlgmr.msra.gmra.mxu3 %v3269_v57  ;;  %865 = vmatmul.f32.vlgmr.msra.gmra.mxu1 %v3272_v60 }
 0x30a   : >> { %845 = vmatmul.f32.gmra.mxu2 %v3280_v55  ;;  %839 = vmatmul.f32.gmra.mxu0 %v3282_v41 }
 0x30c   : >> { %874 = vmatmul.f32.gmra.mxu3 %v3280_v55  ;;  %868 = vmatmul.f32.gmra.mxu1 %v3282_v41 }
 0x37f   : >> { %v837_v38 = vpop.f32.mrf.mxu0 }
 0x380   : >> { %v878_v43 = vadd.f32 %v837_v38, %v812_v2 }
 0x381   : >> { %v866_v9 = vpop.f32.mrf.mxu1 }
 0x382   : >> { %v879_v54 = vadd.f32 %v866_v9, %v813_v42  ;;  %886 = vst [vmem:[#allocation2 + $0xa8] sm:$0xff] %v878_v43 }
 0x384   : >> { %887 = vst [vmem:[#allocation2 + $0x68] sm:$0xff] %v879_v54 }
 0x385   : >> { %v843_v6 = vpop.f32.mrf.mxu2 }
 0x386   : >> { %v882_v8 = vadd.f32 %v843_v6, %v816_v56 }
 0x387   : >> { %v872_v10 = vpop.f32.mrf.mxu3  ;;  %v840_v16 = vpop.f32.mrf.mxu0 }
 0x388   : >> { %v883_v14 = vadd.f32 %v872_v10, %v817_v63  ;;  %890 = vst [vmem:[#allocation2 + $0x80] sm:$0xff] %v882_v8  ;;  %v880_v15 = vadd.f32 %v840_v16, %v814_v7 }
 0x389   : >> { %v869_v17 = vpop.f32.mrf.mxu1 }
 0x38a   : >> { %891 = vst [vmem:[#allocation2 + $0xb8] sm:$0xff] %v883_v14  ;;  %v881_v13 = vadd.f32 %v869_v17, %v815_v11 }
 0x38b   : >> { %888 = vst [vmem:[#allocation2 + $0x30] sm:$0xff] %v880_v15 }
 0x38c   : >> { %889 = vst [vmem:[#allocation2 + $0x58] sm:$0xff] %v881_v13 }
 0x38d   : >> { %v846_v39 = vpop.f32.mrf.mxu2 }
 0x38e   : >> { %v884_v12 = vadd.f32 %v846_v39, %v818_v18  ;;  %897 = sbr.rel (%p1817_p13) target bundleno = 1128 (0x468), region = 71 }
 0x38f   : >> { %v875_v40 = vpop.f32.mrf.mxu3 }
 0x390   : >> { %v885_v2 = vadd.f32 %v875_v40, %v819_v19  ;;  %892 = vst [vmem:[#allocation2 + $0x20] sm:$0xff] %v884_v12 }
 0x392   : >> { %893 = vst [vmem:[#allocation2 + $0x8] sm:$0xff] %v885_v2 }
 0x393   : >> { %v3290_v42 = vstv %s2401_s22  ;;  %v3293_v38 = vperm.slane %v2845_v48, 0  ;;  %vm964_vm9 = vcmp.gt.s32.totalorder %v2845_v48, 0  ;;  %v2420_v9 = vmov 0   ;;  %v1067_v11 = vld [vmem:[#allocation2 + $0x48] sm:$0xff]  ;;  %v1070_v19 = vld [vmem:[#allocation2 + $0x40] sm:$0xff] }
 0x394   : >> { %v914_v43 = vsub.s32 %v2607_v21, %v3290_v42  ;;  %v965_v54 = vsel %vm964_vm9, 1, %v2420_v9  ;;  %v930_v56 = vsub.s32 %v2640_v37, %v3290_v42  ;;  %v913_v6 = vsub.s32 %v2649_v44, %v3290_v42 }
 0x395   : >> { %v966_v63 = vperm.slane %v965_v54, 0  ;;  %v929_v7 = vsub.s32 %v2638_v36, %v3290_v42  ;;  %v912_v10 = vsub.s32 %v2652_v45, %v3290_v42  ;;  %v928_v14 = vsub.s32 %v2636_v35, %v3290_v42 }
 0x396   : >> { %vm947_vm3 = vcmp.eq.s32.totalorder %v3293_v38, %v914_v43  ;;  %vm963_vm4 = vcmp.eq.s32.totalorder %v3293_v38, %v930_v56  ;;  %vm3311_vm6 = vcmp.eq.s32.totalorder %v3293_v38, %v913_v6  ;;  %v2421_v16 = vmov 1.0   ;;  %v1068_v56 = vld [vmem:[#allocation2 + $0x60] sm:$0xff] }
 0x397   : >> { %vm3306_vm5 = vcmp.eq.s32.totalorder %v966_v63, 1  ;;  %vm3320_vm8 = vcmp.eq.s32.totalorder %v3293_v38, %v929_v7  ;;  %vm3341_vm14 = vcmp.eq.s32.totalorder %v3293_v38, %v912_v10  ;;  %v911_v17 = vsub.s32 %v2655_v46, %v3290_v42 }
 0x398   : >> { %vm983_vm7 = vmand %vm947_vm3, %vm3306_vm5  ;;  %vm3348_vm15 = vcmp.eq.s32.totalorder %v3293_v38, %v928_v14  ;;  %v927_v18 = vsub.s32 %v2634_v34, %v3290_v42  ;;  %v910_v39 = vsub.s32 %v2658_v47, %v3290_v42  ;;  %v926_v40 = vsub.s32 %v2632_v33, %v3290_v42 }
 0x399   : >> { %1983 = vmatpush.xpose.msk.msra.mxu2 %vm983_vm7, %v2421_v16  ;;  %vm999_vm10 = vmand %vm963_vm4, %vm3306_vm5  ;;  %1850 = vmatpush.xpose.msk.msra.mxu0 %vm983_vm7, %v2421_v16  ;;  %vm3367_vm11 = vcmp.eq.s32.totalorder %v3293_v38, %v911_v17  ;;  %v909_v43 = vsub.s32 %v2664_v50, %v3290_v42  ;;  %v925_v54 = vsub.s32 %v2630_v32, %v3290_v42 }
 0x39a   : >> { %1999 = vmatpush.xpose.msk.msra.mxu3 %vm999_vm10, %v2421_v16  ;;  %vm982_vm12 = vmand %vm3311_vm6, %vm3306_vm5  ;;  %1866 = vmatpush.xpose.msk.msra.mxu1 %vm999_vm10, %v2421_v16  ;;  %vm3374_vm2 = vcmp.eq.s32.totalorder %v3293_v38, %v927_v18  ;;  %vm3393_vm4 = vcmp.eq.s32.totalorder %v3293_v38, %v910_v39  ;;  %vm3400_vm6 = vcmp.eq.s32.totalorder %v3293_v38, %v926_v40 }
 0x39b   : >> { %vm998_vm13 = vmand %vm3320_vm8, %vm3306_vm5  ;;  %vm3419_vm10 = vcmp.eq.s32.totalorder %v3293_v38, %v909_v43  ;;  %v908_v63 = vsub.s32 %v2666_v51, %v3290_v42  ;;  %v924_v7 = vsub.s32 %v2628_v31, %v3290_v42  ;;  %v907_v10 = vsub.s32 %v2674_v52, %v3290_v42 }
 0x39c   : >> { %vm981_vm1 = vmand %vm3341_vm14, %vm3306_vm5  ;;  %v923_v14 = vsub.s32 %v2626_v30, %v3290_v42  ;;  %v906_v17 = vsub.s32 %v2676_v53, %v3290_v42  ;;  %v922_v18 = vsub.s32 %v2624_v29, %v3290_v42  ;;  %v905_v39 = vsub.s32 %v2698_v58, %v3290_v42 }
 0x39d   : >> { %1984 = vmatpush.xpose.msk.msra.mxu2 %vm982_vm12, %v2421_v16  ;;  %1851 = vmatpush.xpose.msk.msra.mxu0 %vm982_vm12, %v2421_v16  ;;  %vm997_vm0 = vmand %vm3348_vm15, %vm3306_vm5  ;;  %vm3426_vm12 = vcmp.eq.s32.totalorder %v3293_v38, %v925_v54  ;;  %vm3445_vm15 = vcmp.eq.s32.totalorder %v3293_v38, %v908_v63  ;;  %v921_v40 = vsub.s32 %v2622_v28, %v3290_v42 }
 0x39e   : >> { %2000 = vmatpush.xpose.msk.msra.mxu3 %vm998_vm13, %v2421_v16  ;;  %1867 = vmatpush.xpose.msk.msra.mxu1 %vm998_vm13, %v2421_v16  ;;  %vm980_vm9 = vmand %vm3367_vm11, %vm3306_vm5  ;;  %v904_v43 = vsub.s32 %v2700_v59, %v3290_v42  ;;  %v920_v54 = vsub.s32 %v2620_v27, %v3290_v42  ;;  %v903_v63 = vsub.s32 %v2715_v1, %v3290_v42 }
 0x39f   : >> { %vm996_vm3 = vmand %vm3374_vm2, %vm3306_vm5  ;;  %vm3471_vm2 = vcmp.eq.s32.totalorder %v3293_v38, %v907_v10  ;;  %v902_v10 = vsub.s32 %v2718_v3, %v3290_v42  ;;  %v899_v2 = vsub.s32 %v2605_v20, %v3290_v42 }
 0x3a0   : >> { %vm979_vm7 = vmand %vm3393_vm4, %vm3306_vm5 }
 0x3a1   : >> { %1985 = vmatpush.xpose.msk.msra.mxu2 %vm981_vm1, %v2421_v16  ;;  %1852 = vmatpush.xpose.msk.msra.mxu0 %vm981_vm1, %v2421_v16  ;;  %vm995_vm8 = vmand %vm3400_vm6, %vm3306_vm5  ;;  %vm3452_vm1 = vcmp.eq.s32.totalorder %v3293_v38, %v924_v7  ;;  %vm3497_vm6 = vcmp.eq.s32.totalorder %v3293_v38, %v906_v17  ;;  %v919_v7 = vsub.s32 %v2618_v26, %v3290_v42 }
 0x3a2   : >> { %2001 = vmatpush.xpose.msk.msra.mxu3 %vm997_vm0, %v2421_v16  ;;  %1868 = vmatpush.xpose.msk.msra.mxu1 %vm997_vm0, %v2421_v16  ;;  %vm978_vm13 = vmand %vm3419_vm10, %vm3306_vm5  ;;  %v901_v17 = vsub.s32 %v2726_v4, %v3290_v42 }
 0x3a3   : >> { %vm994_vm14 = vmand %vm3426_vm12, %vm3306_vm5  ;;  %vm3523_vm12 = vcmp.eq.s32.totalorder %v3293_v38, %v905_v39  ;;  %v900_v39 = vsub.s32 %v2729_v5, %v3290_v42 }
 0x3a4   : >> { %vm977_vm0 = vmand %vm3445_vm15, %vm3306_vm5 }
 0x3a5   : >> { %1986 = vmatpush.xpose.msk.msra.mxu2 %vm980_vm9, %v2421_v16  ;;  %1853 = vmatpush.xpose.msk.msra.mxu0 %vm980_vm9, %v2421_v16  ;;  %vm993_vm11 = vmand %vm3452_vm1, %vm3306_vm5  ;;  %vm3478_vm9 = vcmp.eq.s32.totalorder %v3293_v38, %v923_v14  ;;  %vm3549_vm1 = vcmp.eq.s32.totalorder %v3293_v38, %v904_v43  ;;  %v918_v14 = vsub.s32 %v2616_v25, %v3290_v42 }
 0x3a6   : >> { %2002 = vmatpush.xpose.msk.msra.mxu3 %vm996_vm3, %v2421_v16  ;;  %1869 = vmatpush.xpose.msk.msra.mxu1 %vm996_vm3, %v2421_v16  ;;  %vm976_vm3 = vmand %vm3471_vm2, %vm3306_vm5  ;;  %v915_v43 = vsub.s32 %v2610_v22, %v3290_v42 }
 0x3a7   : >> { %vm992_vm4 = vmand %vm3478_vm9, %vm3306_vm5  ;;  %vm3575_vm9 = vcmp.eq.s32.totalorder %v3293_v38, %v903_v63  ;;  %v1069_v63 = vld [vmem:[#allocation2 + $0x28] sm:$0xff] }
 0x3a9   : >> { %1987 = vmatpush.xpose.msk.msra.mxu2 %vm979_vm7, %v2421_v16  ;;  %1854 = vmatpush.xpose.msk.msra.mxu0 %vm979_vm7, %v2421_v16  ;;  %vm3504_vm7 = vcmp.eq.s32.totalorder %v3293_v38, %v922_v18  ;;  %v917_v18 = vsub.s32 %v2614_v24, %v3290_v42 }
 0x3aa   : >> { %2003 = vmatpush.xpose.msk.msra.mxu3 %vm995_vm8, %v2421_v16  ;;  %1870 = vmatpush.xpose.msk.msra.mxu1 %vm995_vm8, %v2421_v16  ;;  %vm975_vm8 = vmand %vm3497_vm6, %vm3306_vm5 }
 0x3ab   : >> { %vm991_vm10 = vmand %vm3504_vm7, %vm3306_vm5  ;;  %vm3601_vm7 = vcmp.eq.s32.totalorder %v3293_v38, %v902_v10 }
 0x3ad   : >> { %1988 = vmatpush.xpose.msk.msra.mxu2 %vm978_vm13, %v2421_v16  ;;  %1855 = vmatpush.xpose.msk.msra.mxu0 %vm978_vm13, %v2421_v16  ;;  %vm3530_vm13 = vcmp.eq.s32.totalorder %v3293_v38, %v921_v40  ;;  %v916_v40 = vsub.s32 %v2612_v23, %v3290_v42  ;;  %v1064_v42 = vld [vmem:[#allocation2 + $0xb0] sm:$0xff] }
 0x3ae   : >> { %2004 = vmatpush.xpose.msk.msra.mxu3 %vm994_vm14, %v2421_v16  ;;  %1871 = vmatpush.xpose.msk.msra.mxu1 %vm994_vm14, %v2421_v16  ;;  %vm974_vm14 = vmand %vm3523_vm12, %vm3306_vm5 }
 0x3af   : >> { %vm990_vm15 = vmand %vm3530_vm13, %vm3306_vm5  ;;  %vm3627_vm13 = vcmp.eq.s32.totalorder %v3293_v38, %v901_v17 }
 0x3b1   : >> { %1989 = vmatpush.xpose.msk.msra.mxu2 %vm977_vm0, %v2421_v16  ;;  %1856 = vmatpush.xpose.msk.msra.mxu0 %vm977_vm0, %v2421_v16  ;;  %vm3556_vm0 = vcmp.eq.s32.totalorder %v3293_v38, %v920_v54 }
 0x3b2   : >> { %2005 = vmatpush.xpose.msk.msra.mxu3 %vm993_vm11, %v2421_v16  ;;  %1872 = vmatpush.xpose.msk.msra.mxu1 %vm993_vm11, %v2421_v16  ;;  %vm973_vm11 = vmand %vm3549_vm1, %vm3306_vm5 }
 0x3b3   : >> { %vm989_vm2 = vmand %vm3556_vm0, %vm3306_vm5  ;;  %vm933_vm0 = vcmp.eq.s32.totalorder %v3293_v38, %v900_v39  ;;  %v1071_v39 = vld [vmem:[#allocation2 + $0x78] sm:$0xff] }
 0x3b5   : >> { %1990 = vmatpush.xpose.msk.msra.mxu2 %vm976_vm3, %v2421_v16  ;;  %1857 = vmatpush.xpose.msk.msra.mxu0 %vm976_vm3, %v2421_v16  ;;  %vm3582_vm3 = vcmp.eq.s32.totalorder %v3293_v38, %v919_v7  ;;  %v1066_v7 = vld [vmem:[#allocation2 + $0x10] sm:$0xff] }
 0x3b6   : >> { %2006 = vmatpush.xpose.msk.msra.mxu3 %vm992_vm4, %v2421_v16  ;;  %1873 = vmatpush.xpose.msk.msra.mxu1 %vm992_vm4, %v2421_v16  ;;  %vm972_vm4 = vmand %vm3575_vm9, %vm3306_vm5 }
 0x3b7   : >> { %vm988_vm6 = vmand %vm3582_vm3, %vm3306_vm5  ;;  %vm932_vm3 = vcmp.eq.s32.totalorder %v3293_v38, %v899_v2 }
 0x3b9   : >> { %1991 = vmatpush.xpose.msk.msra.mxu2 %vm975_vm8, %v2421_v16  ;;  %1858 = vmatpush.xpose.msk.msra.mxu0 %vm975_vm8, %v2421_v16  ;;  %vm3608_vm8 = vcmp.eq.s32.totalorder %v3293_v38, %v918_v14 }
 0x3ba   : >> { %2007 = vmatpush.xpose.msk.msra.mxu3 %vm991_vm10, %v2421_v16  ;;  %1874 = vmatpush.xpose.msk.msra.mxu1 %vm991_vm10, %v2421_v16  ;;  %vm971_vm10 = vmand %vm3601_vm7, %vm3306_vm5 }
 0x3bb   : >> { %vm987_vm12 = vmand %vm3608_vm8, %vm3306_vm5 }
 0x3bd   : >> { %1992 = vmatpush.xpose.msk.msra.mxu2 %vm974_vm14, %v2421_v16  ;;  %1859 = vmatpush.xpose.msk.msra.mxu0 %vm974_vm14, %v2421_v16  ;;  %vm3634_vm14 = vcmp.eq.s32.totalorder %v3293_v38, %v917_v18 }
 0x3be   : >> { %2008 = vmatpush.xpose.msk.msra.mxu3 %vm990_vm15, %v2421_v16  ;;  %1875 = vmatpush.xpose.msk.msra.mxu1 %vm990_vm15, %v2421_v16  ;;  %vm970_vm15 = vmand %vm3627_vm13, %vm3306_vm5 }
 0x3bf   : >> { %vm986_vm1 = vmand %vm3634_vm14, %vm3306_vm5 }
 0x3c1   : >> { %1993 = vmatpush.xpose.msk.msra.mxu2 %vm973_vm11, %v2421_v16  ;;  %1860 = vmatpush.xpose.msk.msra.mxu0 %vm973_vm11, %v2421_v16  ;;  %vm949_vm11 = vcmp.eq.s32.totalorder %v3293_v38, %v916_v40 }
 0x3c2   : >> { %2009 = vmatpush.xpose.msk.msra.mxu3 %vm989_vm2, %v2421_v16  ;;  %1876 = vmatpush.xpose.msk.msra.mxu1 %vm989_vm2, %v2421_v16  ;;  %vm969_vm2 = vmand %vm933_vm0, %vm3306_vm5 }
 0x3c3   : >> { %vm985_vm9 = vmand %vm949_vm11, %vm3306_vm5 }
 0x3c5   : >> { %1994 = vmatpush.xpose.msk.msra.mxu2 %vm972_vm4, %v2421_v16  ;;  %1861 = vmatpush.xpose.msk.msra.mxu0 %vm972_vm4, %v2421_v16  ;;  %vm948_vm4 = vcmp.eq.s32.totalorder %v3293_v38, %v915_v43  ;;  %v1065_v38 = vld [vmem:[#allocation2] sm:$0xff] }
 0x3c6   : >> { %2010 = vmatpush.xpose.msk.msra.mxu3 %vm988_vm6, %v2421_v16  ;;  %1877 = vmatpush.xpose.msk.msra.mxu1 %vm988_vm6, %v2421_v16  ;;  %vm968_vm6 = vmand %vm932_vm3, %vm3306_vm5 }
 0x3c7   : >> { %vm984_vm7 = vmand %vm948_vm4, %vm3306_vm5 }
 0x3c9   : >> { %1995 = vmatpush.xpose.msk.msra.mxu2 %vm971_vm10, %v2421_v16  ;;  %1862 = vmatpush.xpose.msk.msra.mxu0 %vm971_vm10, %v2421_v16 }
 0x3ca   : >> { %2011 = vmatpush.xpose.msk.msra.mxu3 %vm987_vm12, %v2421_v16  ;;  %1878 = vmatpush.xpose.msk.msra.mxu1 %vm987_vm12, %v2421_v16 }
 0x3cd   : >> { %1996 = vmatpush.xpose.msk.msra.mxu2 %vm970_vm15, %v2421_v16  ;;  %1863 = vmatpush.xpose.msk.msra.mxu0 %vm970_vm15, %v2421_v16 }
 0x3ce   : >> { %2012 = vmatpush.xpose.msk.msra.mxu3 %vm986_vm1, %v2421_v16  ;;  %1879 = vmatpush.xpose.msk.msra.mxu1 %vm986_vm1, %v2421_v16 }
 0x3d1   : >> { %1997 = vmatpush.xpose.msk.msra.mxu2 %vm969_vm2, %v2421_v16  ;;  %1864 = vmatpush.xpose.msk.msra.mxu0 %vm969_vm2, %v2421_v16 }
 0x3d2   : >> { %2013 = vmatpush.xpose.msk.msra.mxu3 %vm985_vm9, %v2421_v16  ;;  %1880 = vmatpush.xpose.msk.msra.mxu1 %vm985_vm9, %v2421_v16 }
 0x3d5   : >> { %1998 = vmatpush.xpose.msk.msra.mxu2 %vm968_vm6, %v2421_v16  ;;  %1865 = vmatpush.xpose.msk.msra.mxu0 %vm968_vm6, %v2421_v16 }
 0x3d6   : >> { %2014 = vmatpush.xpose.msk.msra.mxu3 %vm984_vm7, %v2421_v16  ;;  %1881 = vmatpush.xpose.msk.msra.mxu1 %vm984_vm7, %v2421_v16 }
 0x3d8   : >> { %1094 = vmatmul.f32.vlgmr.msra.gmra.mxu2 %v3269_v57  ;;  %1088 = vmatmul.f32.vlgmr.msra.gmra.mxu0 %v3272_v60 }
 0x3d9   : >> { %1123 = vmatmul.f32.vlgmr.msra.gmra.mxu3 %v3269_v57  ;;  %1117 = vmatmul.f32.vlgmr.msra.gmra.mxu1 %v3272_v60 }
 0x3e0   : >> { %1097 = vmatmul.f32.gmra.mxu2 %v3280_v55  ;;  %1091 = vmatmul.f32.gmra.mxu0 %v3282_v41 }
 0x3e1   : >> { %1126 = vmatmul.f32.gmra.mxu3 %v3280_v55  ;;  %1120 = vmatmul.f32.gmra.mxu1 %v3282_v41 }
 0x455   : >> { %v1089_v48 = vpop.f32.mrf.mxu0 }
 0x456   : >> { %v1130_v16 = vadd.f32 %v1089_v48, %v1064_v42  ;;  %v1118_v9 = vpop.f32.mrf.mxu1 }
 0x457   : >> { %v1131_v54 = vadd.f32 %v1118_v9, %v1065_v38 }
 0x458   : >> { %1138 = vst [vmem:[#allocation2 + $0xb0] sm:$0xff] %v1130_v16 }
 0x459   : >> { %1139 = vst [vmem:[#allocation2] sm:$0xff] %v1131_v54 }
 0x45b   : >> { %v1095_v6 = vpop.f32.mrf.mxu2 }
 0x45c   : >> { %v1134_v8 = vadd.f32 %v1095_v6, %v1068_v56  ;;  %v1124_v10 = vpop.f32.mrf.mxu3 }
 0x45d   : >> { %v1135_v14 = vadd.f32 %v1124_v10, %v1069_v63  ;;  %v1092_v15 = vpop.f32.mrf.mxu0 }
 0x45e   : >> { %1142 = vst [vmem:[#allocation2 + $0x60] sm:$0xff] %v1134_v8  ;;  %v1132_v17 = vadd.f32 %v1092_v15, %v1066_v7  ;;  %v1121_v13 = vpop.f32.mrf.mxu1 }
 0x45f   : >> { %1143 = vst [vmem:[#allocation2 + $0x28] sm:$0xff] %v1135_v14  ;;  %v1133_v18 = vadd.f32 %v1121_v13, %v1067_v11 }
 0x460   : >> { %1140 = vst [vmem:[#allocation2 + $0x10] sm:$0xff] %v1132_v17 }
 0x461   : >> { %1141 = vst [vmem:[#allocation2 + $0x48] sm:$0xff] %v1133_v18 }
 0x463   : >> { %v1098_v12 = vpop.f32.mrf.mxu2 }
 0x464   : >> { %v1136_v40 = vadd.f32 %v1098_v12, %v1070_v19  ;;  %v1127_v2 = vpop.f32.mrf.mxu3 }
 0x465   : >> { %v1137_v43 = vadd.f32 %v1127_v2, %v1071_v39 }
 0x466   : >> { %1144 = vst [vmem:[#allocation2 + $0x40] sm:$0xff] %v1136_v40 }
 0x467   : >> { %1145 = vst [vmem:[#allocation2 + $0x78] sm:$0xff] %v1137_v43 }
 0x468 PF: >> { %p1882_p0 = scmp.le.s32.totalorder %s2868_s27, 0 }
 0x46a   : >> { %1149 = sbr.rel (%p1882_p0) target bundleno = 1348 (0x544), region = 75 }
 0x46f   : >> { %v3690_v42 = vstv %s2397_s20  ;;  %v3693_v38 = vperm.slane %v2848_v49, 0  ;;  %vm1216_vm5 = vcmp.gt.s32.totalorder %v2848_v49, 0  ;;  %v2422_v16 = vmov 0  }
 0x470   : >> { %v1166_v48 = vsub.s32 %v2607_v21, %v3690_v42  ;;  %v1217_v9 = vsel %vm1216_vm5, 1, %v2422_v16  ;;  %v1182_v54 = vsub.s32 %v2640_v37, %v3690_v42  ;;  %v1165_v63 = vsub.s32 %v2649_v44, %v3690_v42 }
 0x471   : >> { %v1218_v56 = vperm.slane %v1217_v9, 0  ;;  %v1181_v6 = vsub.s32 %v2638_v36, %v3690_v42  ;;  %v1164_v8 = vsub.s32 %v2652_v45, %v3690_v42  ;;  %v1180_v11 = vsub.s32 %v2636_v35, %v3690_v42 }
 0x472   : >> { %vm1199_vm8 = vcmp.eq.s32.totalorder %v3693_v38, %v1166_v48  ;;  %vm1215_vm10 = vcmp.eq.s32.totalorder %v3693_v38, %v1182_v54  ;;  %vm3711_vm13 = vcmp.eq.s32.totalorder %v3693_v38, %v1165_v63  ;;  %v2423_v14 = vmov 1.0  }
 0x473   : >> { %vm3706_vm12 = vcmp.eq.s32.totalorder %v1218_v56, 1  ;;  %vm3720_vm15 = vcmp.eq.s32.totalorder %v3693_v38, %v1181_v6  ;;  %vm3741_vm2 = vcmp.eq.s32.totalorder %v3693_v38, %v1164_v8  ;;  %v1163_v17 = vsub.s32 %v2655_v46, %v3690_v42 }
 0x474   : >> { %vm1235_vm14 = vmand %vm1199_vm8, %vm3706_vm12  ;;  %vm3748_vm9 = vcmp.eq.s32.totalorder %v3693_v38, %v1180_v11  ;;  %v1179_v18 = vsub.s32 %v2634_v34, %v3690_v42  ;;  %v1162_v39 = vsub.s32 %v2658_v47, %v3690_v42  ;;  %v1178_v40 = vsub.s32 %v2632_v33, %v3690_v42 }
 0x475   : >> { %2015 = vmatpush.xpose.msk.msra.mxu2 %vm1235_vm14, %v2423_v14  ;;  %vm1251_vm1 = vmand %vm1215_vm10, %vm3706_vm12  ;;  %1915 = vmatpush.xpose.msk.msra.mxu0 %vm1235_vm14, %v2423_v14  ;;  %vm3767_vm6 = vcmp.eq.s32.totalorder %v3693_v38, %v1163_v17  ;;  %v1161_v43 = vsub.s32 %v2664_v50, %v3690_v42  ;;  %v1177_v16 = vsub.s32 %v2630_v32, %v3690_v42 }
 0x476   : >> { %2031 = vmatpush.xpose.msk.msra.mxu3 %vm1251_vm1, %v2423_v14  ;;  %vm1234_vm0 = vmand %vm3711_vm13, %vm3706_vm12  ;;  %1931 = vmatpush.xpose.msk.msra.mxu1 %vm1251_vm1, %v2423_v14  ;;  %vm3774_vm7 = vcmp.eq.s32.totalorder %v3693_v38, %v1179_v18  ;;  %vm3793_vm10 = vcmp.eq.s32.totalorder %v3693_v38, %v1162_v39  ;;  %vm3800_vm13 = vcmp.eq.s32.totalorder %v3693_v38, %v1178_v40 }
 0x477   : >> { %vm1250_vm11 = vmand %vm3720_vm15, %vm3706_vm12  ;;  %vm3819_vm1 = vcmp.eq.s32.totalorder %v3693_v38, %v1161_v43  ;;  %v1160_v54 = vsub.s32 %v2666_v51, %v3690_v42  ;;  %v1176_v63 = vsub.s32 %v2628_v31, %v3690_v42  ;;  %v1159_v7 = vsub.s32 %v2674_v52, %v3690_v42 }
 0x478   : >> { %vm1233_vm3 = vmand %vm3741_vm2, %vm3706_vm12  ;;  %v1175_v10 = vsub.s32 %v2626_v30, %v3690_v42  ;;  %v1158_v15 = vsub.s32 %v2676_v53, %v3690_v42  ;;  %v1174_v13 = vsub.s32 %v2624_v29, %v3690_v42  ;;  %v1157_v19 = vsub.s32 %v2698_v58, %v3690_v42 }
 0x479   : >> { %2016 = vmatpush.xpose.msk.msra.mxu2 %vm1234_vm0, %v2423_v14  ;;  %1916 = vmatpush.xpose.msk.msra.mxu0 %vm1234_vm0, %v2423_v14  ;;  %vm1249_vm4 = vmand %vm3748_vm9, %vm3706_vm12  ;;  %vm3826_vm0 = vcmp.eq.s32.totalorder %v3693_v38, %v1177_v16  ;;  %vm3845_vm9 = vcmp.eq.s32.totalorder %v3693_v38, %v1160_v54  ;;  %v1173_v12 = vsub.s32 %v2622_v28, %v3690_v42 }
 0x47a   : >> { %2032 = vmatpush.xpose.msk.msra.mxu3 %vm1250_vm11, %v2423_v14  ;;  %1932 = vmatpush.xpose.msk.msra.mxu1 %vm1250_vm11, %v2423_v14  ;;  %vm1232_vm5 = vmand %vm3767_vm6, %vm3706_vm12  ;;  %v1156_v2 = vsub.s32 %v2700_v59, %v3690_v42  ;;  %v1172_v48 = vsub.s32 %v2620_v27, %v3690_v42  ;;  %v1155_v9 = vsub.s32 %v2715_v1, %v3690_v42 }
 0x47b   : >> { %vm1248_vm8 = vmand %vm3774_vm7, %vm3706_vm12  ;;  %vm3871_vm7 = vcmp.eq.s32.totalorder %v3693_v38, %v1159_v7  ;;  %v1171_v56 = vsub.s32 %v2618_v26, %v3690_v42  ;;  %v1154_v6 = vsub.s32 %v2718_v3, %v3690_v42  ;;  %v1170_v8 = vsub.s32 %v2616_v25, %v3690_v42 }
 0x47c   : >> { %vm1231_vm14 = vmand %vm3793_vm10, %vm3706_vm12  ;;  %v1153_v11 = vsub.s32 %v2726_v4, %v3690_v42  ;;  %v1169_v17 = vsub.s32 %v2614_v24, %v3690_v42  ;;  %v1152_v18 = vsub.s32 %v2729_v5, %v3690_v42  ;;  %v1168_v39 = vsub.s32 %v2612_v23, %v3690_v42 }
 0x47d   : >> { %2017 = vmatpush.xpose.msk.msra.mxu2 %vm1233_vm3, %v2423_v14  ;;  %1917 = vmatpush.xpose.msk.msra.mxu0 %vm1233_vm3, %v2423_v14  ;;  %vm1247_vm15 = vmand %vm3800_vm13, %vm3706_vm12  ;;  %vm3852_vm3 = vcmp.eq.s32.totalorder %v3693_v38, %v1176_v63  ;;  %vm3897_vm13 = vcmp.eq.s32.totalorder %v3693_v38, %v1158_v15  ;;  %v1167_v40 = vsub.s32 %v2610_v22, %v3690_v42 }
 0x47e   : >> { %2033 = vmatpush.xpose.msk.msra.mxu3 %vm1249_vm4, %v2423_v14  ;;  %1933 = vmatpush.xpose.msk.msra.mxu1 %vm1249_vm4, %v2423_v14  ;;  %vm1230_vm11 = vmand %vm3819_vm1, %vm3706_vm12 }
 0x47f   : >> { %vm1246_vm2 = vmand %vm3826_vm0, %vm3706_vm12  ;;  %vm3923_vm0 = vcmp.eq.s32.totalorder %v3693_v38, %v1157_v19 }
 0x480   : >> { %vm1229_vm4 = vmand %vm3845_vm9, %vm3706_vm12 }
 0x481   : >> { %2018 = vmatpush.xpose.msk.msra.mxu2 %vm1232_vm5, %v2423_v14  ;;  %1918 = vmatpush.xpose.msk.msra.mxu0 %vm1232_vm5, %v2423_v14  ;;  %vm1245_vm6 = vmand %vm3852_vm3, %vm3706_vm12  ;;  %vm3878_vm5 = vcmp.eq.s32.totalorder %v3693_v38, %v1175_v10  ;;  %vm3949_vm3 = vcmp.eq.s32.totalorder %v3693_v38, %v1156_v2  ;;  %v1324_v10 = vld [vmem:[#allocation2 + $0xa0] sm:$0xff] }
 0x482   : >> { %2034 = vmatpush.xpose.msk.msra.mxu3 %vm1248_vm8, %v2423_v14  ;;  %1934 = vmatpush.xpose.msk.msra.mxu1 %vm1248_vm8, %v2423_v14  ;;  %vm1228_vm8 = vmand %vm3871_vm7, %vm3706_vm12 }
 0x483   : >> { %vm1244_vm10 = vmand %vm3878_vm5, %vm3706_vm12  ;;  %vm3975_vm5 = vcmp.eq.s32.totalorder %v3693_v38, %v1155_v9 }
 0x485   : >> { %2019 = vmatpush.xpose.msk.msra.mxu2 %vm1231_vm14, %v2423_v14  ;;  %1919 = vmatpush.xpose.msk.msra.mxu0 %vm1231_vm14, %v2423_v14  ;;  %vm3904_vm14 = vcmp.eq.s32.totalorder %v3693_v38, %v1174_v13 }
 0x486   : >> { %2035 = vmatpush.xpose.msk.msra.mxu3 %vm1247_vm15, %v2423_v14  ;;  %1935 = vmatpush.xpose.msk.msra.mxu1 %vm1247_vm15, %v2423_v14  ;;  %vm1227_vm15 = vmand %vm3897_vm13, %vm3706_vm12 }
 0x487   : >> { %vm1243_vm1 = vmand %vm3904_vm14, %vm3706_vm12  ;;  %vm4001_vm14 = vcmp.eq.s32.totalorder %v3693_v38, %v1154_v6 }
 0x489   : >> { %2020 = vmatpush.xpose.msk.msra.mxu2 %vm1230_vm11, %v2423_v14  ;;  %1920 = vmatpush.xpose.msk.msra.mxu0 %vm1230_vm11, %v2423_v14  ;;  %vm3930_vm11 = vcmp.eq.s32.totalorder %v3693_v38, %v1173_v12  ;;  %v1151_v12 = vsub.s32 %v2605_v20, %v3690_v42  ;;  %v1317_v42 = vld [vmem:[#allocation2 + $0x88] sm:$0xff] }
 0x48a   : >> { %2036 = vmatpush.xpose.msk.msra.mxu3 %vm1246_vm2, %v2423_v14  ;;  %1936 = vmatpush.xpose.msk.msra.mxu1 %vm1246_vm2, %v2423_v14  ;;  %vm1226_vm2 = vmand %vm3923_vm0, %vm3706_vm12 }
 0x48b   : >> { %vm1242_vm9 = vmand %vm3930_vm11, %vm3706_vm12  ;;  %vm4027_vm11 = vcmp.eq.s32.totalorder %v3693_v38, %v1153_v11 }
 0x48d   : >> { %2021 = vmatpush.xpose.msk.msra.mxu2 %vm1229_vm4, %v2423_v14  ;;  %1921 = vmatpush.xpose.msk.msra.mxu0 %vm1229_vm4, %v2423_v14  ;;  %vm3956_vm4 = vcmp.eq.s32.totalorder %v3693_v38, %v1172_v48  ;;  %v1321_v48 = vld [vmem:[#allocation2 + $0x38] sm:$0xff] }
 0x48e   : >> { %2037 = vmatpush.xpose.msk.msra.mxu3 %vm1245_vm6, %v2423_v14  ;;  %1937 = vmatpush.xpose.msk.msra.mxu1 %vm1245_vm6, %v2423_v14  ;;  %vm1225_vm6 = vmand %vm3949_vm3, %vm3706_vm12 }
 0x48f   : >> { %vm1241_vm7 = vmand %vm3956_vm4, %vm3706_vm12  ;;  %vm1185_vm4 = vcmp.eq.s32.totalorder %v3693_v38, %v1152_v18 }
 0x491   : >> { %2022 = vmatpush.xpose.msk.msra.mxu2 %vm1228_vm8, %v2423_v14  ;;  %1922 = vmatpush.xpose.msk.msra.mxu0 %vm1228_vm8, %v2423_v14  ;;  %vm3982_vm8 = vcmp.eq.s32.totalorder %v3693_v38, %v1171_v56  ;;  %v1320_v56 = vld [vmem:[#allocation2 + $0x98] sm:$0xff] }
 0x492   : >> { %2038 = vmatpush.xpose.msk.msra.mxu3 %vm1244_vm10, %v2423_v14  ;;  %1938 = vmatpush.xpose.msk.msra.mxu1 %vm1244_vm10, %v2423_v14  ;;  %vm1224_vm10 = vmand %vm3975_vm5, %vm3706_vm12 }
 0x493   : >> { %vm1240_vm13 = vmand %vm3982_vm8, %vm3706_vm12  ;;  %vm1184_vm8 = vcmp.eq.s32.totalorder %v3693_v38, %v1151_v12 }
 0x495   : >> { %2023 = vmatpush.xpose.msk.msra.mxu2 %vm1227_vm15, %v2423_v14  ;;  %1923 = vmatpush.xpose.msk.msra.mxu0 %vm1227_vm15, %v2423_v14  ;;  %vm4008_vm15 = vcmp.eq.s32.totalorder %v3693_v38, %v1170_v8  ;;  %v1323_v8 = vld [vmem:[#allocation2 + $0x70] sm:$0xff] }
 0x496   : >> { %2039 = vmatpush.xpose.msk.msra.mxu3 %vm1243_vm1, %v2423_v14  ;;  %1939 = vmatpush.xpose.msk.msra.mxu1 %vm1243_vm1, %v2423_v14  ;;  %vm1223_vm1 = vmand %vm4001_vm14, %vm3706_vm12 }
 0x497   : >> { %vm1239_vm0 = vmand %vm4008_vm15, %vm3706_vm12 }
 0x499   : >> { %2024 = vmatpush.xpose.msk.msra.mxu2 %vm1226_vm2, %v2423_v14  ;;  %1924 = vmatpush.xpose.msk.msra.mxu0 %vm1226_vm2, %v2423_v14  ;;  %vm4034_vm2 = vcmp.eq.s32.totalorder %v3693_v38, %v1169_v17 }
 0x49a   : >> { %2040 = vmatpush.xpose.msk.msra.mxu3 %vm1242_vm9, %v2423_v14  ;;  %1940 = vmatpush.xpose.msk.msra.mxu1 %vm1242_vm9, %v2423_v14  ;;  %vm1222_vm9 = vmand %vm4027_vm11, %vm3706_vm12 }
 0x49b   : >> { %vm1238_vm3 = vmand %vm4034_vm2, %vm3706_vm12 }
 0x49d   : >> { %2025 = vmatpush.xpose.msk.msra.mxu2 %vm1225_vm6, %v2423_v14  ;;  %1925 = vmatpush.xpose.msk.msra.mxu0 %vm1225_vm6, %v2423_v14  ;;  %vm1201_vm6 = vcmp.eq.s32.totalorder %v3693_v38, %v1168_v39 }
 0x49e   : >> { %2041 = vmatpush.xpose.msk.msra.mxu3 %vm1241_vm7, %v2423_v14  ;;  %1941 = vmatpush.xpose.msk.msra.mxu1 %vm1241_vm7, %v2423_v14  ;;  %vm1221_vm7 = vmand %vm1185_vm4, %vm3706_vm12 }
 0x49f   : >> { %vm1237_vm5 = vmand %vm1201_vm6, %vm3706_vm12 }
 0x4a1   : >> { %2026 = vmatpush.xpose.msk.msra.mxu2 %vm1224_vm10, %v2423_v14  ;;  %1926 = vmatpush.xpose.msk.msra.mxu0 %vm1224_vm10, %v2423_v14  ;;  %vm1200_vm10 = vcmp.eq.s32.totalorder %v3693_v38, %v1167_v40  ;;  %v1318_v38 = vld [vmem:[#allocation2 + $0x90] sm:$0xff] }
 0x4a2   : >> { %2042 = vmatpush.xpose.msk.msra.mxu3 %vm1240_vm13, %v2423_v14  ;;  %1942 = vmatpush.xpose.msk.msra.mxu1 %vm1240_vm13, %v2423_v14  ;;  %vm1220_vm13 = vmand %vm1184_vm8, %vm3706_vm12 }
 0x4a3   : >> { %vm1236_vm14 = vmand %vm1200_vm10, %vm3706_vm12 }
 0x4a5   : >> { %2027 = vmatpush.xpose.msk.msra.mxu2 %vm1223_vm1, %v2423_v14  ;;  %1927 = vmatpush.xpose.msk.msra.mxu0 %vm1223_vm1, %v2423_v14 }
 0x4a6   : >> { %2043 = vmatpush.xpose.msk.msra.mxu3 %vm1239_vm0, %v2423_v14  ;;  %1943 = vmatpush.xpose.msk.msra.mxu1 %vm1239_vm0, %v2423_v14 }
 0x4a9   : >> { %2028 = vmatpush.xpose.msk.msra.mxu2 %vm1222_vm9, %v2423_v14  ;;  %1928 = vmatpush.xpose.msk.msra.mxu0 %vm1222_vm9, %v2423_v14 }
 0x4aa   : >> { %2044 = vmatpush.xpose.msk.msra.mxu3 %vm1238_vm3, %v2423_v14  ;;  %1944 = vmatpush.xpose.msk.msra.mxu1 %vm1238_vm3, %v2423_v14 }
 0x4ad   : >> { %2029 = vmatpush.xpose.msk.msra.mxu2 %vm1221_vm7, %v2423_v14  ;;  %1929 = vmatpush.xpose.msk.msra.mxu0 %vm1221_vm7, %v2423_v14 }
 0x4ae   : >> { %2045 = vmatpush.xpose.msk.msra.mxu3 %vm1237_vm5, %v2423_v14  ;;  %1945 = vmatpush.xpose.msk.msra.mxu1 %vm1237_vm5, %v2423_v14 }
 0x4b1   : >> { %2030 = vmatpush.xpose.msk.msra.mxu2 %vm1220_vm13, %v2423_v14  ;;  %1930 = vmatpush.xpose.msk.msra.mxu0 %vm1220_vm13, %v2423_v14 }
 0x4b2   : >> { %2046 = vmatpush.xpose.msk.msra.mxu3 %vm1236_vm14, %v2423_v14  ;;  %1946 = vmatpush.xpose.msk.msra.mxu1 %vm1236_vm14, %v2423_v14 }
 0x4b4   : >> { %1347 = vmatmul.f32.vlgmr.msra.gmra.mxu2 %v3269_v57  ;;  %1341 = vmatmul.f32.vlgmr.msra.gmra.mxu0 %v3272_v60 }
 0x4b5   : >> { %1376 = vmatmul.f32.vlgmr.msra.gmra.mxu3 %v3269_v57  ;;  %1370 = vmatmul.f32.vlgmr.msra.gmra.mxu1 %v3272_v60  ;;  %v1322_v57 = vld [vmem:[#allocation2 + $0x50] sm:$0xff]  ;;  %v1319_v60 = vld [vmem:[#allocation2 + $0x18] sm:$0xff] }
 0x4bc   : >> { %1350 = vmatmul.f32.gmra.mxu2 %v3280_v55  ;;  %1344 = vmatmul.f32.gmra.mxu0 %v3282_v41 }
 0x4bd   : >> { %1379 = vmatmul.f32.gmra.mxu3 %v3280_v55  ;;  %1373 = vmatmul.f32.gmra.mxu1 %v3282_v41 }
 0x531   : >> { %v1342_v49 = vpop.f32.mrf.mxu0 }
 0x532   : >> { %v1383_v14 = vadd.f32 %v1342_v49, %v1317_v42  ;;  %v1371_v2 = vpop.f32.mrf.mxu1 }
 0x533   : >> { %v1384_v43 = vadd.f32 %v1371_v2, %v1318_v38 }
 0x534   : >> { %1391 = vst [vmem:[#allocation2 + $0x88] sm:$0xff] %v1383_v14 }
 0x535   : >> { %1392 = vst [vmem:[#allocation2 + $0x90] sm:$0xff] %v1384_v43 }
 0x537   : >> { %v1348_v16 = vpop.f32.mrf.mxu2 }
 0x538   : >> { %v1387_v9 = vadd.f32 %v1348_v16, %v1321_v48  ;;  %v1377_v54 = vpop.f32.mrf.mxu3 }
 0x539   : >> { %v1388_v63 = vadd.f32 %v1377_v54, %v1322_v57  ;;  %v1345_v6 = vpop.f32.mrf.mxu0 }
 0x53a   : >> { %1395 = vst [vmem:[#allocation2 + $0x38] sm:$0xff] %v1387_v9  ;;  %v1385_v55 = vadd.f32 %v1345_v6, %v1319_v60  ;;  %v1374_v41 = vpop.f32.mrf.mxu1 }
 0x53b   : >> { %1396 = vst [vmem:[#allocation2 + $0x50] sm:$0xff] %v1388_v63  ;;  %v1386_v7 = vadd.f32 %v1374_v41, %v1320_v56 }
 0x53c   : >> { %1393 = vst [vmem:[#allocation2 + $0x18] sm:$0xff] %v1385_v55 }
 0x53d   : >> { %1394 = vst [vmem:[#allocation2 + $0x98] sm:$0xff] %v1386_v7 }
 0x53f   : >> { %v1351_v11 = vpop.f32.mrf.mxu2 }
 0x540   : >> { %v1389_v15 = vadd.f32 %v1351_v11, %v1323_v8  ;;  %v1380_v17 = vpop.f32.mrf.mxu3 }
 0x541   : >> { %v1390_v13 = vadd.f32 %v1380_v17, %v1324_v10 }
 0x542   : >> { %1397 = vst [vmem:[#allocation2 + $0x70] sm:$0xff] %v1389_v15 }
 0x543   : >> { %1398 = vst [vmem:[#allocation2 + $0xa0] sm:$0xff] %v1390_v13 }
 0x544 PF: >> { %s1399_s23 = sadd.s32 1, %s2405_s23   ;;  %s1400_s22 = sadd.s32 %s2401_s22, %s2866_s9  }
 0x545   : >> { %s1401_s20 = sadd.s32 %s2397_s20, %s2868_s27   ;;  %s1402_s14 = sadd.s32 %s2393_s14, %s2870_s30  }
 0x546   : >> { %p539_p1 = scmp.lt.s32.totalorder %s1399_s23, 8  ;;  %p540_p2 = scmp.lt.s32.totalorder %s1400_s22, %s4338_s11 }
 0x547   : >> { %p541_p3 = scmp.lt.s32.totalorder %s1401_s20, %s4338_s11  ;;  %p543_p4 = scmp.lt.s32.totalorder %s1402_s14, %s4338_s11 }
 0x549   : >> { %p542_p7 = por %p541_p3, %p540_p2 }
 0x54b   : >> { %p544_p8 = por %p543_p4, %p542_p7 }
 0x54d   : >> { %p545_p9 = pnand %p544_p8, %p539_p1 }
 0x54f   : > { %548 = sbr.rel (!%p545_p9) target bundleno = 447 (0x1bf), region = 117 }
 0x554 PF: > { %v1403_v18 = vld [vmem:[#allocation2 + $0xb0] sm:$0xff]  ;;  %v1404_v19 = vld [vmem:[#allocation2] sm:$0xff]  ;;  %v1406_v12 = vld [vmem:[#allocation2 + $0x48] sm:$0xff]  ;;  %vm1493_vm1 = vcmask 1040384   ;;  %s1506_s13 = scvt.s32.f32 %s4338_s11  ;;  %vm1524_vm3 = vcmp.eq.s32.totalorder %v2580_v61, 0  ;;  %vm1527_vm4 = vcmp.eq.s32.totalorder %v2582_v62, 1 }
 0x555   : > { %v1405_v39 = vld [vmem:[#allocation2 + $0x10] sm:$0xff]  ;;  %v1407_v40 = vld [vmem:[#allocation2 + $0x60] sm:$0xff]  ;;  %v1408_v42 = vld [vmem:[#allocation2 + $0x28] sm:$0xff]  ;;  %vm1525_vm6 = vcmp.eq.s32.totalorder %v2582_v62, 0 }
 0x556   : > { %v1409_v38 = vld [vmem:[#allocation2 + $0x40] sm:$0xff]  ;;  %v1410_v49 = vld [vmem:[#allocation2 + $0x78] sm:$0xff]  ;;  %v1412_v14 = vld [vmem:[#allocation2 + $0x88] sm:$0xff] }
 0x557   : > { %v1413_v2 = vld [vmem:[#allocation2 + $0x90] sm:$0xff]  ;;  %v1414_v43 = vld [vmem:[#allocation2 + $0x18] sm:$0xff]  ;;  %v1429_v57 = vmul.f32 %v1412_v14, %v1403_v18  ;;  %v1419_v20 = vld [vmem:[#allocation2 + $0xa0] sm:$0xff] }
 0x558   : > { %v1415_v48 = vld [vmem:[#allocation2 + $0x98] sm:$0xff]  ;;  %v1417_v60 = vld [vmem:[#allocation2 + $0x50] sm:$0xff]  ;;  %v1430_v54 = vmul.f32 %v1413_v2, %v1404_v19  ;;  %v1431_v56 = vmul.f32 %v1414_v43, %v1405_v39  ;;  %v1421_v21 = vld [vmem:[#allocation2 + $0xa8] sm:$0xff]  ;;  %v1436_v29 = vmul.f32 %v1419_v20, %v1410_v49 }
 0x559   : > { %v1416_v16 = vld [vmem:[#allocation2 + $0x38] sm:$0xff]  ;;  %v1418_v9 = vld [vmem:[#allocation2 + $0x70] sm:$0xff]  ;;  %v1432_v63 = vmul.f32 %v1415_v48, %v1406_v12  ;;  %v1422_v22 = vld [vmem:[#allocation2 + $0x68] sm:$0xff]  ;;  %v1434_v24 = vmul.f32 %v1417_v60, %v1408_v42  ;;  %v1455_v32 = vmul.f32 %v1421_v21, %v1403_v18 }
 0x55a   : > { %v1433_v23 = vmul.f32 %v1416_v16, %v1407_v40  ;;  %v1435_v25 = vmul.f32 %v1418_v9, %v1409_v38  ;;  %v1423_v26 = vld [vmem:[#allocation2 + $0x30] sm:$0xff]  ;;  %v1424_v27 = vld [vmem:[#allocation2 + $0x58] sm:$0xff]  ;;  %v1425_v28 = vld [vmem:[#allocation2 + $0x80] sm:$0xff]  ;;  %v1437_v30 = vadd.f32 %v1431_v56, %v1429_v57  ;;  %v1456_v36 = vmul.f32 %v1422_v22, %v1404_v19 }
 0x55b   : > { %v1446_v31 = vadd.f32 %v1432_v63, %v1430_v54  ;;  %v1426_v33 = vld [vmem:[#allocation2 + $0xb8] sm:$0xff]  ;;  %v1427_v34 = vld [vmem:[#allocation2 + $0x20] sm:$0xff]  ;;  %v1428_v35 = vld [vmem:[#allocation2 + $0x8] sm:$0xff]  ;;  %v1457_v37 = vmul.f32 %v1423_v26, %v1405_v39  ;;  %v1458_v44 = vmul.f32 %v1424_v27, %v1406_v12  ;;  %v1459_v45 = vmul.f32 %v1425_v28, %v1407_v40 }
 0x55c   : > { %v1438_v46 = vadd.f32 %v1437_v30, %v1433_v23  ;;  %v1460_v50 = vmul.f32 %v1426_v33, %v1408_v42  ;;  %v1461_v51 = vmul.f32 %v1427_v34, %v1409_v38  ;;  %v1462_v52 = vmul.f32 %v1428_v35, %v1410_v49  ;;  %vm1528_vm7 = vmand %vm1524_vm3, %vm1527_vm4 }
 0x55d   : > { %v1447_v47 = vadd.f32 %v1446_v31, %v1434_v24  ;;  %v1463_v53 = vadd.f32 %v1457_v37, %v1455_v32  ;;  %v1472_v58 = vadd.f32 %v1458_v44, %v1456_v36  ;;  %v1487_v9 = vadd.s32 128, %v2582_v62  ;;  %vm1526_vm5 = vmand %vm1524_vm3, %vm1525_vm6 }
 0x55e   : > { %v1439_v59 = vadd.f32 %v1438_v46, %v1435_v25  ;;  %v1488_v63 = vstv %s4338_s11 }
 0x55f   : > { %v1448_v1 = vadd.f32 %v1447_v47, %v1436_v29  ;;  %v1464_v3 = vadd.f32 %v1463_v53, %v1459_v45  ;;  %v1473_v4 = vadd.f32 %v1472_v58, %v1460_v50  ;;  %vm1489_vm12 = vcmp.lt.s32.totalorder %v2582_v62, %v1488_v63 }
 0x560   : > { %v1440_v5 = vrot.slane %v1439_v59, 4  ;;  %vm1490_vm15 = vcmp.lt.s32.totalorder %v1487_v9, %v1488_v63  ;;  %v1507_v29 = vstv %s1506_s13 }
 0x561   : > { %v1449_v6 = vrot.slane %v1448_v1, 4  ;;  %v1465_v55 = vadd.f32 %v1464_v3, %v1461_v51  ;;  %v1474_v41 = vadd.f32 %v1473_v4, %v1462_v52  ;;  %2203 = vrcp.f32 %v1507_v29 }
 0x562   : > { %v1441_v7 = vadd.f32 %v1440_v5, %v1439_v59  ;;  %vm1513_vm0 = vweird.f32 %v1507_v29  ;;  %v1519_v37 = vand.u32 2147483648, %v1507_v29  ;;  %v1517_v45 = vand.u32 2147483647, %v1507_v29 }
 0x563   : > { %v1450_v8 = vadd.f32 %v1449_v6, %v1448_v1  ;;  %v1466_v10 = vrot.slane %v1465_v55, 4  ;;  %v1475_v11 = vrot.slane %v1474_v41, 4  ;;  %v1529_v59 = vsel %vm1528_vm7, 1.0, %v2417_v0 }
 0x564   : > { %v1442_v15 = vrot.slane %v1441_v7, 2  ;;  %v1520_v50 = vor.u32 1.1754944e-38, %v1519_v37  ;;  %vm1518_vm9 = vcmp.eq.f32.partialorder %v1517_v45, 8.507059e+37 }
 0x565   : > { %v1451_v17 = vrot.slane %v1450_v8, 2  ;;  %v1467_v13 = vadd.f32 %v1466_v10, %v1465_v55  ;;  %v1476_v18 = vadd.f32 %v1475_v11, %v1474_v41 }
 0x566   : > { %v1443_v19 = vadd.f32 %v1442_v15, %v1441_v7 }
 0x567   : > { %v1452_v39 = vadd.f32 %v1451_v17, %v1450_v8  ;;  %v1468_v12 = vrot.slane %v1467_v13, 2  ;;  %v1477_v40 = vrot.slane %v1476_v18, 2  ;;  %v2204_v30 = vpop.eup %2203 }
 0x568   : > { %v1444_v42 = vrot.slane %v1443_v19, 1  ;;  %v1509_v31 = vmul.f32 %v2204_v30, %v1507_v29  ;;  %vm1514_vm11 = vweird.f32 %v2204_v30 }
 0x569   : > { %v1453_v38 = vrot.slane %v1452_v39, 1  ;;  %v1469_v49 = vadd.f32 %v1468_v12, %v1467_v13  ;;  %v1478_v14 = vadd.f32 %v1477_v40, %v1476_v18  ;;  %vm1515_vm2 = vmor %vm1513_vm0, %vm1514_vm11 }
 0x56a   : > { %v1445_v2 = vadd.f32 %v1444_v42, %v1443_v19  ;;  %v1510_v32 = vsub.f32 1.0, %v1509_v31 }
 0x56b   : > { %v1454_v43 = vadd.f32 %v1453_v38, %v1452_v39  ;;  %v1470_v48 = vrot.slane %v1469_v49, 1  ;;  %v1479_v57 = vrot.slane %v1478_v14, 1 }
 0x56c   : > { %v1511_v34 = vmul.f32 %v2204_v30, %v1510_v32 }
 0x56d   : > { %v1471_v16 = vadd.f32 %v1470_v48, %v1469_v49  ;;  %v1480_v60 = vadd.f32 %v1479_v57, %v1478_v14 }
 0x56e   : > { %v1512_v44 = vadd.f32 %v2204_v30, %v1511_v34 }
 0x56f   : > { %v1481_v54 = vsub.f32 %v1471_v16, %v1445_v2  ;;  %v1482_v56 = vsub.f32 %v1480_v60, %v1454_v43 }
 0x570   : > { %v1516_v51 = vsel %vm1515_vm2, %v2204_v30, %v1512_v44 }
 0x571   : > { %v1483_v20 = vadd.f32 0.6, %v1481_v54  ;;  %v1484_v21 = vadd.f32 0.6, %v1482_v56  ;;  %v1521_v58 = vsel %vm1518_vm9, %v1520_v50, %v1516_v51 }
 0x573   : > { %v1485_v22 = vmax.f32 %v1483_v20, 0.0  ;;  %v1486_v23 = vmax.f32 %v1484_v21, 0.0 }
 0x575   : > { %v1491_v24 = vsel %vm1489_vm12, %v1485_v22, 0.0  ;;  %v1492_v25 = vsel %vm1490_vm15, %v1486_v23, 0.0 }
 0x576   : > { %v1494_v26 = vsel %vm1493_vm1, %v1491_v24, 0.0  ;;  %v1495_v27 = vsel %vm1493_vm1, %v1492_v25, 0.0 }
 0x577   : > { %v1496_v28 = vadd.f32 %v1495_v27, %v1494_v26 }
 0x579   : > { %1497 = vadd.xlane.f32.xlu0 %v1496_v28 }
 0x5ec   : > { %v1498_v33 = vpop.xlane.xlu0 %1497 }
 0x5ed   : > { %v1499_v35 = vrot.slane %v1498_v33, 4 }
 0x5ef   : > { %v1500_v36 = vadd.f32 %v1499_v35, %v1498_v33 }
 0x5f1   : > { %v1501_v46 = vrot.slane %v1500_v36, 2 }
 0x5f3   : > { %v1502_v47 = vadd.f32 %v1501_v46, %v1500_v36 }
 0x5f5   : > { %v1503_v52 = vrot.slane %v1502_v47, 1 }
 0x5f7   : > { %v1504_v53 = vadd.f32 %v1503_v52, %v1502_v47 }
 0x5f9   : > { %2074 = vpush %v1504_v53 }
 0x5fa   : > { %2076 = vpush %v1521_v58 }
 0x62a   : > { %s2075_s11 = spop %2074 }
 0x62b   : > { %s2077_s14 = spop %2076 }
 0x62c   : > { %s1523_s20 = smul.f32 %s2077_s14, %s2075_s11 }
 0x62e   : > { %v1530_v1 = vstv %s1523_s20 }
 0x62f   : > { %v1531_v3 = vsel %vm1526_vm5, %v1530_v1, %v1529_v59 }
 0x630   : > { %1532 = vst [vmem:[%s2574_s10] sm:$0xff] %v1531_v3 }
 0x631 PF: > { %s1948_s22 = sshll.u32 %s2470_s19, 3  ;;  %s1546_s5 = sshll.u32 %s2574_s10, 4  ;;  %s1547_s5 = int_to_ptr.vmem [resolvable:$true] %s1546_s5 }
 0x632   : > { %s1544_s29 = scalar_lea.hbm %s4153_s4, %s1948_s22  ;;  %s1534_s9 = scalar_lea.sflag [#allocation8], %s232_s7 }
 0x633   : > { %s1548_s6 = sshll.u32 %s1544_s29, 4  ;;  %s2315_s19 = scalar_lea.hbm %s4153_s4, 152  ;;  %s1549_s6 = int_to_ptr.hbm [resolvable:$true] %s1548_s6 }
 0x634   : > { %s2309_s27 = sshra.s32 %s1549_s6, 4  ;;  %s2310_s27 = int_to_ptr.hbm [resolvable:$true] %s2309_s27 }
 0x635   : > { %s2311_s30 = scalar_lea.hbm %s2310_s27, 8  ;;  %p2316_p13 = scmp.lt.s32.totalorder %s2310_s27, %s4153_s4 }
 0x636   : > { %p2312_p10 = scmp.ne.s32.totalorder %s2310_s27, %s2311_s30  ;;  %p2317_p0 = scmp.lt.s32.totalorder %s2315_s19, %s2311_s30 }
 0x638   : > { %p2313_p11 = pnand %p2312_p10, %p2487_p5  ;;  %p2318_p1 = por %p2317_p0, %p2316_p13 }
 0x63a   : > { %p2314_p12 = pneg %p2313_p11 }
 0x63c   : > { %p2319_p2 = pnand %p2318_p1, %p2314_p12 }
 0x63e   : > { %2322 = shalt.err (!%p2319_p2)
}
 0x63f   : > { %2094 = dma.vmem_to_hbm [thread:$0]  (%p2487_p5), %s1547_s5, 128, %s1549_s6, %s1534_s9  }
 0x640 PF: > { %p2121_p3 = scmp.ge.s32.totalorder %s2389_s18, 2  ;;  %s1560_s7 = sand.u32 1, %s2377_s15  }
 0x641   : > { %s1561_s10 = scalar_lea.sflag [#allocation8], %s1560_s7 }
 0x642   : > { %p2110_p4 = pnand %p2121_p3, %p2491_p6 }
 0x644   : > { %p2111_p7 = pneg %p2110_p4 }
 0x646   : > { %2372 = dma.done.wait (%p2111_p7), %s1561_s10, 128  }
 0x647   : > { %2374 = vsyncadd (%p2111_p7), %s1561_s10, 4294967168  ;;  %p18_p8 = scmp.ge.s32.totalorder %s2474_s21, 21   ;;  %s4329_s15 = smov %s2381_s16 }
 0x648   : > { %s4330_s16 = smov %s2385_s17  ;;  %s4331_s17 = smov %s2485_s24 }
 0x649   : > { %s4332_s18 = smov %s2474_s21  ;;  %20 = sbr.rel (!%p18_p8) target bundleno = 7 (0x7), region = 128 }
 0x64e   :  { %1567 = vsyncpa [#allocation7], 1 }
 0x64f   :  { %1569 = vsyncpa [#allocation7 + $0x1], 1 }
 0x650   :  { %1570 = vsyncpa [#allocation14], 1 }
 0x651   :  { %1571 = vsyncpa [#allocation8], 1 }
 0x652   :  { %1573 = vsyncpa [#allocation8 + $0x1], 1 }
 0x653   :  { %1574 = vsyncpa [#allocation9], 1 }
 0x654   :  { %1576 = vsyncpa [#allocation9 + $0x1], 1 }
 0x655   :  { %1577 = vsyncpa [#allocation11], 1 }

// kernel: tpu_custom_call.1
= control target key start
LH: loop header
LB: loop body
LE: loop exit
PB: predicated region body
PF: predicated region fallthrough
CT: control target
= control target key end

     0   :  { %9 = vsyncpa [#allocation9], 0  ;;  %s4149_s0 = inlined_call_operand.hbm [shape: s32[19], index: 0, kind: input, shape index: {}]   ;;  %s4150_s1 = inlined_call_operand.hbm [shape: s32[19], index: 1, kind: input, shape index: {}]   ;;  %s4151_s2 = inlined_call_operand.hbm [shape: s32[8,128], index: 2, kind: input, shape index: {}]   ;;  %s4152_s3 = inlined_call_operand.hbm [shape: f32[8,32,128], index: 3, kind: input, shape index: {}]   ;;  %s4153_s4 = inlined_call_operand.hbm [shape: f32[19,8,128], index: 4, kind: output, shape index: {}]  }
   0x1   :  { %10 = vsyncpa [#allocation11], 0 }
   0x2   :  { %11 = vsyncpa [#allocation7], 0 }
   0x3   :  { %12 = vsyncpa [#allocation14], 0 }
   0x4   :  { %13 = vsyncpa [#allocation8], 0 }
   0x5   :  { %15 = vsyncpa [#allocation8 + $0x1], 0  ;;  %s2449_s15 = smov 0   ;;  %s2451_s16 = smov 0  }
   0x6   :  { %s2453_s17 = smov 0   ;;  %s2455_s18 = smov 0  }
   0x7 LB: > { %s2470_s19 = sadd.s32 4294967295, %s2389_s18   ;;  %s1665_s20 = sadd.s32 4294967294, %s2389_s18   ;;  %s2389_s18 = sphi %s2455_s18, %s4332_s18   ;;  %s2385_s17 = sphi %s2453_s17, %s4331_s17   ;;  %s2381_s16 = sphi %s2451_s16, %s4330_s16   ;;  %s2377_s15 = sphi %s2449_s15, %s4329_s15  }
   0x8   : > { %s2474_s21 = sadd.s32 1, %s2389_s18   ;;  %s112_s22 = sadd.s32 1, %s2385_s17 }
   0x9   : > { %s109_s23 = ssub.s32 %s2389_s18, %s2474_s21  ;;  %p122_p0 = scmp.ne.s32.totalorder %s2385_s17, %s2381_s16 }
   0xa   : > { %p110_p1 = scmp.eq.s32.totalorder %s109_s23, 0  ;;  %p123_p2 = scmp.eq.s32.totalorder %s2470_s19, 18 }
   0xb   : > { %p128_p3 = scmp.ne.s32.totalorder %s2381_s16, %s2377_s15  ;;  %p129_p4 = scmp.eq.s32.totalorder %s1665_s20, 18 }
   0xc   : > { %s2485_s24 = scalar_select %p110_p1, %s2385_s17, %s112_s22  }
   0xd   : > { %p2487_p5 = por %p123_p2, %p122_p0  ;;  %p2491_p6 = por %p129_p4, %p128_p3 }
   0xe   : > { %p1666_p7 = scmp.ge.s32.totalorder %s2389_s18, 1  ;;  %p136_p8 = scmp.lt.s32.totalorder %s2389_s18, 20 }
   0xf   : > { %p2113_p9 = scmp.eq.s32.totalorder %s2470_s19, 0  ;;  %s148_s30 = sshll.u32 %s4149_s0, 4  ;;  %s149_s30 = int_to_ptr.hbm [resolvable:$true] %s148_s30 }
  0x10   : > { %p2498_p10 = pnand %p1666_p7, %p136_p8  ;;  %s158_s7 = sshll.u32 %s4150_s1, 4  ;;  %s159_s7 = int_to_ptr.hbm [resolvable:$true] %s158_s7 }
  0x11   : > { %s168_s11 = sshll.u32 %s4151_s2, 4  ;;  %s2407_s12 = smov [#allocation12]   ;;  %s169_s11 = int_to_ptr.hbm [resolvable:$true] %s168_s11 }
  0x12   : > { %p2096_p11 = pneg %p2498_p10  ;;  %s170_s13 = sshll.u32 %s2407_s12, 4  ;;  %s171_s13 = int_to_ptr.vmem [resolvable:$true] %s170_s13 }
  0x13   : > { %s2408_s14 = smov [#allocation6]   ;;  %s2409_s20 = smov [#allocation10]  }
  0x14   : > { %p2512_p12 = pnand %p2113_p9, %p2096_p11  ;;  %s179_s28 = sshll.u32 %s4152_s3, 4  ;;  %s180_s28 = int_to_ptr.hbm [resolvable:$true] %s179_s28 }
  0x15   : > { %s2410_s29 = smov [#allocation13]   ;;  %s2411_s6 = smov 128  }
  0x16   : > { %2099 = dma.hbm_to_smem (!%p2512_p12), %s149_s30, 16, %s2408_s14, [#allocation9]  }
  0x17   : > { %2102 = dma.hbm_to_smem (!%p2512_p12), %s159_s7, 16, %s2409_s20, [#allocation11]  }
  0x18   : > { %2105 = dma.hbm_to_vmem [thread:$0]  (!%p2512_p12), %s169_s11, 128, %s171_s13, [#allocation7]  }
  0x19   : > { %s181_s5 = sshll.u32 %s2410_s29, 4  ;;  %s2412_s9 = smov 8   ;;  %s182_s5 = int_to_ptr.vmem [resolvable:$true] %s181_s5 }
  0x1a   : > { %2108 = dma.hbm_to_vmem [thread:$0]  (!%p2512_p12), %s180_s28, 4096, %s182_s5, [#allocation14], %s2411_s6, %s2411_s6, %s2412_s9  }
  0x1b   : > { %197 = sbr.rel (%p2498_p10) target bundleno = 1600 (0x640), region = 36 }
  0x20   : > { %2356 = dma.done.wait (%p2113_p9), [#allocation9], 16  }
  0x21   : > { %2358 = vsyncadd (%p2113_p9), [#allocation9], 4294967280 }
  0x22   : > { %2360 = dma.done.wait (%p2113_p9), [#allocation11], 16  }
  0x23   : > { %2362 = vsyncadd (%p2113_p9), [#allocation11], 4294967280 }
  0x24   : > { %2364 = dma.done.wait (%p2113_p9), [#allocation7], 128  }
  0x25   : > { %2366 = vsyncadd (%p2113_p9), [#allocation7], 4294967168 }
  0x26   : > { %2368 = dma.done.wait (%p2113_p9), [#allocation14], 4096  }
  0x27   : > { %2370 = vsyncadd (%p2113_p9), [#allocation14], 4294963200 }
  0x28   : > { %219 = sfence }
  0x29   : > { %v237_v0 = vld [vmem:[#allocation12] sm:$0xff]  ;;  %v238_v1 = vstv %s2470_s19  ;;  %s235_s27 = sld [smem:[#allocation6 + %s2470_s19]]  ;;  %v2413_v3 = vmov 0   ;;  %vm2414_vm3 = vmmov 1   ;;  %s232_s7 = sand.u32 1, %s2381_s16   ;;  %v2415_v59 = vmov 0.0  }
  0x2a   : > { %vm2550_vm0 = vcmp.eq.s32.totalorder %v237_v0, %v238_v1  ;;  %s236_s30 = sld [smem:[#allocation10 + %s2470_s19]]  ;;  %vm250_vm2 = vcmp.ne.s32.totalorder %v237_v0, 1073741823  ;;  %s1676_s8 = sshll.u32 %s232_s7, 3 }
  0x2b   : > { %v252_v4 = vsel %vm2550_vm0, 1, %v2413_v3  ;;  %vm245_vm4 = vmxor %vm2550_vm0, %vm2414_vm3  ;;  %s2574_s10 = scalar_lea.vmem [#allocation15], %s1676_s8 }
  0x2c   : > { %v254_v5 = vshrl.u32 %v252_v4, 16  ;;  %v253_v19 = vand.u32 65535, %v252_v4  ;;  %318 = vst [vmem:[%s2574_s10] sm:$0xff] %v2415_v59 }
  0x2e   : > { %v256_v6 = vcvt.s32.f32 %v254_v5  ;;  %v255_v21 = vcvt.s32.f32 %v253_v19 }
  0x2f   : > { %v240_v7 = vstv %s235_s27 }
  0x30   : > { %259 = vadd.xlane.f32.xlu0 %v256_v6  ;;  %v242_v8 = vstv %s236_s30  ;;  %vm247_vm1 = vcmp.lt.s32.totalorder %v237_v0, %v240_v7  ;;  %vm241_vm6 = vcmp.ge.s32.totalorder %v237_v0, %v240_v7 }
  0x31   : > { %vm248_vm5 = vcmp.ge.s32.totalorder %v237_v0, %v242_v8  ;;  %vm243_vm7 = vcmp.lt.s32.totalorder %v237_v0, %v242_v8 }
  0x32   : > { %vm249_vm8 = vmor %vm247_vm1, %vm248_vm5 }
  0x33   : > { %vm2559_vm9 = vmand %vm249_vm8, %vm250_vm2 }
  0x34   : > { %v292_v10 = vsel %vm2559_vm9, 1, %v2413_v3  ;;  %vm244_vm10 = vmand %vm241_vm6, %vm243_vm7 }
  0x35   : > { %v294_v11 = vshrl.u32 %v292_v10, 16  ;;  %vm2565_vm11 = vmand %vm244_vm10, %vm245_vm4  ;;  %v293_v20 = vand.u32 65535, %v292_v10 }
  0x36   : > { %v272_v13 = vsel %vm2565_vm11, 1, %v2413_v3 }
  0x37   : > { %v296_v14 = vcvt.s32.f32 %v294_v11  ;;  %v274_v15 = vshrl.u32 %v272_v13, 16  ;;  %v273_v16 = vand.u32 65535, %v272_v13  ;;  %v295_v22 = vcvt.s32.f32 %v293_v20 }
  0x39   : > { %299 = vadd.xlane.f32.xlu1 %v296_v14  ;;  %v276_v17 = vcvt.s32.f32 %v274_v15  ;;  %v275_v18 = vcvt.s32.f32 %v273_v16 }
  0x3b   : > { %279 = vadd.xlane.f32.xlu0 %v276_v17  ;;  %277 = vadd.xlane.f32.xlu2 %v275_v18 }
  0x41   : > { %257 = vadd.xlane.f32.xlu1 %v255_v21 }
  0x43   : > { %297 = vadd.xlane.f32.xlu2 %v295_v22 }
  0xa3   : > { %v260_v23 = vpop.xlane.xlu0 %259 }
  0xa4   : > { %v262_v28 = vcvt.f32.s32 %v260_v23 }
  0xa6   : > { %v263_v34 = vshll.u32 %v262_v28, 16 }
  0xac   : > { %v300_v24 = vpop.xlane.xlu1 %299 }
  0xad   : > { %v302_v31 = vcvt.f32.s32 %v300_v24 }
  0xae   : > { %v280_v25 = vpop.xlane.xlu0 %279  ;;  %v278_v26 = vpop.xlane.xlu2 %277 }
  0xaf   : > { %v282_v27 = vcvt.f32.s32 %v280_v25  ;;  %v281_v30 = vcvt.f32.s32 %v278_v26  ;;  %v303_v38 = vshll.u32 %v302_v31, 16 }
  0xb1   : > { %v283_v29 = vshll.u32 %v282_v27, 16 }
  0xb3   : > { %v284_v32 = vadd.s32 %v283_v29, %v281_v30 }
  0xb4   : > { %v258_v33 = vpop.xlane.xlu1 %257 }
  0xb5   : > { %v285_v35 = vrot.slane %v284_v32, 4  ;;  %v261_v36 = vcvt.f32.s32 %v258_v33 }
  0xb6   : > { %v298_v37 = vpop.xlane.xlu2 %297 }
  0xb7   : > { %v286_v39 = vadd.s32 %v285_v35, %v284_v32  ;;  %v264_v40 = vadd.s32 %v263_v34, %v261_v36  ;;  %v301_v41 = vcvt.f32.s32 %v298_v37 }
  0xb9   : > { %v265_v42 = vrot.slane %v264_v40, 4  ;;  %v304_v43 = vadd.s32 %v303_v38, %v301_v41  ;;  %v287_v44 = vrot.slane %v286_v39, 2 }
  0xbb   : > { %v266_v45 = vadd.s32 %v265_v42, %v264_v40  ;;  %v305_v46 = vrot.slane %v304_v43, 4  ;;  %v288_v47 = vadd.s32 %v287_v44, %v286_v39 }
  0xbd   : > { %v306_v48 = vadd.s32 %v305_v46, %v304_v43  ;;  %v267_v49 = vrot.slane %v266_v45, 2  ;;  %v289_v52 = vrot.slane %v288_v47, 1 }
  0xbf   : > { %v268_v50 = vadd.s32 %v267_v49, %v266_v45  ;;  %v307_v51 = vrot.slane %v306_v48, 2  ;;  %v290_v57 = vadd.s32 %v289_v52, %v288_v47 }
  0xc1   : > { %v269_v53 = vrot.slane %v268_v50, 1  ;;  %v308_v54 = vadd.s32 %v307_v51, %v306_v48 }
  0xc3   : > { %v270_v55 = vadd.s32 %v269_v53, %v268_v50  ;;  %v309_v56 = vrot.slane %v308_v54, 1 }
  0xc5   : > { %2047 = vpush %v270_v55  ;;  %v310_v58 = vadd.s32 %v309_v56, %v308_v54 }
  0xc6   : > { %2049 = vpush %v290_v57 }
  0xc7   : > { %2051 = vpush %v310_v58 }
  0xf6   : > { %s2048_s11 = spop %2047 }
  0xf7   : > { %s2050_s12 = spop %2049 }
  0xf8   : > { %p312_p13 = scmp.lt.s32.totalorder %s2048_s11, %s2050_s12  ;;  %s2052_s13 = spop %2051 }
  0xf9   : > { %p314_p0 = scmp.lt.s32.totalorder %s2052_s13, 200 }
  0xfa   : > { %s4334_s11 = smov (!%p312_p13, %s2048_s11), %s2050_s12 }
  0xfb   : > { %s4336_s13 = smov (!%p314_p0, %s2052_s13), 200 }
  0xfc   : > { %p316_p1 = scmp.lt.s32.totalorder %s4334_s11, %s4336_s13 }
  0xfe   : > { %s4338_s11 = smov (!%p316_p1, %s4334_s11), %s4336_s13 }
  0xff   : > { %p1677_p2 = scmp.le.s32.totalorder %s4338_s11, 0 }
 0x100   : > { %p1748_p3 = scmp.gt.s32.totalorder (!%p1677_p2), %s4338_s11, 0 }
 0x101   : > { %322 = sbr.rel (%p1677_p2) target bundleno = 1585 (0x631), region = 56 }
 0x102   : > { %p1601_p4 = por (!%p1677_p2), %p1748_p3, %p1748_p3 }
 0x104   : > { %p1603_p7 = por (!%p1677_p2), %p1748_p3, %p1601_p4 }
 0x106   : > { %v347_v60 = vlaneseq  ;;  %v2416_v13 = vmov 1.0   ;;  %s2824_s14 = smov (%p1603_p7), 0   ;;  %s2826_s20 = smov (%p1603_p7), 0  }
 0x107   : > { %s2828_s22 = smov (%p1603_p7), 0   ;;  %s2830_s23 = smov (%p1603_p7), 0  }
 0x108   : > { %v2580_v61 = vshrl.u32 %v347_v60, 7  ;;  %v2582_v62 = vand.u32 127, %v347_v60 }
 0x10a   : > { %v363_v63 = vadd.s32 120, %v2580_v61  ;;  %v486_v0 = vadd.s32 128, %v2580_v61  ;;  %v487_v1 = vadd.s32 136, %v2580_v61  ;;  %v488_v3 = vadd.s32 144, %v2580_v61 }
 0x10b   : > { %v489_v4 = vadd.s32 152, %v2580_v61  ;;  %v490_v5 = vadd.s32 160, %v2580_v61  ;;  %v491_v6 = vadd.s32 168, %v2580_v61  ;;  %v492_v7 = vadd.s32 176, %v2580_v61 }
 0x10c   : > { %vm381_vm12 = vcmp.le.s32.totalorder %v363_v63, %v2582_v62  ;;  %v493_v8 = vadd.s32 184, %v2580_v61  ;;  %v494_v10 = vadd.s32 192, %v2580_v61  ;;  %v495_v11 = vadd.s32 200, %v2580_v61 }
 0x10d   : > { %1731 = vmatpush.msk.msra.mxu2 %vm381_vm12, %v2416_v13  ;;  %v496_v14 = vadd.s32 208, %v2580_v61  ;;  %v497_v15 = vadd.s32 216, %v2580_v61  ;;  %v498_v16 = vadd.s32 224, %v2580_v61  ;;  %v499_v17 = vadd.s32 232, %v2580_v61  ;;  %1695 = vmatpush.msk.msra.mxu0 %vm381_vm12, %v2416_v13 }
 0x10e   : > { %v500_v18 = vadd.s32 240, %v2580_v61  ;;  %v501_v19 = vadd.s32 248, %v2580_v61  ;;  %v2605_v20 = vadd.s32 1, %v2580_v61  ;;  %v2607_v21 = vadd.s32 1, %v363_v63  ;;  %1713 = vmatpush.msk.msra.mxu1 %vm381_vm12, %v2416_v13 }
 0x10f   : > { %v2610_v22 = vadd.s32 1, %v486_v0  ;;  %v2612_v23 = vadd.s32 1, %v487_v1  ;;  %v2614_v24 = vadd.s32 1, %v488_v3  ;;  %v2616_v25 = vadd.s32 1, %v489_v4 }
 0x110   : > { %v2618_v26 = vadd.s32 1, %v490_v5  ;;  %v2620_v27 = vadd.s32 1, %v491_v6  ;;  %v2622_v28 = vadd.s32 1, %v492_v7  ;;  %v2624_v29 = vadd.s32 1, %v493_v8 }
 0x111   : > { %v2626_v30 = vadd.s32 1, %v494_v10  ;;  %v2628_v31 = vadd.s32 1, %v495_v11  ;;  %v2630_v32 = vadd.s32 1, %v496_v14  ;;  %v2632_v33 = vadd.s32 1, %v497_v15 }
 0x112   : > { %v2634_v34 = vadd.s32 1, %v498_v16  ;;  %v2636_v35 = vadd.s32 1, %v499_v17  ;;  %v2638_v36 = vadd.s32 1, %v500_v18  ;;  %v2640_v37 = vadd.s32 1, %v501_v19 }
 0x113   : > { %v362_v38 = vadd.s32 112, %v2580_v61  ;;  %v361_v39 = vadd.s32 104, %v2580_v61  ;;  %v360_v40 = vadd.s32 96, %v2580_v61  ;;  %v359_v41 = vadd.s32 88, %v2580_v61 }
 0x114   : > { %v358_v42 = vadd.s32 80, %v2580_v61  ;;  %v357_v43 = vadd.s32 72, %v2580_v61  ;;  %v356_v48 = vadd.s32 64, %v2580_v61  ;;  %v355_v49 = vadd.s32 56, %v2580_v61 }
 0x115   : > { %vm380_vm13 = vcmp.le.s32.totalorder %v362_v38, %v2582_v62  ;;  %v2649_v44 = vadd.s32 1, %v362_v38  ;;  %vm379_vm14 = vcmp.le.s32.totalorder %v361_v39, %v2582_v62  ;;  %v2652_v45 = vadd.s32 1, %v361_v39 }
 0x116   : > { %1732 = vmatpush.msk.msra.mxu2 %vm380_vm13, %v2416_v13  ;;  %v2655_v46 = vadd.s32 1, %v360_v40  ;;  %1696 = vmatpush.msk.msra.mxu0 %vm380_vm13, %v2416_v13  ;;  %v2658_v47 = vadd.s32 1, %v359_v41  ;;  %vm378_vm15 = vcmp.le.s32.totalorder %v360_v40, %v2582_v62  ;;  %v2664_v50 = vadd.s32 1, %v358_v42 }
 0x117   : > { %1714 = vmatpush.msk.msra.mxu1 %vm380_vm13, %v2416_v13  ;;  %v2666_v51 = vadd.s32 1, %v357_v43  ;;  %v2674_v52 = vadd.s32 1, %v356_v48  ;;  %v2676_v53 = vadd.s32 1, %v355_v49  ;;  %vm377_vm1 = vcmp.le.s32.totalorder %v359_v41, %v2582_v62 }
 0x118   : > { %1733 = vmatpush.msk.msra.mxu2 %vm379_vm14, %v2416_v13  ;;  %1697 = vmatpush.msk.msra.mxu0 %vm379_vm14, %v2416_v13  ;;  %v354_v54 = vadd.s32 48, %v2580_v61  ;;  %v353_v55 = vadd.s32 40, %v2580_v61  ;;  %vm376_vm2 = vcmp.le.s32.totalorder %v358_v42, %v2582_v62  ;;  %v352_v56 = vadd.s32 32, %v2580_v61 }
 0x119   : > { %1715 = vmatpush.msk.msra.mxu1 %vm379_vm14, %v2416_v13  ;;  %v2693_v57 = vadd.s32 24, %v2580_v61  ;;  %v2703_v60 = vadd.s32 16, %v2580_v61  ;;  %v2706_v63 = vadd.s32 8, %v2580_v61  ;;  %v2417_v0 = vmov 0.0  }
 0x11a   : > { %1734 = vmatpush.msk.msra.mxu2 %vm378_vm15, %v2416_v13  ;;  %1698 = vmatpush.msk.msra.mxu0 %vm378_vm15, %v2416_v13  ;;  %v2698_v58 = vadd.s32 1, %v354_v54  ;;  %v2700_v59 = vadd.s32 1, %v353_v55  ;;  %323 = vst [vmem:[#allocation2 + $0xb0] sm:$0xff] %v2417_v0  ;;  %v2715_v1 = vadd.s32 1, %v352_v56  ;;  %vm375_vm3 = vcmp.le.s32.totalorder %v357_v43, %v2582_v62 }
 0x11b   : > { %1716 = vmatpush.msk.msra.mxu1 %vm378_vm15, %v2416_v13  ;;  %v2718_v3 = vadd.s32 1, %v2693_v57  ;;  %324 = vst [vmem:[#allocation2] sm:$0xff] %v2417_v0  ;;  %v2726_v4 = vadd.s32 1, %v2703_v60  ;;  %v2729_v5 = vadd.s32 1, %v2706_v63  ;;  %vm374_vm4 = vcmp.le.s32.totalorder %v356_v48, %v2582_v62 }
 0x11c   : > { %1735 = vmatpush.msk.msra.mxu2 %vm377_vm1, %v2416_v13  ;;  %1699 = vmatpush.msk.msra.mxu0 %vm377_vm1, %v2416_v13  ;;  %325 = vst [vmem:[#allocation2 + $0x10] sm:$0xff] %v2417_v0  ;;  %vm373_vm5 = vcmp.le.s32.totalorder %v355_v49, %v2582_v62  ;;  %vm372_vm6 = vcmp.le.s32.totalorder %v354_v54, %v2582_v62  ;;  %v1694_v6 = vsel %vm2550_vm0, 1.0, %v2417_v0  ;;  %v1712_v7 = vsel %vm2565_vm11, 1.0, %v2417_v0 }
 0x11d   : > { %1717 = vmatpush.msk.msra.mxu1 %vm377_vm1, %v2416_v13  ;;  %326 = vst [vmem:[#allocation2 + $0x48] sm:$0xff] %v2417_v0  ;;  %vm371_vm7 = vcmp.le.s32.totalorder %v353_v55, %v2582_v62  ;;  %vm370_vm8 = vcmp.le.s32.totalorder %v352_v56, %v2582_v62  ;;  %vm369_vm10 = vcmp.le.s32.totalorder %v2693_v57, %v2582_v62  ;;  %v1730_v15 = vsel %vm2559_vm9, 1.0, %v2417_v0 }
 0x11e   : > { %1736 = vmatpush.msk.msra.mxu2 %vm376_vm2, %v2416_v13  ;;  %1700 = vmatpush.msk.msra.mxu0 %vm376_vm2, %v2416_v13  ;;  %327 = vst [vmem:[#allocation2 + $0x60] sm:$0xff] %v2417_v0  ;;  %vm368_vm12 = vcmp.le.s32.totalorder %v2703_v60, %v2582_v62  ;;  %vm367_vm13 = vcmp.le.s32.totalorder %v2706_v63, %v2582_v62 }
 0x11f   : > { %1718 = vmatpush.msk.msra.mxu1 %vm376_vm2, %v2416_v13  ;;  %328 = vst [vmem:[#allocation2 + $0x28] sm:$0xff] %v2417_v0  ;;  %vm366_vm14 = vcmp.le.s32.totalorder %v2580_v61, %v2582_v62 }
 0x120   : > { %1737 = vmatpush.msk.msra.mxu2 %vm375_vm3, %v2416_v13  ;;  %1701 = vmatpush.msk.msra.mxu0 %vm375_vm3, %v2416_v13  ;;  %329 = vst [vmem:[#allocation2 + $0x40] sm:$0xff] %v2417_v0 }
 0x121   : > { %1719 = vmatpush.msk.msra.mxu1 %vm375_vm3, %v2416_v13  ;;  %330 = vst [vmem:[#allocation2 + $0x78] sm:$0xff] %v2417_v0 }
 0x122   : > { %1738 = vmatpush.msk.msra.mxu2 %vm374_vm4, %v2416_v13  ;;  %1702 = vmatpush.msk.msra.mxu0 %vm374_vm4, %v2416_v13  ;;  %331 = vst [vmem:[#allocation2 + $0x88] sm:$0xff] %v2417_v0 }
 0x123   : > { %1720 = vmatpush.msk.msra.mxu1 %vm374_vm4, %v2416_v13  ;;  %332 = vst [vmem:[#allocation2 + $0x90] sm:$0xff] %v2417_v0 }
 0x124   : > { %1739 = vmatpush.msk.msra.mxu2 %vm373_vm5, %v2416_v13  ;;  %1703 = vmatpush.msk.msra.mxu0 %vm373_vm5, %v2416_v13  ;;  %333 = vst [vmem:[#allocation2 + $0x18] sm:$0xff] %v2417_v0 }
 0x125   : > { %1721 = vmatpush.msk.msra.mxu1 %vm373_vm5, %v2416_v13  ;;  %334 = vst [vmem:[#allocation2 + $0x98] sm:$0xff] %v2417_v0 }
 0x126   : > { %1740 = vmatpush.msk.msra.mxu2 %vm372_vm6, %v2416_v13  ;;  %1704 = vmatpush.msk.msra.mxu0 %vm372_vm6, %v2416_v13  ;;  %335 = vst [vmem:[#allocation2 + $0x38] sm:$0xff] %v2417_v0 }
 0x127   : > { %1722 = vmatpush.msk.msra.mxu1 %vm372_vm6, %v2416_v13  ;;  %336 = vst [vmem:[#allocation2 + $0x50] sm:$0xff] %v2417_v0 }
 0x128   : > { %1741 = vmatpush.msk.msra.mxu2 %vm371_vm7, %v2416_v13  ;;  %1705 = vmatpush.msk.msra.mxu0 %vm371_vm7, %v2416_v13  ;;  %337 = vst [vmem:[#allocation2 + $0x70] sm:$0xff] %v2417_v0 }
 0x129   : > { %1723 = vmatpush.msk.msra.mxu1 %vm371_vm7, %v2416_v13  ;;  %338 = vst [vmem:[#allocation2 + $0xa0] sm:$0xff] %v2417_v0 }
 0x12a   : > { %1742 = vmatpush.msk.msra.mxu2 %vm370_vm8, %v2416_v13  ;;  %1706 = vmatpush.msk.msra.mxu0 %vm370_vm8, %v2416_v13  ;;  %339 = vst [vmem:[#allocation2 + $0xa8] sm:$0xff] %v2417_v0 }
 0x12b   : > { %1724 = vmatpush.msk.msra.mxu1 %vm370_vm8, %v2416_v13  ;;  %340 = vst [vmem:[#allocation2 + $0x68] sm:$0xff] %v2417_v0 }
 0x12c   : > { %1743 = vmatpush.msk.msra.mxu2 %vm369_vm10, %v2416_v13  ;;  %1707 = vmatpush.msk.msra.mxu0 %vm369_vm10, %v2416_v13  ;;  %341 = vst [vmem:[#allocation2 + $0x30] sm:$0xff] %v2417_v0 }
 0x12d   : > { %1725 = vmatpush.msk.msra.mxu1 %vm369_vm10, %v2416_v13  ;;  %342 = vst [vmem:[#allocation2 + $0x58] sm:$0xff] %v2417_v0 }
 0x12e   : > { %1744 = vmatpush.msk.msra.mxu2 %vm368_vm12, %v2416_v13  ;;  %1708 = vmatpush.msk.msra.mxu0 %vm368_vm12, %v2416_v13  ;;  %343 = vst [vmem:[#allocation2 + $0x80] sm:$0xff] %v2417_v0 }
 0x12f   : > { %1726 = vmatpush.msk.msra.mxu1 %vm368_vm12, %v2416_v13  ;;  %344 = vst [vmem:[#allocation2 + $0xb8] sm:$0xff] %v2417_v0 }
 0x130   : > { %1745 = vmatpush.msk.msra.mxu2 %vm367_vm13, %v2416_v13  ;;  %1709 = vmatpush.msk.msra.mxu0 %vm367_vm13, %v2416_v13  ;;  %345 = vst [vmem:[#allocation2 + $0x20] sm:$0xff] %v2417_v0 }
 0x131   : > { %1727 = vmatpush.msk.msra.mxu1 %vm367_vm13, %v2416_v13  ;;  %346 = vst [vmem:[#allocation2 + $0x8] sm:$0xff] %v2417_v0 }
 0x132   : > { %1746 = vmatpush.msk.msra.mxu2 %vm366_vm14, %v2416_v13  ;;  %1710 = vmatpush.msk.msra.mxu0 %vm366_vm14, %v2416_v13 }
 0x133   : > { %1747 = vmatmul.msk.f32.vlgmr.msra.gmra.mxu2 %vm2559_vm9, %v2416_v13  ;;  %1728 = vmatpush.msk.msra.mxu1 %vm366_vm14, %v2416_v13 }
 0x134   : > { %1711 = vmatmul.msk.f32.vlgmr.msra.gmra.mxu0 %vm2550_vm0, %v2416_v13  ;;  %1729 = vmatmul.msk.f32.vlgmr.msra.gmra.mxu1 %vm2565_vm11, %v2416_v13 }
 0x1b1   : > { %v432_v8 = vpop.f32.mrf.mxu0  ;;  %v456_v10 = vpop.f32.mrf.mxu1 }
 0x1b2   : > { %v435_v11 = vmul.f32 %v1694_v6, %v432_v8  ;;  %v459_v14 = vmul.f32 %v1712_v7, %v456_v10 }
 0x1b4   : > { %vm2053_vm15 = vcmp.lt.s32.totalorder %v435_v11, 0  ;;  %v2054_v16 = vceil.f32 %v435_v11  ;;  %v2055_v17 = vfloor.f32 %v435_v11  ;;  %vm2058_vm1 = vcmp.lt.s32.totalorder %v459_v14, 0 }
 0x1b5   : > { %v2059_v13 = vceil.f32 %v459_v14  ;;  %v2060_v18 = vfloor.f32 %v459_v14 }
 0x1b6   : > { %v2056_v2 = vsel %vm2053_vm15, %v2054_v16, %v2055_v17  ;;  %v480_v19 = vpop.f32.mrf.mxu2 }
 0x1b7   : > { %v2057_v38 = vcvt.f32.s32 %v2056_v2  ;;  %v2061_v39 = vsel %vm2058_vm1, %v2059_v13, %v2060_v18  ;;  %v483_v12 = vmul.f32 %v1730_v15, %v480_v19 }
 0x1b8   : > { %v2062_v40 = vcvt.f32.s32 %v2061_v39 }
 0x1b9   : > { %437 = vst [vmem:[#allocation3] sm:$0xff] %v2057_v38  ;;  %vm2063_vm0 = vcmp.lt.s32.totalorder %v483_v12, 0  ;;  %v2064_v41 = vceil.f32 %v483_v12  ;;  %v2065_v42 = vfloor.f32 %v483_v12 }
 0x1ba   : > { %461 = vst [vmem:[#allocation4] sm:$0xff] %v2062_v40  ;;  %1605 = sbr.rel (!%p1603_p7) target bundleno = 1364 (0x554), region = 111 }
 0x1bb   : > { %v2066_v43 = vsel %vm2063_vm0, %v2064_v41, %v2065_v42 }
 0x1bc   : > { %v2067_v9 = vcvt.f32.s32 %v2066_v43 }
 0x1be   : > { %485 = vst [vmem:[#allocation5] sm:$0xff] %v2067_v9 }
 0x1bf LB: >> { %vm555_vm9 = vcmask 1040384   ;;  %s549_s28 = scalar_lea.vmem [#allocation3], %s2405_s23  ;;  %s551_s29 = scalar_lea.vmem [#allocation4], %s2405_s23  ;;  %s2405_s23 = sphi %s2830_s23, %s1399_s23   ;;  %s2401_s22 = sphi %s2828_s22, %s1400_s22   ;;  %s2397_s20 = sphi %s2826_s20, %s1401_s20   ;;  %s2393_s14 = sphi %s2824_s14, %s1402_s14  }
 0x1c0   : >> { %v2845_v48 = vld [vmem:[%s549_s28] sm:$0x1]  ;;  %s553_s5 = scalar_lea.vmem [#allocation5], %s2405_s23  ;;  %p631_p8 = scmp.lt.s32.totalorder %s2401_s22, %s4338_s11 }
 0x1c1   : >> { %v2848_v49 = vld [vmem:[%s551_s29] sm:$0x1]  ;;  %v556_v54 = vsel %vm555_vm9, %v2845_v48, 2147483648  ;;  %p632_p9 = scmp.lt.s32.totalorder %s2397_s20, %s4338_s11  ;;  %p634_p11 = scmp.lt.s32.totalorder %s2393_s14, %s4338_s11 }
 0x1c2   : >> { %v558_v56 = vshra.s32 %v556_v54, 16  ;;  %v581_v60 = vsel %vm555_vm9, %v2848_v49, 2147483648  ;;  %v557_v11 = vand.u32 65535, %v556_v54 }
 0x1c3   : >> { %v583_v8 = vshra.s32 %v581_v60, 16  ;;  %v582_v17 = vand.u32 65535, %v581_v60  ;;  %p633_p10 = por %p632_p9, %p631_p8 }
 0x1c4   : >> { %v560_v6 = vcvt.s32.f32 %v558_v56  ;;  %v559_v14 = vcvt.s32.f32 %v557_v11 }
 0x1c5   : >> { %v2852_v55 = vld [vmem:[%s553_s5] sm:$0x1]  ;;  %v585_v10 = vcvt.s32.f32 %v583_v8  ;;  %v584_v13 = vcvt.s32.f32 %v582_v17  ;;  %p2862_p12 = por %p634_p11, %p633_p10 }
 0x1c6   : >> { %v606_v57 = vsel %vm555_vm9, %v2852_v55, 2147483648  ;;  %561 = vmax.xlane.f32.xlu0 %v560_v6  ;;  %vm711_vm15 = vcmp.gt.s32.totalorder (%p2862_p12), %v2852_v55, 0  ;;  %s1752_s8 = sshll.u32 (%p2862_p12), %s2405_s23, 5 }
 0x1c7   : >> { %v608_v63 = vshra.s32 %v606_v57, 16  ;;  %v607_v2 = vand.u32 65535, %v606_v57  ;;  %s640_s12 = scalar_lea.vmem (%p2862_p12), [#allocation13], %s1752_s8 }
 0x1c9   : >> { %v610_v7 = vcvt.s32.f32 %v608_v63  ;;  %v609_v39 = vcvt.s32.f32 %v607_v2 }
 0x1cb   : >> { %611 = vmax.xlane.f32.xlu1 %v610_v7 }
 0x1ce   : >> { %586 = vmax.xlane.f32.xlu0 %v585_v10 }
 0x239   : >> { %v562_v15 = vpop.xlane.xlu0 %561 }
 0x23a   : >> { %vm563_vm11 = vcmp.eq.f32.partialorder %v560_v6, %v562_v15  ;;  %v568_v40 = vcvt.f32.s32 %v562_v15 }
 0x23b   : >> { %v564_v16 = vsel %vm563_vm11, %v559_v14, -inf }
 0x23c   : >> { %565 = vmax.xlane.f32.xlu1 %v564_v16  ;;  %v569_v42 = vshll.u32 %v568_v40, 16 }
 0x23e   : >> { %v612_v38 = vpop.xlane.xlu1 %611 }
 0x23f   : >> { %vm613_vm3 = vcmp.eq.f32.partialorder %v610_v7, %v612_v38  ;;  %v618_v11 = vcvt.f32.s32 %v612_v38 }
 0x240   : >> { %v614_v12 = vsel %vm613_vm3, %v609_v39, -inf }
 0x241   : >> { %v587_v18 = vpop.xlane.xlu0 %586  ;;  %v619_v2 = vshll.u32 %v618_v11, 16 }
 0x242   : >> { %vm588_vm2 = vcmp.eq.f32.partialorder %v585_v10, %v587_v18  ;;  %v593_v54 = vcvt.f32.s32 %v587_v18 }
 0x243   : >> { %v589_v19 = vsel %vm588_vm2, %v584_v13, -inf }
 0x244   : >> { %590 = vmax.xlane.f32.xlu2 %v589_v19  ;;  %v594_v63 = vshll.u32 %v593_v54, 16 }
 0x24c   : >> { %615 = vmax.xlane.f32.xlu2 %v614_v12 }
 0x2af   : >> { %v566_v41 = vpop.xlane.xlu1 %565 }
 0x2b0   : >> { %v567_v43 = vcvt.f32.s32 %v566_v41 }
 0x2b2   : >> { %v570_v9 = vadd.s32 %v569_v42, %v567_v43 }
 0x2b4   : >> { %v571_v56 = vrot.slane %v570_v9, 4 }
 0x2b6   : >> { %vm572_vm4 = vcmp.gt.s32.totalorder %v570_v9, %v571_v56 }
 0x2b7   : >> { %v591_v57 = vpop.xlane.xlu2 %590  ;;  %v573_v60 = vsel %vm572_vm4, %v570_v9, %v571_v56 }
 0x2b8   : >> { %v592_v6 = vcvt.f32.s32 %v591_v57  ;;  %v574_v7 = vrot.slane %v573_v60, 2  ;;  %v2875_v57 = vstv (%p2862_p12), %s2393_s14 }
 0x2b9   : >> { %v660_v11 = vsub.s32 (%p2862_p12), %v2649_v44, %v2875_v57 }
 0x2ba   : >> { %v595_v8 = vadd.s32 %v594_v63, %v592_v6  ;;  %vm575_vm5 = vcmp.gt.s32.totalorder %v573_v60, %v574_v7  ;;  %v661_v63 = vsub.s32 (%p2862_p12), %v2607_v21, %v2875_v57  ;;  %v2418_v6 = vmov (%p2862_p12), 0  }
 0x2bb   : >> { %v576_v10 = vsel %vm575_vm5, %v573_v60, %v574_v7  ;;  %v2878_v60 = vperm.slane (%p2862_p12), %v2852_v55, 0  ;;  %v712_v7 = vsel (%p2862_p12), %vm711_vm15, 1, %v2418_v6  ;;  %v655_v6 = vsub.s32 (%p2862_p12), %v2666_v51, %v2875_v57  ;;  %v3280_v55 = vld [vmem:[%s640_s12 + $0x18] sm:$0xff] (%p2862_p12) }
 0x2bc   : >> { %v596_v14 = vrot.slane %v595_v8, 4  ;;  %v577_v16 = vrot.slane %v576_v10, 1 }
 0x2bd   : >> { %vm694_vm1 = vcmp.eq.s32.totalorder (%p2862_p12), %v2878_v60, %v661_v63  ;;  %vm2896_vm11 = vcmp.eq.s32.totalorder (%p2862_p12), %v2878_v60, %v660_v11  ;;  %v654_v11 = vsub.s32 (%p2862_p12), %v2674_v52, %v2875_v57  ;;  %v666_v63 = vsub.s32 (%p2862_p12), %v2618_v26, %v2875_v57 }
 0x2be   : >> { %vm597_vm6 = vcmp.gt.s32.totalorder %v595_v8, %v596_v14  ;;  %vm578_vm7 = vcmp.gt.s32.totalorder %v576_v10, %v577_v16 }
 0x2bf   : >> { %v616_v15 = vpop.xlane.xlu2 %615  ;;  %v579_v17 = vsel %vm578_vm7, %v576_v10, %v577_v16  ;;  %v598_v13 = vsel %vm597_vm6, %v595_v8, %v596_v14  ;;  %v677_v8 = vsub.s32 (%p2862_p12), %v2640_v37, %v2875_v57  ;;  %v713_v10 = vperm.slane (%p2862_p12), %v712_v7, 0 }
 0x2c0   : >> { %v617_v18 = vcvt.f32.s32 %v616_v15  ;;  %2068 = vpush %v579_v17  ;;  %v599_v19 = vrot.slane %v598_v13, 2  ;;  %v676_v14 = vsub.s32 (%p2862_p12), %v2638_v36, %v2875_v57  ;;  %v659_v15 = vsub.s32 (%p2862_p12), %v2652_v45, %v2875_v57 }
 0x2c1   : >> { %vm710_vm0 = vcmp.eq.s32.totalorder (%p2862_p12), %v2878_v60, %v677_v8  ;;  %vm2891_vm9 = vcmp.eq.s32.totalorder (%p2862_p12), %v713_v10, 1  ;;  %v671_v8 = vsub.s32 (%p2862_p12), %v2628_v31, %v2875_v57  ;;  %v670_v16 = vsub.s32 (%p2862_p12), %v2626_v30, %v2875_v57 }
 0x2c2   : >> { %v620_v39 = vadd.s32 %v619_v2, %v617_v18  ;;  %vm600_vm8 = vcmp.gt.s32.totalorder %v598_v13, %v599_v19  ;;  %vm730_vm2 = vmand (%p2862_p12), %vm694_vm1, %vm2891_vm9  ;;  %vm2905_vm3 = vcmp.eq.s32.totalorder (%p2862_p12), %v2878_v60, %v676_v14  ;;  %v2419_v2 = vmov (%p2862_p12), 1.0  }
 0x2c3   : >> { %v601_v12 = vsel %vm600_vm8, %v598_v13, %v599_v19  ;;  %v675_v13 = vsub.s32 (%p2862_p12), %v2636_v35, %v2875_v57  ;;  %1951 = vmatpush.xpose.msk.msra.mxu2 (%p2862_p12), %vm730_vm2, %v2419_v2  ;;  %vm746_vm4 = vmand (%p2862_p12), %vm710_vm0, %vm2891_vm9  ;;  %1785 = vmatpush.xpose.msk.msra.mxu0 (%p2862_p12), %vm730_vm2, %v2419_v2  ;;  %vm2926_vm7 = vcmp.eq.s32.totalorder (%p2862_p12), %v2878_v60, %v659_v15 }
 0x2c4   : >> { %v621_v40 = vrot.slane %v620_v39, 4  ;;  %v602_v41 = vrot.slane %v601_v12, 1  ;;  %1967 = vmatpush.xpose.msk.msra.mxu3 (%p2862_p12), %vm746_vm4, %v2419_v2  ;;  %vm729_vm5 = vmand (%p2862_p12), %vm2896_vm11, %vm2891_vm9  ;;  %1801 = vmatpush.xpose.msk.msra.mxu1 (%p2862_p12), %vm746_vm4, %v2419_v2  ;;  %v658_v19 = vsub.s32 (%p2862_p12), %v2655_v46, %v2875_v57  ;;  %v653_v17 = vsub.s32 (%p2862_p12), %v2676_v53, %v2875_v57 }
 0x2c5   : >> { %vm745_vm6 = vmand (%p2862_p12), %vm2905_vm3, %vm2891_vm9  ;;  %vm2933_vm8 = vcmp.eq.s32.totalorder (%p2862_p12), %v2878_v60, %v675_v13  ;;  %v669_v18 = vsub.s32 (%p2862_p12), %v2624_v29, %v2875_v57  ;;  %v649_v7 = vsub.s32 (%p2862_p12), %v2718_v3, %v2875_v57  ;;  %v665_v10 = vsub.s32 (%p2862_p12), %v2616_v25, %v2875_v57 }
 0x2c6   : >> { %vm622_vm10 = vcmp.gt.s32.totalorder %v620_v39, %v621_v40  ;;  %vm603_vm12 = vcmp.gt.s32.totalorder %v601_v12, %v602_v41  ;;  %v648_v14 = vsub.s32 (%p2862_p12), %v2726_v4, %v2875_v57  ;;  %v664_v15 = vsub.s32 (%p2862_p12), %v2614_v24, %v2875_v57 }
 0x2c7   : >> { %v604_v42 = vsel %vm603_vm12, %v601_v12, %v602_v41  ;;  %v623_v38 = vsel %vm622_vm10, %v620_v39, %v621_v40  ;;  %v674_v12 = vsub.s32 (%p2862_p12), %v2634_v34, %v2875_v57  ;;  %1952 = vmatpush.xpose.msk.msra.mxu2 (%p2862_p12), %vm729_vm5, %v2419_v2  ;;  %1786 = vmatpush.xpose.msk.msra.mxu0 (%p2862_p12), %vm729_vm5, %v2419_v2  ;;  %vm728_vm10 = vmand (%p2862_p12), %vm2926_vm7, %vm2891_vm9 }
 0x2c8   : >> { %2070 = vpush %v604_v42  ;;  %v624_v43 = vrot.slane %v623_v38, 2  ;;  %1968 = vmatpush.xpose.msk.msra.mxu3 (%p2862_p12), %vm745_vm6, %v2419_v2  ;;  %1802 = vmatpush.xpose.msk.msra.mxu1 (%p2862_p12), %vm745_vm6, %v2419_v2  ;;  %vm744_vm12 = vmand (%p2862_p12), %vm2933_vm8, %vm2891_vm9  ;;  %v657_v41 = vsub.s32 (%p2862_p12), %v2658_v47, %v2875_v57  ;;  %vm3030_vm8 = vcmp.eq.s32.totalorder (%p2862_p12), %v2878_v60, %v655_v6 }
 0x2c9   : >> { %v652_v39 = vsub.s32 (%p2862_p12), %v2698_v58, %v2875_v57  ;;  %v668_v40 = vsub.s32 (%p2862_p12), %v2622_v28, %v2875_v57  ;;  %v651_v42 = vsub.s32 (%p2862_p12), %v2700_v59, %v2875_v57  ;;  %v647_v13 = vsub.s32 (%p2862_p12), %v2729_v5, %v2875_v57 }
 0x2ca   : >> { %vm625_vm13 = vcmp.gt.s32.totalorder %v623_v38, %v624_v43  ;;  %vm2978_vm0 = vcmp.eq.s32.totalorder (%p2862_p12), %v2878_v60, %v657_v41  ;;  %v3282_v41 = vld [vmem:[%s640_s12 + $0x8] sm:$0xff] (%p2862_p12) }
 0x2cb   : >> { %v626_v9 = vsel %vm625_vm13, %v623_v38, %v624_v43  ;;  %vm2952_vm13 = vcmp.eq.s32.totalorder (%p2862_p12), %v2878_v60, %v658_v19  ;;  %v673_v38 = vsub.s32 (%p2862_p12), %v2632_v33, %v2875_v57  ;;  %1953 = vmatpush.xpose.msk.msra.mxu2 (%p2862_p12), %vm728_vm10, %v2419_v2  ;;  %1787 = vmatpush.xpose.msk.msra.mxu0 (%p2862_p12), %vm728_vm10, %v2419_v2  ;;  %vm726_vm2 = vmand (%p2862_p12), %vm2978_vm0, %vm2891_vm9 }
 0x2cc   : >> { %v627_v54 = vrot.slane %v626_v9, 1  ;;  %1969 = vmatpush.xpose.msk.msra.mxu3 (%p2862_p12), %vm744_vm12, %v2419_v2  ;;  %vm727_vm15 = vmand (%p2862_p12), %vm2952_vm13, %vm2891_vm9  ;;  %1803 = vmatpush.xpose.msk.msra.mxu1 (%p2862_p12), %vm744_vm12, %v2419_v2  ;;  %vm3037_vm10 = vcmp.eq.s32.totalorder (%p2862_p12), %v2878_v60, %v671_v8  ;;  %v667_v43 = vsub.s32 (%p2862_p12), %v2620_v27, %v2875_v57  ;;  %v663_v19 = vsub.s32 (%p2862_p12), %v2612_v23, %v2875_v57 }
 0x2cd   : >> { %vm2985_vm11 = vcmp.eq.s32.totalorder (%p2862_p12), %v2878_v60, %v673_v38  ;;  %vm724_vm12 = vmand (%p2862_p12), %vm3030_vm8, %vm2891_vm9 }
 0x2ce   : >> { %vm628_vm14 = vcmp.gt.s32.totalorder %v626_v9, %v627_v54  ;;  %vm742_vm3 = vmand (%p2862_p12), %vm2985_vm11, %vm2891_vm9  ;;  %vm3082_vm11 = vcmp.eq.s32.totalorder (%p2862_p12), %v2878_v60, %v653_v17 }
 0x2cf   : >> { %v629_v56 = vsel %vm628_vm14, %v626_v9, %v627_v54  ;;  %vm2959_vm14 = vcmp.eq.s32.totalorder (%p2862_p12), %v2878_v60, %v674_v12  ;;  %v656_v9 = vsub.s32 (%p2862_p12), %v2664_v50, %v2875_v57  ;;  %1954 = vmatpush.xpose.msk.msra.mxu2 (%p2862_p12), %vm727_vm15, %v2419_v2  ;;  %1788 = vmatpush.xpose.msk.msra.mxu0 (%p2862_p12), %vm727_vm15, %v2419_v2  ;;  %vm740_vm13 = vmand (%p2862_p12), %vm3037_vm10, %vm2891_vm9 }
 0x2d0   : >> { %2072 = vpush %v629_v56  ;;  %vm743_vm1 = vmand (%p2862_p12), %vm2959_vm14, %vm2891_vm9  ;;  %v672_v56 = vsub.s32 (%p2862_p12), %v2630_v32, %v2875_v57  ;;  %vm3056_vm14 = vcmp.eq.s32.totalorder (%p2862_p12), %v2878_v60, %v654_v11  ;;  %vm3063_vm15 = vcmp.eq.s32.totalorder (%p2862_p12), %v2878_v60, %v670_v16  ;;  %vm3134_vm10 = vcmp.eq.s32.totalorder (%p2862_p12), %v2878_v60, %v651_v42  ;;  %v813_v42 = vld [vmem:[#allocation2 + $0x68] sm:$0xff] (%p2862_p12)  ;;  %v815_v11 = vld [vmem:[#allocation2 + $0x58] sm:$0xff] (%p2862_p12) }
 0x2d1   : >> { %1970 = vmatpush.xpose.msk.msra.mxu3 (%p2862_p12), %vm743_vm1, %v2419_v2  ;;  %1804 = vmatpush.xpose.msk.msra.mxu1 (%p2862_p12), %vm743_vm1, %v2419_v2  ;;  %vm3004_vm4 = vcmp.eq.s32.totalorder (%p2862_p12), %v2878_v60, %v656_v9  ;;  %vm723_vm1 = vmand (%p2862_p12), %vm3056_vm14, %vm2891_vm9  ;;  %v650_v54 = vsub.s32 (%p2862_p12), %v2715_v1, %v2875_v57 }
 0x2d2   : >> { %vm3011_vm5 = vcmp.eq.s32.totalorder (%p2862_p12), %v2878_v60, %v672_v56  ;;  %vm725_vm6 = vmand (%p2862_p12), %vm3004_vm4, %vm2891_vm9  ;;  %v816_v56 = vld [vmem:[#allocation2 + $0x80] sm:$0xff] (%p2862_p12) }
 0x2d3   : >> { %1955 = vmatpush.xpose.msk.msra.mxu2 (%p2862_p12), %vm726_vm2, %v2419_v2  ;;  %1789 = vmatpush.xpose.msk.msra.mxu0 (%p2862_p12), %vm726_vm2, %v2419_v2  ;;  %vm741_vm7 = vmand (%p2862_p12), %vm3011_vm5, %vm2891_vm9  ;;  %vm3089_vm2 = vcmp.eq.s32.totalorder (%p2862_p12), %v2878_v60, %v669_v18  ;;  %vm3108_vm5 = vcmp.eq.s32.totalorder (%p2862_p12), %v2878_v60, %v652_v39  ;;  %v646_v39 = vsub.s32 (%p2862_p12), %v2605_v20, %v2875_v57  ;;  %v818_v18 = vld [vmem:[#allocation2 + $0x20] sm:$0xff] (%p2862_p12) }
 0x2d4   : >> { %vm739_vm0 = vmand (%p2862_p12), %vm3063_vm15, %vm2891_vm9  ;;  %vm3160_vm15 = vcmp.eq.s32.totalorder (%p2862_p12), %v2878_v60, %v650_v54 }
 0x2d5   : >> { %1971 = vmatpush.xpose.msk.msra.mxu3 (%p2862_p12), %vm742_vm3, %v2419_v2  ;;  %1805 = vmatpush.xpose.msk.msra.mxu1 (%p2862_p12), %vm742_vm3, %v2419_v2  ;;  %vm722_vm3 = vmand (%p2862_p12), %vm3082_vm11, %vm2891_vm9 }
 0x2d6   : >> { %vm738_vm4 = vmand (%p2862_p12), %vm3089_vm2, %vm2891_vm9  ;;  %vm3186_vm2 = vcmp.eq.s32.totalorder (%p2862_p12), %v2878_v60, %v649_v7  ;;  %v814_v7 = vld [vmem:[#allocation2 + $0x30] sm:$0xff] (%p2862_p12) }
 0x2d7   : >> { %1956 = vmatpush.xpose.msk.msra.mxu2 (%p2862_p12), %vm725_vm6, %v2419_v2  ;;  %1790 = vmatpush.xpose.msk.msra.mxu0 (%p2862_p12), %vm725_vm6, %v2419_v2  ;;  %vm3115_vm6 = vcmp.eq.s32.totalorder (%p2862_p12), %v2878_v60, %v668_v40  ;;  %v662_v40 = vsub.s32 (%p2862_p12), %v2610_v22, %v2875_v57  ;;  %v3269_v57 = vld [vmem:[%s640_s12 + $0x10] sm:$0xff] (%p2862_p12) }
 0x2d8   : >> { %vm737_vm8 = vmand (%p2862_p12), %vm3115_vm6, %vm2891_vm9  ;;  %vm3212_vm6 = vcmp.eq.s32.totalorder (%p2862_p12), %v2878_v60, %v648_v14 }
 0x2d9   : >> { %1972 = vmatpush.xpose.msk.msra.mxu3 (%p2862_p12), %vm741_vm7, %v2419_v2  ;;  %1806 = vmatpush.xpose.msk.msra.mxu1 (%p2862_p12), %vm741_vm7, %v2419_v2  ;;  %vm721_vm7 = vmand (%p2862_p12), %vm3108_vm5, %vm2891_vm9 }
 0x2db   : >> { %1957 = vmatpush.xpose.msk.msra.mxu2 (%p2862_p12), %vm724_vm12, %v2419_v2  ;;  %1791 = vmatpush.xpose.msk.msra.mxu0 (%p2862_p12), %vm724_vm12, %v2419_v2  ;;  %vm3141_vm12 = vcmp.eq.s32.totalorder (%p2862_p12), %v2878_v60, %v667_v43 }
 0x2dc   : >> { %vm736_vm14 = vmand (%p2862_p12), %vm3141_vm12, %vm2891_vm9  ;;  %vm680_vm12 = vcmp.eq.s32.totalorder (%p2862_p12), %v2878_v60, %v647_v13 }
 0x2dd   : >> { %1973 = vmatpush.xpose.msk.msra.mxu3 (%p2862_p12), %vm740_vm13, %v2419_v2  ;;  %1807 = vmatpush.xpose.msk.msra.mxu1 (%p2862_p12), %vm740_vm13, %v2419_v2  ;;  %vm720_vm13 = vmand (%p2862_p12), %vm3134_vm10, %vm2891_vm9 }
 0x2df   : >> { %1958 = vmatpush.xpose.msk.msra.mxu2 (%p2862_p12), %vm723_vm1, %v2419_v2  ;;  %1792 = vmatpush.xpose.msk.msra.mxu0 (%p2862_p12), %vm723_vm1, %v2419_v2  ;;  %vm3167_vm1 = vcmp.eq.s32.totalorder (%p2862_p12), %v2878_v60, %v666_v63  ;;  %v817_v63 = vld [vmem:[#allocation2 + $0xb8] sm:$0xff] (%p2862_p12) }
 0x2e0   : >> { %vm735_vm11 = vmand (%p2862_p12), %vm3167_vm1, %vm2891_vm9  ;;  %vm679_vm1 = vcmp.eq.s32.totalorder (%p2862_p12), %v2878_v60, %v646_v39 }
 0x2e1   : >> { %1974 = vmatpush.xpose.msk.msra.mxu3 (%p2862_p12), %vm739_vm0, %v2419_v2  ;;  %1808 = vmatpush.xpose.msk.msra.mxu1 (%p2862_p12), %vm739_vm0, %v2419_v2  ;;  %vm719_vm0 = vmand (%p2862_p12), %vm3160_vm15, %vm2891_vm9 }
 0x2e3   : >> { %1959 = vmatpush.xpose.msk.msra.mxu2 (%p2862_p12), %vm722_vm3, %v2419_v2  ;;  %1793 = vmatpush.xpose.msk.msra.mxu0 (%p2862_p12), %vm722_vm3, %v2419_v2  ;;  %vm3193_vm3 = vcmp.eq.s32.totalorder (%p2862_p12), %v2878_v60, %v665_v10 }
 0x2e4   : >> { %vm734_vm5 = vmand (%p2862_p12), %vm3193_vm3, %vm2891_vm9 }
 0x2e5   : >> { %1975 = vmatpush.xpose.msk.msra.mxu3 (%p2862_p12), %vm738_vm4, %v2419_v2  ;;  %1809 = vmatpush.xpose.msk.msra.mxu1 (%p2862_p12), %vm738_vm4, %v2419_v2  ;;  %vm718_vm4 = vmand (%p2862_p12), %vm3186_vm2, %vm2891_vm9 }
 0x2e7   : >> { %1960 = vmatpush.xpose.msk.msra.mxu2 (%p2862_p12), %vm721_vm7, %v2419_v2  ;;  %1794 = vmatpush.xpose.msk.msra.mxu0 (%p2862_p12), %vm721_vm7, %v2419_v2  ;;  %vm3219_vm7 = vcmp.eq.s32.totalorder (%p2862_p12), %v2878_v60, %v664_v15 }
 0x2e8   : >> { %vm733_vm10 = vmand (%p2862_p12), %vm3219_vm7, %vm2891_vm9 }
 0x2e9   : >> { %1976 = vmatpush.xpose.msk.msra.mxu3 (%p2862_p12), %vm737_vm8, %v2419_v2  ;;  %1810 = vmatpush.xpose.msk.msra.mxu1 (%p2862_p12), %vm737_vm8, %v2419_v2  ;;  %vm717_vm8 = vmand (%p2862_p12), %vm3212_vm6, %vm2891_vm9 }
 0x2eb   : >> { %1961 = vmatpush.xpose.msk.msra.mxu2 (%p2862_p12), %vm720_vm13, %v2419_v2  ;;  %1795 = vmatpush.xpose.msk.msra.mxu0 (%p2862_p12), %vm720_vm13, %v2419_v2  ;;  %vm3241_vm13 = vcmp.eq.s32.totalorder (%p2862_p12), %v2878_v60, %v663_v19  ;;  %v819_v19 = vld [vmem:[#allocation2 + $0x8] sm:$0xff] (%p2862_p12) }
 0x2ec   : >> { %vm732_vm15 = vmand (%p2862_p12), %vm3241_vm13, %vm2891_vm9 }
 0x2ed   : >> { %1977 = vmatpush.xpose.msk.msra.mxu3 (%p2862_p12), %vm736_vm14, %v2419_v2  ;;  %1811 = vmatpush.xpose.msk.msra.mxu1 (%p2862_p12), %vm736_vm14, %v2419_v2  ;;  %vm716_vm14 = vmand (%p2862_p12), %vm680_vm12, %vm2891_vm9 }
 0x2ef   : >> { %1962 = vmatpush.xpose.msk.msra.mxu2 (%p2862_p12), %vm719_vm0, %v2419_v2  ;;  %1796 = vmatpush.xpose.msk.msra.mxu0 (%p2862_p12), %vm719_vm0, %v2419_v2  ;;  %vm695_vm0 = vcmp.eq.s32.totalorder (%p2862_p12), %v2878_v60, %v662_v40  ;;  %v3272_v60 = vld [vmem:[%s640_s12] sm:$0xff] (%p2862_p12) }
 0x2f0   : >> { %vm731_vm2 = vmand (%p2862_p12), %vm695_vm0, %vm2891_vm9 }
 0x2f1   : >> { %s2866_s9 = spop %2068  ;;  %1978 = vmatpush.xpose.msk.msra.mxu3 (%p2862_p12), %vm735_vm11, %v2419_v2  ;;  %1812 = vmatpush.xpose.msk.msra.mxu1 (%p2862_p12), %vm735_vm11, %v2419_v2  ;;  %vm715_vm11 = vmand (%p2862_p12), %vm679_vm1, %vm2891_vm9 }
 0x2f2   : >> { %p1817_p13 = scmp.le.s32.totalorder (%p2862_p12), %s2866_s9, 0 }
 0x2f3   : >> { %1963 = vmatpush.xpose.msk.msra.mxu2 (%p2862_p12), %vm718_vm4, %v2419_v2  ;;  %1797 = vmatpush.xpose.msk.msra.mxu0 (%p2862_p12), %vm718_vm4, %v2419_v2 }
 0x2f5   : >> { %1979 = vmatpush.xpose.msk.msra.mxu3 (%p2862_p12), %vm734_vm5, %v2419_v2  ;;  %1813 = vmatpush.xpose.msk.msra.mxu1 (%p2862_p12), %vm734_vm5, %v2419_v2 }
 0x2f7   : >> { %1964 = vmatpush.xpose.msk.msra.mxu2 (%p2862_p12), %vm717_vm8, %v2419_v2  ;;  %1798 = vmatpush.xpose.msk.msra.mxu0 (%p2862_p12), %vm717_vm8, %v2419_v2 }
 0x2f9   : >> { %s2868_s27 = spop %2070  ;;  %1980 = vmatpush.xpose.msk.msra.mxu3 (%p2862_p12), %vm733_vm10, %v2419_v2  ;;  %1814 = vmatpush.xpose.msk.msra.mxu1 (%p2862_p12), %vm733_vm10, %v2419_v2 }
 0x2fb   : >> { %1965 = vmatpush.xpose.msk.msra.mxu2 (%p2862_p12), %vm716_vm14, %v2419_v2  ;;  %1799 = vmatpush.xpose.msk.msra.mxu0 (%p2862_p12), %vm716_vm14, %v2419_v2 }
 0x2fd   : >> { %638 = sbr.rel (!%p2862_p12) target bundleno = 1348 (0x544), region = 67  ;;  %1981 = vmatpush.xpose.msk.msra.mxu3 (%p2862_p12), %vm732_vm15, %v2419_v2  ;;  %1815 = vmatpush.xpose.msk.msra.mxu1 (%p2862_p12), %vm732_vm15, %v2419_v2 }
 0x2ff   : >> { %1966 = vmatpush.xpose.msk.msra.mxu2 (%p2862_p12), %vm715_vm11, %v2419_v2  ;;  %1800 = vmatpush.xpose.msk.msra.mxu0 (%p2862_p12), %vm715_vm11, %v2419_v2 }
 0x301   : >> { %s2870_s30 = spop %2072  ;;  %1982 = vmatpush.xpose.msk.msra.mxu3 (%p2862_p12), %vm731_vm2, %v2419_v2  ;;  %1816 = vmatpush.xpose.msk.msra.mxu1 (%p2862_p12), %vm731_vm2, %v2419_v2  ;;  %v812_v2 = vld [vmem:[#allocation2 + $0xa8] sm:$0xff] (%p2862_p12) }
 0x302   : >> { %842 = vmatmul.f32.vlgmr.msra.gmra.mxu2 %v3269_v57  ;;  %836 = vmatmul.f32.vlgmr.msra.gmra.mxu0 %v3272_v60 }
 0x304   : >> { %871 = vmatmul.f32.vlgmr.msra.gmra.mxu3 %v3269_v57  ;;  %865 = vmatmul.f32.vlgmr.msra.gmra.mxu1 %v3272_v60 }
 0x30a   : >> { %845 = vmatmul.f32.gmra.mxu2 %v3280_v55  ;;  %839 = vmatmul.f32.gmra.mxu0 %v3282_v41 }
 0x30c   : >> { %874 = vmatmul.f32.gmra.mxu3 %v3280_v55  ;;  %868 = vmatmul.f32.gmra.mxu1 %v3282_v41 }
 0x37f   : >> { %v837_v38 = vpop.f32.mrf.mxu0 }
 0x380   : >> { %v878_v43 = vadd.f32 %v837_v38, %v812_v2 }
 0x381   : >> { %v866_v9 = vpop.f32.mrf.mxu1 }
 0x382   : >> { %v879_v54 = vadd.f32 %v866_v9, %v813_v42  ;;  %886 = vst [vmem:[#allocation2 + $0xa8] sm:$0xff] %v878_v43 }
 0x384   : >> { %887 = vst [vmem:[#allocation2 + $0x68] sm:$0xff] %v879_v54 }
 0x385   : >> { %v843_v6 = vpop.f32.mrf.mxu2 }
 0x386   : >> { %v882_v8 = vadd.f32 %v843_v6, %v816_v56 }
 0x387   : >> { %v872_v10 = vpop.f32.mrf.mxu3  ;;  %v840_v16 = vpop.f32.mrf.mxu0 }
 0x388   : >> { %v883_v14 = vadd.f32 %v872_v10, %v817_v63  ;;  %890 = vst [vmem:[#allocation2 + $0x80] sm:$0xff] %v882_v8  ;;  %v880_v15 = vadd.f32 %v840_v16, %v814_v7 }
 0x389   : >> { %v869_v17 = vpop.f32.mrf.mxu1 }
 0x38a   : >> { %891 = vst [vmem:[#allocation2 + $0xb8] sm:$0xff] %v883_v14  ;;  %v881_v13 = vadd.f32 %v869_v17, %v815_v11 }
 0x38b   : >> { %888 = vst [vmem:[#allocation2 + $0x30] sm:$0xff] %v880_v15 }
 0x38c   : >> { %889 = vst [vmem:[#allocation2 + $0x58] sm:$0xff] %v881_v13 }
 0x38d   : >> { %v846_v39 = vpop.f32.mrf.mxu2 }
 0x38e   : >> { %v884_v12 = vadd.f32 %v846_v39, %v818_v18  ;;  %897 = sbr.rel (%p1817_p13) target bundleno = 1128 (0x468), region = 71 }
 0x38f   : >> { %v875_v40 = vpop.f32.mrf.mxu3 }
 0x390   : >> { %v885_v2 = vadd.f32 %v875_v40, %v819_v19  ;;  %892 = vst [vmem:[#allocation2 + $0x20] sm:$0xff] %v884_v12 }
 0x392   : >> { %893 = vst [vmem:[#allocation2 + $0x8] sm:$0xff] %v885_v2 }
 0x393   : >> { %v3290_v42 = vstv %s2401_s22  ;;  %v3293_v38 = vperm.slane %v2845_v48, 0  ;;  %vm964_vm9 = vcmp.gt.s32.totalorder %v2845_v48, 0  ;;  %v2420_v9 = vmov 0   ;;  %v1067_v11 = vld [vmem:[#allocation2 + $0x48] sm:$0xff]  ;;  %v1070_v19 = vld [vmem:[#allocation2 + $0x40] sm:$0xff] }
 0x394   : >> { %v914_v43 = vsub.s32 %v2607_v21, %v3290_v42  ;;  %v965_v54 = vsel %vm964_vm9, 1, %v2420_v9  ;;  %v930_v56 = vsub.s32 %v2640_v37, %v3290_v42  ;;  %v913_v6 = vsub.s32 %v2649_v44, %v3290_v42 }
 0x395   : >> { %v966_v63 = vperm.slane %v965_v54, 0  ;;  %v929_v7 = vsub.s32 %v2638_v36, %v3290_v42  ;;  %v912_v10 = vsub.s32 %v2652_v45, %v3290_v42  ;;  %v928_v14 = vsub.s32 %v2636_v35, %v3290_v42 }
 0x396   : >> { %vm947_vm3 = vcmp.eq.s32.totalorder %v3293_v38, %v914_v43  ;;  %vm963_vm4 = vcmp.eq.s32.totalorder %v3293_v38, %v930_v56  ;;  %vm3311_vm6 = vcmp.eq.s32.totalorder %v3293_v38, %v913_v6  ;;  %v2421_v16 = vmov 1.0   ;;  %v1068_v56 = vld [vmem:[#allocation2 + $0x60] sm:$0xff] }
 0x397   : >> { %vm3306_vm5 = vcmp.eq.s32.totalorder %v966_v63, 1  ;;  %vm3320_vm8 = vcmp.eq.s32.totalorder %v3293_v38, %v929_v7  ;;  %vm3341_vm14 = vcmp.eq.s32.totalorder %v3293_v38, %v912_v10  ;;  %v911_v17 = vsub.s32 %v2655_v46, %v3290_v42 }
 0x398   : >> { %vm983_vm7 = vmand %vm947_vm3, %vm3306_vm5  ;;  %vm3348_vm15 = vcmp.eq.s32.totalorder %v3293_v38, %v928_v14  ;;  %v927_v18 = vsub.s32 %v2634_v34, %v3290_v42  ;;  %v910_v39 = vsub.s32 %v2658_v47, %v3290_v42  ;;  %v926_v40 = vsub.s32 %v2632_v33, %v3290_v42 }
 0x399   : >> { %1983 = vmatpush.xpose.msk.msra.mxu2 %vm983_vm7, %v2421_v16  ;;  %vm999_vm10 = vmand %vm963_vm4, %vm3306_vm5  ;;  %1850 = vmatpush.xpose.msk.msra.mxu0 %vm983_vm7, %v2421_v16  ;;  %vm3367_vm11 = vcmp.eq.s32.totalorder %v3293_v38, %v911_v17  ;;  %v909_v43 = vsub.s32 %v2664_v50, %v3290_v42  ;;  %v925_v54 = vsub.s32 %v2630_v32, %v3290_v42 }
 0x39a   : >> { %1999 = vmatpush.xpose.msk.msra.mxu3 %vm999_vm10, %v2421_v16  ;;  %vm982_vm12 = vmand %vm3311_vm6, %vm3306_vm5  ;;  %1866 = vmatpush.xpose.msk.msra.mxu1 %vm999_vm10, %v2421_v16  ;;  %vm3374_vm2 = vcmp.eq.s32.totalorder %v3293_v38, %v927_v18  ;;  %vm3393_vm4 = vcmp.eq.s32.totalorder %v3293_v38, %v910_v39  ;;  %vm3400_vm6 = vcmp.eq.s32.totalorder %v3293_v38, %v926_v40 }
 0x39b   : >> { %vm998_vm13 = vmand %vm3320_vm8, %vm3306_vm5  ;;  %vm3419_vm10 = vcmp.eq.s32.totalorder %v3293_v38, %v909_v43  ;;  %v908_v63 = vsub.s32 %v2666_v51, %v3290_v42  ;;  %v924_v7 = vsub.s32 %v2628_v31, %v3290_v42  ;;  %v907_v10 = vsub.s32 %v2674_v52, %v3290_v42 }
 0x39c   : >> { %vm981_vm1 = vmand %vm3341_vm14, %vm3306_vm5  ;;  %v923_v14 = vsub.s32 %v2626_v30, %v3290_v42  ;;  %v906_v17 = vsub.s32 %v2676_v53, %v3290_v42  ;;  %v922_v18 = vsub.s32 %v2624_v29, %v3290_v42  ;;  %v905_v39 = vsub.s32 %v2698_v58, %v3290_v42 }
 0x39d   : >> { %1984 = vmatpush.xpose.msk.msra.mxu2 %vm982_vm12, %v2421_v16  ;;  %1851 = vmatpush.xpose.msk.msra.mxu0 %vm982_vm12, %v2421_v16  ;;  %vm997_vm0 = vmand %vm3348_vm15, %vm3306_vm5  ;;  %vm3426_vm12 = vcmp.eq.s32.totalorder %v3293_v38, %v925_v54  ;;  %vm3445_vm15 = vcmp.eq.s32.totalorder %v3293_v38, %v908_v63  ;;  %v921_v40 = vsub.s32 %v2622_v28, %v3290_v42 }
 0x39e   : >> { %2000 = vmatpush.xpose.msk.msra.mxu3 %vm998_vm13, %v2421_v16  ;;  %1867 = vmatpush.xpose.msk.msra.mxu1 %vm998_vm13, %v2421_v16  ;;  %vm980_vm9 = vmand %vm3367_vm11, %vm3306_vm5  ;;  %v904_v43 = vsub.s32 %v2700_v59, %v3290_v42  ;;  %v920_v54 = vsub.s32 %v2620_v27, %v3290_v42  ;;  %v903_v63 = vsub.s32 %v2715_v1, %v3290_v42 }
 0x39f   : >> { %vm996_vm3 = vmand %vm3374_vm2, %vm3306_vm5  ;;  %vm3471_vm2 = vcmp.eq.s32.totalorder %v3293_v38, %v907_v10  ;;  %v902_v10 = vsub.s32 %v2718_v3, %v3290_v42  ;;  %v899_v2 = vsub.s32 %v2605_v20, %v3290_v42 }
 0x3a0   : >> { %vm979_vm7 = vmand %vm3393_vm4, %vm3306_vm5 }
 0x3a1   : >> { %1985 = vmatpush.xpose.msk.msra.mxu2 %vm981_vm1, %v2421_v16  ;;  %1852 = vmatpush.xpose.msk.msra.mxu0 %vm981_vm1, %v2421_v16  ;;  %vm995_vm8 = vmand %vm3400_vm6, %vm3306_vm5  ;;  %vm3452_vm1 = vcmp.eq.s32.totalorder %v3293_v38, %v924_v7  ;;  %vm3497_vm6 = vcmp.eq.s32.totalorder %v3293_v38, %v906_v17  ;;  %v919_v7 = vsub.s32 %v2618_v26, %v3290_v42 }
 0x3a2   : >> { %2001 = vmatpush.xpose.msk.msra.mxu3 %vm997_vm0, %v2421_v16  ;;  %1868 = vmatpush.xpose.msk.msra.mxu1 %vm997_vm0, %v2421_v16  ;;  %vm978_vm13 = vmand %vm3419_vm10, %vm3306_vm5  ;;  %v901_v17 = vsub.s32 %v2726_v4, %v3290_v42 }
 0x3a3   : >> { %vm994_vm14 = vmand %vm3426_vm12, %vm3306_vm5  ;;  %vm3523_vm12 = vcmp.eq.s32.totalorder %v3293_v38, %v905_v39  ;;  %v900_v39 = vsub.s32 %v2729_v5, %v3290_v42 }
 0x3a4   : >> { %vm977_vm0 = vmand %vm3445_vm15, %vm3306_vm5 }
 0x3a5   : >> { %1986 = vmatpush.xpose.msk.msra.mxu2 %vm980_vm9, %v2421_v16  ;;  %1853 = vmatpush.xpose.msk.msra.mxu0 %vm980_vm9, %v2421_v16  ;;  %vm993_vm11 = vmand %vm3452_vm1, %vm3306_vm5  ;;  %vm3478_vm9 = vcmp.eq.s32.totalorder %v3293_v38, %v923_v14  ;;  %vm3549_vm1 = vcmp.eq.s32.totalorder %v3293_v38, %v904_v43  ;;  %v918_v14 = vsub.s32 %v2616_v25, %v3290_v42 }
 0x3a6   : >> { %2002 = vmatpush.xpose.msk.msra.mxu3 %vm996_vm3, %v2421_v16  ;;  %1869 = vmatpush.xpose.msk.msra.mxu1 %vm996_vm3, %v2421_v16  ;;  %vm976_vm3 = vmand %vm3471_vm2, %vm3306_vm5  ;;  %v915_v43 = vsub.s32 %v2610_v22, %v3290_v42 }
 0x3a7   : >> { %vm992_vm4 = vmand %vm3478_vm9, %vm3306_vm5  ;;  %vm3575_vm9 = vcmp.eq.s32.totalorder %v3293_v38, %v903_v63  ;;  %v1069_v63 = vld [vmem:[#allocation2 + $0x28] sm:$0xff] }
 0x3a9   : >> { %1987 = vmatpush.xpose.msk.msra.mxu2 %vm979_vm7, %v2421_v16  ;;  %1854 = vmatpush.xpose.msk.msra.mxu0 %vm979_vm7, %v2421_v16  ;;  %vm3504_vm7 = vcmp.eq.s32.totalorder %v3293_v38, %v922_v18  ;;  %v917_v18 = vsub.s32 %v2614_v24, %v3290_v42 }
 0x3aa   : >> { %2003 = vmatpush.xpose.msk.msra.mxu3 %vm995_vm8, %v2421_v16  ;;  %1870 = vmatpush.xpose.msk.msra.mxu1 %vm995_vm8, %v2421_v16  ;;  %vm975_vm8 = vmand %vm3497_vm6, %vm3306_vm5 }
 0x3ab   : >> { %vm991_vm10 = vmand %vm3504_vm7, %vm3306_vm5  ;;  %vm3601_vm7 = vcmp.eq.s32.totalorder %v3293_v38, %v902_v10 }
 0x3ad   : >> { %1988 = vmatpush.xpose.msk.msra.mxu2 %vm978_vm13, %v2421_v16  ;;  %1855 = vmatpush.xpose.msk.msra.mxu0 %vm978_vm13, %v2421_v16  ;;  %vm3530_vm13 = vcmp.eq.s32.totalorder %v3293_v38, %v921_v40  ;;  %v916_v40 = vsub.s32 %v2612_v23, %v3290_v42  ;;  %v1064_v42 = vld [vmem:[#allocation2 + $0xb0] sm:$0xff] }
 0x3ae   : >> { %2004 = vmatpush.xpose.msk.msra.mxu3 %vm994_vm14, %v2421_v16  ;;  %1871 = vmatpush.xpose.msk.msra.mxu1 %vm994_vm14, %v2421_v16  ;;  %vm974_vm14 = vmand %vm3523_vm12, %vm3306_vm5 }
 0x3af   : >> { %vm990_vm15 = vmand %vm3530_vm13, %vm3306_vm5  ;;  %vm3627_vm13 = vcmp.eq.s32.totalorder %v3293_v38, %v901_v17 }
 0x3b1   : >> { %1989 = vmatpush.xpose.msk.msra.mxu2 %vm977_vm0, %v2421_v16  ;;  %1856 = vmatpush.xpose.msk.msra.mxu0 %vm977_vm0, %v2421_v16  ;;  %vm3556_vm0 = vcmp.eq.s32.totalorder %v3293_v38, %v920_v54 }
 0x3b2   : >> { %2005 = vmatpush.xpose.msk.msra.mxu3 %vm993_vm11, %v2421_v16  ;;  %1872 = vmatpush.xpose.msk.msra.mxu1 %vm993_vm11, %v2421_v16  ;;  %vm973_vm11 = vmand %vm3549_vm1, %vm3306_vm5 }
 0x3b3   : >> { %vm989_vm2 = vmand %vm3556_vm0, %vm3306_vm5  ;;  %vm933_vm0 = vcmp.eq.s32.totalorder %v3293_v38, %v900_v39  ;;  %v1071_v39 = vld [vmem:[#allocation2 + $0x78] sm:$0xff] }
 0x3b5   : >> { %1990 = vmatpush.xpose.msk.msra.mxu2 %vm976_vm3, %v2421_v16  ;;  %1857 = vmatpush.xpose.msk.msra.mxu0 %vm976_vm3, %v2421_v16  ;;  %vm3582_vm3 = vcmp.eq.s32.totalorder %v3293_v38, %v919_v7  ;;  %v1066_v7 = vld [vmem:[#allocation2 + $0x10] sm:$0xff] }
 0x3b6   : >> { %2006 = vmatpush.xpose.msk.msra.mxu3 %vm992_vm4, %v2421_v16  ;;  %1873 = vmatpush.xpose.msk.msra.mxu1 %vm992_vm4, %v2421_v16  ;;  %vm972_vm4 = vmand %vm3575_vm9, %vm3306_vm5 }
 0x3b7   : >> { %vm988_vm6 = vmand %vm3582_vm3, %vm3306_vm5  ;;  %vm932_vm3 = vcmp.eq.s32.totalorder %v3293_v38, %v899_v2 }
 0x3b9   : >> { %1991 = vmatpush.xpose.msk.msra.mxu2 %vm975_vm8, %v2421_v16  ;;  %1858 = vmatpush.xpose.msk.msra.mxu0 %vm975_vm8, %v2421_v16  ;;  %vm3608_vm8 = vcmp.eq.s32.totalorder %v3293_v38, %v918_v14 }
 0x3ba   : >> { %2007 = vmatpush.xpose.msk.msra.mxu3 %vm991_vm10, %v2421_v16  ;;  %1874 = vmatpush.xpose.msk.msra.mxu1 %vm991_vm10, %v2421_v16  ;;  %vm971_vm10 = vmand %vm3601_vm7, %vm3306_vm5 }
 0x3bb   : >> { %vm987_vm12 = vmand %vm3608_vm8, %vm3306_vm5 }
 0x3bd   : >> { %1992 = vmatpush.xpose.msk.msra.mxu2 %vm974_vm14, %v2421_v16  ;;  %1859 = vmatpush.xpose.msk.msra.mxu0 %vm974_vm14, %v2421_v16  ;;  %vm3634_vm14 = vcmp.eq.s32.totalorder %v3293_v38, %v917_v18 }
 0x3be   : >> { %2008 = vmatpush.xpose.msk.msra.mxu3 %vm990_vm15, %v2421_v16  ;;  %1875 = vmatpush.xpose.msk.msra.mxu1 %vm990_vm15, %v2421_v16  ;;  %vm970_vm15 = vmand %vm3627_vm13, %vm3306_vm5 }
 0x3bf   : >> { %vm986_vm1 = vmand %vm3634_vm14, %vm3306_vm5 }
 0x3c1   : >> { %1993 = vmatpush.xpose.msk.msra.mxu2 %vm973_vm11, %v2421_v16  ;;  %1860 = vmatpush.xpose.msk.msra.mxu0 %vm973_vm11, %v2421_v16  ;;  %vm949_vm11 = vcmp.eq.s32.totalorder %v3293_v38, %v916_v40 }
 0x3c2   : >> { %2009 = vmatpush.xpose.msk.msra.mxu3 %vm989_vm2, %v2421_v16  ;;  %1876 = vmatpush.xpose.msk.msra.mxu1 %vm989_vm2, %v2421_v16  ;;  %vm969_vm2 = vmand %vm933_vm0, %vm3306_vm5 }
 0x3c3   : >> { %vm985_vm9 = vmand %vm949_vm11, %vm3306_vm5 }
 0x3c5   : >> { %1994 = vmatpush.xpose.msk.msra.mxu2 %vm972_vm4, %v2421_v16  ;;  %1861 = vmatpush.xpose.msk.msra.mxu0 %vm972_vm4, %v2421_v16  ;;  %vm948_vm4 = vcmp.eq.s32.totalorder %v3293_v38, %v915_v43  ;;  %v1065_v38 = vld [vmem:[#allocation2] sm:$0xff] }
 0x3c6   : >> { %2010 = vmatpush.xpose.msk.msra.mxu3 %vm988_vm6, %v2421_v16  ;;  %1877 = vmatpush.xpose.msk.msra.mxu1 %vm988_vm6, %v2421_v16  ;;  %vm968_vm6 = vmand %vm932_vm3, %vm3306_vm5 }
 0x3c7   : >> { %vm984_vm7 = vmand %vm948_vm4, %vm3306_vm5 }
 0x3c9   : >> { %1995 = vmatpush.xpose.msk.msra.mxu2 %vm971_vm10, %v2421_v16  ;;  %1862 = vmatpush.xpose.msk.msra.mxu0 %vm971_vm10, %v2421_v16 }
 0x3ca   : >> { %2011 = vmatpush.xpose.msk.msra.mxu3 %vm987_vm12, %v2421_v16  ;;  %1878 = vmatpush.xpose.msk.msra.mxu1 %vm987_vm12, %v2421_v16 }
 0x3cd   : >> { %1996 = vmatpush.xpose.msk.msra.mxu2 %vm970_vm15, %v2421_v16  ;;  %1863 = vmatpush.xpose.msk.msra.mxu0 %vm970_vm15, %v2421_v16 }
 0x3ce   : >> { %2012 = vmatpush.xpose.msk.msra.mxu3 %vm986_vm1, %v2421_v16  ;;  %1879 = vmatpush.xpose.msk.msra.mxu1 %vm986_vm1, %v2421_v16 }
 0x3d1   : >> { %1997 = vmatpush.xpose.msk.msra.mxu2 %vm969_vm2, %v2421_v16  ;;  %1864 = vmatpush.xpose.msk.msra.mxu0 %vm969_vm2, %v2421_v16 }
 0x3d2   : >> { %2013 = vmatpush.xpose.msk.msra.mxu3 %vm985_vm9, %v2421_v16  ;;  %1880 = vmatpush.xpose.msk.msra.mxu1 %vm985_vm9, %v2421_v16 }
 0x3d5   : >> { %1998 = vmatpush.xpose.msk.msra.mxu2 %vm968_vm6, %v2421_v16  ;;  %1865 = vmatpush.xpose.msk.msra.mxu0 %vm968_vm6, %v2421_v16 }
 0x3d6   : >> { %2014 = vmatpush.xpose.msk.msra.mxu3 %vm984_vm7, %v2421_v16  ;;  %1881 = vmatpush.xpose.msk.msra.mxu1 %vm984_vm7, %v2421_v16 }
 0x3d8   : >> { %1094 = vmatmul.f32.vlgmr.msra.gmra.mxu2 %v3269_v57  ;;  %1088 = vmatmul.f32.vlgmr.msra.gmra.mxu0 %v3272_v60 }
 0x3d9   : >> { %1123 = vmatmul.f32.vlgmr.msra.gmra.mxu3 %v3269_v57  ;;  %1117 = vmatmul.f32.vlgmr.msra.gmra.mxu1 %v3272_v60 }
 0x3e0   : >> { %1097 = vmatmul.f32.gmra.mxu2 %v3280_v55  ;;  %1091 = vmatmul.f32.gmra.mxu0 %v3282_v41 }
 0x3e1   : >> { %1126 = vmatmul.f32.gmra.mxu3 %v3280_v55  ;;  %1120 = vmatmul.f32.gmra.mxu1 %v3282_v41 }
 0x455   : >> { %v1089_v48 = vpop.f32.mrf.mxu0 }
 0x456   : >> { %v1130_v16 = vadd.f32 %v1089_v48, %v1064_v42  ;;  %v1118_v9 = vpop.f32.mrf.mxu1 }
 0x457   : >> { %v1131_v54 = vadd.f32 %v1118_v9, %v1065_v38 }
 0x458   : >> { %1138 = vst [vmem:[#allocation2 + $0xb0] sm:$0xff] %v1130_v16 }
 0x459   : >> { %1139 = vst [vmem:[#allocation2] sm:$0xff] %v1131_v54 }
 0x45b   : >> { %v1095_v6 = vpop.f32.mrf.mxu2 }
 0x45c   : >> { %v1134_v8 = vadd.f32 %v1095_v6, %v1068_v56  ;;  %v1124_v10 = vpop.f32.mrf.mxu3 }
 0x45d   : >> { %v1135_v14 = vadd.f32 %v1124_v10, %v1069_v63  ;;  %v1092_v15 = vpop.f32.mrf.mxu0 }
 0x45e   : >> { %1142 = vst [vmem:[#allocation2 + $0x60] sm:$0xff] %v1134_v8  ;;  %v1132_v17 = vadd.f32 %v1092_v15, %v1066_v7  ;;  %v1121_v13 = vpop.f32.mrf.mxu1 }
 0x45f   : >> { %1143 = vst [vmem:[#allocation2 + $0x28] sm:$0xff] %v1135_v14  ;;  %v1133_v18 = vadd.f32 %v1121_v13, %v1067_v11 }
 0x460   : >> { %1140 = vst [vmem:[#allocation2 + $0x10] sm:$0xff] %v1132_v17 }
 0x461   : >> { %1141 = vst [vmem:[#allocation2 + $0x48] sm:$0xff] %v1133_v18 }
 0x463   : >> { %v1098_v12 = vpop.f32.mrf.mxu2 }
 0x464   : >> { %v1136_v40 = vadd.f32 %v1098_v12, %v1070_v19  ;;  %v1127_v2 = vpop.f32.mrf.mxu3 }
 0x465   : >> { %v1137_v43 = vadd.f32 %v1127_v2, %v1071_v39 }
 0x466   : >> { %1144 = vst [vmem:[#allocation2 + $0x40] sm:$0xff] %v1136_v40 }
 0x467   : >> { %1145 = vst [vmem:[#allocation2 + $0x78] sm:$0xff] %v1137_v43 }
 0x468 PF: >> { %p1882_p0 = scmp.le.s32.totalorder %s2868_s27, 0 }
 0x46a   : >> { %1149 = sbr.rel (%p1882_p0) target bundleno = 1348 (0x544), region = 75 }
 0x46f   : >> { %v3690_v42 = vstv %s2397_s20  ;;  %v3693_v38 = vperm.slane %v2848_v49, 0  ;;  %vm1216_vm5 = vcmp.gt.s32.totalorder %v2848_v49, 0  ;;  %v2422_v16 = vmov 0  }
 0x470   : >> { %v1166_v48 = vsub.s32 %v2607_v21, %v3690_v42  ;;  %v1217_v9 = vsel %vm1216_vm5, 1, %v2422_v16  ;;  %v1182_v54 = vsub.s32 %v2640_v37, %v3690_v42  ;;  %v1165_v63 = vsub.s32 %v2649_v44, %v3690_v42 }
 0x471   : >> { %v1218_v56 = vperm.slane %v1217_v9, 0  ;;  %v1181_v6 = vsub.s32 %v2638_v36, %v3690_v42  ;;  %v1164_v8 = vsub.s32 %v2652_v45, %v3690_v42  ;;  %v1180_v11 = vsub.s32 %v2636_v35, %v3690_v42 }
 0x472   : >> { %vm1199_vm8 = vcmp.eq.s32.totalorder %v3693_v38, %v1166_v48  ;;  %vm1215_vm10 = vcmp.eq.s32.totalorder %v3693_v38, %v1182_v54  ;;  %vm3711_vm13 = vcmp.eq.s32.totalorder %v3693_v38, %v1165_v63  ;;  %v2423_v14 = vmov 1.0  }
 0x473   : >> { %vm3706_vm12 = vcmp.eq.s32.totalorder %v1218_v56, 1  ;;  %vm3720_vm15 = vcmp.eq.s32.totalorder %v3693_v38, %v1181_v6  ;;  %vm3741_vm2 = vcmp.eq.s32.totalorder %v3693_v38, %v1164_v8  ;;  %v1163_v17 = vsub.s32 %v2655_v46, %v3690_v42 }
 0x474   : >> { %vm1235_vm14 = vmand %vm1199_vm8, %vm3706_vm12  ;;  %vm3748_vm9 = vcmp.eq.s32.totalorder %v3693_v38, %v1180_v11  ;;  %v1179_v18 = vsub.s32 %v2634_v34, %v3690_v42  ;;  %v1162_v39 = vsub.s32 %v2658_v47, %v3690_v42  ;;  %v1178_v40 = vsub.s32 %v2632_v33, %v3690_v42 }
 0x475   : >> { %2015 = vmatpush.xpose.msk.msra.mxu2 %vm1235_vm14, %v2423_v14  ;;  %vm1251_vm1 = vmand %vm1215_vm10, %vm3706_vm12  ;;  %1915 = vmatpush.xpose.msk.msra.mxu0 %vm1235_vm14, %v2423_v14  ;;  %vm3767_vm6 = vcmp.eq.s32.totalorder %v3693_v38, %v1163_v17  ;;  %v1161_v43 = vsub.s32 %v2664_v50, %v3690_v42  ;;  %v1177_v16 = vsub.s32 %v2630_v32, %v3690_v42 }
 0x476   : >> { %2031 = vmatpush.xpose.msk.msra.mxu3 %vm1251_vm1, %v2423_v14  ;;  %vm1234_vm0 = vmand %vm3711_vm13, %vm3706_vm12  ;;  %1931 = vmatpush.xpose.msk.msra.mxu1 %vm1251_vm1, %v2423_v14  ;;  %vm3774_vm7 = vcmp.eq.s32.totalorder %v3693_v38, %v1179_v18  ;;  %vm3793_vm10 = vcmp.eq.s32.totalorder %v3693_v38, %v1162_v39  ;;  %vm3800_vm13 = vcmp.eq.s32.totalorder %v3693_v38, %v1178_v40 }
 0x477   : >> { %vm1250_vm11 = vmand %vm3720_vm15, %vm3706_vm12  ;;  %vm3819_vm1 = vcmp.eq.s32.totalorder %v3693_v38, %v1161_v43  ;;  %v1160_v54 = vsub.s32 %v2666_v51, %v3690_v42  ;;  %v1176_v63 = vsub.s32 %v2628_v31, %v3690_v42  ;;  %v1159_v7 = vsub.s32 %v2674_v52, %v3690_v42 }
 0x478   : >> { %vm1233_vm3 = vmand %vm3741_vm2, %vm3706_vm12  ;;  %v1175_v10 = vsub.s32 %v2626_v30, %v3690_v42  ;;  %v1158_v15 = vsub.s32 %v2676_v53, %v3690_v42  ;;  %v1174_v13 = vsub.s32 %v2624_v29, %v3690_v42  ;;  %v1157_v19 = vsub.s32 %v2698_v58, %v3690_v42 }
 0x479   : >> { %2016 = vmatpush.xpose.msk.msra.mxu2 %vm1234_vm0, %v2423_v14  ;;  %1916 = vmatpush.xpose.msk.msra.mxu0 %vm1234_vm0, %v2423_v14  ;;  %vm1249_vm4 = vmand %vm3748_vm9, %vm3706_vm12  ;;  %vm3826_vm0 = vcmp.eq.s32.totalorder %v3693_v38, %v1177_v16  ;;  %vm3845_vm9 = vcmp.eq.s32.totalorder %v3693_v38, %v1160_v54  ;;  %v1173_v12 = vsub.s32 %v2622_v28, %v3690_v42 }
 0x47a   : >> { %2032 = vmatpush.xpose.msk.msra.mxu3 %vm1250_vm11, %v2423_v14  ;;  %1932 = vmatpush.xpose.msk.msra.mxu1 %vm1250_vm11, %v2423_v14  ;;  %vm1232_vm5 = vmand %vm3767_vm6, %vm3706_vm12  ;;  %v1156_v2 = vsub.s32 %v2700_v59, %v3690_v42  ;;  %v1172_v48 = vsub.s32 %v2620_v27, %v3690_v42  ;;  %v1155_v9 = vsub.s32 %v2715_v1, %v3690_v42 }
 0x47b   : >> { %vm1248_vm8 = vmand %vm3774_vm7, %vm3706_vm12  ;;  %vm3871_vm7 = vcmp.eq.s32.totalorder %v3693_v38, %v1159_v7  ;;  %v1171_v56 = vsub.s32 %v2618_v26, %v3690_v42  ;;  %v1154_v6 = vsub.s32 %v2718_v3, %v3690_v42  ;;  %v1170_v8 = vsub.s32 %v2616_v25, %v3690_v42 }
 0x47c   : >> { %vm1231_vm14 = vmand %vm3793_vm10, %vm3706_vm12  ;;  %v1153_v11 = vsub.s32 %v2726_v4, %v3690_v42  ;;  %v1169_v17 = vsub.s32 %v2614_v24, %v3690_v42  ;;  %v1152_v18 = vsub.s32 %v2729_v5, %v3690_v42  ;;  %v1168_v39 = vsub.s32 %v2612_v23, %v3690_v42 }
 0x47d   : >> { %2017 = vmatpush.xpose.msk.msra.mxu2 %vm1233_vm3, %v2423_v14  ;;  %1917 = vmatpush.xpose.msk.msra.mxu0 %vm1233_vm3, %v2423_v14  ;;  %vm1247_vm15 = vmand %vm3800_vm13, %vm3706_vm12  ;;  %vm3852_vm3 = vcmp.eq.s32.totalorder %v3693_v38, %v1176_v63  ;;  %vm3897_vm13 = vcmp.eq.s32.totalorder %v3693_v38, %v1158_v15  ;;  %v1167_v40 = vsub.s32 %v2610_v22, %v3690_v42 }
 0x47e   : >> { %2033 = vmatpush.xpose.msk.msra.mxu3 %vm1249_vm4, %v2423_v14  ;;  %1933 = vmatpush.xpose.msk.msra.mxu1 %vm1249_vm4, %v2423_v14  ;;  %vm1230_vm11 = vmand %vm3819_vm1, %vm3706_vm12 }
 0x47f   : >> { %vm1246_vm2 = vmand %vm3826_vm0, %vm3706_vm12  ;;  %vm3923_vm0 = vcmp.eq.s32.totalorder %v3693_v38, %v1157_v19 }
 0x480   : >> { %vm1229_vm4 = vmand %vm3845_vm9, %vm3706_vm12 }
 0x481   : >> { %2018 = vmatpush.xpose.msk.msra.mxu2 %vm1232_vm5, %v2423_v14  ;;  %1918 = vmatpush.xpose.msk.msra.mxu0 %vm1232_vm5, %v2423_v14  ;;  %vm1245_vm6 = vmand %vm3852_vm3, %vm3706_vm12  ;;  %vm3878_vm5 = vcmp.eq.s32.totalorder %v3693_v38, %v1175_v10  ;;  %vm3949_vm3 = vcmp.eq.s32.totalorder %v3693_v38, %v1156_v2  ;;  %v1324_v10 = vld [vmem:[#allocation2 + $0xa0] sm:$0xff] }
 0x482   : >> { %2034 = vmatpush.xpose.msk.msra.mxu3 %vm1248_vm8, %v2423_v14  ;;  %1934 = vmatpush.xpose.msk.msra.mxu1 %vm1248_vm8, %v2423_v14  ;;  %vm1228_vm8 = vmand %vm3871_vm7, %vm3706_vm12 }
 0x483   : >> { %vm1244_vm10 = vmand %vm3878_vm5, %vm3706_vm12  ;;  %vm3975_vm5 = vcmp.eq.s32.totalorder %v3693_v38, %v1155_v9 }
 0x485   : >> { %2019 = vmatpush.xpose.msk.msra.mxu2 %vm1231_vm14, %v2423_v14  ;;  %1919 = vmatpush.xpose.msk.msra.mxu0 %vm1231_vm14, %v2423_v14  ;;  %vm3904_vm14 = vcmp.eq.s32.totalorder %v3693_v38, %v1174_v13 }
 0x486   : >> { %2035 = vmatpush.xpose.msk.msra.mxu3 %vm1247_vm15, %v2423_v14  ;;  %1935 = vmatpush.xpose.msk.msra.mxu1 %vm1247_vm15, %v2423_v14  ;;  %vm1227_vm15 = vmand %vm3897_vm13, %vm3706_vm12 }
 0x487   : >> { %vm1243_vm1 = vmand %vm3904_vm14, %vm3706_vm12  ;;  %vm4001_vm14 = vcmp.eq.s32.totalorder %v3693_v38, %v1154_v6 }
 0x489   : >> { %2020 = vmatpush.xpose.msk.msra.mxu2 %vm1230_vm11, %v2423_v14  ;;  %1920 = vmatpush.xpose.msk.msra.mxu0 %vm1230_vm11, %v2423_v14  ;;  %vm3930_vm11 = vcmp.eq.s32.totalorder %v3693_v38, %v1173_v12  ;;  %v1151_v12 = vsub.s32 %v2605_v20, %v3690_v42  ;;  %v1317_v42 = vld [vmem:[#allocation2 + $0x88] sm:$0xff] }
 0x48a   : >> { %2036 = vmatpush.xpose.msk.msra.mxu3 %vm1246_vm2, %v2423_v14  ;;  %1936 = vmatpush.xpose.msk.msra.mxu1 %vm1246_vm2, %v2423_v14  ;;  %vm1226_vm2 = vmand %vm3923_vm0, %vm3706_vm12 }
 0x48b   : >> { %vm1242_vm9 = vmand %vm3930_vm11, %vm3706_vm12  ;;  %vm4027_vm11 = vcmp.eq.s32.totalorder %v3693_v38, %v1153_v11 }
 0x48d   : >> { %2021 = vmatpush.xpose.msk.msra.mxu2 %vm1229_vm4, %v2423_v14  ;;  %1921 = vmatpush.xpose.msk.msra.mxu0 %vm1229_vm4, %v2423_v14  ;;  %vm3956_vm4 = vcmp.eq.s32.totalorder %v3693_v38, %v1172_v48  ;;  %v1321_v48 = vld [vmem:[#allocation2 + $0x38] sm:$0xff] }
 0x48e   : >> { %2037 = vmatpush.xpose.msk.msra.mxu3 %vm1245_vm6, %v2423_v14  ;;  %1937 = vmatpush.xpose.msk.msra.mxu1 %vm1245_vm6, %v2423_v14  ;;  %vm1225_vm6 = vmand %vm3949_vm3, %vm3706_vm12 }
 0x48f   : >> { %vm1241_vm7 = vmand %vm3956_vm4, %vm3706_vm12  ;;  %vm1185_vm4 = vcmp.eq.s32.totalorder %v3693_v38, %v1152_v18 }
 0x491   : >> { %2022 = vmatpush.xpose.msk.msra.mxu2 %vm1228_vm8, %v2423_v14  ;;  %1922 = vmatpush.xpose.msk.msra.mxu0 %vm1228_vm8, %v2423_v14  ;;  %vm3982_vm8 = vcmp.eq.s32.totalorder %v3693_v38, %v1171_v56  ;;  %v1320_v56 = vld [vmem:[#allocation2 + $0x98] sm:$0xff] }
 0x492   : >> { %2038 = vmatpush.xpose.msk.msra.mxu3 %vm1244_vm10, %v2423_v14  ;;  %1938 = vmatpush.xpose.msk.msra.mxu1 %vm1244_vm10, %v2423_v14  ;;  %vm1224_vm10 = vmand %vm3975_vm5, %vm3706_vm12 }
 0x493   : >> { %vm1240_vm13 = vmand %vm3982_vm8, %vm3706_vm12  ;;  %vm1184_vm8 = vcmp.eq.s32.totalorder %v3693_v38, %v1151_v12 }
 0x495   : >> { %2023 = vmatpush.xpose.msk.msra.mxu2 %vm1227_vm15, %v2423_v14  ;;  %1923 = vmatpush.xpose.msk.msra.mxu0 %vm1227_vm15, %v2423_v14  ;;  %vm4008_vm15 = vcmp.eq.s32.totalorder %v3693_v38, %v1170_v8  ;;  %v1323_v8 = vld [vmem:[#allocation2 + $0x70] sm:$0xff] }
 0x496   : >> { %2039 = vmatpush.xpose.msk.msra.mxu3 %vm1243_vm1, %v2423_v14  ;;  %1939 = vmatpush.xpose.msk.msra.mxu1 %vm1243_vm1, %v2423_v14  ;;  %vm1223_vm1 = vmand %vm4001_vm14, %vm3706_vm12 }
 0x497   : >> { %vm1239_vm0 = vmand %vm4008_vm15, %vm3706_vm12 }
 0x499   : >> { %2024 = vmatpush.xpose.msk.msra.mxu2 %vm1226_vm2, %v2423_v14  ;;  %1924 = vmatpush.xpose.msk.msra.mxu0 %vm1226_vm2, %v2423_v14  ;;  %vm4034_vm2 = vcmp.eq.s32.totalorder %v3693_v38, %v1169_v17 }
 0x49a   : >> { %2040 = vmatpush.xpose.msk.msra.mxu3 %vm1242_vm9, %v2423_v14  ;;  %1940 = vmatpush.xpose.msk.msra.mxu1 %vm1242_vm9, %v2423_v14  ;;  %vm1222_vm9 = vmand %vm4027_vm11, %vm3706_vm12 }
 0x49b   : >> { %vm1238_vm3 = vmand %vm4034_vm2, %vm3706_vm12 }
 0x49d   : >> { %2025 = vmatpush.xpose.msk.msra.mxu2 %vm1225_vm6, %v2423_v14  ;;  %1925 = vmatpush.xpose.msk.msra.mxu0 %vm1225_vm6, %v2423_v14  ;;  %vm1201_vm6 = vcmp.eq.s32.totalorder %v3693_v38, %v1168_v39 }
 0x49e   : >> { %2041 = vmatpush.xpose.msk.msra.mxu3 %vm1241_vm7, %v2423_v14  ;;  %1941 = vmatpush.xpose.msk.msra.mxu1 %vm1241_vm7, %v2423_v14  ;;  %vm1221_vm7 = vmand %vm1185_vm4, %vm3706_vm12 }
 0x49f   : >> { %vm1237_vm5 = vmand %vm1201_vm6, %vm3706_vm12 }
 0x4a1   : >> { %2026 = vmatpush.xpose.msk.msra.mxu2 %vm1224_vm10, %v2423_v14  ;;  %1926 = vmatpush.xpose.msk.msra.mxu0 %vm1224_vm10, %v2423_v14  ;;  %vm1200_vm10 = vcmp.eq.s32.totalorder %v3693_v38, %v1167_v40  ;;  %v1318_v38 = vld [vmem:[#allocation2 + $0x90] sm:$0xff] }
 0x4a2   : >> { %2042 = vmatpush.xpose.msk.msra.mxu3 %vm1240_vm13, %v2423_v14  ;;  %1942 = vmatpush.xpose.msk.msra.mxu1 %vm1240_vm13, %v2423_v14  ;;  %vm1220_vm13 = vmand %vm1184_vm8, %vm3706_vm12 }
 0x4a3   : >> { %vm1236_vm14 = vmand %vm1200_vm10, %vm3706_vm12 }
 0x4a5   : >> { %2027 = vmatpush.xpose.msk.msra.mxu2 %vm1223_vm1, %v2423_v14  ;;  %1927 = vmatpush.xpose.msk.msra.mxu0 %vm1223_vm1, %v2423_v14 }
 0x4a6   : >> { %2043 = vmatpush.xpose.msk.msra.mxu3 %vm1239_vm0, %v2423_v14  ;;  %1943 = vmatpush.xpose.msk.msra.mxu1 %vm1239_vm0, %v2423_v14 }
 0x4a9   : >> { %2028 = vmatpush.xpose.msk.msra.mxu2 %vm1222_vm9, %v2423_v14  ;;  %1928 = vmatpush.xpose.msk.msra.mxu0 %vm1222_vm9, %v2423_v14 }
 0x4aa   : >> { %2044 = vmatpush.xpose.msk.msra.mxu3 %vm1238_vm3, %v2423_v14  ;;  %1944 = vmatpush.xpose.msk.msra.mxu1 %vm1238_vm3, %v2423_v14 }
 0x4ad   : >> { %2029 = vmatpush.xpose.msk.msra.mxu2 %vm1221_vm7, %v2423_v14  ;;  %1929 = vmatpush.xpose.msk.msra.mxu0 %vm1221_vm7, %v2423_v14 }
 0x4ae   : >> { %2045 = vmatpush.xpose.msk.msra.mxu3 %vm1237_vm5, %v2423_v14  ;;  %1945 = vmatpush.xpose.msk.msra.mxu1 %vm1237_vm5, %v2423_v14 }
 0x4b1   : >> { %2030 = vmatpush.xpose.msk.msra.mxu2 %vm1220_vm13, %v2423_v14  ;;  %1930 = vmatpush.xpose.msk.msra.mxu0 %vm1220_vm13, %v2423_v14 }
 0x4b2   : >> { %2046 = vmatpush.xpose.msk.msra.mxu3 %vm1236_vm14, %v2423_v14  ;;  %1946 = vmatpush.xpose.msk.msra.mxu1 %vm1236_vm14, %v2423_v14 }
 0x4b4   : >> { %1347 = vmatmul.f32.vlgmr.msra.gmra.mxu2 %v3269_v57  ;;  %1341 = vmatmul.f32.vlgmr.msra.gmra.mxu0 %v3272_v60 }
 0x4b5   : >> { %1376 = vmatmul.f32.vlgmr.msra.gmra.mxu3 %v3269_v57  ;;  %1370 = vmatmul.f32.vlgmr.msra.gmra.mxu1 %v3272_v60  ;;  %v1322_v57 = vld [vmem:[#allocation2 + $0x50] sm:$0xff]  ;;  %v1319_v60 = vld [vmem:[#allocation2 + $0x18] sm:$0xff] }
 0x4bc   : >> { %1350 = vmatmul.f32.gmra.mxu2 %v3280_v55  ;;  %1344 = vmatmul.f32.gmra.mxu0 %v3282_v41 }
 0x4bd   : >> { %1379 = vmatmul.f32.gmra.mxu3 %v3280_v55  ;;  %1373 = vmatmul.f32.gmra.mxu1 %v3282_v41 }
 0x531   : >> { %v1342_v49 = vpop.f32.mrf.mxu0 }
 0x532   : >> { %v1383_v14 = vadd.f32 %v1342_v49, %v1317_v42  ;;  %v1371_v2 = vpop.f32.mrf.mxu1 }
 0x533   : >> { %v1384_v43 = vadd.f32 %v1371_v2, %v1318_v38 }
 0x534   : >> { %1391 = vst [vmem:[#allocation2 + $0x88] sm:$0xff] %v1383_v14 }
 0x535   : >> { %1392 = vst [vmem:[#allocation2 + $0x90] sm:$0xff] %v1384_v43 }
 0x537   : >> { %v1348_v16 = vpop.f32.mrf.mxu2 }
 0x538   : >> { %v1387_v9 = vadd.f32 %v1348_v16, %v1321_v48  ;;  %v1377_v54 = vpop.f32.mrf.mxu3 }
 0x539   : >> { %v1388_v63 = vadd.f32 %v1377_v54, %v1322_v57  ;;  %v1345_v6 = vpop.f32.mrf.mxu0 }
 0x53a   : >> { %1395 = vst [vmem:[#allocation2 + $0x38] sm:$0xff] %v1387_v9  ;;  %v1385_v55 = vadd.f32 %v1345_v6, %v1319_v60  ;;  %v1374_v41 = vpop.f32.mrf.mxu1 }
 0x53b   : >> { %1396 = vst [vmem:[#allocation2 + $0x50] sm:$0xff] %v1388_v63  ;;  %v1386_v7 = vadd.f32 %v1374_v41, %v1320_v56 }
 0x53c   : >> { %1393 = vst [vmem:[#allocation2 + $0x18] sm:$0xff] %v1385_v55 }
 0x53d   : >> { %1394 = vst [vmem:[#allocation2 + $0x98] sm:$0xff] %v1386_v7 }
 0x53f   : >> { %v1351_v11 = vpop.f32.mrf.mxu2 }
 0x540   : >> { %v1389_v15 = vadd.f32 %v1351_v11, %v1323_v8  ;;  %v1380_v17 = vpop.f32.mrf.mxu3 }
 0x541   : >> { %v1390_v13 = vadd.f32 %v1380_v17, %v1324_v10 }
 0x542   : >> { %1397 = vst [vmem:[#allocation2 + $0x70] sm:$0xff] %v1389_v15 }
 0x543   : >> { %1398 = vst [vmem:[#allocation2 + $0xa0] sm:$0xff] %v1390_v13 }
 0x544 PF: >> { %s1399_s23 = sadd.s32 1, %s2405_s23   ;;  %s1400_s22 = sadd.s32 %s2401_s22, %s2866_s9  }
 0x545   : >> { %s1401_s20 = sadd.s32 %s2397_s20, %s2868_s27   ;;  %s1402_s14 = sadd.s32 %s2393_s14, %s2870_s30  }
 0x546   : >> { %p539_p1 = scmp.lt.s32.totalorder %s1399_s23, 8  ;;  %p540_p2 = scmp.lt.s32.totalorder %s1400_s22, %s4338_s11 }
 0x547   : >> { %p541_p3 = scmp.lt.s32.totalorder %s1401_s20, %s4338_s11  ;;  %p543_p4 = scmp.lt.s32.totalorder %s1402_s14, %s4338_s11 }
 0x549   : >> { %p542_p7 = por %p541_p3, %p540_p2 }
 0x54b   : >> { %p544_p8 = por %p543_p4, %p542_p7 }
 0x54d   : >> { %p545_p9 = pnand %p544_p8, %p539_p1 }
 0x54f   : > { %548 = sbr.rel (!%p545_p9) target bundleno = 447 (0x1bf), region = 117 }
 0x554 PF: > { %v1403_v18 = vld [vmem:[#allocation2 + $0xb0] sm:$0xff]  ;;  %v1404_v19 = vld [vmem:[#allocation2] sm:$0xff]  ;;  %v1406_v12 = vld [vmem:[#allocation2 + $0x48] sm:$0xff]  ;;  %vm1493_vm1 = vcmask 1040384   ;;  %s1506_s13 = scvt.s32.f32 %s4338_s11  ;;  %vm1524_vm3 = vcmp.eq.s32.totalorder %v2580_v61, 0  ;;  %vm1527_vm4 = vcmp.eq.s32.totalorder %v2582_v62, 1 }
 0x555   : > { %v1405_v39 = vld [vmem:[#allocation2 + $0x10] sm:$0xff]  ;;  %v1407_v40 = vld [vmem:[#allocation2 + $0x60] sm:$0xff]  ;;  %v1408_v42 = vld [vmem:[#allocation2 + $0x28] sm:$0xff]  ;;  %vm1525_vm6 = vcmp.eq.s32.totalorder %v2582_v62, 0 }
 0x556   : > { %v1409_v38 = vld [vmem:[#allocation2 + $0x40] sm:$0xff]  ;;  %v1410_v49 = vld [vmem:[#allocation2 + $0x78] sm:$0xff]  ;;  %v1412_v14 = vld [vmem:[#allocation2 + $0x88] sm:$0xff] }
 0x557   : > { %v1413_v2 = vld [vmem:[#allocation2 + $0x90] sm:$0xff]  ;;  %v1414_v43 = vld [vmem:[#allocation2 + $0x18] sm:$0xff]  ;;  %v1429_v57 = vmul.f32 %v1412_v14, %v1403_v18  ;;  %v1419_v20 = vld [vmem:[#allocation2 + $0xa0] sm:$0xff] }
 0x558   : > { %v1415_v48 = vld [vmem:[#allocation2 + $0x98] sm:$0xff]  ;;  %v1417_v60 = vld [vmem:[#allocation2 + $0x50] sm:$0xff]  ;;  %v1430_v54 = vmul.f32 %v1413_v2, %v1404_v19  ;;  %v1431_v56 = vmul.f32 %v1414_v43, %v1405_v39  ;;  %v1421_v21 = vld [vmem:[#allocation2 + $0xa8] sm:$0xff]  ;;  %v1436_v29 = vmul.f32 %v1419_v20, %v1410_v49 }
 0x559   : > { %v1416_v16 = vld [vmem:[#allocation2 + $0x38] sm:$0xff]  ;;  %v1418_v9 = vld [vmem:[#allocation2 + $0x70] sm:$0xff]  ;;  %v1432_v63 = vmul.f32 %v1415_v48, %v1406_v12  ;;  %v1422_v22 = vld [vmem:[#allocation2 + $0x68] sm:$0xff]  ;;  %v1434_v24 = vmul.f32 %v1417_v60, %v1408_v42  ;;  %v1455_v32 = vmul.f32 %v1421_v21, %v1403_v18 }
 0x55a   : > { %v1433_v23 = vmul.f32 %v1416_v16, %v1407_v40  ;;  %v1435_v25 = vmul.f32 %v1418_v9, %v1409_v38  ;;  %v1423_v26 = vld [vmem:[#allocation2 + $0x30] sm:$0xff]  ;;  %v1424_v27 = vld [vmem:[#allocation2 + $0x58] sm:$0xff]  ;;  %v1425_v28 = vld [vmem:[#allocation2 + $0x80] sm:$0xff]  ;;  %v1437_v30 = vadd.f32 %v1431_v56, %v1429_v57  ;;  %v1456_v36 = vmul.f32 %v1422_v22, %v1404_v19 }
 0x55b   : > { %v1446_v31 = vadd.f32 %v1432_v63, %v1430_v54  ;;  %v1426_v33 = vld [vmem:[#allocation2 + $0xb8] sm:$0xff]  ;;  %v1427_v34 = vld [vmem:[#allocation2 + $0x20] sm:$0xff]  ;;  %v1428_v35 = vld [vmem:[#allocation2 + $0x8] sm:$0xff]  ;;  %v1457_v37 = vmul.f32 %v1423_v26, %v1405_v39  ;;  %v1458_v44 = vmul.f32 %v1424_v27, %v1406_v12  ;;  %v1459_v45 = vmul.f32 %v1425_v28, %v1407_v40 }
 0x55c   : > { %v1438_v46 = vadd.f32 %v1437_v30, %v1433_v23  ;;  %v1460_v50 = vmul.f32 %v1426_v33, %v1408_v42  ;;  %v1461_v51 = vmul.f32 %v1427_v34, %v1409_v38  ;;  %v1462_v52 = vmul.f32 %v1428_v35, %v1410_v49  ;;  %vm1528_vm7 = vmand %vm1524_vm3, %vm1527_vm4 }
 0x55d   : > { %v1447_v47 = vadd.f32 %v1446_v31, %v1434_v24  ;;  %v1463_v53 = vadd.f32 %v1457_v37, %v1455_v32  ;;  %v1472_v58 = vadd.f32 %v1458_v44, %v1456_v36  ;;  %v1487_v9 = vadd.s32 128, %v2582_v62  ;;  %vm1526_vm5 = vmand %vm1524_vm3, %vm1525_vm6 }
 0x55e   : > { %v1439_v59 = vadd.f32 %v1438_v46, %v1435_v25  ;;  %v1488_v63 = vstv %s4338_s11 }
 0x55f   : > { %v1448_v1 = vadd.f32 %v1447_v47, %v1436_v29  ;;  %v1464_v3 = vadd.f32 %v1463_v53, %v1459_v45  ;;  %v1473_v4 = vadd.f32 %v1472_v58, %v1460_v50  ;;  %vm1489_vm12 = vcmp.lt.s32.totalorder %v2582_v62, %v1488_v63 }
 0x560   : > { %v1440_v5 = vrot.slane %v1439_v59, 4  ;;  %vm1490_vm15 = vcmp.lt.s32.totalorder %v1487_v9, %v1488_v63  ;;  %v1507_v29 = vstv %s1506_s13 }
 0x561   : > { %v1449_v6 = vrot.slane %v1448_v1, 4  ;;  %v1465_v55 = vadd.f32 %v1464_v3, %v1461_v51  ;;  %v1474_v41 = vadd.f32 %v1473_v4, %v1462_v52  ;;  %2203 = vrcp.f32 %v1507_v29 }
 0x562   : > { %v1441_v7 = vadd.f32 %v1440_v5, %v1439_v59  ;;  %vm1513_vm0 = vweird.f32 %v1507_v29  ;;  %v1519_v37 = vand.u32 2147483648, %v1507_v29  ;;  %v1517_v45 = vand.u32 2147483647, %v1507_v29 }
 0x563   : > { %v1450_v8 = vadd.f32 %v1449_v6, %v1448_v1  ;;  %v1466_v10 = vrot.slane %v1465_v55, 4  ;;  %v1475_v11 = vrot.slane %v1474_v41, 4  ;;  %v1529_v59 = vsel %vm1528_vm7, 1.0, %v2417_v0 }
 0x564   : > { %v1442_v15 = vrot.slane %v1441_v7, 2  ;;  %v1520_v50 = vor.u32 1.1754944e-38, %v1519_v37  ;;  %vm1518_vm9 = vcmp.eq.f32.partialorder %v1517_v45, 8.507059e+37 }
 0x565   : > { %v1451_v17 = vrot.slane %v1450_v8, 2  ;;  %v1467_v13 = vadd.f32 %v1466_v10, %v1465_v55  ;;  %v1476_v18 = vadd.f32 %v1475_v11, %v1474_v41 }
 0x566   : > { %v1443_v19 = vadd.f32 %v1442_v15, %v1441_v7 }
 0x567   : > { %v1452_v39 = vadd.f32 %v1451_v17, %v1450_v8  ;;  %v1468_v12 = vrot.slane %v1467_v13, 2  ;;  %v1477_v40 = vrot.slane %v1476_v18, 2  ;;  %v2204_v30 = vpop.eup %2203 }
 0x568   : > { %v1444_v42 = vrot.slane %v1443_v19, 1  ;;  %v1509_v31 = vmul.f32 %v2204_v30, %v1507_v29  ;;  %vm1514_vm11 = vweird.f32 %v2204_v30 }
 0x569   : > { %v1453_v38 = vrot.slane %v1452_v39, 1  ;;  %v1469_v49 = vadd.f32 %v1468_v12, %v1467_v13  ;;  %v1478_v14 = vadd.f32 %v1477_v40, %v1476_v18  ;;  %vm1515_vm2 = vmor %vm1513_vm0, %vm1514_vm11 }
 0x56a   : > { %v1445_v2 = vadd.f32 %v1444_v42, %v1443_v19  ;;  %v1510_v32 = vsub.f32 1.0, %v1509_v31 }
 0x56b   : > { %v1454_v43 = vadd.f32 %v1453_v38, %v1452_v39  ;;  %v1470_v48 = vrot.slane %v1469_v49, 1  ;;  %v1479_v57 = vrot.slane %v1478_v14, 1 }
 0x56c   : > { %v1511_v34 = vmul.f32 %v2204_v30, %v1510_v32 }
 0x56d   : > { %v1471_v16 = vadd.f32 %v1470_v48, %v1469_v49  ;;  %v1480_v60 = vadd.f32 %v1479_v57, %v1478_v14 }
 0x56e   : > { %v1512_v44 = vadd.f32 %v2204_v30, %v1511_v34 }
 0x56f   : > { %v1481_v54 = vsub.f32 %v1471_v16, %v1445_v2  ;;  %v1482_v56 = vsub.f32 %v1480_v60, %v1454_v43 }
 0x570   : > { %v1516_v51 = vsel %vm1515_vm2, %v2204_v30, %v1512_v44 }
 0x571   : > { %v1483_v20 = vadd.f32 0.6, %v1481_v54  ;;  %v1484_v21 = vadd.f32 0.6, %v1482_v56  ;;  %v1521_v58 = vsel %vm1518_vm9, %v1520_v50, %v1516_v51 }
 0x573   : > { %v1485_v22 = vmax.f32 %v1483_v20, 0.0  ;;  %v1486_v23 = vmax.f32 %v1484_v21, 0.0 }
 0x575   : > { %v1491_v24 = vsel %vm1489_vm12, %v1485_v22, 0.0  ;;  %v1492_v25 = vsel %vm1490_vm15, %v1486_v23, 0.0 }
 0x576   : > { %v1494_v26 = vsel %vm1493_vm1, %v1491_v24, 0.0  ;;  %v1495_v27 = vsel %vm1493_vm1, %v1492_v25, 0.0 }
 0x577   : > { %v1496_v28 = vadd.f32 %v1495_v27, %v1494_v26 }
 0x579   : > { %1497 = vadd.xlane.f32.xlu0 %v1496_v28 }
 0x5ec   : > { %v1498_v33 = vpop.xlane.xlu0 %1497 }
 0x5ed   : > { %v1499_v35 = vrot.slane %v1498_v33, 4 }
 0x5ef   : > { %v1500_v36 = vadd.f32 %v1499_v35, %v1498_v33 }
 0x5f1   : > { %v1501_v46 = vrot.slane %v1500_v36, 2 }
 0x5f3   : > { %v1502_v47 = vadd.f32 %v1501_v46, %v1500_v36 }
 0x5f5   : > { %v1503_v52 = vrot.slane %v1502_v47, 1 }
 0x5f7   : > { %v1504_v53 = vadd.f32 %v1503_v52, %v1502_v47 }
 0x5f9   : > { %2074 = vpush %v1504_v53 }
 0x5fa   : > { %2076 = vpush %v1521_v58 }
 0x62a   : > { %s2075_s11 = spop %2074 }
 0x62b   : > { %s2077_s14 = spop %2076 }
 0x62c   : > { %s1523_s20 = smul.f32 %s2077_s14, %s2075_s11 }
 0x62e   : > { %v1530_v1 = vstv %s1523_s20 }
 0x62f   : > { %v1531_v3 = vsel %vm1526_vm5, %v1530_v1, %v1529_v59 }
 0x630   : > { %1532 = vst [vmem:[%s2574_s10] sm:$0xff] %v1531_v3 }
 0x631 PF: > { %s1948_s22 = sshll.u32 %s2470_s19, 3  ;;  %s1546_s5 = sshll.u32 %s2574_s10, 4  ;;  %s1547_s5 = int_to_ptr.vmem [resolvable:$true] %s1546_s5 }
 0x632   : > { %s1544_s29 = scalar_lea.hbm %s4153_s4, %s1948_s22  ;;  %s1534_s9 = scalar_lea.sflag [#allocation8], %s232_s7 }
 0x633   : > { %s1548_s6 = sshll.u32 %s1544_s29, 4  ;;  %s2315_s19 = scalar_lea.hbm %s4153_s4, 152  ;;  %s1549_s6 = int_to_ptr.hbm [resolvable:$true] %s1548_s6 }
 0x634   : > { %s2309_s27 = sshra.s32 %s1549_s6, 4  ;;  %s2310_s27 = int_to_ptr.hbm [resolvable:$true] %s2309_s27 }
 0x635   : > { %s2311_s30 = scalar_lea.hbm %s2310_s27, 8  ;;  %p2316_p13 = scmp.lt.s32.totalorder %s2310_s27, %s4153_s4 }
 0x636   : > { %p2312_p10 = scmp.ne.s32.totalorder %s2310_s27, %s2311_s30  ;;  %p2317_p0 = scmp.lt.s32.totalorder %s2315_s19, %s2311_s30 }
 0x638   : > { %p2313_p11 = pnand %p2312_p10, %p2487_p5  ;;  %p2318_p1 = por %p2317_p0, %p2316_p13 }
 0x63a   : > { %p2314_p12 = pneg %p2313_p11 }
 0x63c   : > { %p2319_p2 = pnand %p2318_p1, %p2314_p12 }
 0x63e   : > { %2322 = shalt.err (!%p2319_p2)
}
 0x63f   : > { %2094 = dma.vmem_to_hbm [thread:$0]  (%p2487_p5), %s1547_s5, 128, %s1549_s6, %s1534_s9  }
 0x640 PF: > { %p2121_p3 = scmp.ge.s32.totalorder %s2389_s18, 2  ;;  %s1560_s7 = sand.u32 1, %s2377_s15  }
 0x641   : > { %s1561_s10 = scalar_lea.sflag [#allocation8], %s1560_s7 }
 0x642   : > { %p2110_p4 = pnand %p2121_p3, %p2491_p6 }
 0x644   : > { %p2111_p7 = pneg %p2110_p4 }
 0x646   : > { %2372 = dma.done.wait (%p2111_p7), %s1561_s10, 128  }
 0x647   : > { %2374 = vsyncadd (%p2111_p7), %s1561_s10, 4294967168  ;;  %p18_p8 = scmp.ge.s32.totalorder %s2474_s21, 21   ;;  %s4329_s15 = smov %s2381_s16 }
 0x648   : > { %s4330_s16 = smov %s2385_s17  ;;  %s4331_s17 = smov %s2485_s24 }
 0x649   : > { %s4332_s18 = smov %s2474_s21  ;;  %20 = sbr.rel (!%p18_p8) target bundleno = 7 (0x7), region = 128 }
 0x64e   :  { %1567 = vsyncpa [#allocation7], 1 }
 0x64f   :  { %1569 = vsyncpa [#allocation7 + $0x1], 1 }
 0x650   :  { %1570 = vsyncpa [#allocation14], 1 }
 0x651   :  { %1571 = vsyncpa [#allocation8], 1 }
 0x652   :  { %1573 = vsyncpa [#allocation8 + $0x1], 1 }
 0x653   :  { %1574 = vsyncpa [#allocation9], 1 }
 0x654   :  { %1576 = vsyncpa [#allocation9 + $0x1], 1 }
 0x655   :  { %1577 = vsyncpa [#allocation11], 1 }

// kernel: tpu_custom_call.1
= control target key start
LH: loop header
LB: loop body
LE: loop exit
PB: predicated region body
PF: predicated region fallthrough
CT: control target
= control target key end

     0   :  { %9 = vsyncpa [#allocation9], 0  ;;  %s4133_s0 = inlined_call_operand.hbm [shape: s32[19], index: 0, kind: input, shape index: {}]   ;;  %s4134_s1 = inlined_call_operand.hbm [shape: s32[19], index: 1, kind: input, shape index: {}]   ;;  %s4135_s2 = inlined_call_operand.hbm [shape: s32[8,128], index: 2, kind: input, shape index: {}]   ;;  %s4136_s3 = inlined_call_operand.hbm [shape: f32[8,32,128], index: 3, kind: input, shape index: {}]   ;;  %s4137_s4 = inlined_call_operand.hbm [shape: f32[19,8,128], index: 4, kind: output, shape index: {}]  }
   0x1   :  { %10 = vsyncpa [#allocation11], 0 }
   0x2   :  { %11 = vsyncpa [#allocation7], 0 }
   0x3   :  { %12 = vsyncpa [#allocation14], 0 }
   0x4   :  { %13 = vsyncpa [#allocation8], 0 }
   0x5   :  { %15 = vsyncpa [#allocation8 + $0x1], 0  ;;  %s2432_s15 = smov 0   ;;  %s2434_s16 = smov 0  }
   0x6   :  { %s2436_s17 = smov 0   ;;  %s2438_s18 = smov 0  }
   0x7 LB: > { %s2453_s19 = sadd.s32 4294967295, %s2372_s18   ;;  %s1652_s20 = sadd.s32 4294967294, %s2372_s18   ;;  %s2372_s18 = sphi %s2438_s18, %s4316_s18   ;;  %s2368_s17 = sphi %s2436_s17, %s4315_s17   ;;  %s2364_s16 = sphi %s2434_s16, %s4314_s16   ;;  %s2360_s15 = sphi %s2432_s15, %s4313_s15  }
   0x8   : > { %s2457_s21 = sadd.s32 1, %s2372_s18   ;;  %s112_s22 = sadd.s32 1, %s2368_s17 }
   0x9   : > { %s109_s23 = ssub.s32 %s2372_s18, %s2457_s21  ;;  %p122_p0 = scmp.ne.s32.totalorder %s2368_s17, %s2364_s16 }
   0xa   : > { %p110_p1 = scmp.eq.s32.totalorder %s109_s23, 0  ;;  %p123_p2 = scmp.eq.s32.totalorder %s2453_s19, 18 }
   0xb   : > { %p128_p3 = scmp.ne.s32.totalorder %s2364_s16, %s2360_s15  ;;  %p129_p4 = scmp.eq.s32.totalorder %s1652_s20, 18 }
   0xc   : > { %s2468_s24 = scalar_select %p110_p1, %s2368_s17, %s112_s22  }
   0xd   : > { %p2470_p5 = por %p123_p2, %p122_p0  ;;  %p2474_p6 = por %p129_p4, %p128_p3 }
   0xe   : > { %p1653_p7 = scmp.ge.s32.totalorder %s2372_s18, 1  ;;  %p136_p8 = scmp.lt.s32.totalorder %s2372_s18, 20 }
   0xf   : > { %p2096_p9 = scmp.eq.s32.totalorder %s2453_s19, 0  ;;  %s148_s30 = sshll.u32 %s4133_s0, 4  ;;  %s149_s30 = int_to_ptr.hbm [resolvable:$true] %s148_s30 }
  0x10   : > { %p2481_p10 = pnand %p1653_p7, %p136_p8  ;;  %s158_s7 = sshll.u32 %s4134_s1, 4  ;;  %s159_s7 = int_to_ptr.hbm [resolvable:$true] %s158_s7 }
  0x11   : > { %s168_s11 = sshll.u32 %s4135_s2, 4  ;;  %s2390_s12 = smov [#allocation12]   ;;  %s169_s11 = int_to_ptr.hbm [resolvable:$true] %s168_s11 }
  0x12   : > { %p2079_p11 = pneg %p2481_p10  ;;  %s170_s13 = sshll.u32 %s2390_s12, 4  ;;  %s171_s13 = int_to_ptr.vmem [resolvable:$true] %s170_s13 }
  0x13   : > { %s2391_s14 = smov [#allocation6]   ;;  %s2392_s20 = smov [#allocation10]  }
  0x14   : > { %p2495_p12 = pnand %p2096_p9, %p2079_p11  ;;  %s179_s28 = sshll.u32 %s4136_s3, 4  ;;  %s180_s28 = int_to_ptr.hbm [resolvable:$true] %s179_s28 }
  0x15   : > { %s2393_s29 = smov [#allocation13]   ;;  %s2394_s6 = smov 128  }
  0x16   : > { %2082 = dma.hbm_to_smem (!%p2495_p12), %s149_s30, 16, %s2391_s14, [#allocation9]  }
  0x17   : > { %2085 = dma.hbm_to_smem (!%p2495_p12), %s159_s7, 16, %s2392_s20, [#allocation11]  }
  0x18   : > { %2088 = dma.hbm_to_vmem [thread:$0]  (!%p2495_p12), %s169_s11, 128, %s171_s13, [#allocation7]  }
  0x19   : > { %s181_s5 = sshll.u32 %s2393_s29, 4  ;;  %s2395_s9 = smov 8   ;;  %s182_s5 = int_to_ptr.vmem [resolvable:$true] %s181_s5 }
  0x1a   : > { %2091 = dma.hbm_to_vmem [thread:$0]  (!%p2495_p12), %s180_s28, 4096, %s182_s5, [#allocation14], %s2394_s6, %s2394_s6, %s2395_s9  }
  0x1b   : > { %197 = sbr.rel (%p2481_p10) target bundleno = 1587 (0x633), region = 36 }
  0x20   : > { %2339 = dma.done.wait (%p2096_p9), [#allocation9], 16  }
  0x21   : > { %2341 = vsyncadd (%p2096_p9), [#allocation9], 4294967280 }
  0x22   : > { %2343 = dma.done.wait (%p2096_p9), [#allocation11], 16  }
  0x23   : > { %2345 = vsyncadd (%p2096_p9), [#allocation11], 4294967280 }
  0x24   : > { %2347 = dma.done.wait (%p2096_p9), [#allocation7], 128  }
  0x25   : > { %2349 = vsyncadd (%p2096_p9), [#allocation7], 4294967168 }
  0x26   : > { %2351 = dma.done.wait (%p2096_p9), [#allocation14], 4096  }
  0x27   : > { %2353 = vsyncadd (%p2096_p9), [#allocation14], 4294963200 }
  0x28   : > { %219 = sfence }
  0x29   : > { %v237_v0 = vld [vmem:[#allocation12] sm:$0xff]  ;;  %v238_v1 = vstv %s2453_s19  ;;  %s235_s27 = sld [smem:[#allocation6 + %s2453_s19]]  ;;  %v2396_v3 = vmov 0   ;;  %vm2397_vm3 = vmmov 1   ;;  %s232_s7 = sand.u32 1, %s2364_s16   ;;  %v2398_v59 = vmov 0.0  }
  0x2a   : > { %vm2533_vm0 = vcmp.eq.s32.totalorder %v237_v0, %v238_v1  ;;  %s236_s30 = sld [smem:[#allocation10 + %s2453_s19]]  ;;  %vm250_vm2 = vcmp.ne.s32.totalorder %v237_v0, 1073741823  ;;  %s1663_s8 = sshll.u32 %s232_s7, 3 }
  0x2b   : > { %v252_v4 = vsel %vm2533_vm0, 1, %v2396_v3  ;;  %vm245_vm4 = vmxor %vm2533_vm0, %vm2397_vm3  ;;  %s2557_s10 = scalar_lea.vmem [#allocation15], %s1663_s8 }
  0x2c   : > { %v254_v5 = vshrl.u32 %v252_v4, 16  ;;  %v253_v19 = vand.u32 65535, %v252_v4  ;;  %318 = vst [vmem:[%s2557_s10] sm:$0xff] %v2398_v59 }
  0x2e   : > { %v256_v6 = vcvt.s32.f32 %v254_v5  ;;  %v255_v21 = vcvt.s32.f32 %v253_v19 }
  0x2f   : > { %v240_v7 = vstv %s235_s27 }
  0x30   : > { %259 = vadd.xlane.f32.xlu0 %v256_v6  ;;  %v242_v8 = vstv %s236_s30  ;;  %vm247_vm1 = vcmp.lt.s32.totalorder %v237_v0, %v240_v7  ;;  %vm241_vm6 = vcmp.ge.s32.totalorder %v237_v0, %v240_v7 }
  0x31   : > { %vm248_vm5 = vcmp.ge.s32.totalorder %v237_v0, %v242_v8  ;;  %vm243_vm7 = vcmp.lt.s32.totalorder %v237_v0, %v242_v8 }
  0x32   : > { %vm249_vm8 = vmor %vm247_vm1, %vm248_vm5 }
  0x33   : > { %vm2542_vm9 = vmand %vm249_vm8, %vm250_vm2 }
  0x34   : > { %v292_v10 = vsel %vm2542_vm9, 1, %v2396_v3  ;;  %vm244_vm10 = vmand %vm241_vm6, %vm243_vm7 }
  0x35   : > { %v294_v11 = vshrl.u32 %v292_v10, 16  ;;  %vm2548_vm11 = vmand %vm244_vm10, %vm245_vm4  ;;  %v293_v20 = vand.u32 65535, %v292_v10 }
  0x36   : > { %v272_v13 = vsel %vm2548_vm11, 1, %v2396_v3 }
  0x37   : > { %v296_v14 = vcvt.s32.f32 %v294_v11  ;;  %v274_v15 = vshrl.u32 %v272_v13, 16  ;;  %v273_v16 = vand.u32 65535, %v272_v13  ;;  %v295_v22 = vcvt.s32.f32 %v293_v20 }
  0x39   : > { %299 = vadd.xlane.f32.xlu1 %v296_v14  ;;  %v276_v17 = vcvt.s32.f32 %v274_v15  ;;  %v275_v18 = vcvt.s32.f32 %v273_v16 }
  0x3b   : > { %279 = vadd.xlane.f32.xlu0 %v276_v17  ;;  %277 = vadd.xlane.f32.xlu2 %v275_v18 }
  0x41   : > { %257 = vadd.xlane.f32.xlu1 %v255_v21 }
  0x43   : > { %297 = vadd.xlane.f32.xlu2 %v295_v22 }
  0xa3   : > { %v260_v23 = vpop.xlane.xlu0 %259 }
  0xa4   : > { %v262_v28 = vcvt.f32.s32 %v260_v23 }
  0xa6   : > { %v263_v34 = vshll.u32 %v262_v28, 16 }
  0xac   : > { %v300_v24 = vpop.xlane.xlu1 %299 }
  0xad   : > { %v302_v31 = vcvt.f32.s32 %v300_v24 }
  0xae   : > { %v280_v25 = vpop.xlane.xlu0 %279  ;;  %v278_v26 = vpop.xlane.xlu2 %277 }
  0xaf   : > { %v282_v27 = vcvt.f32.s32 %v280_v25  ;;  %v281_v30 = vcvt.f32.s32 %v278_v26  ;;  %v303_v38 = vshll.u32 %v302_v31, 16 }
  0xb1   : > { %v283_v29 = vshll.u32 %v282_v27, 16 }
  0xb3   : > { %v284_v32 = vadd.s32 %v283_v29, %v281_v30 }
  0xb4   : > { %v258_v33 = vpop.xlane.xlu1 %257 }
  0xb5   : > { %v285_v35 = vrot.slane %v284_v32, 4  ;;  %v261_v36 = vcvt.f32.s32 %v258_v33 }
  0xb6   : > { %v298_v37 = vpop.xlane.xlu2 %297 }
  0xb7   : > { %v286_v39 = vadd.s32 %v285_v35, %v284_v32  ;;  %v264_v40 = vadd.s32 %v263_v34, %v261_v36  ;;  %v301_v41 = vcvt.f32.s32 %v298_v37 }
  0xb9   : > { %v265_v42 = vrot.slane %v264_v40, 4  ;;  %v304_v43 = vadd.s32 %v303_v38, %v301_v41  ;;  %v287_v44 = vrot.slane %v286_v39, 2 }
  0xbb   : > { %v266_v45 = vadd.s32 %v265_v42, %v264_v40  ;;  %v305_v46 = vrot.slane %v304_v43, 4  ;;  %v288_v47 = vadd.s32 %v287_v44, %v286_v39 }
  0xbd   : > { %v306_v48 = vadd.s32 %v305_v46, %v304_v43  ;;  %v267_v49 = vrot.slane %v266_v45, 2  ;;  %v289_v52 = vrot.slane %v288_v47, 1 }
  0xbf   : > { %v268_v50 = vadd.s32 %v267_v49, %v266_v45  ;;  %v307_v51 = vrot.slane %v306_v48, 2  ;;  %v290_v57 = vadd.s32 %v289_v52, %v288_v47 }
  0xc1   : > { %v269_v53 = vrot.slane %v268_v50, 1  ;;  %v308_v54 = vadd.s32 %v307_v51, %v306_v48 }
  0xc3   : > { %v270_v55 = vadd.s32 %v269_v53, %v268_v50  ;;  %v309_v56 = vrot.slane %v308_v54, 1 }
  0xc5   : > { %2030 = vpush %v270_v55  ;;  %v310_v58 = vadd.s32 %v309_v56, %v308_v54 }
  0xc6   : > { %2032 = vpush %v290_v57 }
  0xc7   : > { %2034 = vpush %v310_v58 }
  0xf6   : > { %s2031_s11 = spop %2030 }
  0xf7   : > { %s2033_s12 = spop %2032 }
  0xf8   : > { %p312_p13 = scmp.lt.s32.totalorder %s2031_s11, %s2033_s12  ;;  %s2035_s13 = spop %2034 }
  0xf9   : > { %p314_p0 = scmp.lt.s32.totalorder %s2035_s13, 200 }
  0xfa   : > { %s4318_s11 = smov (!%p312_p13, %s2031_s11), %s2033_s12 }
  0xfb   : > { %s4320_s13 = smov (!%p314_p0, %s2035_s13), 200 }
  0xfc   : > { %p316_p1 = scmp.lt.s32.totalorder %s4318_s11, %s4320_s13 }
  0xfe   : > { %s4322_s11 = smov (!%p316_p1, %s4318_s11), %s4320_s13 }
  0xff   : > { %p1664_p2 = scmp.le.s32.totalorder %s4322_s11, 0 }
 0x100   : > { %s2806_s14 = smov (!%p1664_p2), 0   ;;  %s2808_s20 = smov (!%p1664_p2), 0  }
 0x101   : > { %322 = sbr.rel (%p1664_p2) target bundleno = 1572 (0x624), region = 56  ;;  %s2810_s22 = smov (!%p1664_p2), 0  }
 0x102   : > { %s2812_s23 = smov (!%p1664_p2), 0  }
 0x106   : > { %v347_v60 = vlaneseq  ;;  %v2399_v13 = vmov 1.0  }
 0x108   : > { %v2563_v61 = vshrl.u32 %v347_v60, 7  ;;  %v2565_v62 = vand.u32 127, %v347_v60 }
 0x10a   : > { %v363_v63 = vadd.s32 120, %v2563_v61  ;;  %v486_v0 = vadd.s32 128, %v2563_v61  ;;  %v487_v1 = vadd.s32 136, %v2563_v61  ;;  %v488_v3 = vadd.s32 144, %v2563_v61 }
 0x10b   : > { %v489_v4 = vadd.s32 152, %v2563_v61  ;;  %v490_v5 = vadd.s32 160, %v2563_v61  ;;  %v491_v6 = vadd.s32 168, %v2563_v61  ;;  %v492_v7 = vadd.s32 176, %v2563_v61 }
 0x10c   : > { %vm381_vm12 = vcmp.le.s32.totalorder %v363_v63, %v2565_v62  ;;  %v493_v8 = vadd.s32 184, %v2563_v61  ;;  %v494_v10 = vadd.s32 192, %v2563_v61  ;;  %v495_v11 = vadd.s32 200, %v2563_v61 }
 0x10d   : > { %1718 = vmatpush.msk.msra.mxu2 %vm381_vm12, %v2399_v13  ;;  %v496_v14 = vadd.s32 208, %v2563_v61  ;;  %v497_v15 = vadd.s32 216, %v2563_v61  ;;  %v498_v16 = vadd.s32 224, %v2563_v61  ;;  %v499_v17 = vadd.s32 232, %v2563_v61  ;;  %1682 = vmatpush.msk.msra.mxu0 %vm381_vm12, %v2399_v13 }
 0x10e   : > { %v500_v18 = vadd.s32 240, %v2563_v61  ;;  %v501_v19 = vadd.s32 248, %v2563_v61  ;;  %v2588_v20 = vadd.s32 1, %v2563_v61  ;;  %v2590_v21 = vadd.s32 1, %v363_v63  ;;  %1700 = vmatpush.msk.msra.mxu1 %vm381_vm12, %v2399_v13 }
 0x10f   : > { %v2593_v22 = vadd.s32 1, %v486_v0  ;;  %v2595_v23 = vadd.s32 1, %v487_v1  ;;  %v2597_v24 = vadd.s32 1, %v488_v3  ;;  %v2599_v25 = vadd.s32 1, %v489_v4 }
 0x110   : > { %v2601_v26 = vadd.s32 1, %v490_v5  ;;  %v2603_v27 = vadd.s32 1, %v491_v6  ;;  %v2605_v28 = vadd.s32 1, %v492_v7  ;;  %v2607_v29 = vadd.s32 1, %v493_v8 }
 0x111   : > { %v2609_v30 = vadd.s32 1, %v494_v10  ;;  %v2611_v31 = vadd.s32 1, %v495_v11  ;;  %v2613_v32 = vadd.s32 1, %v496_v14  ;;  %v2615_v33 = vadd.s32 1, %v497_v15 }
 0x112   : > { %v2617_v34 = vadd.s32 1, %v498_v16  ;;  %v2619_v35 = vadd.s32 1, %v499_v17  ;;  %v2621_v36 = vadd.s32 1, %v500_v18  ;;  %v2623_v37 = vadd.s32 1, %v501_v19 }
 0x113   : > { %v362_v38 = vadd.s32 112, %v2563_v61  ;;  %v361_v39 = vadd.s32 104, %v2563_v61  ;;  %v360_v40 = vadd.s32 96, %v2563_v61  ;;  %v359_v41 = vadd.s32 88, %v2563_v61 }
 0x114   : > { %v358_v42 = vadd.s32 80, %v2563_v61  ;;  %v357_v43 = vadd.s32 72, %v2563_v61  ;;  %v356_v48 = vadd.s32 64, %v2563_v61  ;;  %v355_v49 = vadd.s32 56, %v2563_v61 }
 0x115   : > { %vm380_vm13 = vcmp.le.s32.totalorder %v362_v38, %v2565_v62  ;;  %v2632_v44 = vadd.s32 1, %v362_v38  ;;  %vm379_vm14 = vcmp.le.s32.totalorder %v361_v39, %v2565_v62  ;;  %v2635_v45 = vadd.s32 1, %v361_v39 }
 0x116   : > { %1719 = vmatpush.msk.msra.mxu2 %vm380_vm13, %v2399_v13  ;;  %v2638_v46 = vadd.s32 1, %v360_v40  ;;  %1683 = vmatpush.msk.msra.mxu0 %vm380_vm13, %v2399_v13  ;;  %v2641_v47 = vadd.s32 1, %v359_v41  ;;  %vm378_vm15 = vcmp.le.s32.totalorder %v360_v40, %v2565_v62  ;;  %v2647_v50 = vadd.s32 1, %v358_v42 }
 0x117   : > { %1701 = vmatpush.msk.msra.mxu1 %vm380_vm13, %v2399_v13  ;;  %v2649_v51 = vadd.s32 1, %v357_v43  ;;  %v2657_v52 = vadd.s32 1, %v356_v48  ;;  %v2659_v53 = vadd.s32 1, %v355_v49  ;;  %vm377_vm1 = vcmp.le.s32.totalorder %v359_v41, %v2565_v62 }
 0x118   : > { %1720 = vmatpush.msk.msra.mxu2 %vm379_vm14, %v2399_v13  ;;  %1684 = vmatpush.msk.msra.mxu0 %vm379_vm14, %v2399_v13  ;;  %v354_v54 = vadd.s32 48, %v2563_v61  ;;  %v353_v55 = vadd.s32 40, %v2563_v61  ;;  %vm376_vm2 = vcmp.le.s32.totalorder %v358_v42, %v2565_v62  ;;  %v352_v56 = vadd.s32 32, %v2563_v61 }
 0x119   : > { %1702 = vmatpush.msk.msra.mxu1 %vm379_vm14, %v2399_v13  ;;  %v2676_v57 = vadd.s32 24, %v2563_v61  ;;  %v2686_v60 = vadd.s32 16, %v2563_v61  ;;  %v2689_v63 = vadd.s32 8, %v2563_v61  ;;  %v2400_v0 = vmov 0.0  }
 0x11a   : > { %1721 = vmatpush.msk.msra.mxu2 %vm378_vm15, %v2399_v13  ;;  %1685 = vmatpush.msk.msra.mxu0 %vm378_vm15, %v2399_v13  ;;  %v2681_v58 = vadd.s32 1, %v354_v54  ;;  %v2683_v59 = vadd.s32 1, %v353_v55  ;;  %323 = vst [vmem:[#allocation2 + $0xb0] sm:$0xff] %v2400_v0  ;;  %v2698_v1 = vadd.s32 1, %v352_v56  ;;  %vm375_vm3 = vcmp.le.s32.totalorder %v357_v43, %v2565_v62 }
 0x11b   : > { %1703 = vmatpush.msk.msra.mxu1 %vm378_vm15, %v2399_v13  ;;  %v2701_v3 = vadd.s32 1, %v2676_v57  ;;  %324 = vst [vmem:[#allocation2] sm:$0xff] %v2400_v0  ;;  %v2709_v4 = vadd.s32 1, %v2686_v60  ;;  %v2712_v5 = vadd.s32 1, %v2689_v63  ;;  %vm374_vm4 = vcmp.le.s32.totalorder %v356_v48, %v2565_v62 }
 0x11c   : > { %1722 = vmatpush.msk.msra.mxu2 %vm377_vm1, %v2399_v13  ;;  %1686 = vmatpush.msk.msra.mxu0 %vm377_vm1, %v2399_v13  ;;  %325 = vst [vmem:[#allocation2 + $0x10] sm:$0xff] %v2400_v0  ;;  %vm373_vm5 = vcmp.le.s32.totalorder %v355_v49, %v2565_v62  ;;  %vm372_vm6 = vcmp.le.s32.totalorder %v354_v54, %v2565_v62  ;;  %v1681_v6 = vsel %vm2533_vm0, 1.0, %v2400_v0  ;;  %v1699_v7 = vsel %vm2548_vm11, 1.0, %v2400_v0 }
 0x11d   : > { %1704 = vmatpush.msk.msra.mxu1 %vm377_vm1, %v2399_v13  ;;  %326 = vst [vmem:[#allocation2 + $0x48] sm:$0xff] %v2400_v0  ;;  %vm371_vm7 = vcmp.le.s32.totalorder %v353_v55, %v2565_v62  ;;  %vm370_vm8 = vcmp.le.s32.totalorder %v352_v56, %v2565_v62  ;;  %vm369_vm10 = vcmp.le.s32.totalorder %v2676_v57, %v2565_v62  ;;  %v1717_v15 = vsel %vm2542_vm9, 1.0, %v2400_v0 }
 0x11e   : > { %1723 = vmatpush.msk.msra.mxu2 %vm376_vm2, %v2399_v13  ;;  %1687 = vmatpush.msk.msra.mxu0 %vm376_vm2, %v2399_v13  ;;  %327 = vst [vmem:[#allocation2 + $0x60] sm:$0xff] %v2400_v0  ;;  %vm368_vm12 = vcmp.le.s32.totalorder %v2686_v60, %v2565_v62  ;;  %vm367_vm13 = vcmp.le.s32.totalorder %v2689_v63, %v2565_v62 }
 0x11f   : > { %1705 = vmatpush.msk.msra.mxu1 %vm376_vm2, %v2399_v13  ;;  %328 = vst [vmem:[#allocation2 + $0x28] sm:$0xff] %v2400_v0  ;;  %vm366_vm14 = vcmp.le.s32.totalorder %v2563_v61, %v2565_v62 }
 0x120   : > { %1724 = vmatpush.msk.msra.mxu2 %vm375_vm3, %v2399_v13  ;;  %1688 = vmatpush.msk.msra.mxu0 %vm375_vm3, %v2399_v13  ;;  %329 = vst [vmem:[#allocation2 + $0x40] sm:$0xff] %v2400_v0 }
 0x121   : > { %1706 = vmatpush.msk.msra.mxu1 %vm375_vm3, %v2399_v13  ;;  %330 = vst [vmem:[#allocation2 + $0x78] sm:$0xff] %v2400_v0 }
 0x122   : > { %1725 = vmatpush.msk.msra.mxu2 %vm374_vm4, %v2399_v13  ;;  %1689 = vmatpush.msk.msra.mxu0 %vm374_vm4, %v2399_v13  ;;  %331 = vst [vmem:[#allocation2 + $0x88] sm:$0xff] %v2400_v0 }
 0x123   : > { %1707 = vmatpush.msk.msra.mxu1 %vm374_vm4, %v2399_v13  ;;  %332 = vst [vmem:[#allocation2 + $0x90] sm:$0xff] %v2400_v0 }
 0x124   : > { %1726 = vmatpush.msk.msra.mxu2 %vm373_vm5, %v2399_v13  ;;  %1690 = vmatpush.msk.msra.mxu0 %vm373_vm5, %v2399_v13  ;;  %333 = vst [vmem:[#allocation2 + $0x18] sm:$0xff] %v2400_v0 }
 0x125   : > { %1708 = vmatpush.msk.msra.mxu1 %vm373_vm5, %v2399_v13  ;;  %334 = vst [vmem:[#allocation2 + $0x98] sm:$0xff] %v2400_v0 }
 0x126   : > { %1727 = vmatpush.msk.msra.mxu2 %vm372_vm6, %v2399_v13  ;;  %1691 = vmatpush.msk.msra.mxu0 %vm372_vm6, %v2399_v13  ;;  %335 = vst [vmem:[#allocation2 + $0x38] sm:$0xff] %v2400_v0 }
 0x127   : > { %1709 = vmatpush.msk.msra.mxu1 %vm372_vm6, %v2399_v13  ;;  %336 = vst [vmem:[#allocation2 + $0x50] sm:$0xff] %v2400_v0 }
 0x128   : > { %1728 = vmatpush.msk.msra.mxu2 %vm371_vm7, %v2399_v13  ;;  %1692 = vmatpush.msk.msra.mxu0 %vm371_vm7, %v2399_v13  ;;  %337 = vst [vmem:[#allocation2 + $0x70] sm:$0xff] %v2400_v0 }
 0x129   : > { %1710 = vmatpush.msk.msra.mxu1 %vm371_vm7, %v2399_v13  ;;  %338 = vst [vmem:[#allocation2 + $0xa0] sm:$0xff] %v2400_v0 }
 0x12a   : > { %1729 = vmatpush.msk.msra.mxu2 %vm370_vm8, %v2399_v13  ;;  %1693 = vmatpush.msk.msra.mxu0 %vm370_vm8, %v2399_v13  ;;  %339 = vst [vmem:[#allocation2 + $0xa8] sm:$0xff] %v2400_v0 }
 0x12b   : > { %1711 = vmatpush.msk.msra.mxu1 %vm370_vm8, %v2399_v13  ;;  %340 = vst [vmem:[#allocation2 + $0x68] sm:$0xff] %v2400_v0 }
 0x12c   : > { %1730 = vmatpush.msk.msra.mxu2 %vm369_vm10, %v2399_v13  ;;  %1694 = vmatpush.msk.msra.mxu0 %vm369_vm10, %v2399_v13  ;;  %341 = vst [vmem:[#allocation2 + $0x30] sm:$0xff] %v2400_v0 }
 0x12d   : > { %1712 = vmatpush.msk.msra.mxu1 %vm369_vm10, %v2399_v13  ;;  %342 = vst [vmem:[#allocation2 + $0x58] sm:$0xff] %v2400_v0 }
 0x12e   : > { %1731 = vmatpush.msk.msra.mxu2 %vm368_vm12, %v2399_v13  ;;  %1695 = vmatpush.msk.msra.mxu0 %vm368_vm12, %v2399_v13  ;;  %343 = vst [vmem:[#allocation2 + $0x80] sm:$0xff] %v2400_v0 }
 0x12f   : > { %1713 = vmatpush.msk.msra.mxu1 %vm368_vm12, %v2399_v13  ;;  %344 = vst [vmem:[#allocation2 + $0xb8] sm:$0xff] %v2400_v0 }
 0x130   : > { %1732 = vmatpush.msk.msra.mxu2 %vm367_vm13, %v2399_v13  ;;  %1696 = vmatpush.msk.msra.mxu0 %vm367_vm13, %v2399_v13  ;;  %345 = vst [vmem:[#allocation2 + $0x20] sm:$0xff] %v2400_v0 }
 0x131   : > { %1714 = vmatpush.msk.msra.mxu1 %vm367_vm13, %v2399_v13  ;;  %346 = vst [vmem:[#allocation2 + $0x8] sm:$0xff] %v2400_v0 }
 0x132   : > { %1733 = vmatpush.msk.msra.mxu2 %vm366_vm14, %v2399_v13  ;;  %1697 = vmatpush.msk.msra.mxu0 %vm366_vm14, %v2399_v13 }
 0x133   : > { %1734 = vmatmul.msk.f32.vlgmr.msra.gmra.mxu2 %vm2542_vm9, %v2399_v13  ;;  %1715 = vmatpush.msk.msra.mxu1 %vm366_vm14, %v2399_v13 }
 0x134   : > { %1698 = vmatmul.msk.f32.vlgmr.msra.gmra.mxu0 %vm2533_vm0, %v2399_v13  ;;  %1716 = vmatmul.msk.f32.vlgmr.msra.gmra.mxu1 %vm2548_vm11, %v2399_v13 }
 0x1b1   : > { %v432_v8 = vpop.f32.mrf.mxu0  ;;  %v456_v10 = vpop.f32.mrf.mxu1 }
 0x1b2   : > { %v435_v11 = vmul.f32 %v1681_v6, %v432_v8  ;;  %v459_v14 = vmul.f32 %v1699_v7, %v456_v10 }
 0x1b4   : > { %vm2036_vm15 = vcmp.lt.s32.totalorder %v435_v11, 0  ;;  %v2037_v16 = vceil.f32 %v435_v11  ;;  %v2038_v17 = vfloor.f32 %v435_v11  ;;  %vm2041_vm1 = vcmp.lt.s32.totalorder %v459_v14, 0 }
 0x1b5   : > { %v2042_v13 = vceil.f32 %v459_v14  ;;  %v2043_v18 = vfloor.f32 %v459_v14 }
 0x1b6   : > { %v2039_v2 = vsel %vm2036_vm15, %v2037_v16, %v2038_v17  ;;  %v480_v19 = vpop.f32.mrf.mxu2 }
 0x1b7   : > { %v2040_v38 = vcvt.f32.s32 %v2039_v2  ;;  %v2044_v39 = vsel %vm2041_vm1, %v2042_v13, %v2043_v18  ;;  %v483_v12 = vmul.f32 %v1717_v15, %v480_v19 }
 0x1b8   : > { %v2045_v40 = vcvt.f32.s32 %v2044_v39 }
 0x1b9   : > { %437 = vst [vmem:[#allocation3] sm:$0xff] %v2040_v38  ;;  %vm2046_vm0 = vcmp.lt.s32.totalorder %v483_v12, 0  ;;  %v2047_v41 = vceil.f32 %v483_v12  ;;  %v2048_v42 = vfloor.f32 %v483_v12 }
 0x1ba   : > { %461 = vst [vmem:[#allocation4] sm:$0xff] %v2045_v40 }
 0x1bb   : > { %v2049_v43 = vsel %vm2046_vm0, %v2047_v41, %v2048_v42 }
 0x1bc   : > { %v2050_v9 = vcvt.f32.s32 %v2049_v43 }
 0x1be   : > { %485 = vst [vmem:[#allocation5] sm:$0xff] %v2050_v9 }
 0x1bf LB: >> { %vm549_vm9 = vcmask 1040384   ;;  %s543_s28 = scalar_lea.vmem [#allocation3], %s2388_s23  ;;  %s545_s29 = scalar_lea.vmem [#allocation4], %s2388_s23  ;;  %s2388_s23 = sphi %s2812_s23, %s539_s23   ;;  %s2384_s22 = sphi %s2810_s22, %s1393_s22   ;;  %s2380_s20 = sphi %s2808_s20, %s1394_s20   ;;  %s2376_s14 = sphi %s2806_s14, %s1395_s14  }
 0x1c0   : >> { %v2827_v48 = vld [vmem:[%s543_s28] sm:$0x1]  ;;  %s547_s5 = scalar_lea.vmem [#allocation5], %s2388_s23  ;;  %p625_p3 = scmp.lt.s32.totalorder %s2384_s22, %s4322_s11 }
 0x1c1   : >> { %v2830_v49 = vld [vmem:[%s545_s29] sm:$0x1]  ;;  %v550_v54 = vsel %vm549_vm9, %v2827_v48, 2147483648  ;;  %p626_p4 = scmp.lt.s32.totalorder %s2380_s20, %s4322_s11  ;;  %p628_p8 = scmp.lt.s32.totalorder %s2376_s14, %s4322_s11 }
 0x1c2   : >> { %v552_v56 = vshra.s32 %v550_v54, 16  ;;  %v575_v60 = vsel %vm549_vm9, %v2830_v49, 2147483648  ;;  %v551_v11 = vand.u32 65535, %v550_v54 }
 0x1c3   : >> { %v577_v8 = vshra.s32 %v575_v60, 16  ;;  %v576_v17 = vand.u32 65535, %v575_v60  ;;  %p627_p7 = por %p626_p4, %p625_p3 }
 0x1c4   : >> { %v554_v6 = vcvt.s32.f32 %v552_v56  ;;  %v553_v14 = vcvt.s32.f32 %v551_v11 }
 0x1c5   : >> { %v2835_v55 = vld [vmem:[%s547_s5] sm:$0x1]  ;;  %v579_v10 = vcvt.s32.f32 %v577_v8  ;;  %v578_v13 = vcvt.s32.f32 %v576_v17  ;;  %p2847_p9 = por %p628_p8, %p627_p7 }
 0x1c6   : >> { %v600_v57 = vsel %vm549_vm9, %v2835_v55, 2147483648  ;;  %555 = vmax.xlane.f32.xlu0 %v554_v6  ;;  %vm705_vm15 = vcmp.gt.s32.totalorder (%p2847_p9), %v2835_v55, 0  ;;  %s1735_s8 = sshll.u32 (%p2847_p9), %s2388_s23, 5 }
 0x1c7   : >> { %v602_v63 = vshra.s32 %v600_v57, 16  ;;  %v601_v2 = vand.u32 65535, %v600_v57  ;;  %s634_s12 = scalar_lea.vmem (%p2847_p9), [#allocation13], %s1735_s8 }
 0x1c9   : >> { %v604_v7 = vcvt.s32.f32 %v602_v63  ;;  %v603_v39 = vcvt.s32.f32 %v601_v2 }
 0x1cb   : >> { %605 = vmax.xlane.f32.xlu1 %v604_v7 }
 0x1ce   : >> { %580 = vmax.xlane.f32.xlu0 %v579_v10 }
 0x239   : >> { %v556_v15 = vpop.xlane.xlu0 %555 }
 0x23a   : >> { %vm557_vm11 = vcmp.eq.f32.partialorder %v554_v6, %v556_v15  ;;  %v562_v40 = vcvt.f32.s32 %v556_v15 }
 0x23b   : >> { %v558_v16 = vsel %vm557_vm11, %v553_v14, -inf }
 0x23c   : >> { %559 = vmax.xlane.f32.xlu1 %v558_v16  ;;  %v563_v42 = vshll.u32 %v562_v40, 16 }
 0x23e   : >> { %v606_v38 = vpop.xlane.xlu1 %605 }
 0x23f   : >> { %vm607_vm3 = vcmp.eq.f32.partialorder %v604_v7, %v606_v38  ;;  %v612_v11 = vcvt.f32.s32 %v606_v38 }
 0x240   : >> { %v608_v12 = vsel %vm607_vm3, %v603_v39, -inf }
 0x241   : >> { %v581_v18 = vpop.xlane.xlu0 %580  ;;  %v613_v2 = vshll.u32 %v612_v11, 16 }
 0x242   : >> { %vm582_vm2 = vcmp.eq.f32.partialorder %v579_v10, %v581_v18  ;;  %v587_v54 = vcvt.f32.s32 %v581_v18 }
 0x243   : >> { %v583_v19 = vsel %vm582_vm2, %v578_v13, -inf }
 0x244   : >> { %584 = vmax.xlane.f32.xlu2 %v583_v19  ;;  %v588_v63 = vshll.u32 %v587_v54, 16 }
 0x24c   : >> { %609 = vmax.xlane.f32.xlu2 %v608_v12 }
 0x2af   : >> { %v560_v41 = vpop.xlane.xlu1 %559 }
 0x2b0   : >> { %v561_v43 = vcvt.f32.s32 %v560_v41 }
 0x2b2   : >> { %v564_v9 = vadd.s32 %v563_v42, %v561_v43 }
 0x2b4   : >> { %v565_v56 = vrot.slane %v564_v9, 4 }
 0x2b6   : >> { %vm566_vm4 = vcmp.gt.s32.totalorder %v564_v9, %v565_v56 }
 0x2b7   : >> { %v585_v57 = vpop.xlane.xlu2 %584  ;;  %v567_v60 = vsel %vm566_vm4, %v564_v9, %v565_v56 }
 0x2b8   : >> { %v586_v6 = vcvt.f32.s32 %v585_v57  ;;  %v568_v7 = vrot.slane %v567_v60, 2  ;;  %v2860_v57 = vstv (%p2847_p9), %s2376_s14 }
 0x2b9   : >> { %v654_v11 = vsub.s32 (%p2847_p9), %v2632_v44, %v2860_v57 }
 0x2ba   : >> { %v589_v8 = vadd.s32 %v588_v63, %v586_v6  ;;  %vm569_vm5 = vcmp.gt.s32.totalorder %v567_v60, %v568_v7  ;;  %v655_v63 = vsub.s32 (%p2847_p9), %v2590_v21, %v2860_v57  ;;  %v2401_v6 = vmov (%p2847_p9), 0  }
 0x2bb   : >> { %v570_v10 = vsel %vm569_vm5, %v567_v60, %v568_v7  ;;  %v2863_v60 = vperm.slane (%p2847_p9), %v2835_v55, 0  ;;  %v706_v7 = vsel (%p2847_p9), %vm705_vm15, 1, %v2401_v6  ;;  %v649_v6 = vsub.s32 (%p2847_p9), %v2649_v51, %v2860_v57  ;;  %v3265_v55 = vld [vmem:[%s634_s12 + $0x18] sm:$0xff] (%p2847_p9) }
 0x2bc   : >> { %v590_v14 = vrot.slane %v589_v8, 4  ;;  %v571_v16 = vrot.slane %v570_v10, 1 }
 0x2bd   : >> { %vm688_vm1 = vcmp.eq.s32.totalorder (%p2847_p9), %v2863_v60, %v655_v63  ;;  %vm2881_vm2 = vcmp.eq.s32.totalorder (%p2847_p9), %v2863_v60, %v654_v11  ;;  %v648_v11 = vsub.s32 (%p2847_p9), %v2657_v52, %v2860_v57  ;;  %v660_v63 = vsub.s32 (%p2847_p9), %v2601_v26, %v2860_v57 }
 0x2be   : >> { %vm591_vm6 = vcmp.gt.s32.totalorder %v589_v8, %v590_v14  ;;  %vm572_vm7 = vcmp.gt.s32.totalorder %v570_v10, %v571_v16 }
 0x2bf   : >> { %v610_v15 = vpop.xlane.xlu2 %609  ;;  %v573_v17 = vsel %vm572_vm7, %v570_v10, %v571_v16  ;;  %v592_v13 = vsel %vm591_vm6, %v589_v8, %v590_v14  ;;  %v671_v8 = vsub.s32 (%p2847_p9), %v2623_v37, %v2860_v57  ;;  %v707_v10 = vperm.slane (%p2847_p9), %v706_v7, 0 }
 0x2c0   : >> { %v611_v18 = vcvt.f32.s32 %v610_v15  ;;  %2051 = vpush %v573_v17  ;;  %v593_v19 = vrot.slane %v592_v13, 2  ;;  %v670_v14 = vsub.s32 (%p2847_p9), %v2621_v36, %v2860_v57  ;;  %v653_v15 = vsub.s32 (%p2847_p9), %v2635_v45, %v2860_v57 }
 0x2c1   : >> { %vm704_vm0 = vcmp.eq.s32.totalorder (%p2847_p9), %v2863_v60, %v671_v8  ;;  %vm2876_vm11 = vcmp.eq.s32.totalorder (%p2847_p9), %v707_v10, 1  ;;  %v665_v8 = vsub.s32 (%p2847_p9), %v2611_v31, %v2860_v57  ;;  %v664_v16 = vsub.s32 (%p2847_p9), %v2609_v30, %v2860_v57 }
 0x2c2   : >> { %v614_v39 = vadd.s32 %v613_v2, %v611_v18  ;;  %vm594_vm8 = vcmp.gt.s32.totalorder %v592_v13, %v593_v19  ;;  %vm724_vm3 = vmand (%p2847_p9), %vm688_vm1, %vm2876_vm11  ;;  %vm2890_vm4 = vcmp.eq.s32.totalorder (%p2847_p9), %v2863_v60, %v670_v14  ;;  %v2402_v2 = vmov (%p2847_p9), 1.0  }
 0x2c3   : >> { %v595_v12 = vsel %vm594_vm8, %v592_v13, %v593_v19  ;;  %v669_v13 = vsub.s32 (%p2847_p9), %v2619_v35, %v2860_v57  ;;  %1934 = vmatpush.xpose.msk.msra.mxu2 (%p2847_p9), %vm724_vm3, %v2402_v2  ;;  %vm740_vm5 = vmand (%p2847_p9), %vm704_vm0, %vm2876_vm11  ;;  %1768 = vmatpush.xpose.msk.msra.mxu0 (%p2847_p9), %vm724_vm3, %v2402_v2  ;;  %vm2911_vm8 = vcmp.eq.s32.totalorder (%p2847_p9), %v2863_v60, %v653_v15 }
 0x2c4   : >> { %v615_v40 = vrot.slane %v614_v39, 4  ;;  %v596_v41 = vrot.slane %v595_v12, 1  ;;  %1950 = vmatpush.xpose.msk.msra.mxu3 (%p2847_p9), %vm740_vm5, %v2402_v2  ;;  %vm723_vm6 = vmand (%p2847_p9), %vm2881_vm2, %vm2876_vm11  ;;  %1784 = vmatpush.xpose.msk.msra.mxu1 (%p2847_p9), %vm740_vm5, %v2402_v2  ;;  %v652_v19 = vsub.s32 (%p2847_p9), %v2638_v46, %v2860_v57  ;;  %v647_v17 = vsub.s32 (%p2847_p9), %v2659_v53, %v2860_v57 }
 0x2c5   : >> { %vm739_vm7 = vmand (%p2847_p9), %vm2890_vm4, %vm2876_vm11  ;;  %v663_v18 = vsub.s32 (%p2847_p9), %v2607_v29, %v2860_v57  ;;  %v643_v7 = vsub.s32 (%p2847_p9), %v2701_v3, %v2860_v57  ;;  %v659_v10 = vsub.s32 (%p2847_p9), %v2599_v25, %v2860_v57  ;;  %v642_v14 = vsub.s32 (%p2847_p9), %v2709_v4, %v2860_v57 }
 0x2c6   : >> { %vm616_vm10 = vcmp.gt.s32.totalorder %v614_v39, %v615_v40  ;;  %vm597_vm12 = vcmp.gt.s32.totalorder %v595_v12, %v596_v41  ;;  %v658_v15 = vsub.s32 (%p2847_p9), %v2597_v24, %v2860_v57 }
 0x2c7   : >> { %v598_v42 = vsel %vm597_vm12, %v595_v12, %v596_v41  ;;  %v617_v38 = vsel %vm616_vm10, %v614_v39, %v615_v40  ;;  %vm2918_vm10 = vcmp.eq.s32.totalorder (%p2847_p9), %v2863_v60, %v669_v13  ;;  %v668_v12 = vsub.s32 (%p2847_p9), %v2617_v34, %v2860_v57  ;;  %1935 = vmatpush.xpose.msk.msra.mxu2 (%p2847_p9), %vm723_vm6, %v2402_v2  ;;  %vm722_vm12 = vmand (%p2847_p9), %vm2911_vm8, %vm2876_vm11 }
 0x2c8   : >> { %2053 = vpush %v598_v42  ;;  %v618_v43 = vrot.slane %v617_v38, 2  ;;  %1769 = vmatpush.xpose.msk.msra.mxu0 (%p2847_p9), %vm723_vm6, %v2402_v2  ;;  %1951 = vmatpush.xpose.msk.msra.mxu3 (%p2847_p9), %vm739_vm7, %v2402_v2  ;;  %v651_v41 = vsub.s32 (%p2847_p9), %v2641_v47, %v2860_v57  ;;  %v646_v39 = vsub.s32 (%p2847_p9), %v2681_v58, %v2860_v57 }
 0x2c9   : >> { %1785 = vmatpush.xpose.msk.msra.mxu1 (%p2847_p9), %vm739_vm7, %v2402_v2  ;;  %vm2944_vm15 = vcmp.eq.s32.totalorder (%p2847_p9), %v2863_v60, %v668_v12  ;;  %v662_v40 = vsub.s32 (%p2847_p9), %v2605_v28, %v2860_v57  ;;  %v645_v42 = vsub.s32 (%p2847_p9), %v2683_v59, %v2860_v57  ;;  %v641_v13 = vsub.s32 (%p2847_p9), %v2712_v5, %v2860_v57 }
 0x2ca   : >> { %vm619_vm13 = vcmp.gt.s32.totalorder %v617_v38, %v618_v43  ;;  %vm737_vm0 = vmand (%p2847_p9), %vm2944_vm15, %vm2876_vm11  ;;  %vm2963_vm2 = vcmp.eq.s32.totalorder (%p2847_p9), %v2863_v60, %v651_v41  ;;  %v3267_v41 = vld [vmem:[%s634_s12 + $0x8] sm:$0xff] (%p2847_p9) }
 0x2cb   : >> { %v620_v9 = vsel %vm619_vm13, %v617_v38, %v618_v43  ;;  %vm738_vm13 = vmand (%p2847_p9), %vm2918_vm10, %vm2876_vm11  ;;  %v667_v38 = vsub.s32 (%p2847_p9), %v2615_v33, %v2860_v57  ;;  %1936 = vmatpush.xpose.msk.msra.mxu2 (%p2847_p9), %vm722_vm12, %v2402_v2  ;;  %v661_v43 = vsub.s32 (%p2847_p9), %v2603_v27, %v2860_v57 }
 0x2cc   : >> { %v621_v54 = vrot.slane %v620_v9, 1  ;;  %1770 = vmatpush.xpose.msk.msra.mxu0 (%p2847_p9), %vm722_vm12, %v2402_v2  ;;  %1952 = vmatpush.xpose.msk.msra.mxu3 (%p2847_p9), %vm738_vm13, %v2402_v2  ;;  %vm720_vm4 = vmand (%p2847_p9), %vm2963_vm2, %vm2876_vm11  ;;  %vm3015_vm12 = vcmp.eq.s32.totalorder (%p2847_p9), %v2863_v60, %v649_v6 }
 0x2cd   : >> { %1786 = vmatpush.xpose.msk.msra.mxu1 (%p2847_p9), %vm738_vm13, %v2402_v2  ;;  %vm2970_vm3 = vcmp.eq.s32.totalorder (%p2847_p9), %v2863_v60, %v667_v38  ;;  %vm3022_vm13 = vcmp.eq.s32.totalorder (%p2847_p9), %v2863_v60, %v665_v8 }
 0x2ce   : >> { %vm622_vm14 = vcmp.gt.s32.totalorder %v620_v9, %v621_v54  ;;  %vm736_vm5 = vmand (%p2847_p9), %vm2970_vm3, %vm2876_vm11 }
 0x2cf   : >> { %v623_v56 = vsel %vm622_vm14, %v620_v9, %v621_v54  ;;  %vm2937_vm14 = vcmp.eq.s32.totalorder (%p2847_p9), %v2863_v60, %v652_v19  ;;  %v650_v9 = vsub.s32 (%p2847_p9), %v2647_v50, %v2860_v57  ;;  %vm734_vm15 = vmand (%p2847_p9), %vm3022_vm13, %vm2876_vm11  ;;  %v644_v54 = vsub.s32 (%p2847_p9), %v2698_v1, %v2860_v57 }
 0x2d0   : >> { %2055 = vpush %v623_v56  ;;  %vm721_vm1 = vmand (%p2847_p9), %vm2937_vm14, %vm2876_vm11  ;;  %v666_v56 = vsub.s32 (%p2847_p9), %v2613_v32, %v2860_v57  ;;  %1953 = vmatpush.xpose.msk.msra.mxu3 (%p2847_p9), %vm737_vm0, %v2402_v2  ;;  %v657_v19 = vsub.s32 (%p2847_p9), %v2595_v23, %v2860_v57 }
 0x2d1   : >> { %1937 = vmatpush.xpose.msk.msra.mxu2 (%p2847_p9), %vm721_vm1, %v2402_v2  ;;  %1771 = vmatpush.xpose.msk.msra.mxu0 (%p2847_p9), %vm721_vm1, %v2402_v2  ;;  %vm2989_vm6 = vcmp.eq.s32.totalorder (%p2847_p9), %v2863_v60, %v650_v9  ;;  %vm718_vm14 = vmand (%p2847_p9), %vm3015_vm12, %vm2876_vm11  ;;  %vm3041_vm1 = vcmp.eq.s32.totalorder (%p2847_p9), %v2863_v60, %v648_v11  ;;  %v809_v11 = vld [vmem:[#allocation2 + $0x58] sm:$0xff] (%p2847_p9) }
 0x2d2   : >> { %1787 = vmatpush.xpose.msk.msra.mxu1 (%p2847_p9), %vm737_vm0, %v2402_v2  ;;  %vm2996_vm7 = vcmp.eq.s32.totalorder (%p2847_p9), %v2863_v60, %v666_v56  ;;  %vm719_vm8 = vmand (%p2847_p9), %vm2989_vm6, %vm2876_vm11  ;;  %vm3048_vm0 = vcmp.eq.s32.totalorder (%p2847_p9), %v2863_v60, %v664_v16  ;;  %v810_v56 = vld [vmem:[#allocation2 + $0x80] sm:$0xff] (%p2847_p9) }
 0x2d3   : >> { %vm735_vm10 = vmand (%p2847_p9), %vm2996_vm7, %vm2876_vm11 }
 0x2d4   : >> { %1954 = vmatpush.xpose.msk.msra.mxu3 (%p2847_p9), %vm736_vm5, %v2402_v2  ;;  %vm717_vm2 = vmand (%p2847_p9), %vm3041_vm1, %vm2876_vm11 }
 0x2d5   : >> { %1938 = vmatpush.xpose.msk.msra.mxu2 (%p2847_p9), %vm720_vm4, %v2402_v2  ;;  %1772 = vmatpush.xpose.msk.msra.mxu0 (%p2847_p9), %vm720_vm4, %v2402_v2  ;;  %vm733_vm3 = vmand (%p2847_p9), %vm3048_vm0, %vm2876_vm11  ;;  %vm3067_vm4 = vcmp.eq.s32.totalorder (%p2847_p9), %v2863_v60, %v647_v17 }
 0x2d6   : >> { %1788 = vmatpush.xpose.msk.msra.mxu1 (%p2847_p9), %vm736_vm5, %v2402_v2  ;;  %vm3074_vm5 = vcmp.eq.s32.totalorder (%p2847_p9), %v2863_v60, %v663_v18  ;;  %vm716_vm6 = vmand (%p2847_p9), %vm3067_vm4, %vm2876_vm11  ;;  %v812_v18 = vld [vmem:[#allocation2 + $0x20] sm:$0xff] (%p2847_p9) }
 0x2d7   : >> { %vm732_vm7 = vmand (%p2847_p9), %vm3074_vm5, %vm2876_vm11 }
 0x2d8   : >> { %1955 = vmatpush.xpose.msk.msra.mxu3 (%p2847_p9), %vm735_vm10, %v2402_v2 }
 0x2d9   : >> { %1939 = vmatpush.xpose.msk.msra.mxu2 (%p2847_p9), %vm719_vm8, %v2402_v2  ;;  %1773 = vmatpush.xpose.msk.msra.mxu0 (%p2847_p9), %vm719_vm8, %v2402_v2  ;;  %vm3093_vm8 = vcmp.eq.s32.totalorder (%p2847_p9), %v2863_v60, %v646_v39  ;;  %v640_v39 = vsub.s32 (%p2847_p9), %v2588_v20, %v2860_v57 }
 0x2da   : >> { %1789 = vmatpush.xpose.msk.msra.mxu1 (%p2847_p9), %vm735_vm10, %v2402_v2  ;;  %vm3100_vm10 = vcmp.eq.s32.totalorder (%p2847_p9), %v2863_v60, %v662_v40  ;;  %vm715_vm12 = vmand (%p2847_p9), %vm3093_vm8, %vm2876_vm11  ;;  %v656_v40 = vsub.s32 (%p2847_p9), %v2593_v22, %v2860_v57  ;;  %v3254_v57 = vld [vmem:[%s634_s12 + $0x10] sm:$0xff] (%p2847_p9) }
 0x2db   : >> { %vm731_vm13 = vmand (%p2847_p9), %vm3100_vm10, %vm2876_vm11 }
 0x2dc   : >> { %1956 = vmatpush.xpose.msk.msra.mxu3 (%p2847_p9), %vm734_vm15, %v2402_v2 }
 0x2dd   : >> { %1940 = vmatpush.xpose.msk.msra.mxu2 (%p2847_p9), %vm718_vm14, %v2402_v2  ;;  %1774 = vmatpush.xpose.msk.msra.mxu0 (%p2847_p9), %vm718_vm14, %v2402_v2  ;;  %vm3119_vm14 = vcmp.eq.s32.totalorder (%p2847_p9), %v2863_v60, %v645_v42  ;;  %v807_v42 = vld [vmem:[#allocation2 + $0x68] sm:$0xff] (%p2847_p9) }
 0x2de   : >> { %1790 = vmatpush.xpose.msk.msra.mxu1 (%p2847_p9), %vm734_vm15, %v2402_v2  ;;  %vm3126_vm15 = vcmp.eq.s32.totalorder (%p2847_p9), %v2863_v60, %v661_v43  ;;  %vm714_vm1 = vmand (%p2847_p9), %vm3119_vm14, %vm2876_vm11 }
 0x2df   : >> { %vm730_vm0 = vmand (%p2847_p9), %vm3126_vm15, %vm2876_vm11 }
 0x2e0   : >> { %1957 = vmatpush.xpose.msk.msra.mxu3 (%p2847_p9), %vm733_vm3, %v2402_v2 }
 0x2e1   : >> { %1941 = vmatpush.xpose.msk.msra.mxu2 (%p2847_p9), %vm717_vm2, %v2402_v2  ;;  %1775 = vmatpush.xpose.msk.msra.mxu0 (%p2847_p9), %vm717_vm2, %v2402_v2  ;;  %vm3145_vm2 = vcmp.eq.s32.totalorder (%p2847_p9), %v2863_v60, %v644_v54 }
 0x2e2   : >> { %1791 = vmatpush.xpose.msk.msra.mxu1 (%p2847_p9), %vm733_vm3, %v2402_v2  ;;  %vm3152_vm3 = vcmp.eq.s32.totalorder (%p2847_p9), %v2863_v60, %v660_v63  ;;  %vm713_vm4 = vmand (%p2847_p9), %vm3145_vm2, %vm2876_vm11  ;;  %v811_v63 = vld [vmem:[#allocation2 + $0xb8] sm:$0xff] (%p2847_p9) }
 0x2e3   : >> { %vm729_vm5 = vmand (%p2847_p9), %vm3152_vm3, %vm2876_vm11 }
 0x2e4   : >> { %1958 = vmatpush.xpose.msk.msra.mxu3 (%p2847_p9), %vm732_vm7, %v2402_v2 }
 0x2e5   : >> { %1942 = vmatpush.xpose.msk.msra.mxu2 (%p2847_p9), %vm716_vm6, %v2402_v2  ;;  %1776 = vmatpush.xpose.msk.msra.mxu0 (%p2847_p9), %vm716_vm6, %v2402_v2  ;;  %vm3171_vm6 = vcmp.eq.s32.totalorder (%p2847_p9), %v2863_v60, %v643_v7  ;;  %v808_v7 = vld [vmem:[#allocation2 + $0x30] sm:$0xff] (%p2847_p9) }
 0x2e6   : >> { %1792 = vmatpush.xpose.msk.msra.mxu1 (%p2847_p9), %vm732_vm7, %v2402_v2  ;;  %vm3178_vm7 = vcmp.eq.s32.totalorder (%p2847_p9), %v2863_v60, %v659_v10  ;;  %vm712_vm8 = vmand (%p2847_p9), %vm3171_vm6, %vm2876_vm11 }
 0x2e7   : >> { %vm728_vm10 = vmand (%p2847_p9), %vm3178_vm7, %vm2876_vm11 }
 0x2e8   : >> { %1959 = vmatpush.xpose.msk.msra.mxu3 (%p2847_p9), %vm731_vm13, %v2402_v2 }
 0x2e9   : >> { %1943 = vmatpush.xpose.msk.msra.mxu2 (%p2847_p9), %vm715_vm12, %v2402_v2  ;;  %1777 = vmatpush.xpose.msk.msra.mxu0 (%p2847_p9), %vm715_vm12, %v2402_v2  ;;  %vm3197_vm12 = vcmp.eq.s32.totalorder (%p2847_p9), %v2863_v60, %v642_v14 }
 0x2ea   : >> { %1793 = vmatpush.xpose.msk.msra.mxu1 (%p2847_p9), %vm731_vm13, %v2402_v2  ;;  %vm3204_vm13 = vcmp.eq.s32.totalorder (%p2847_p9), %v2863_v60, %v658_v15  ;;  %vm711_vm14 = vmand (%p2847_p9), %vm3197_vm12, %vm2876_vm11 }
 0x2eb   : >> { %vm727_vm15 = vmand (%p2847_p9), %vm3204_vm13, %vm2876_vm11 }
 0x2ec   : >> { %1960 = vmatpush.xpose.msk.msra.mxu3 (%p2847_p9), %vm730_vm0, %v2402_v2 }
 0x2ed   : >> { %1944 = vmatpush.xpose.msk.msra.mxu2 (%p2847_p9), %vm714_vm1, %v2402_v2  ;;  %1778 = vmatpush.xpose.msk.msra.mxu0 (%p2847_p9), %vm714_vm1, %v2402_v2  ;;  %vm674_vm1 = vcmp.eq.s32.totalorder (%p2847_p9), %v2863_v60, %v641_v13 }
 0x2ee   : >> { %1794 = vmatpush.xpose.msk.msra.mxu1 (%p2847_p9), %vm730_vm0, %v2402_v2  ;;  %vm3226_vm0 = vcmp.eq.s32.totalorder (%p2847_p9), %v2863_v60, %v657_v19  ;;  %vm710_vm2 = vmand (%p2847_p9), %vm674_vm1, %vm2876_vm11  ;;  %v813_v19 = vld [vmem:[#allocation2 + $0x8] sm:$0xff] (%p2847_p9) }
 0x2ef   : >> { %vm726_vm3 = vmand (%p2847_p9), %vm3226_vm0, %vm2876_vm11 }
 0x2f0   : >> { %1961 = vmatpush.xpose.msk.msra.mxu3 (%p2847_p9), %vm729_vm5, %v2402_v2 }
 0x2f1   : >> { %s2851_s9 = spop %2051  ;;  %1945 = vmatpush.xpose.msk.msra.mxu2 (%p2847_p9), %vm713_vm4, %v2402_v2  ;;  %1779 = vmatpush.xpose.msk.msra.mxu0 (%p2847_p9), %vm713_vm4, %v2402_v2  ;;  %vm673_vm4 = vcmp.eq.s32.totalorder (%p2847_p9), %v2863_v60, %v640_v39 }
 0x2f2   : >> { %1795 = vmatpush.xpose.msk.msra.mxu1 (%p2847_p9), %vm729_vm5, %v2402_v2  ;;  %vm689_vm5 = vcmp.eq.s32.totalorder (%p2847_p9), %v2863_v60, %v656_v40  ;;  %vm709_vm6 = vmand (%p2847_p9), %vm673_vm4, %vm2876_vm11  ;;  %v3257_v60 = vld [vmem:[%s634_s12] sm:$0xff] (%p2847_p9)  ;;  %p1800_p10 = scmp.le.s32.totalorder (%p2847_p9), %s2851_s9, 0 }
 0x2f3   : >> { %vm725_vm7 = vmand (%p2847_p9), %vm689_vm5, %vm2876_vm11 }
 0x2f4   : >> { %1962 = vmatpush.xpose.msk.msra.mxu3 (%p2847_p9), %vm728_vm10, %v2402_v2 }
 0x2f5   : >> { %1946 = vmatpush.xpose.msk.msra.mxu2 (%p2847_p9), %vm712_vm8, %v2402_v2  ;;  %1780 = vmatpush.xpose.msk.msra.mxu0 (%p2847_p9), %vm712_vm8, %v2402_v2 }
 0x2f6   : >> { %1796 = vmatpush.xpose.msk.msra.mxu1 (%p2847_p9), %vm728_vm10, %v2402_v2 }
 0x2f8   : >> { %1963 = vmatpush.xpose.msk.msra.mxu3 (%p2847_p9), %vm727_vm15, %v2402_v2 }
 0x2f9   : >> { %s2853_s27 = spop %2053  ;;  %1947 = vmatpush.xpose.msk.msra.mxu2 (%p2847_p9), %vm711_vm14, %v2402_v2  ;;  %1781 = vmatpush.xpose.msk.msra.mxu0 (%p2847_p9), %vm711_vm14, %v2402_v2 }
 0x2fa   : >> { %1797 = vmatpush.xpose.msk.msra.mxu1 (%p2847_p9), %vm727_vm15, %v2402_v2 }
 0x2fc   : >> { %1964 = vmatpush.xpose.msk.msra.mxu3 (%p2847_p9), %vm726_vm3, %v2402_v2 }
 0x2fd   : >> { %632 = sbr.rel (!%p2847_p9) target bundleno = 1348 (0x544), region = 67  ;;  %1948 = vmatpush.xpose.msk.msra.mxu2 (%p2847_p9), %vm710_vm2, %v2402_v2  ;;  %1782 = vmatpush.xpose.msk.msra.mxu0 (%p2847_p9), %vm710_vm2, %v2402_v2 }
 0x2fe   : >> { %1798 = vmatpush.xpose.msk.msra.mxu1 (%p2847_p9), %vm726_vm3, %v2402_v2 }
 0x300   : >> { %1965 = vmatpush.xpose.msk.msra.mxu3 (%p2847_p9), %vm725_vm7, %v2402_v2 }
 0x301   : >> { %s2855_s30 = spop %2055  ;;  %1949 = vmatpush.xpose.msk.msra.mxu2 (%p2847_p9), %vm709_vm6, %v2402_v2  ;;  %1783 = vmatpush.xpose.msk.msra.mxu0 (%p2847_p9), %vm709_vm6, %v2402_v2 }
 0x302   : >> { %1799 = vmatpush.xpose.msk.msra.mxu1 %vm725_vm7, %v2402_v2  ;;  %v806_v2 = vld [vmem:[#allocation2 + $0xa8] sm:$0xff] }
 0x303   : >> { %865 = vmatmul.f32.vlgmr.msra.gmra.mxu3 %v3254_v57 }
 0x304   : >> { %836 = vmatmul.f32.vlgmr.msra.gmra.mxu2 %v3254_v57  ;;  %830 = vmatmul.f32.vlgmr.msra.gmra.mxu0 %v3257_v60 }
 0x305   : >> { %859 = vmatmul.f32.vlgmr.msra.gmra.mxu1 %v3257_v60 }
 0x30b   : >> { %868 = vmatmul.f32.gmra.mxu3 %v3265_v55 }
 0x30c   : >> { %839 = vmatmul.f32.gmra.mxu2 %v3265_v55  ;;  %833 = vmatmul.f32.gmra.mxu0 %v3267_v41 }
 0x30d   : >> { %862 = vmatmul.f32.gmra.mxu1 %v3267_v41 }
 0x381   : >> { %v831_v38 = vpop.f32.mrf.mxu0 }
 0x382   : >> { %v872_v43 = vadd.f32 %v831_v38, %v806_v2  ;;  %v860_v9 = vpop.f32.mrf.mxu1 }
 0x383   : >> { %v873_v54 = vadd.f32 %v860_v9, %v807_v42 }
 0x384   : >> { %880 = vst [vmem:[#allocation2 + $0xa8] sm:$0xff] %v872_v43 }
 0x385   : >> { %881 = vst [vmem:[#allocation2 + $0x68] sm:$0xff] %v873_v54 }
 0x386   : >> { %v866_v10 = vpop.f32.mrf.mxu3 }
 0x387   : >> { %v837_v6 = vpop.f32.mrf.mxu2  ;;  %v877_v14 = vadd.f32 %v866_v10, %v811_v63 }
 0x388   : >> { %v876_v8 = vadd.f32 %v837_v6, %v810_v56 }
 0x389   : >> { %v834_v16 = vpop.f32.mrf.mxu0  ;;  %885 = vst [vmem:[#allocation2 + $0xb8] sm:$0xff] %v877_v14 }
 0x38a   : >> { %884 = vst [vmem:[#allocation2 + $0x80] sm:$0xff] %v876_v8  ;;  %v874_v15 = vadd.f32 %v834_v16, %v808_v7  ;;  %v863_v17 = vpop.f32.mrf.mxu1 }
 0x38b   : >> { %v875_v13 = vadd.f32 %v863_v17, %v809_v11 }
 0x38c   : >> { %882 = vst [vmem:[#allocation2 + $0x30] sm:$0xff] %v874_v15 }
 0x38d   : >> { %883 = vst [vmem:[#allocation2 + $0x58] sm:$0xff] %v875_v13 }
 0x38e   : >> { %v869_v40 = vpop.f32.mrf.mxu3  ;;  %891 = sbr.rel (%p1800_p10) target bundleno = 1128 (0x468), region = 71 }
 0x38f   : >> { %v840_v39 = vpop.f32.mrf.mxu2  ;;  %v879_v2 = vadd.f32 %v869_v40, %v813_v19 }
 0x390   : >> { %v878_v12 = vadd.f32 %v840_v39, %v812_v18 }
 0x391   : >> { %887 = vst [vmem:[#allocation2 + $0x8] sm:$0xff] %v879_v2 }
 0x392   : >> { %886 = vst [vmem:[#allocation2 + $0x20] sm:$0xff] %v878_v12 }
 0x393   : >> { %v3275_v42 = vstv %s2384_s22  ;;  %v3278_v38 = vperm.slane %v2827_v48, 0  ;;  %vm958_vm11 = vcmp.gt.s32.totalorder %v2827_v48, 0  ;;  %v2403_v9 = vmov 0   ;;  %v1061_v11 = vld [vmem:[#allocation2 + $0x48] sm:$0xff]  ;;  %v1064_v19 = vld [vmem:[#allocation2 + $0x40] sm:$0xff] }
 0x394   : >> { %v908_v43 = vsub.s32 %v2590_v21, %v3275_v42  ;;  %v959_v54 = vsel %vm958_vm11, 1, %v2403_v9  ;;  %v924_v56 = vsub.s32 %v2623_v37, %v3275_v42  ;;  %v907_v6 = vsub.s32 %v2632_v44, %v3275_v42 }
 0x395   : >> { %v960_v63 = vperm.slane %v959_v54, 0  ;;  %v923_v7 = vsub.s32 %v2621_v36, %v3275_v42  ;;  %v906_v10 = vsub.s32 %v2635_v45, %v3275_v42  ;;  %v922_v14 = vsub.s32 %v2619_v35, %v3275_v42 }
 0x396   : >> { %vm941_vm8 = vcmp.eq.s32.totalorder %v3278_v38, %v908_v43  ;;  %vm957_vm10 = vcmp.eq.s32.totalorder %v3278_v38, %v924_v56  ;;  %vm3296_vm13 = vcmp.eq.s32.totalorder %v3278_v38, %v907_v6  ;;  %v2404_v16 = vmov 1.0   ;;  %v1062_v56 = vld [vmem:[#allocation2 + $0x60] sm:$0xff] }
 0x397   : >> { %vm3291_vm12 = vcmp.eq.s32.totalorder %v960_v63, 1  ;;  %vm3305_vm15 = vcmp.eq.s32.totalorder %v3278_v38, %v923_v7  ;;  %vm3326_vm3 = vcmp.eq.s32.totalorder %v3278_v38, %v906_v10  ;;  %v905_v17 = vsub.s32 %v2638_v46, %v3275_v42 }
 0x398   : >> { %vm977_vm14 = vmand %vm941_vm8, %vm3291_vm12  ;;  %vm3333_vm4 = vcmp.eq.s32.totalorder %v3278_v38, %v922_v14  ;;  %v921_v18 = vsub.s32 %v2617_v34, %v3275_v42  ;;  %v904_v39 = vsub.s32 %v2641_v47, %v3275_v42  ;;  %v920_v40 = vsub.s32 %v2615_v33, %v3275_v42 }
 0x399   : >> { %1966 = vmatpush.xpose.msk.msra.mxu2 %vm977_vm14, %v2404_v16  ;;  %vm993_vm1 = vmand %vm957_vm10, %vm3291_vm12  ;;  %1833 = vmatpush.xpose.msk.msra.mxu0 %vm977_vm14, %v2404_v16  ;;  %vm3352_vm7 = vcmp.eq.s32.totalorder %v3278_v38, %v905_v17  ;;  %v903_v43 = vsub.s32 %v2647_v50, %v3275_v42  ;;  %v919_v54 = vsub.s32 %v2613_v32, %v3275_v42 }
 0x39a   : >> { %1982 = vmatpush.xpose.msk.msra.mxu3 %vm993_vm1, %v2404_v16  ;;  %vm976_vm0 = vmand %vm3296_vm13, %vm3291_vm12  ;;  %1849 = vmatpush.xpose.msk.msra.mxu1 %vm993_vm1, %v2404_v16  ;;  %vm3359_vm11 = vcmp.eq.s32.totalorder %v3278_v38, %v921_v18  ;;  %vm3378_vm13 = vcmp.eq.s32.totalorder %v3278_v38, %v904_v39  ;;  %vm3385_vm14 = vcmp.eq.s32.totalorder %v3278_v38, %v920_v40 }
 0x39b   : >> { %vm992_vm2 = vmand %vm3305_vm15, %vm3291_vm12  ;;  %v902_v63 = vsub.s32 %v2649_v51, %v3275_v42  ;;  %v918_v7 = vsub.s32 %v2611_v31, %v3275_v42  ;;  %v901_v10 = vsub.s32 %v2657_v52, %v3275_v42  ;;  %v917_v14 = vsub.s32 %v2609_v30, %v3275_v42 }
 0x39c   : >> { %vm975_vm5 = vmand %vm3326_vm3, %vm3291_vm12  ;;  %v900_v17 = vsub.s32 %v2659_v53, %v3275_v42  ;;  %v916_v18 = vsub.s32 %v2607_v29, %v3275_v42  ;;  %v899_v39 = vsub.s32 %v2681_v58, %v3275_v42  ;;  %v915_v40 = vsub.s32 %v2605_v28, %v3275_v42 }
 0x39d   : >> { %1967 = vmatpush.xpose.msk.msra.mxu2 %vm976_vm0, %v2404_v16  ;;  %1834 = vmatpush.xpose.msk.msra.mxu0 %vm976_vm0, %v2404_v16  ;;  %vm991_vm6 = vmand %vm3333_vm4, %vm3291_vm12  ;;  %vm3404_vm0 = vcmp.eq.s32.totalorder %v3278_v38, %v903_v43  ;;  %v898_v43 = vsub.s32 %v2683_v59, %v3275_v42  ;;  %v893_v2 = vsub.s32 %v2588_v20, %v3275_v42 }
 0x39e   : >> { %1983 = vmatpush.xpose.msk.msra.mxu3 %vm992_vm2, %v2404_v16  ;;  %1850 = vmatpush.xpose.msk.msra.mxu1 %vm992_vm2, %v2404_v16  ;;  %vm974_vm8 = vmand %vm3352_vm7, %vm3291_vm12  ;;  %vm3411_vm2 = vcmp.eq.s32.totalorder %v3278_v38, %v919_v54  ;;  %v914_v54 = vsub.s32 %v2603_v27, %v3275_v42 }
 0x39f   : >> { %vm990_vm10 = vmand %vm3359_vm11, %vm3291_vm12 }
 0x3a0   : >> { %vm973_vm15 = vmand %vm3378_vm13, %vm3291_vm12 }
 0x3a1   : >> { %1968 = vmatpush.xpose.msk.msra.mxu2 %vm975_vm5, %v2404_v16  ;;  %1835 = vmatpush.xpose.msk.msra.mxu0 %vm975_vm5, %v2404_v16  ;;  %vm989_vm1 = vmand %vm3385_vm14, %vm3291_vm12  ;;  %vm3430_vm5 = vcmp.eq.s32.totalorder %v3278_v38, %v902_v63  ;;  %v897_v63 = vsub.s32 %v2698_v1, %v3275_v42 }
 0x3a2   : >> { %1984 = vmatpush.xpose.msk.msra.mxu3 %vm991_vm6, %v2404_v16  ;;  %1851 = vmatpush.xpose.msk.msra.mxu1 %vm991_vm6, %v2404_v16  ;;  %vm972_vm3 = vmand %vm3404_vm0, %vm3291_vm12  ;;  %vm3437_vm6 = vcmp.eq.s32.totalorder %v3278_v38, %v918_v7  ;;  %v913_v7 = vsub.s32 %v2601_v26, %v3275_v42 }
 0x3a3   : >> { %vm988_vm4 = vmand %vm3411_vm2, %vm3291_vm12 }
 0x3a4   : >> { %vm971_vm7 = vmand %vm3430_vm5, %vm3291_vm12 }
 0x3a5   : >> { %1969 = vmatpush.xpose.msk.msra.mxu2 %vm974_vm8, %v2404_v16  ;;  %1836 = vmatpush.xpose.msk.msra.mxu0 %vm974_vm8, %v2404_v16  ;;  %vm987_vm11 = vmand %vm3437_vm6, %vm3291_vm12  ;;  %vm3456_vm8 = vcmp.eq.s32.totalorder %v3278_v38, %v901_v10  ;;  %v896_v10 = vsub.s32 %v2701_v3, %v3275_v42 }
 0x3a6   : >> { %1985 = vmatpush.xpose.msk.msra.mxu3 %vm990_vm10, %v2404_v16  ;;  %1852 = vmatpush.xpose.msk.msra.mxu1 %vm990_vm10, %v2404_v16  ;;  %vm3463_vm10 = vcmp.eq.s32.totalorder %v3278_v38, %v917_v14  ;;  %vm970_vm13 = vmand %vm3456_vm8, %vm3291_vm12  ;;  %v912_v14 = vsub.s32 %v2599_v25, %v3275_v42 }
 0x3a7   : >> { %vm986_vm14 = vmand %vm3463_vm10, %vm3291_vm12 }
 0x3a9   : >> { %1970 = vmatpush.xpose.msk.msra.mxu2 %vm973_vm15, %v2404_v16  ;;  %1837 = vmatpush.xpose.msk.msra.mxu0 %vm973_vm15, %v2404_v16  ;;  %vm3482_vm15 = vcmp.eq.s32.totalorder %v3278_v38, %v900_v17  ;;  %v895_v17 = vsub.s32 %v2709_v4, %v3275_v42 }
 0x3aa   : >> { %1986 = vmatpush.xpose.msk.msra.mxu3 %vm989_vm1, %v2404_v16  ;;  %1853 = vmatpush.xpose.msk.msra.mxu1 %vm989_vm1, %v2404_v16  ;;  %vm3489_vm1 = vcmp.eq.s32.totalorder %v3278_v38, %v916_v18  ;;  %vm969_vm0 = vmand %vm3482_vm15, %vm3291_vm12  ;;  %v911_v18 = vsub.s32 %v2597_v24, %v3275_v42 }
 0x3ab   : >> { %vm985_vm2 = vmand %vm3489_vm1, %vm3291_vm12 }
 0x3ad   : >> { %1971 = vmatpush.xpose.msk.msra.mxu2 %vm972_vm3, %v2404_v16  ;;  %1838 = vmatpush.xpose.msk.msra.mxu0 %vm972_vm3, %v2404_v16  ;;  %vm3508_vm3 = vcmp.eq.s32.totalorder %v3278_v38, %v899_v39  ;;  %v894_v39 = vsub.s32 %v2712_v5, %v3275_v42 }
 0x3ae   : >> { %1987 = vmatpush.xpose.msk.msra.mxu3 %vm988_vm4, %v2404_v16  ;;  %1854 = vmatpush.xpose.msk.msra.mxu1 %vm988_vm4, %v2404_v16  ;;  %vm3515_vm4 = vcmp.eq.s32.totalorder %v3278_v38, %v915_v40  ;;  %vm968_vm5 = vmand %vm3508_vm3, %vm3291_vm12  ;;  %v910_v40 = vsub.s32 %v2595_v23, %v3275_v42 }
 0x3af   : >> { %vm984_vm6 = vmand %vm3515_vm4, %vm3291_vm12 }
 0x3b1   : >> { %1972 = vmatpush.xpose.msk.msra.mxu2 %vm971_vm7, %v2404_v16  ;;  %1839 = vmatpush.xpose.msk.msra.mxu0 %vm971_vm7, %v2404_v16  ;;  %vm3534_vm7 = vcmp.eq.s32.totalorder %v3278_v38, %v898_v43  ;;  %v909_v43 = vsub.s32 %v2593_v22, %v3275_v42  ;;  %v1058_v42 = vld [vmem:[#allocation2 + $0xb0] sm:$0xff] }
 0x3b2   : >> { %1988 = vmatpush.xpose.msk.msra.mxu3 %vm987_vm11, %v2404_v16  ;;  %1855 = vmatpush.xpose.msk.msra.mxu1 %vm987_vm11, %v2404_v16  ;;  %vm3541_vm11 = vcmp.eq.s32.totalorder %v3278_v38, %v914_v54  ;;  %vm967_vm8 = vmand %vm3534_vm7, %vm3291_vm12 }
 0x3b3   : >> { %vm983_vm10 = vmand %vm3541_vm11, %vm3291_vm12 }
 0x3b5   : >> { %1973 = vmatpush.xpose.msk.msra.mxu2 %vm970_vm13, %v2404_v16  ;;  %1840 = vmatpush.xpose.msk.msra.mxu0 %vm970_vm13, %v2404_v16  ;;  %vm3560_vm13 = vcmp.eq.s32.totalorder %v3278_v38, %v897_v63  ;;  %v1063_v63 = vld [vmem:[#allocation2 + $0x28] sm:$0xff] }
 0x3b6   : >> { %1989 = vmatpush.xpose.msk.msra.mxu3 %vm986_vm14, %v2404_v16  ;;  %1856 = vmatpush.xpose.msk.msra.mxu1 %vm986_vm14, %v2404_v16  ;;  %vm3567_vm14 = vcmp.eq.s32.totalorder %v3278_v38, %v913_v7  ;;  %vm966_vm15 = vmand %vm3560_vm13, %vm3291_vm12  ;;  %v1060_v7 = vld [vmem:[#allocation2 + $0x10] sm:$0xff] }
 0x3b7   : >> { %vm982_vm1 = vmand %vm3567_vm14, %vm3291_vm12 }
 0x3b9   : >> { %1974 = vmatpush.xpose.msk.msra.mxu2 %vm969_vm0, %v2404_v16  ;;  %1841 = vmatpush.xpose.msk.msra.mxu0 %vm969_vm0, %v2404_v16  ;;  %vm3586_vm0 = vcmp.eq.s32.totalorder %v3278_v38, %v896_v10 }
 0x3ba   : >> { %1990 = vmatpush.xpose.msk.msra.mxu3 %vm985_vm2, %v2404_v16  ;;  %1857 = vmatpush.xpose.msk.msra.mxu1 %vm985_vm2, %v2404_v16  ;;  %vm3593_vm2 = vcmp.eq.s32.totalorder %v3278_v38, %v912_v14  ;;  %vm965_vm3 = vmand %vm3586_vm0, %vm3291_vm12 }
 0x3bb   : >> { %vm981_vm4 = vmand %vm3593_vm2, %vm3291_vm12 }
 0x3bd   : >> { %1975 = vmatpush.xpose.msk.msra.mxu2 %vm968_vm5, %v2404_v16  ;;  %1842 = vmatpush.xpose.msk.msra.mxu0 %vm968_vm5, %v2404_v16  ;;  %vm3612_vm5 = vcmp.eq.s32.totalorder %v3278_v38, %v895_v17 }
 0x3be   : >> { %1991 = vmatpush.xpose.msk.msra.mxu3 %vm984_vm6, %v2404_v16  ;;  %1858 = vmatpush.xpose.msk.msra.mxu1 %vm984_vm6, %v2404_v16  ;;  %vm3619_vm6 = vcmp.eq.s32.totalorder %v3278_v38, %v911_v18  ;;  %vm964_vm7 = vmand %vm3612_vm5, %vm3291_vm12 }
 0x3bf   : >> { %vm980_vm11 = vmand %vm3619_vm6, %vm3291_vm12 }
 0x3c1   : >> { %1976 = vmatpush.xpose.msk.msra.mxu2 %vm967_vm8, %v2404_v16  ;;  %1843 = vmatpush.xpose.msk.msra.mxu0 %vm967_vm8, %v2404_v16  ;;  %vm927_vm8 = vcmp.eq.s32.totalorder %v3278_v38, %v894_v39  ;;  %v1065_v39 = vld [vmem:[#allocation2 + $0x78] sm:$0xff] }
 0x3c2   : >> { %1992 = vmatpush.xpose.msk.msra.mxu3 %vm983_vm10, %v2404_v16  ;;  %1859 = vmatpush.xpose.msk.msra.mxu1 %vm983_vm10, %v2404_v16  ;;  %vm943_vm10 = vcmp.eq.s32.totalorder %v3278_v38, %v910_v40  ;;  %vm963_vm13 = vmand %vm927_vm8, %vm3291_vm12 }
 0x3c3   : >> { %vm979_vm14 = vmand %vm943_vm10, %vm3291_vm12 }
 0x3c5   : >> { %1977 = vmatpush.xpose.msk.msra.mxu2 %vm966_vm15, %v2404_v16  ;;  %1844 = vmatpush.xpose.msk.msra.mxu0 %vm966_vm15, %v2404_v16  ;;  %vm926_vm15 = vcmp.eq.s32.totalorder %v3278_v38, %v893_v2 }
 0x3c6   : >> { %1993 = vmatpush.xpose.msk.msra.mxu3 %vm982_vm1, %v2404_v16  ;;  %1860 = vmatpush.xpose.msk.msra.mxu1 %vm982_vm1, %v2404_v16  ;;  %vm942_vm1 = vcmp.eq.s32.totalorder %v3278_v38, %v909_v43  ;;  %vm962_vm0 = vmand %vm926_vm15, %vm3291_vm12  ;;  %v1059_v38 = vld [vmem:[#allocation2] sm:$0xff] }
 0x3c7   : >> { %vm978_vm2 = vmand %vm942_vm1, %vm3291_vm12 }
 0x3c9   : >> { %1978 = vmatpush.xpose.msk.msra.mxu2 %vm965_vm3, %v2404_v16  ;;  %1845 = vmatpush.xpose.msk.msra.mxu0 %vm965_vm3, %v2404_v16 }
 0x3ca   : >> { %1994 = vmatpush.xpose.msk.msra.mxu3 %vm981_vm4, %v2404_v16  ;;  %1861 = vmatpush.xpose.msk.msra.mxu1 %vm981_vm4, %v2404_v16 }
 0x3cd   : >> { %1979 = vmatpush.xpose.msk.msra.mxu2 %vm964_vm7, %v2404_v16  ;;  %1846 = vmatpush.xpose.msk.msra.mxu0 %vm964_vm7, %v2404_v16 }
 0x3ce   : >> { %1995 = vmatpush.xpose.msk.msra.mxu3 %vm980_vm11, %v2404_v16  ;;  %1862 = vmatpush.xpose.msk.msra.mxu1 %vm980_vm11, %v2404_v16 }
 0x3d1   : >> { %1980 = vmatpush.xpose.msk.msra.mxu2 %vm963_vm13, %v2404_v16  ;;  %1847 = vmatpush.xpose.msk.msra.mxu0 %vm963_vm13, %v2404_v16 }
 0x3d2   : >> { %1996 = vmatpush.xpose.msk.msra.mxu3 %vm979_vm14, %v2404_v16  ;;  %1863 = vmatpush.xpose.msk.msra.mxu1 %vm979_vm14, %v2404_v16 }
 0x3d5   : >> { %1981 = vmatpush.xpose.msk.msra.mxu2 %vm962_vm0, %v2404_v16  ;;  %1848 = vmatpush.xpose.msk.msra.mxu0 %vm962_vm0, %v2404_v16 }
 0x3d6   : >> { %1997 = vmatpush.xpose.msk.msra.mxu3 %vm978_vm2, %v2404_v16  ;;  %1864 = vmatpush.xpose.msk.msra.mxu1 %vm978_vm2, %v2404_v16 }
 0x3d8   : >> { %1088 = vmatmul.f32.vlgmr.msra.gmra.mxu2 %v3254_v57  ;;  %1082 = vmatmul.f32.vlgmr.msra.gmra.mxu0 %v3257_v60 }
 0x3d9   : >> { %1117 = vmatmul.f32.vlgmr.msra.gmra.mxu3 %v3254_v57  ;;  %1111 = vmatmul.f32.vlgmr.msra.gmra.mxu1 %v3257_v60 }
 0x3e0   : >> { %1091 = vmatmul.f32.gmra.mxu2 %v3265_v55  ;;  %1085 = vmatmul.f32.gmra.mxu0 %v3267_v41 }
 0x3e1   : >> { %1120 = vmatmul.f32.gmra.mxu3 %v3265_v55  ;;  %1114 = vmatmul.f32.gmra.mxu1 %v3267_v41 }
 0x455   : >> { %v1083_v48 = vpop.f32.mrf.mxu0 }
 0x456   : >> { %v1124_v16 = vadd.f32 %v1083_v48, %v1058_v42  ;;  %v1112_v9 = vpop.f32.mrf.mxu1 }
 0x457   : >> { %v1125_v54 = vadd.f32 %v1112_v9, %v1059_v38 }
 0x458   : >> { %1132 = vst [vmem:[#allocation2 + $0xb0] sm:$0xff] %v1124_v16 }
 0x459   : >> { %1133 = vst [vmem:[#allocation2] sm:$0xff] %v1125_v54 }
 0x45b   : >> { %v1089_v6 = vpop.f32.mrf.mxu2 }
 0x45c   : >> { %v1128_v8 = vadd.f32 %v1089_v6, %v1062_v56  ;;  %v1118_v10 = vpop.f32.mrf.mxu3 }
 0x45d   : >> { %v1129_v14 = vadd.f32 %v1118_v10, %v1063_v63  ;;  %v1086_v15 = vpop.f32.mrf.mxu0 }
 0x45e   : >> { %1136 = vst [vmem:[#allocation2 + $0x60] sm:$0xff] %v1128_v8  ;;  %v1126_v17 = vadd.f32 %v1086_v15, %v1060_v7  ;;  %v1115_v13 = vpop.f32.mrf.mxu1 }
 0x45f   : >> { %1137 = vst [vmem:[#allocation2 + $0x28] sm:$0xff] %v1129_v14  ;;  %v1127_v18 = vadd.f32 %v1115_v13, %v1061_v11 }
 0x460   : >> { %1134 = vst [vmem:[#allocation2 + $0x10] sm:$0xff] %v1126_v17 }
 0x461   : >> { %1135 = vst [vmem:[#allocation2 + $0x48] sm:$0xff] %v1127_v18 }
 0x463   : >> { %v1092_v12 = vpop.f32.mrf.mxu2 }
 0x464   : >> { %v1130_v40 = vadd.f32 %v1092_v12, %v1064_v19  ;;  %v1121_v2 = vpop.f32.mrf.mxu3 }
 0x465   : >> { %v1131_v43 = vadd.f32 %v1121_v2, %v1065_v39 }
 0x466   : >> { %1138 = vst [vmem:[#allocation2 + $0x40] sm:$0xff] %v1130_v40 }
 0x467   : >> { %1139 = vst [vmem:[#allocation2 + $0x78] sm:$0xff] %v1131_v43 }
 0x468 PF: >> { %p1865_p11 = scmp.le.s32.totalorder %s2853_s27, 0 }
 0x46a   : >> { %1143 = sbr.rel (%p1865_p11) target bundleno = 1348 (0x544), region = 75 }
 0x46f   : >> { %v3675_v42 = vstv %s2380_s20  ;;  %v3678_v38 = vperm.slane %v2830_v49, 0  ;;  %vm1210_vm12 = vcmp.gt.s32.totalorder %v2830_v49, 0  ;;  %v2405_v16 = vmov 0  }
 0x470   : >> { %v1160_v48 = vsub.s32 %v2590_v21, %v3675_v42  ;;  %v1211_v9 = vsel %vm1210_vm12, 1, %v2405_v16  ;;  %v1176_v54 = vsub.s32 %v2623_v37, %v3675_v42  ;;  %v1159_v63 = vsub.s32 %v2632_v44, %v3675_v42 }
 0x471   : >> { %v1212_v56 = vperm.slane %v1211_v9, 0  ;;  %v1175_v6 = vsub.s32 %v2621_v36, %v3675_v42  ;;  %v1158_v8 = vsub.s32 %v2635_v45, %v3675_v42  ;;  %v1174_v11 = vsub.s32 %v2619_v35, %v3675_v42 }
 0x472   : >> { %vm1193_vm3 = vcmp.eq.s32.totalorder %v3678_v38, %v1160_v48  ;;  %vm1209_vm4 = vcmp.eq.s32.totalorder %v3678_v38, %v1176_v54  ;;  %vm3696_vm6 = vcmp.eq.s32.totalorder %v3678_v38, %v1159_v63  ;;  %v2406_v14 = vmov 1.0  }
 0x473   : >> { %vm3691_vm5 = vcmp.eq.s32.totalorder %v1212_v56, 1  ;;  %vm3705_vm11 = vcmp.eq.s32.totalorder %v3678_v38, %v1175_v6  ;;  %vm3726_vm14 = vcmp.eq.s32.totalorder %v3678_v38, %v1158_v8  ;;  %v1157_v17 = vsub.s32 %v2638_v46, %v3675_v42 }
 0x474   : >> { %vm1229_vm7 = vmand %vm1193_vm3, %vm3691_vm5  ;;  %vm3733_vm15 = vcmp.eq.s32.totalorder %v3678_v38, %v1174_v11  ;;  %v1173_v18 = vsub.s32 %v2617_v34, %v3675_v42  ;;  %v1156_v39 = vsub.s32 %v2641_v47, %v3675_v42  ;;  %v1172_v40 = vsub.s32 %v2615_v33, %v3675_v42 }
 0x475   : >> { %1998 = vmatpush.xpose.msk.msra.mxu2 %vm1229_vm7, %v2406_v14  ;;  %vm1245_vm8 = vmand %vm1209_vm4, %vm3691_vm5  ;;  %1898 = vmatpush.xpose.msk.msra.mxu0 %vm1229_vm7, %v2406_v14  ;;  %vm3752_vm2 = vcmp.eq.s32.totalorder %v3678_v38, %v1157_v17  ;;  %v1155_v43 = vsub.s32 %v2647_v50, %v3675_v42  ;;  %v1171_v16 = vsub.s32 %v2613_v32, %v3675_v42 }
 0x476   : >> { %2014 = vmatpush.xpose.msk.msra.mxu3 %vm1245_vm8, %v2406_v14  ;;  %vm1228_vm10 = vmand %vm3696_vm6, %vm3691_vm5  ;;  %1914 = vmatpush.xpose.msk.msra.mxu1 %vm1245_vm8, %v2406_v14  ;;  %vm3759_vm12 = vcmp.eq.s32.totalorder %v3678_v38, %v1173_v18  ;;  %vm3778_vm6 = vcmp.eq.s32.totalorder %v3678_v38, %v1156_v39  ;;  %vm3785_vm7 = vcmp.eq.s32.totalorder %v3678_v38, %v1172_v40 }
 0x477   : >> { %vm1244_vm13 = vmand %vm3705_vm11, %vm3691_vm5  ;;  %v1154_v54 = vsub.s32 %v2649_v51, %v3675_v42  ;;  %v1170_v63 = vsub.s32 %v2611_v31, %v3675_v42  ;;  %v1153_v7 = vsub.s32 %v2657_v52, %v3675_v42  ;;  %v1169_v10 = vsub.s32 %v2609_v30, %v3675_v42 }
 0x478   : >> { %vm1227_vm1 = vmand %vm3726_vm14, %vm3691_vm5  ;;  %v1152_v15 = vsub.s32 %v2659_v53, %v3675_v42  ;;  %v1168_v13 = vsub.s32 %v2607_v29, %v3675_v42  ;;  %v1151_v19 = vsub.s32 %v2681_v58, %v3675_v42  ;;  %v1167_v12 = vsub.s32 %v2605_v28, %v3675_v42 }
 0x479   : >> { %1999 = vmatpush.xpose.msk.msra.mxu2 %vm1228_vm10, %v2406_v14  ;;  %1899 = vmatpush.xpose.msk.msra.mxu0 %vm1228_vm10, %v2406_v14  ;;  %vm1243_vm0 = vmand %vm3733_vm15, %vm3691_vm5  ;;  %vm3804_vm10 = vcmp.eq.s32.totalorder %v3678_v38, %v1155_v43  ;;  %v1150_v2 = vsub.s32 %v2683_v59, %v3675_v42  ;;  %v1166_v48 = vsub.s32 %v2603_v27, %v3675_v42 }
 0x47a   : >> { %2015 = vmatpush.xpose.msk.msra.mxu3 %vm1244_vm13, %v2406_v14  ;;  %1915 = vmatpush.xpose.msk.msra.mxu1 %vm1244_vm13, %v2406_v14  ;;  %vm1226_vm3 = vmand %vm3752_vm2, %vm3691_vm5  ;;  %vm3811_vm13 = vcmp.eq.s32.totalorder %v3678_v38, %v1171_v16  ;;  %v1149_v9 = vsub.s32 %v2698_v1, %v3675_v42  ;;  %v1165_v56 = vsub.s32 %v2601_v26, %v3675_v42 }
 0x47b   : >> { %vm1242_vm4 = vmand %vm3759_vm12, %vm3691_vm5  ;;  %v1148_v6 = vsub.s32 %v2701_v3, %v3675_v42  ;;  %v1164_v8 = vsub.s32 %v2599_v25, %v3675_v42  ;;  %v1147_v11 = vsub.s32 %v2709_v4, %v3675_v42  ;;  %v1163_v17 = vsub.s32 %v2597_v24, %v3675_v42 }
 0x47c   : >> { %vm1225_vm11 = vmand %vm3778_vm6, %vm3691_vm5  ;;  %v1146_v18 = vsub.s32 %v2712_v5, %v3675_v42  ;;  %v1162_v39 = vsub.s32 %v2595_v23, %v3675_v42  ;;  %v1161_v40 = vsub.s32 %v2593_v22, %v3675_v42 }
 0x47d   : >> { %2000 = vmatpush.xpose.msk.msra.mxu2 %vm1227_vm1, %v2406_v14  ;;  %1900 = vmatpush.xpose.msk.msra.mxu0 %vm1227_vm1, %v2406_v14  ;;  %vm1241_vm8 = vmand %vm3785_vm7, %vm3691_vm5  ;;  %vm3830_vm1 = vcmp.eq.s32.totalorder %v3678_v38, %v1154_v54 }
 0x47e   : >> { %2016 = vmatpush.xpose.msk.msra.mxu3 %vm1243_vm0, %v2406_v14  ;;  %1916 = vmatpush.xpose.msk.msra.mxu1 %vm1243_vm0, %v2406_v14  ;;  %vm1224_vm14 = vmand %vm3804_vm10, %vm3691_vm5  ;;  %vm3837_vm0 = vcmp.eq.s32.totalorder %v3678_v38, %v1170_v63 }
 0x47f   : >> { %vm1240_vm15 = vmand %vm3811_vm13, %vm3691_vm5 }
 0x480   : >> { %vm1223_vm2 = vmand %vm3830_vm1, %vm3691_vm5 }
 0x481   : >> { %2001 = vmatpush.xpose.msk.msra.mxu2 %vm1226_vm3, %v2406_v14  ;;  %1901 = vmatpush.xpose.msk.msra.mxu0 %vm1226_vm3, %v2406_v14  ;;  %vm1239_vm12 = vmand %vm3837_vm0, %vm3691_vm5  ;;  %vm3856_vm3 = vcmp.eq.s32.totalorder %v3678_v38, %v1153_v7 }
 0x482   : >> { %2017 = vmatpush.xpose.msk.msra.mxu3 %vm1242_vm4, %v2406_v14  ;;  %1917 = vmatpush.xpose.msk.msra.mxu1 %vm1242_vm4, %v2406_v14  ;;  %vm3863_vm4 = vcmp.eq.s32.totalorder %v3678_v38, %v1169_v10  ;;  %vm1222_vm6 = vmand %vm3856_vm3, %vm3691_vm5  ;;  %v1318_v10 = vld [vmem:[#allocation2 + $0xa0] sm:$0xff] }
 0x483   : >> { %vm1238_vm7 = vmand %vm3863_vm4, %vm3691_vm5 }
 0x485   : >> { %2002 = vmatpush.xpose.msk.msra.mxu2 %vm1225_vm11, %v2406_v14  ;;  %1902 = vmatpush.xpose.msk.msra.mxu0 %vm1225_vm11, %v2406_v14  ;;  %vm3882_vm11 = vcmp.eq.s32.totalorder %v3678_v38, %v1152_v15 }
 0x486   : >> { %2018 = vmatpush.xpose.msk.msra.mxu3 %vm1241_vm8, %v2406_v14  ;;  %1918 = vmatpush.xpose.msk.msra.mxu1 %vm1241_vm8, %v2406_v14  ;;  %vm3889_vm8 = vcmp.eq.s32.totalorder %v3678_v38, %v1168_v13  ;;  %vm1221_vm10 = vmand %vm3882_vm11, %vm3691_vm5 }
 0x487   : >> { %vm1237_vm13 = vmand %vm3889_vm8, %vm3691_vm5 }
 0x489   : >> { %2003 = vmatpush.xpose.msk.msra.mxu2 %vm1224_vm14, %v2406_v14  ;;  %1903 = vmatpush.xpose.msk.msra.mxu0 %vm1224_vm14, %v2406_v14  ;;  %vm3908_vm14 = vcmp.eq.s32.totalorder %v3678_v38, %v1151_v19 }
 0x48a   : >> { %2019 = vmatpush.xpose.msk.msra.mxu3 %vm1240_vm15, %v2406_v14  ;;  %1919 = vmatpush.xpose.msk.msra.mxu1 %vm1240_vm15, %v2406_v14  ;;  %vm3915_vm15 = vcmp.eq.s32.totalorder %v3678_v38, %v1167_v12  ;;  %vm1220_vm1 = vmand %vm3908_vm14, %vm3691_vm5  ;;  %v1145_v12 = vsub.s32 %v2588_v20, %v3675_v42  ;;  %v1311_v42 = vld [vmem:[#allocation2 + $0x88] sm:$0xff] }
 0x48b   : >> { %vm1236_vm0 = vmand %vm3915_vm15, %vm3691_vm5 }
 0x48d   : >> { %2004 = vmatpush.xpose.msk.msra.mxu2 %vm1223_vm2, %v2406_v14  ;;  %1904 = vmatpush.xpose.msk.msra.mxu0 %vm1223_vm2, %v2406_v14  ;;  %vm3934_vm2 = vcmp.eq.s32.totalorder %v3678_v38, %v1150_v2 }
 0x48e   : >> { %2020 = vmatpush.xpose.msk.msra.mxu3 %vm1239_vm12, %v2406_v14  ;;  %1920 = vmatpush.xpose.msk.msra.mxu1 %vm1239_vm12, %v2406_v14  ;;  %vm3941_vm12 = vcmp.eq.s32.totalorder %v3678_v38, %v1166_v48  ;;  %vm1219_vm3 = vmand %vm3934_vm2, %vm3691_vm5  ;;  %v1315_v48 = vld [vmem:[#allocation2 + $0x38] sm:$0xff] }
 0x48f   : >> { %vm1235_vm4 = vmand %vm3941_vm12, %vm3691_vm5 }
 0x491   : >> { %2005 = vmatpush.xpose.msk.msra.mxu2 %vm1222_vm6, %v2406_v14  ;;  %1905 = vmatpush.xpose.msk.msra.mxu0 %vm1222_vm6, %v2406_v14  ;;  %vm3960_vm6 = vcmp.eq.s32.totalorder %v3678_v38, %v1149_v9 }
 0x492   : >> { %2021 = vmatpush.xpose.msk.msra.mxu3 %vm1238_vm7, %v2406_v14  ;;  %1921 = vmatpush.xpose.msk.msra.mxu1 %vm1238_vm7, %v2406_v14  ;;  %vm3967_vm7 = vcmp.eq.s32.totalorder %v3678_v38, %v1165_v56  ;;  %vm1218_vm11 = vmand %vm3960_vm6, %vm3691_vm5  ;;  %v1314_v56 = vld [vmem:[#allocation2 + $0x98] sm:$0xff] }
 0x493   : >> { %vm1234_vm8 = vmand %vm3967_vm7, %vm3691_vm5 }
 0x495   : >> { %2006 = vmatpush.xpose.msk.msra.mxu2 %vm1221_vm10, %v2406_v14  ;;  %1906 = vmatpush.xpose.msk.msra.mxu0 %vm1221_vm10, %v2406_v14  ;;  %vm3986_vm10 = vcmp.eq.s32.totalorder %v3678_v38, %v1148_v6 }
 0x496   : >> { %2022 = vmatpush.xpose.msk.msra.mxu3 %vm1237_vm13, %v2406_v14  ;;  %1922 = vmatpush.xpose.msk.msra.mxu1 %vm1237_vm13, %v2406_v14  ;;  %vm3993_vm13 = vcmp.eq.s32.totalorder %v3678_v38, %v1164_v8  ;;  %vm1217_vm14 = vmand %vm3986_vm10, %vm3691_vm5  ;;  %v1317_v8 = vld [vmem:[#allocation2 + $0x70] sm:$0xff] }
 0x497   : >> { %vm1233_vm15 = vmand %vm3993_vm13, %vm3691_vm5 }
 0x499   : >> { %2007 = vmatpush.xpose.msk.msra.mxu2 %vm1220_vm1, %v2406_v14  ;;  %1907 = vmatpush.xpose.msk.msra.mxu0 %vm1220_vm1, %v2406_v14  ;;  %vm4012_vm1 = vcmp.eq.s32.totalorder %v3678_v38, %v1147_v11 }
 0x49a   : >> { %2023 = vmatpush.xpose.msk.msra.mxu3 %vm1236_vm0, %v2406_v14  ;;  %1923 = vmatpush.xpose.msk.msra.mxu1 %vm1236_vm0, %v2406_v14  ;;  %vm4019_vm0 = vcmp.eq.s32.totalorder %v3678_v38, %v1163_v17  ;;  %vm1216_vm2 = vmand %vm4012_vm1, %vm3691_vm5 }
 0x49b   : >> { %vm1232_vm12 = vmand %vm4019_vm0, %vm3691_vm5 }
 0x49d   : >> { %2008 = vmatpush.xpose.msk.msra.mxu2 %vm1219_vm3, %v2406_v14  ;;  %1908 = vmatpush.xpose.msk.msra.mxu0 %vm1219_vm3, %v2406_v14  ;;  %vm1179_vm3 = vcmp.eq.s32.totalorder %v3678_v38, %v1146_v18 }
 0x49e   : >> { %2024 = vmatpush.xpose.msk.msra.mxu3 %vm1235_vm4, %v2406_v14  ;;  %1924 = vmatpush.xpose.msk.msra.mxu1 %vm1235_vm4, %v2406_v14  ;;  %vm1195_vm4 = vcmp.eq.s32.totalorder %v3678_v38, %v1162_v39  ;;  %vm1215_vm6 = vmand %vm1179_vm3, %vm3691_vm5 }
 0x49f   : >> { %vm1231_vm7 = vmand %vm1195_vm4, %vm3691_vm5 }
 0x4a1   : >> { %2009 = vmatpush.xpose.msk.msra.mxu2 %vm1218_vm11, %v2406_v14  ;;  %1909 = vmatpush.xpose.msk.msra.mxu0 %vm1218_vm11, %v2406_v14  ;;  %vm1178_vm11 = vcmp.eq.s32.totalorder %v3678_v38, %v1145_v12 }
 0x4a2   : >> { %2025 = vmatpush.xpose.msk.msra.mxu3 %vm1234_vm8, %v2406_v14  ;;  %1925 = vmatpush.xpose.msk.msra.mxu1 %vm1234_vm8, %v2406_v14  ;;  %vm1194_vm8 = vcmp.eq.s32.totalorder %v3678_v38, %v1161_v40  ;;  %vm1214_vm10 = vmand %vm1178_vm11, %vm3691_vm5  ;;  %v1312_v38 = vld [vmem:[#allocation2 + $0x90] sm:$0xff] }
 0x4a3   : >> { %vm1230_vm13 = vmand %vm1194_vm8, %vm3691_vm5 }
 0x4a5   : >> { %2010 = vmatpush.xpose.msk.msra.mxu2 %vm1217_vm14, %v2406_v14  ;;  %1910 = vmatpush.xpose.msk.msra.mxu0 %vm1217_vm14, %v2406_v14 }
 0x4a6   : >> { %2026 = vmatpush.xpose.msk.msra.mxu3 %vm1233_vm15, %v2406_v14  ;;  %1926 = vmatpush.xpose.msk.msra.mxu1 %vm1233_vm15, %v2406_v14 }
 0x4a9   : >> { %2011 = vmatpush.xpose.msk.msra.mxu2 %vm1216_vm2, %v2406_v14  ;;  %1911 = vmatpush.xpose.msk.msra.mxu0 %vm1216_vm2, %v2406_v14 }
 0x4aa   : >> { %2027 = vmatpush.xpose.msk.msra.mxu3 %vm1232_vm12, %v2406_v14  ;;  %1927 = vmatpush.xpose.msk.msra.mxu1 %vm1232_vm12, %v2406_v14 }
 0x4ad   : >> { %2012 = vmatpush.xpose.msk.msra.mxu2 %vm1215_vm6, %v2406_v14  ;;  %1912 = vmatpush.xpose.msk.msra.mxu0 %vm1215_vm6, %v2406_v14 }
 0x4ae   : >> { %2028 = vmatpush.xpose.msk.msra.mxu3 %vm1231_vm7, %v2406_v14  ;;  %1928 = vmatpush.xpose.msk.msra.mxu1 %vm1231_vm7, %v2406_v14 }
 0x4b1   : >> { %2013 = vmatpush.xpose.msk.msra.mxu2 %vm1214_vm10, %v2406_v14  ;;  %1913 = vmatpush.xpose.msk.msra.mxu0 %vm1214_vm10, %v2406_v14 }
 0x4b2   : >> { %2029 = vmatpush.xpose.msk.msra.mxu3 %vm1230_vm13, %v2406_v14  ;;  %1929 = vmatpush.xpose.msk.msra.mxu1 %vm1230_vm13, %v2406_v14 }
 0x4b4   : >> { %1341 = vmatmul.f32.vlgmr.msra.gmra.mxu2 %v3254_v57  ;;  %1335 = vmatmul.f32.vlgmr.msra.gmra.mxu0 %v3257_v60 }
 0x4b5   : >> { %1370 = vmatmul.f32.vlgmr.msra.gmra.mxu3 %v3254_v57  ;;  %1364 = vmatmul.f32.vlgmr.msra.gmra.mxu1 %v3257_v60  ;;  %v1316_v57 = vld [vmem:[#allocation2 + $0x50] sm:$0xff]  ;;  %v1313_v60 = vld [vmem:[#allocation2 + $0x18] sm:$0xff] }
 0x4bc   : >> { %1344 = vmatmul.f32.gmra.mxu2 %v3265_v55  ;;  %1338 = vmatmul.f32.gmra.mxu0 %v3267_v41 }
 0x4bd   : >> { %1373 = vmatmul.f32.gmra.mxu3 %v3265_v55  ;;  %1367 = vmatmul.f32.gmra.mxu1 %v3267_v41 }
 0x531   : >> { %v1336_v49 = vpop.f32.mrf.mxu0 }
 0x532   : >> { %v1377_v14 = vadd.f32 %v1336_v49, %v1311_v42  ;;  %v1365_v2 = vpop.f32.mrf.mxu1 }
 0x533   : >> { %v1378_v43 = vadd.f32 %v1365_v2, %v1312_v38 }
 0x534   : >> { %1385 = vst [vmem:[#allocation2 + $0x88] sm:$0xff] %v1377_v14 }
 0x535   : >> { %1386 = vst [vmem:[#allocation2 + $0x90] sm:$0xff] %v1378_v43 }
 0x537   : >> { %v1342_v16 = vpop.f32.mrf.mxu2 }
 0x538   : >> { %v1381_v9 = vadd.f32 %v1342_v16, %v1315_v48  ;;  %v1371_v54 = vpop.f32.mrf.mxu3 }
 0x539   : >> { %v1382_v63 = vadd.f32 %v1371_v54, %v1316_v57  ;;  %v1339_v6 = vpop.f32.mrf.mxu0 }
 0x53a   : >> { %1389 = vst [vmem:[#allocation2 + $0x38] sm:$0xff] %v1381_v9  ;;  %v1379_v55 = vadd.f32 %v1339_v6, %v1313_v60  ;;  %v1368_v41 = vpop.f32.mrf.mxu1 }
 0x53b   : >> { %1390 = vst [vmem:[#allocation2 + $0x50] sm:$0xff] %v1382_v63  ;;  %v1380_v7 = vadd.f32 %v1368_v41, %v1314_v56 }
 0x53c   : >> { %1387 = vst [vmem:[#allocation2 + $0x18] sm:$0xff] %v1379_v55 }
 0x53d   : >> { %1388 = vst [vmem:[#allocation2 + $0x98] sm:$0xff] %v1380_v7 }
 0x53f   : >> { %v1345_v11 = vpop.f32.mrf.mxu2 }
 0x540   : >> { %v1383_v15 = vadd.f32 %v1345_v11, %v1317_v8  ;;  %v1374_v17 = vpop.f32.mrf.mxu3 }
 0x541   : >> { %v1384_v13 = vadd.f32 %v1374_v17, %v1318_v10 }
 0x542   : >> { %1391 = vst [vmem:[#allocation2 + $0x70] sm:$0xff] %v1383_v15 }
 0x543   : >> { %1392 = vst [vmem:[#allocation2 + $0xa0] sm:$0xff] %v1384_v13 }
 0x544 PF: >> { %s1393_s22 = sadd.s32 %s2384_s22, %s2851_s9   ;;  %s1394_s20 = sadd.s32 %s2380_s20, %s2853_s27  }
 0x545   : >> { %s1395_s14 = sadd.s32 %s2376_s14, %s2855_s30   ;;  %s539_s23 = sadd.s32 1, %s2388_s23  }
 0x546   : >> { %p536_p12 = scmp.ge.s32.totalorder %s539_s23, 8  }
 0x547   : > { %v1396_v18 = vld [vmem:[#allocation2 + $0xb0] sm:$0xff] (%p536_p12)  ;;  %v1397_v19 = vld [vmem:[#allocation2] sm:$0xff] (%p536_p12)  ;;  %v1399_v12 = vld [vmem:[#allocation2 + $0x48] sm:$0xff] (%p536_p12)  ;;  %s1499_s13 = scvt.s32.f32 (%p536_p12), %s4322_s11  ;;  %vm1517_vm2 = vcmp.eq.s32.totalorder (%p536_p12), %v2563_v61, 0  ;;  %vm1520_vm12 = vcmp.eq.s32.totalorder (%p536_p12), %v2565_v62, 1  ;;  %vm1518_vm3 = vcmp.eq.s32.totalorder (%p536_p12), %v2565_v62, 0 }
 0x548   : > { %538 = sbr.rel (!%p536_p12) target bundleno = 447 (0x1bf), region = 117  ;;  %v1398_v39 = vld [vmem:[#allocation2 + $0x10] sm:$0xff] (%p536_p12)  ;;  %v1400_v40 = vld [vmem:[#allocation2 + $0x60] sm:$0xff] (%p536_p12)  ;;  %v1401_v42 = vld [vmem:[#allocation2 + $0x28] sm:$0xff] (%p536_p12) }
 0x549   : > { %v1402_v38 = vld [vmem:[#allocation2 + $0x40] sm:$0xff] (%p536_p12)  ;;  %v1403_v49 = vld [vmem:[#allocation2 + $0x78] sm:$0xff] (%p536_p12)  ;;  %v1405_v14 = vld [vmem:[#allocation2 + $0x88] sm:$0xff] (%p536_p12) }
 0x54a   : > { %v1406_v2 = vld [vmem:[#allocation2 + $0x90] sm:$0xff] (%p536_p12)  ;;  %v1407_v43 = vld [vmem:[#allocation2 + $0x18] sm:$0xff] (%p536_p12)  ;;  %v1422_v57 = vmul.f32 (%p536_p12), %v1405_v14, %v1396_v18  ;;  %v1412_v6 = vld [vmem:[#allocation2 + $0xa0] sm:$0xff] (%p536_p12) }
 0x54b   : > { %v1408_v48 = vld [vmem:[#allocation2 + $0x98] sm:$0xff] (%p536_p12)  ;;  %v1410_v60 = vld [vmem:[#allocation2 + $0x50] sm:$0xff] (%p536_p12)  ;;  %v1423_v54 = vmul.f32 (%p536_p12), %v1406_v2, %v1397_v19  ;;  %v1424_v56 = vmul.f32 (%p536_p12), %v1407_v43, %v1398_v39  ;;  %v1414_v20 = vld [vmem:[#allocation2 + $0xa8] sm:$0xff] (%p536_p12)  ;;  %v1429_v28 = vmul.f32 (%p536_p12), %v1412_v6, %v1403_v49 }
 0x54c   : > { %v1409_v16 = vld [vmem:[#allocation2 + $0x38] sm:$0xff] (%p536_p12)  ;;  %v1411_v9 = vld [vmem:[#allocation2 + $0x70] sm:$0xff] (%p536_p12)  ;;  %v1425_v63 = vmul.f32 (%p536_p12), %v1408_v48, %v1399_v12  ;;  %v1415_v21 = vld [vmem:[#allocation2 + $0x68] sm:$0xff] (%p536_p12)  ;;  %v1427_v23 = vmul.f32 (%p536_p12), %v1410_v60, %v1401_v42  ;;  %v1448_v31 = vmul.f32 (%p536_p12), %v1414_v20, %v1396_v18 }
 0x54d   : > { %v1426_v22 = vmul.f32 %v1409_v16, %v1400_v40  ;;  %v1428_v24 = vmul.f32 %v1411_v9, %v1402_v38  ;;  %v1416_v25 = vld [vmem:[#allocation2 + $0x30] sm:$0xff]  ;;  %v1417_v26 = vld [vmem:[#allocation2 + $0x58] sm:$0xff]  ;;  %v1418_v27 = vld [vmem:[#allocation2 + $0x80] sm:$0xff]  ;;  %v1430_v29 = vadd.f32 %v1424_v56, %v1422_v57  ;;  %v1449_v35 = vmul.f32 %v1415_v21, %v1397_v19 }
 0x54e   : > { %v1439_v30 = vadd.f32 %v1425_v63, %v1423_v54  ;;  %v1419_v32 = vld [vmem:[#allocation2 + $0xb8] sm:$0xff]  ;;  %v1420_v33 = vld [vmem:[#allocation2 + $0x20] sm:$0xff]  ;;  %v1421_v34 = vld [vmem:[#allocation2 + $0x8] sm:$0xff]  ;;  %v1450_v36 = vmul.f32 %v1416_v25, %v1398_v39  ;;  %v1451_v37 = vmul.f32 %v1417_v26, %v1399_v12  ;;  %v1452_v44 = vmul.f32 %v1418_v27, %v1400_v40 }
 0x54f   : > { %v1431_v45 = vadd.f32 %v1430_v29, %v1426_v22  ;;  %v1453_v47 = vmul.f32 %v1419_v32, %v1401_v42  ;;  %v1454_v50 = vmul.f32 %v1420_v33, %v1402_v38  ;;  %v1455_v51 = vmul.f32 %v1421_v34, %v1403_v49  ;;  %vm1521_vm4 = vmand %vm1517_vm2, %vm1520_vm12 }
 0x550   : > { %v1440_v46 = vadd.f32 %v1439_v30, %v1427_v23  ;;  %v1456_v52 = vadd.f32 %v1450_v36, %v1448_v31  ;;  %v1465_v53 = vadd.f32 %v1451_v37, %v1449_v35  ;;  %v1480_v9 = vadd.s32 128, %v2565_v62  ;;  %vm1519_vm6 = vmand %vm1517_vm2, %vm1518_vm3 }
 0x551   : > { %v1432_v58 = vadd.f32 %v1431_v45, %v1428_v24  ;;  %v1481_v63 = vstv %s4322_s11 }
 0x552   : > { %v1441_v59 = vadd.f32 %v1440_v46, %v1429_v28  ;;  %v1457_v1 = vadd.f32 %v1456_v52, %v1452_v44  ;;  %v1466_v3 = vadd.f32 %v1465_v53, %v1453_v47  ;;  %vm1482_vm5 = vcmp.lt.s32.totalorder %v2565_v62, %v1481_v63 }
 0x553   : > { %v1433_v4 = vrot.slane %v1432_v58, 4  ;;  %vm1483_vm14 = vcmp.lt.s32.totalorder %v1480_v9, %v1481_v63  ;;  %v1500_v28 = vstv %s1499_s13 }
 0x554   : > { %v1442_v5 = vrot.slane %v1441_v59, 4  ;;  %v1458_v55 = vadd.f32 %v1457_v1, %v1454_v50  ;;  %v1467_v41 = vadd.f32 %v1466_v3, %v1455_v51  ;;  %2186 = vrcp.f32 %v1500_v28 }
 0x555   : > { %v1434_v7 = vadd.f32 %v1433_v4, %v1432_v58  ;;  %vm1506_vm15 = vweird.f32 %v1500_v28  ;;  %v1512_v36 = vand.u32 2147483648, %v1500_v28  ;;  %v1510_v44 = vand.u32 2147483647, %v1500_v28 }
 0x556   : > { %v1443_v8 = vadd.f32 %v1442_v5, %v1441_v59  ;;  %v1459_v10 = vrot.slane %v1458_v55, 4  ;;  %v1468_v11 = vrot.slane %v1467_v41, 4  ;;  %v1522_v58 = vsel %vm1521_vm4, 1.0, %v2400_v0 }
 0x557   : > { %v1435_v15 = vrot.slane %v1434_v7, 2  ;;  %v1513_v47 = vor.u32 1.1754944e-38, %v1512_v36 }
 0x558   : > { %v1444_v17 = vrot.slane %v1443_v8, 2  ;;  %v1460_v13 = vadd.f32 %v1459_v10, %v1458_v55  ;;  %v1469_v18 = vadd.f32 %v1468_v11, %v1467_v41 }
 0x559   : > { %v1436_v19 = vadd.f32 %v1435_v15, %v1434_v7 }
 0x55a   : > { %v1445_v39 = vadd.f32 %v1444_v17, %v1443_v8  ;;  %v1461_v12 = vrot.slane %v1460_v13, 2  ;;  %v1470_v40 = vrot.slane %v1469_v18, 2  ;;  %v2187_v29 = vpop.eup %2186 }
 0x55b   : > { %v1437_v42 = vrot.slane %v1436_v19, 1  ;;  %v1502_v30 = vmul.f32 %v2187_v29, %v1500_v28  ;;  %vm1507_vm1 = vweird.f32 %v2187_v29 }
 0x55c   : > { %v1446_v38 = vrot.slane %v1445_v39, 1  ;;  %v1462_v49 = vadd.f32 %v1461_v12, %v1460_v13  ;;  %v1471_v14 = vadd.f32 %v1470_v40, %v1469_v18  ;;  %vm1508_vm0 = vmor %vm1506_vm15, %vm1507_vm1 }
 0x55d   : > { %v1438_v2 = vadd.f32 %v1437_v42, %v1436_v19  ;;  %v1503_v31 = vsub.f32 1.0, %v1502_v30 }
 0x55e   : > { %v1447_v43 = vadd.f32 %v1446_v38, %v1445_v39  ;;  %v1463_v48 = vrot.slane %v1462_v49, 1  ;;  %v1472_v57 = vrot.slane %v1471_v14, 1 }
 0x55f   : > { %v1504_v33 = vmul.f32 %v2187_v29, %v1503_v31 }
 0x560   : > { %v1464_v16 = vadd.f32 %v1463_v48, %v1462_v49  ;;  %v1473_v60 = vadd.f32 %v1472_v57, %v1471_v14 }
 0x561   : > { %v1505_v37 = vadd.f32 %v2187_v29, %v1504_v33 }
 0x562   : > { %v1474_v54 = vsub.f32 %v1464_v16, %v1438_v2  ;;  %v1475_v56 = vsub.f32 %v1473_v60, %v1447_v43 }
 0x563   : > { %v1509_v50 = vsel %vm1508_vm0, %v2187_v29, %v1505_v37 }
 0x564   : > { %v1476_v6 = vadd.f32 0.6, %v1474_v54  ;;  %v1477_v20 = vadd.f32 0.6, %v1475_v56 }
 0x566   : > { %v1478_v21 = vmax.f32 %v1476_v6, 0.0  ;;  %v1479_v22 = vmax.f32 %v1477_v20, 0.0 }
 0x568   : > { %v1484_v23 = vsel %vm1482_vm5, %v1478_v21, 0.0  ;;  %v1485_v24 = vsel %vm1483_vm14, %v1479_v22, 0.0 }
 0x569   : > { %v1487_v25 = vsel %vm549_vm9, %v1484_v23, 0.0  ;;  %v1488_v26 = vsel %vm549_vm9, %v1485_v24, 0.0  ;;  %vm1511_vm9 = vcmp.eq.f32.partialorder %v1510_v44, 8.507059e+37 }
 0x56a   : > { %v1489_v27 = vadd.f32 %v1488_v26, %v1487_v25  ;;  %v1514_v53 = vsel %vm1511_vm9, %v1513_v47, %v1509_v50 }
 0x56c   : > { %1490 = vadd.xlane.f32.xlu0 %v1489_v27 }
 0x5df   : > { %v1491_v32 = vpop.xlane.xlu0 %1490 }
 0x5e0   : > { %v1492_v34 = vrot.slane %v1491_v32, 4 }
 0x5e2   : > { %v1493_v35 = vadd.f32 %v1492_v34, %v1491_v32 }
 0x5e4   : > { %v1494_v45 = vrot.slane %v1493_v35, 2 }
 0x5e6   : > { %v1495_v46 = vadd.f32 %v1494_v45, %v1493_v35 }
 0x5e8   : > { %v1496_v51 = vrot.slane %v1495_v46, 1 }
 0x5ea   : > { %v1497_v52 = vadd.f32 %v1496_v51, %v1495_v46 }
 0x5ec   : > { %2057 = vpush %v1497_v52 }
 0x5ed   : > { %2059 = vpush %v1514_v53 }
 0x61d   : > { %s2058_s11 = spop %2057 }
 0x61e   : > { %s2060_s14 = spop %2059 }
 0x61f   : > { %s1516_s20 = smul.f32 %s2060_s14, %s2058_s11 }
 0x621   : > { %v1523_v59 = vstv %s1516_s20 }
 0x622   : > { %v1524_v1 = vsel %vm1519_vm6, %v1523_v59, %v1522_v58 }
 0x623   : > { %1525 = vst [vmem:[%s2557_s10] sm:$0xff] %v1524_v1 }
 0x624 PF: > { %s1931_s22 = sshll.u32 %s2453_s19, 3  ;;  %s1539_s5 = sshll.u32 %s2557_s10, 4  ;;  %s1540_s5 = int_to_ptr.vmem [resolvable:$true] %s1539_s5 }
 0x625   : > { %s1537_s29 = scalar_lea.hbm %s4137_s4, %s1931_s22  ;;  %s1527_s9 = scalar_lea.sflag [#allocation8], %s232_s7 }
 0x626   : > { %s1541_s6 = sshll.u32 %s1537_s29, 4  ;;  %s2298_s19 = scalar_lea.hbm %s4137_s4, 152  ;;  %s1542_s6 = int_to_ptr.hbm [resolvable:$true] %s1541_s6 }
 0x627   : > { %s2292_s27 = sshra.s32 %s1542_s6, 4  ;;  %s2293_s27 = int_to_ptr.hbm [resolvable:$true] %s2292_s27 }
 0x628   : > { %s2294_s30 = scalar_lea.hbm %s2293_s27, 8  ;;  %p2299_p2 = scmp.lt.s32.totalorder %s2293_s27, %s4137_s4 }
 0x629   : > { %p2295_p13 = scmp.ne.s32.totalorder %s2293_s27, %s2294_s30  ;;  %p2300_p3 = scmp.lt.s32.totalorder %s2298_s19, %s2294_s30 }
 0x62b   : > { %p2296_p0 = pnand %p2295_p13, %p2470_p5  ;;  %p2301_p4 = por %p2300_p3, %p2299_p2 }
 0x62d   : > { %p2297_p1 = pneg %p2296_p0 }
 0x62f   : > { %p2302_p7 = pnand %p2301_p4, %p2297_p1 }
 0x631   : > { %2305 = shalt.err (!%p2302_p7)
}
 0x632   : > { %2077 = dma.vmem_to_hbm [thread:$0]  (%p2470_p5), %s1540_s5, 128, %s1542_s6, %s1527_s9  }
 0x633 PF: > { %p2104_p8 = scmp.ge.s32.totalorder %s2372_s18, 2  ;;  %s1553_s7 = sand.u32 1, %s2360_s15  }
 0x634   : > { %s1554_s10 = scalar_lea.sflag [#allocation8], %s1553_s7 }
 0x635   : > { %p2093_p9 = pnand %p2104_p8, %p2474_p6 }
 0x637   : > { %p2094_p10 = pneg %p2093_p9 }
 0x639   : > { %2355 = dma.done.wait (%p2094_p10), %s1554_s10, 128  }
 0x63a   : > { %2357 = vsyncadd (%p2094_p10), %s1554_s10, 4294967168  ;;  %p18_p11 = scmp.ge.s32.totalorder %s2457_s21, 21   ;;  %s4313_s15 = smov %s2364_s16 }
 0x63b   : > { %s4314_s16 = smov %s2368_s17  ;;  %s4315_s17 = smov %s2468_s24 }
 0x63c   : > { %s4316_s18 = smov %s2457_s21  ;;  %20 = sbr.rel (!%p18_p11) target bundleno = 7 (0x7), region = 128 }
 0x641   :  { %1560 = vsyncpa [#allocation7], 1 }
 0x642   :  { %1562 = vsyncpa [#allocation7 + $0x1], 1 }
 0x643   :  { %1563 = vsyncpa [#allocation14], 1 }
 0x644   :  { %1564 = vsyncpa [#allocation8], 1 }
 0x645   :  { %1566 = vsyncpa [#allocation8 + $0x1], 1 }
 0x646   :  { %1567 = vsyncpa [#allocation9], 1 }
 0x647   :  { %1569 = vsyncpa [#allocation9 + $0x1], 1 }
 0x648   :  { %1570 = vsyncpa [#allocation11], 1 }

</bundles_post_ra>
